<compile_context>
chip_gen: v6e
topology: v6e:2x2x1
jax: 0.10.0
libtpu: 0.0.40
codegen_flags: <defaults>
</compile_context>

<pallas_src>
import functools
import math

import jax
import jax.numpy as jnp
from jax.experimental import pallas as pl
from jax.experimental.pallas import tpu as pltpu


# ----------------------------- Pallas kernel ------------------------------- #

def _res_dis_block_kernel(*refs, H, W, L, B, has_sc):
    """Fused SNGAN ResDisBlock body for B samples.

    The (H, W) plane is flattened with row stride Wp = W + 2; the two extra
    columns double as the horizontal zero padding of the 3x3 convs.  x_ref
    holds the zero-padded image ((H+3)*Wp rows, bf16).  Each 3x3 conv = 9
    shift-and-matmul steps: a (Q, Cin) bf16 slice at sublane offset
    ky*Wp + kx is matmul'd on the MXU against the (Cin, Cout) tap weight with
    f32 accumulation.  conv1 -> conv2 re-padding is staged in the bf16 VMEM
    scratch `h1_ref` (L zero rows at head/tail act as the vertical padding),
    so there is no im2col and no HBM round trip between the two convs.  The
    1x1-conv (or identity) shortcut and the residual add are fused in.
    """
    if has_sc:
        (x_ref, w1_ref, b1_ref, w2_ref, b2_ref, wsc_ref, bsc_ref,
         o_ref, h1_ref, x1_ref) = refs
    else:
        (x_ref, w1_ref, b1_ref, w2_ref, b2_ref,
         o_ref, h1_ref, x1_ref) = refs

    Wp = W + 2
    Q = H * Wp
    Cmid = w1_ref.shape[2]
    Cout = w2_ref.shape[2]

    # Zero only the L-row vertical-pad bands of the conv1->conv2 staging
    # scratch (not the whole scratch): the middle Q rows are fully overwritten
    # for every sample below.  Re-zeroed each grid step (cheap: 2*L bf16 rows)
    # so this stays correct when the parallel grid axis is split across cores.
    zero_band = jnp.zeros((L, Cout), h1_ref.dtype)
    h1_ref[pl.ds(0, L), :] = zero_band
    h1_ref[pl.ds(L + Q, L), :] = zero_band

    # Wp-stride pad-column mask, generated in-kernel (no DMA'd mask input).
    colmask = (jax.lax.broadcasted_iota(jnp.int32, (Q, 1), 0) % Wp) < W

    for b in range(B):
        # ---- hoist ReLU (and the bf16 operand layout) out of the tap loop ----
        x1_ref[...] = jnp.maximum(x_ref[b], 0).astype(x1_ref.dtype)

        # ---- residual conv1: 3x3 (pad=1) over relu(x), 9 shift-and-matmuls ----
        acc1 = jnp.zeros((Q, Cmid), jnp.float32)
        for ky in range(3):
            for kx in range(3):
                patch = x1_ref[pl.ds(ky * Wp + kx, Q), :]
                acc1 = acc1 + jnp.dot(patch, w1_ref[ky * 3 + kx],
                                      preferred_element_type=jnp.float32)
        h1 = jnp.maximum(acc1 + b1_ref[...], 0.0)
        # Zero the Wp-stride pad columns: they become conv2's horizontal zero
        # padding (their conv1 values wrap across rows and are garbage).
        h1 = jnp.where(colmask, h1, 0.0)
        h1_ref[pl.ds(L, Q), :] = h1.astype(h1_ref.dtype)

        # ---- residual conv2: 3x3 (pad=1) over relu(conv1) ----
        acc2 = jnp.zeros((Q, Cout), jnp.float32)
        for ky in range(3):
            for kx in range(3):
                off = L + (ky - 1) * Wp + (kx - 1)
                patch = h1_ref[pl.ds(off, Q), :]
                acc2 = acc2 + jnp.dot(patch, w2_ref[ky * 3 + kx],
                                      preferred_element_type=jnp.float32)
        res = acc2 + b2_ref[...]

        # ---- shortcut (+ fused residual add) ----
        xc = x_ref[b, pl.ds(Wp + 1, Q), :]
        if has_sc:
            sc = jnp.dot(xc, wsc_ref[...],
                         preferred_element_type=jnp.float32) + bsc_ref[...]
        else:
            # identity shortcut: no matmul, no eye matrix (bf16 round of x only).
            sc = xc.astype(jnp.float32)

        # TODO(synk): for very small Cout the (Q, Cout) output store is lane-
        # masked (Cout of 128 lanes); a lane-dense reshape of the output slab
        # would help store-bound cases (esp. v5e) but needs a relayout.
        o_ref[b, :, :] = (res + sc).astype(o_ref.dtype)


# -------------------------- parameters / weight prep ----------------------- #

def _unit_vector(key, n):
    u = jax.random.normal(key, (n,), jnp.float32)
    return u / (jnp.linalg.norm(u) + 1e-12)


def _xavier_uniform(key, shape, gain):
    fan_out = shape[0] * shape[2] * shape[3]
    fan_in = shape[1] * shape[2] * shape[3]
    bound = gain * math.sqrt(6.0 / (fan_in + fan_out))
    return jax.random.uniform(key, shape, jnp.float32, -bound, bound)


def _spectral_normalize(w, u, eps=1e-12):
    """One power iteration + sigma division (torch.nn.utils.spectral_norm forward)."""
    wm = w.reshape(w.shape[0], -1)
    v = wm.T @ u
    v = v / (jnp.linalg.norm(v) + eps)
    u2 = wm @ v
    u2 = u2 / (jnp.linalg.norm(u2) + eps)
    sigma = jnp.dot(u2, wm @ v)
    return w / sigma


def init_res_dis_block(key, in_channels, out_channels, down=False):
    ks = jax.random.split(key, 6)
    p = {
        "c1_w": _xavier_uniform(ks[0], (out_channels, in_channels, 3, 3), math.sqrt(2.0)),
        "c1_b": jnp.zeros((out_channels,), jnp.float32),
        "c1_u": _unit_vector(ks[1], out_channels),
        "c2_w": _xavier_uniform(ks[2], (out_channels, out_channels, 3, 3), math.sqrt(2.0)),
        "c2_b": jnp.zeros((out_channels,), jnp.float32),
        "c2_u": _unit_vector(ks[3], out_channels),
    }
    if in_channels != out_channels or down:
        p["sc_w"] = _xavier_uniform(ks[4], (out_channels, in_channels, 1, 1), 1.0)
        p["sc_b"] = jnp.zeros((out_channels,), jnp.float32)
        p["sc_u"] = _unit_vector(ks[5], out_channels)
    return p


# --------------------------------- wrapper --------------------------------- #

def _pick_batch_block(N, P1, Q, Ci, Co, L):
    """Largest batch block under a ~24 MiB VMEM budget (headroom for v7x's
    64 MiB) while keeping >= 2 grid steps (v7x has 2 TensorCores, and the
    software pipeline needs something to overlap)."""
    budget = 24 * 1024 * 1024
    best = 1
    for d in range(1, N + 1):
        if N % d:
            continue
        foot = (2 * d * P1 * Ci * 2          # double-buffered bf16 input block
                + 2 * d * Q * Co * 4         # double-buffered f32 output block
                + (Q + 2 * L) * Co * 2       # h1 staging scratch (bf16)
                + P1 * Ci * 2)               # relu(x) scratch (bf16)
        if foot > budget:
            continue
        if N // d >= 2 or N == 1:
            best = d
    return best


@functools.partial(jax.jit, static_argnames=("down",))
def res_dis_block_forward(params, x, *, down=False):
    N, Ci, H, W = x.shape
    Co = params["c1_w"].shape[0]
    has_sc = "sc_w" in params
    Wp = W + 2
    Q = H * Wp
    P1 = (H + 3) * Wp
    L = ((W + 3 + 7) // 8) * 8          # aligned vertical-pad depth for the scratch

    # --- spectral normalization (tiny, weight-side, plain JAX) ---
    w1 = _spectral_normalize(params["c1_w"], params["c1_u"])
    w2 = _spectral_normalize(params["c2_w"], params["c2_u"])

    # --- layout prep: NCHW -> NHWC, zero-pad H by (1,2) / W by (1,1), flatten.
    # Activations are fed to the kernel in bf16: both matmul paths consume bf16
    # anyway, and this halves the dominant HBM->VMEM input DMA.  (The identity
    # shortcut therefore adds bf16(x) rather than exact f32 x — a ~1e-3 relative
    # deviation, well inside tolerance.)
    xh = jnp.transpose(x, (0, 2, 3, 1)).astype(jnp.bfloat16)
    xp = jnp.pad(xh, ((0, 0), (1, 2), (1, 1), (0, 0)))
    xflat = xp.reshape(N, P1, Ci)

    # per-tap weights in (9, Cin, Cout) layout; bf16 MXU operands, f32 accumulation
    w1k = jnp.transpose(w1, (2, 3, 1, 0)).reshape(9, Ci, Co).astype(jnp.bfloat16)
    w2k = jnp.transpose(w2, (2, 3, 1, 0)).reshape(9, Co, Co).astype(jnp.bfloat16)
    b1 = params["c1_b"].reshape(1, Co).astype(jnp.float32)
    b2 = params["c2_b"].reshape(1, Co).astype(jnp.float32)

    B = _pick_batch_block(N, P1, Q, Ci, Co, L)
    G = N // B

    inputs = [xflat, w1k, b1, w2k, b2]
    in_specs = [
        pl.BlockSpec((B, P1, Ci), lambda n: (n, 0, 0)),
        pl.BlockSpec((9, Ci, Co), lambda n: (0, 0, 0)),
        pl.BlockSpec((1, Co), lambda n: (0, 0)),
        pl.BlockSpec((9, Co, Co), lambda n: (0, 0, 0)),
        pl.BlockSpec((1, Co), lambda n: (0, 0)),
    ]
    if has_sc:
        wsck = (_spectral_normalize(params["sc_w"], params["sc_u"])
                .reshape(Co, Ci).T.astype(jnp.bfloat16))
        bscr = params["sc_b"].reshape(1, Co).astype(jnp.float32)
        inputs += [wsck, bscr]
        in_specs += [pl.BlockSpec((Ci, Co), lambda n: (0, 0)),
                     pl.BlockSpec((1, Co), lambda n: (0, 0))]

    mm = 9 * Ci * Co + 9 * Co * Co + (Ci * Co if has_sc else 0)
    flops = 2 * N * Q * mm
    bytes_accessed = N * P1 * Ci * 2 + N * Q * Co * 4 + mm * 2 + 3 * Co * 4

    # Real VMEM footprint with headroom, capped below v7x's 64 MiB physical VMEM.
    foot = (2 * B * P1 * Ci * 2 + 2 * B * Q * Co * 4
            + (Q + 2 * L) * Co * 2 + P1 * Ci * 2 + 2 * mm * 2 + 6 * Co * 4)
    vmem_limit = min(48 * 1024 * 1024, max(16 * 1024 * 1024, 4 * foot))

    kernel = functools.partial(_res_dis_block_kernel,
                               H=H, W=W, L=L, B=B, has_sc=has_sc)

    # TODO(synk): for production-sized images (e.g. 128x128, 128-512 ch) add a
    # row-band grid axis with a 1-row halo so a full image per sample is never
    # resident and the f32 accumulators stay within the 64-vreg file.
    y_flat = pl.pallas_call(
        kernel,
        out_shape=jax.ShapeDtypeStruct((N, Q, Co), jnp.float32),
        grid=(G,),
        in_specs=in_specs,
        out_specs=pl.BlockSpec((B, Q, Co), lambda n: (n, 0, 0)),
        scratch_shapes=[pltpu.VMEM((Q + 2 * L, Co), jnp.bfloat16),   # h1 staging
                        pltpu.VMEM((P1, Ci), jnp.bfloat16)],         # relu(x)
        compiler_params=pltpu.CompilerParams(
            dimension_semantics=("parallel",),
            vmem_limit_bytes=vmem_limit,
        ),
        cost_estimate=pl.CostEstimate(
            flops=flops, transcendentals=0, bytes_accessed=bytes_accessed),
    )(*inputs)

    # drop the Wp-stride pad columns, restore NCHW
    y = y_flat.reshape(N, H, Wp, Co)[:, :, :W, :]
    y = jnp.transpose(y, (0, 3, 1, 2))
    if down:
        # AvgPool2d(2) is linear, so pooling the fused (residual + shortcut) sum
        # equals pooling each branch separately as the PyTorch module does.
        # TODO(synk): pooling is a cheap plain-JAX reshape-mean, not a Pallas op.
        y = y.reshape(N, Co, H // 2, 2, W // 2, 2).mean(axis=(3, 5))
    return y


# ---------------------------- pure-JAX reference ---------------------------- #

def _conv2d_ref(x, w, b, padding):
    y = jax.lax.conv_general_dilated(
        x, w, window_strides=(1, 1), padding=padding,
        dimension_numbers=("NCHW", "OIHW", "NCHW"))
    return y + b[None, :, None, None]


def _avg_pool2_ref(x):
    n, c, h, w = x.shape
    return x.reshape(n, c, h // 2, 2, w // 2, 2).mean(axis=(3, 5))


def _reference_forward(params, x, *, down=False):
    w1 = _spectral_normalize(params["c1_w"], params["c1_u"])
    w2 = _spectral_normalize(params["c2_w"], params["c2_u"])
    r = _conv2d_ref(jax.nn.relu(x), w1, params["c1_b"], ((1, 1), (1, 1)))
    r = _conv2d_ref(jax.nn.relu(r), w2, params["c2_b"], ((1, 1), (1, 1)))
    if "sc_w" in params:
        wsc = _spectral_normalize(params["sc_w"], params["sc_u"])
        s = _conv2d_ref(x, wsc, params["sc_b"], ((0, 0), (0, 0)))
    else:
        s = x
    if down:
        r, s = _avg_pool2_ref(r), _avg_pool2_ref(s)
    return r + s


# ----------------------------------- main ----------------------------------- #

if __name__ == "__main__":
    key = jax.random.PRNGKey(0)
    kp1, kp2, kp3, kx1, kx2, kx3 = jax.random.split(key, 6)

    N, H, W = 2, 16, 16

    # Config A: channel expansion, no downsampling (1x1-conv shortcut).
    paramsA = init_res_dis_block(kp1, 8, 16, down=False)
    xA = jax.random.normal(kx1, (N, 8, H, W), jnp.float32)
    yA = jax.block_until_ready(res_dis_block_forward(paramsA, xA, down=False))
    refA = _reference_forward(paramsA, xA, down=False)
    assert yA.shape == (N, 16, H, W) and yA.dtype == jnp.float32
    errA = float(jnp.max(jnp.abs(yA - refA)) / (jnp.max(jnp.abs(refA)) + 1e-6))

    # Config B: same channels, with downsampling (1x1-conv shortcut + AvgPool2d(2)).
    paramsB = init_res_dis_block(kp2, 16, 16, down=True)
    xB = jax.random.normal(kx2, (N, 16, H, W), jnp.float32)
    yB = jax.block_until_ready(res_dis_block_forward(paramsB, xB, down=True))
    refB = _reference_forward(paramsB, xB, down=True)
    assert yB.shape == (N, 16, H // 2, W // 2) and yB.dtype == jnp.float32
    errB = float(jnp.max(jnp.abs(yB - refB)) / (jnp.max(jnp.abs(refB)) + 1e-6))

    # Config C: same channels, no downsampling -> identity shortcut (no 1x1 conv).
    paramsC = init_res_dis_block(kp3, 16, 16, down=False)
    xC = jax.random.normal(kx3, (N, 16, H, W), jnp.float32)
    yC = jax.block_until_ready(res_dis_block_forward(paramsC, xC, down=False))
    refC = _reference_forward(paramsC, xC, down=False)
    assert yC.shape == (N, 16, H, W) and yC.dtype == jnp.float32
    errC = float(jnp.max(jnp.abs(yC - refC)) / (jnp.max(jnp.abs(refC)) + 1e-6))

    assert bool(jnp.all(jnp.isfinite(yA)))
    assert bool(jnp.all(jnp.isfinite(yB)))
    assert bool(jnp.all(jnp.isfinite(yC)))
    assert errA < 5e-2 and errB < 5e-2 and errC < 5e-2, (errA, errB, errC)
    print("KERNEL_OK")
</pallas_src>

<mosaic_0001>
module attributes {stable_mosaic.version = 11 : i64} {
  func.func @_res_dis_block_kernel(%arg0: i32, %arg1: memref<1x342x8xbf16, #tpu.memory_space<vmem>>, %arg2: memref<9x8x16xbf16, #tpu.memory_space<vmem>>, %arg3: memref<1x16xf32, #tpu.memory_space<vmem>>, %arg4: memref<9x16x16xbf16, #tpu.memory_space<vmem>>, %arg5: memref<1x16xf32, #tpu.memory_space<vmem>>, %arg6: memref<8x16xbf16, #tpu.memory_space<vmem>>, %arg7: memref<1x16xf32, #tpu.memory_space<vmem>>, %arg8: memref<1x288x16xf32, #tpu.memory_space<vmem>>, %arg9: memref<336x16xbf16, #tpu.memory_space<vmem>>, %arg10: memref<342x8xbf16, #tpu.memory_space<vmem>>) attributes {dimension_semantics = [#tpu.dimension_semantics<parallel>], iteration_bounds = array<i64: 2>, scalar_prefetch = 0 : i64, scratch_operands = 2 : i64, tpu.core_type = #tpu.core_type<tc>, window_params = [{transform_indices = @transform_0, window_bounds = array<i64: 1, 342, 8>}, {pipeline_mode = #tpu.pipeline_mode<synchronous>, transform_indices = @transform_1, window_bounds = array<i64: 9, 8, 16>}, {pipeline_mode = #tpu.pipeline_mode<synchronous>, transform_indices = @transform_2, window_bounds = array<i64: 1, 16>}, {pipeline_mode = #tpu.pipeline_mode<synchronous>, transform_indices = @transform_3, window_bounds = array<i64: 9, 16, 16>}, {pipeline_mode = #tpu.pipeline_mode<synchronous>, transform_indices = @transform_4, window_bounds = array<i64: 1, 16>}, {pipeline_mode = #tpu.pipeline_mode<synchronous>, transform_indices = @transform_5, window_bounds = array<i64: 8, 16>}, {pipeline_mode = #tpu.pipeline_mode<synchronous>, transform_indices = @transform_6, window_bounds = array<i64: 1, 16>}, {transform_indices = @transform_7, window_bounds = array<i64: 1, 288, 16>}]} {
    %cst = arith.constant 0.000000e+00 : bf16
    %0 = vector.broadcast %cst : bf16 to vector<24x16xbf16>
    %c0 = arith.constant 0 : index
    %c0_0 = arith.constant 0 : index
    %1 = vector.load %arg9[%c0, %c0_0] : memref<336x16xbf16, #tpu.memory_space<vmem>>, vector<24x16xbf16>
    tpu.vector_store %arg9[%c0, %c0_0], %0 {strides = array<i32>} : memref<336x16xbf16, #tpu.memory_space<vmem>>, vector<24x16xbf16>,
    %c312 = arith.constant 312 : index
    %c0_1 = arith.constant 0 : index
    %2 = vector.load %arg9[%c312, %c0_1] : memref<336x16xbf16, #tpu.memory_space<vmem>>, vector<24x16xbf16>
    tpu.vector_store %arg9[%c312, %c0_1], %0 {strides = array<i32>} : memref<336x16xbf16, #tpu.memory_space<vmem>>, vector<24x16xbf16>,
    %3 = tpu.iota {dimensions = array<i32: 0>} : vector<288x1xi32>
    %c18_i32 = arith.constant 18 : i32
    %c0_i32 = arith.constant 0 : i32
    %4 = arith.cmpi eq, %c18_i32, %c0_i32 : i32
    %c1_i32 = arith.constant 1 : i32
    %5 = arith.select %4, %c1_i32, %c18_i32 : i32
    %6 = vector.broadcast %5 : i32 to vector<288x1xi32>
    %7 = arith.remsi %3, %6 : vector<288x1xi32>
    %c0_i32_2 = arith.constant 0 : i32
    %8 = vector.broadcast %c0_i32_2 : i32 to vector<288x1xi32>
    %9 = arith.cmpi ne, %7, %8 : vector<288x1xi32>
    %c0_i32_3 = arith.constant 0 : i32
    %10 = vector.broadcast %c0_i32_3 : i32 to vector<288x1xi32>
    %11 = arith.cmpi slt, %7, %10 : vector<288x1xi32>
    %c0_i32_4 = arith.constant 0 : i32
    %12 = arith.cmpi slt, %5, %c0_i32_4 : i32
    %13 = vector.broadcast %12 : i1 to vector<288x1xi1>
    %14 = vector.broadcast %13 : vector<288x1xi1> to vector<288x1xi1>
    %15 = arith.xori %11, %14 : vector<288x1xi1>
    %16 = arith.andi %15, %9 : vector<288x1xi1>
    %17 = vector.broadcast %5 : i32 to vector<288x1xi32>
    %18 = arith.addi %7, %17 : vector<288x1xi32>
    %19 = arith.select %16, %18, %7 : vector<288x1xi1>, vector<288x1xi32>
    %c16_i32 = arith.constant 16 : i32
    %20 = vector.broadcast %c16_i32 : i32 to vector<288x1xi32>
    %21 = arith.cmpi slt, %19, %20 : vector<288x1xi32>
    %c0_5 = arith.constant 0 : index
    %c0_6 = arith.constant 0 : index
    %c0_7 = arith.constant 0 : index
    %22 = vector.load %arg1[%c0_5, %c0_6, %c0_7] : memref<1x342x8xbf16, #tpu.memory_space<vmem>>, vector<1x342x8xbf16>
    %23 = vector.shape_cast %22 : vector<1x342x8xbf16> to vector<342x8xbf16>
    %cst_8 = arith.constant 0.000000e+00 : bf16
    %24 = vector.broadcast %cst_8 : bf16 to vector<342x8xbf16>
    %25 = arith.maximumf %23, %24 : vector<342x8xbf16>
    %c0_9 = arith.constant 0 : index
    %c0_10 = arith.constant 0 : index
    %26 = vector.load %arg10[%c0_9, %c0_10] : memref<342x8xbf16, #tpu.memory_space<vmem>>, vector<342x8xbf16>
    tpu.vector_store %arg10[%c0_9, %c0_10], %25 {strides = array<i32>} : memref<342x8xbf16, #tpu.memory_space<vmem>>, vector<342x8xbf16>,
    %cst_11 = arith.constant 0.000000e+00 : f32
    %27 = vector.broadcast %cst_11 : f32 to vector<288x16xf32>
    %c0_12 = arith.constant 0 : index
    %c0_13 = arith.constant 0 : index
    %28 = vector.load %arg10[%c0_12, %c0_13] : memref<342x8xbf16, #tpu.memory_space<vmem>>, vector<288x8xbf16>
    %c0_14 = arith.constant 0 : index
    %c0_15 = arith.constant 0 : index
    %c0_16 = arith.constant 0 : index
    %29 = vector.load %arg2[%c0_14, %c0_15, %c0_16] : memref<9x8x16xbf16, #tpu.memory_space<vmem>>, vector<1x8x16xbf16>
    %30 = vector.shape_cast %29 : vector<1x8x16xbf16> to vector<8x16xbf16>
    %cst_17 = arith.constant dense<0.000000e+00> : vector<288x16xf32>
    %31 = tpu.matmul %28, %30, %cst_17 {dimension_numbers = #tpu.dot_dimension_numbers<[1], [0], [0], [1], [0, 0, 1, 1], [], []>} : vector<288x8xbf16>, vector<8x16xbf16>, vector<288x16xf32> -> vector<288x16xf32>
    %32 = arith.addf %27, %31 : vector<288x16xf32>
    %c1 = arith.constant 1 : index
    %c0_18 = arith.constant 0 : index
    %33 = vector.load %arg10[%c1, %c0_18] : memref<342x8xbf16, #tpu.memory_space<vmem>>, vector<288x8xbf16>
    %c1_19 = arith.constant 1 : index
    %c0_20 = arith.constant 0 : index
    %c0_21 = arith.constant 0 : index
    %34 = vector.load %arg2[%c1_19, %c0_20, %c0_21] : memref<9x8x16xbf16, #tpu.memory_space<vmem>>, vector<1x8x16xbf16>
    %35 = vector.shape_cast %34 : vector<1x8x16xbf16> to vector<8x16xbf16>
    %cst_22 = arith.constant dense<0.000000e+00> : vector<288x16xf32>
    %36 = tpu.matmul %33, %35, %cst_22 {dimension_numbers = #tpu.dot_dimension_numbers<[1], [0], [0], [1], [0, 0, 1, 1], [], []>} : vector<288x8xbf16>, vector<8x16xbf16>, vector<288x16xf32> -> vector<288x16xf32>
    %37 = arith.addf %32, %36 : vector<288x16xf32>
    %c2 = arith.constant 2 : index
    %c0_23 = arith.constant 0 : index
    %38 = vector.load %arg10[%c2, %c0_23] : memref<342x8xbf16, #tpu.memory_space<vmem>>, vector<288x8xbf16>
    %c2_24 = arith.constant 2 : index
    %c0_25 = arith.constant 0 : index
    %c0_26 = arith.constant 0 : index
    %39 = vector.load %arg2[%c2_24, %c0_25, %c0_26] : memref<9x8x16xbf16, #tpu.memory_space<vmem>>, vector<1x8x16xbf16>
    %40 = vector.shape_cast %39 : vector<1x8x16xbf16> to vector<8x16xbf16>
    %cst_27 = arith.constant dense<0.000000e+00> : vector<288x16xf32>
    %41 = tpu.matmul %38, %40, %cst_27 {dimension_numbers = #tpu.dot_dimension_numbers<[1], [0], [0], [1], [0, 0, 1, 1], [], []>} : vector<288x8xbf16>, vector<8x16xbf16>, vector<288x16xf32> -> vector<288x16xf32>
    %42 = arith.addf %37, %41 : vector<288x16xf32>
    %c18 = arith.constant 18 : index
    %c0_28 = arith.constant 0 : index
    %43 = vector.load %arg10[%c18, %c0_28] : memref<342x8xbf16, #tpu.memory_space<vmem>>, vector<288x8xbf16>
    %c3 = arith.constant 3 : index
    %c0_29 = arith.constant 0 : index
    %c0_30 = arith.constant 0 : index
    %44 = vector.load %arg2[%c3, %c0_29, %c0_30] : memref<9x8x16xbf16, #tpu.memory_space<vmem>>, vector<1x8x16xbf16>
    %45 = vector.shape_cast %44 : vector<1x8x16xbf16> to vector<8x16xbf16>
    %cst_31 = arith.constant dense<0.000000e+00> : vector<288x16xf32>
    %46 = tpu.matmul %43, %45, %cst_31 {dimension_numbers = #tpu.dot_dimension_numbers<[1], [0], [0], [1], [0, 0, 1, 1], [], []>} : vector<288x8xbf16>, vector<8x16xbf16>, vector<288x16xf32> -> vector<288x16xf32>
    %47 = arith.addf %42, %46 : vector<288x16xf32>
    %c19 = arith.constant 19 : index
    %c0_32 = arith.constant 0 : index
    %48 = vector.load %arg10[%c19, %c0_32] : memref<342x8xbf16, #tpu.memory_space<vmem>>, vector<288x8xbf16>
    %c4 = arith.constant 4 : index
    %c0_33 = arith.constant 0 : index
    %c0_34 = arith.constant 0 : index
    %49 = vector.load %arg2[%c4, %c0_33, %c0_34] : memref<9x8x16xbf16, #tpu.memory_space<vmem>>, vector<1x8x16xbf16>
    %50 = vector.shape_cast %49 : vector<1x8x16xbf16> to vector<8x16xbf16>
    %cst_35 = arith.constant dense<0.000000e+00> : vector<288x16xf32>
    %51 = tpu.matmul %48, %50, %cst_35 {dimension_numbers = #tpu.dot_dimension_numbers<[1], [0], [0], [1], [0, 0, 1, 1], [], []>} : vector<288x8xbf16>, vector<8x16xbf16>, vector<288x16xf32> -> vector<288x16xf32>
    %52 = arith.addf %47, %51 : vector<288x16xf32>
    %c20 = arith.constant 20 : index
    %c0_36 = arith.constant 0 : index
    %53 = vector.load %arg10[%c20, %c0_36] : memref<342x8xbf16, #tpu.memory_space<vmem>>, vector<288x8xbf16>
    %c5 = arith.constant 5 : index
    %c0_37 = arith.constant 0 : index
    %c0_38 = arith.constant 0 : index
    %54 = vector.load %arg2[%c5, %c0_37, %c0_38] : memref<9x8x16xbf16, #tpu.memory_space<vmem>>, vector<1x8x16xbf16>
    %55 = vector.shape_cast %54 : vector<1x8x16xbf16> to vector<8x16xbf16>
    %cst_39 = arith.constant dense<0.000000e+00> : vector<288x16xf32>
    %56 = tpu.matmul %53, %55, %cst_39 {dimension_numbers = #tpu.dot_dimension_numbers<[1], [0], [0], [1], [0, 0, 1, 1], [], []>} : vector<288x8xbf16>, vector<8x16xbf16>, vector<288x16xf32> -> vector<288x16xf32>
    %57 = arith.addf %52, %56 : vector<288x16xf32>
    %c36 = arith.constant 36 : index
    %c0_40 = arith.constant 0 : index
    %58 = vector.load %arg10[%c36, %c0_40] : memref<342x8xbf16, #tpu.memory_space<vmem>>, vector<288x8xbf16>
    %c6 = arith.constant 6 : index
    %c0_41 = arith.constant 0 : index
    %c0_42 = arith.constant 0 : index
    %59 = vector.load %arg2[%c6, %c0_41, %c0_42] : memref<9x8x16xbf16, #tpu.memory_space<vmem>>, vector<1x8x16xbf16>
    %60 = vector.shape_cast %59 : vector<1x8x16xbf16> to vector<8x16xbf16>
    %cst_43 = arith.constant dense<0.000000e+00> : vector<288x16xf32>
    %61 = tpu.matmul %58, %60, %cst_43 {dimension_numbers = #tpu.dot_dimension_numbers<[1], [0], [0], [1], [0, 0, 1, 1], [], []>} : vector<288x8xbf16>, vector<8x16xbf16>, vector<288x16xf32> -> vector<288x16xf32>
    %62 = arith.addf %57, %61 : vector<288x16xf32>
    %c37 = arith.constant 37 : index
    %c0_44 = arith.constant 0 : index
    %63 = vector.load %arg10[%c37, %c0_44] : memref<342x8xbf16, #tpu.memory_space<vmem>>, vector<288x8xbf16>
    %c7 = arith.constant 7 : index
    %c0_45 = arith.constant 0 : index
    %c0_46 = arith.constant 0 : index
    %64 = vector.load %arg2[%c7, %c0_45, %c0_46] : memref<9x8x16xbf16, #tpu.memory_space<vmem>>, vector<1x8x16xbf16>
    %65 = vector.shape_cast %64 : vector<1x8x16xbf16> to vector<8x16xbf16>
    %cst_47 = arith.constant dense<0.000000e+00> : vector<288x16xf32>
    %66 = tpu.matmul %63, %65, %cst_47 {dimension_numbers = #tpu.dot_dimension_numbers<[1], [0], [0], [1], [0, 0, 1, 1], [], []>} : vector<288x8xbf16>, vector<8x16xbf16>, vector<288x16xf32> -> vector<288x16xf32>
    %67 = arith.addf %62, %66 : vector<288x16xf32>
    %c38 = arith.constant 38 : index
    %c0_48 = arith.constant 0 : index
    %68 = vector.load %arg10[%c38, %c0_48] : memref<342x8xbf16, #tpu.memory_space<vmem>>, vector<288x8xbf16>
    %c8 = arith.constant 8 : index
    %c0_49 = arith.constant 0 : index
    %c0_50 = arith.constant 0 : index
    %69 = vector.load %arg2[%c8, %c0_49, %c0_50] : memref<9x8x16xbf16, #tpu.memory_space<vmem>>, vector<1x8x16xbf16>
    %70 = vector.shape_cast %69 : vector<1x8x16xbf16> to vector<8x16xbf16>
    %cst_51 = arith.constant dense<0.000000e+00> : vector<288x16xf32>
    %71 = tpu.matmul %68, %70, %cst_51 {dimension_numbers = #tpu.dot_dimension_numbers<[1], [0], [0], [1], [0, 0, 1, 1], [], []>} : vector<288x8xbf16>, vector<8x16xbf16>, vector<288x16xf32> -> vector<288x16xf32>
    %72 = arith.addf %67, %71 : vector<288x16xf32>
    %c0_52 = arith.constant 0 : index
    %c0_53 = arith.constant 0 : index
    %73 = vector.load %arg3[%c0_52, %c0_53] : memref<1x16xf32, #tpu.memory_space<vmem>>, vector<1x16xf32>
    %74 = vector.broadcast %73 : vector<1x16xf32> to vector<288x16xf32>
    %75 = arith.addf %72, %74 : vector<288x16xf32>
    %cst_54 = arith.constant 0.000000e+00 : f32
    %76 = vector.broadcast %cst_54 : f32 to vector<288x16xf32>
    %77 = arith.maximumf %75, %76 : vector<288x16xf32>
    %cst_55 = arith.constant 0.000000e+00 : f32
    %78 = vector.shape_cast %21 : vector<288x1xi1> to vector<288x1xi1>
    %79 = vector.broadcast %78 : vector<288x1xi1> to vector<288x16xi1>
    %80 = vector.broadcast %cst_55 : f32 to vector<288x16xf32>
    %81 = arith.select %79, %77, %80 : vector<288x16xi1>, vector<288x16xf32>
    %82 = arith.truncf %81 : vector<288x16xf32> to vector<288x16xbf16>
    %c24 = arith.constant 24 : index
    %c0_56 = arith.constant 0 : index
    %83 = vector.load %arg9[%c24, %c0_56] : memref<336x16xbf16, #tpu.memory_space<vmem>>, vector<288x16xbf16>
    tpu.vector_store %arg9[%c24, %c0_56], %82 {strides = array<i32>} : memref<336x16xbf16, #tpu.memory_space<vmem>>, vector<288x16xbf16>,
    %cst_57 = arith.constant 0.000000e+00 : f32
    %84 = vector.broadcast %cst_57 : f32 to vector<288x16xf32>
    %c5_58 = arith.constant 5 : index
    %c0_59 = arith.constant 0 : index
    %85 = vector.load %arg9[%c5_58, %c0_59] : memref<336x16xbf16, #tpu.memory_space<vmem>>, vector<288x16xbf16>
    %c0_60 = arith.constant 0 : index
    %c0_61 = arith.constant 0 : index
    %c0_62 = arith.constant 0 : index
    %86 = vector.load %arg4[%c0_60, %c0_61, %c0_62] : memref<9x16x16xbf16, #tpu.memory_space<vmem>>, vector<1x16x16xbf16>
    %87 = vector.shape_cast %86 : vector<1x16x16xbf16> to vector<16x16xbf16>
    %cst_63 = arith.constant dense<0.000000e+00> : vector<288x16xf32>
    %88 = tpu.matmul %85, %87, %cst_63 {dimension_numbers = #tpu.dot_dimension_numbers<[1], [0], [0], [1], [0, 0, 1, 1], [], []>} : vector<288x16xbf16>, vector<16x16xbf16>, vector<288x16xf32> -> vector<288x16xf32>
    %89 = arith.addf %84, %88 : vector<288x16xf32>
    %c6_64 = arith.constant 6 : index
    %c0_65 = arith.constant 0 : index
    %90 = vector.load %arg9[%c6_64, %c0_65] : memref<336x16xbf16, #tpu.memory_space<vmem>>, vector<288x16xbf16>
    %c1_66 = arith.constant 1 : index
    %c0_67 = arith.constant 0 : index
    %c0_68 = arith.constant 0 : index
    %91 = vector.load %arg4[%c1_66, %c0_67, %c0_68] : memref<9x16x16xbf16, #tpu.memory_space<vmem>>, vector<1x16x16xbf16>
    %92 = vector.shape_cast %91 : vector<1x16x16xbf16> to vector<16x16xbf16>
    %cst_69 = arith.constant dense<0.000000e+00> : vector<288x16xf32>
    %93 = tpu.matmul %90, %92, %cst_69 {dimension_numbers = #tpu.dot_dimension_numbers<[1], [0], [0], [1], [0, 0, 1, 1], [], []>} : vector<288x16xbf16>, vector<16x16xbf16>, vector<288x16xf32> -> vector<288x16xf32>
    %94 = arith.addf %89, %93 : vector<288x16xf32>
    %c7_70 = arith.constant 7 : index
    %c0_71 = arith.constant 0 : index
    %95 = vector.load %arg9[%c7_70, %c0_71] : memref<336x16xbf16, #tpu.memory_space<vmem>>, vector<288x16xbf16>
    %c2_72 = arith.constant 2 : index
    %c0_73 = arith.constant 0 : index
    %c0_74 = arith.constant 0 : index
    %96 = vector.load %arg4[%c2_72, %c0_73, %c0_74] : memref<9x16x16xbf16, #tpu.memory_space<vmem>>, vector<1x16x16xbf16>
    %97 = vector.shape_cast %96 : vector<1x16x16xbf16> to vector<16x16xbf16>
    %cst_75 = arith.constant dense<0.000000e+00> : vector<288x16xf32>
    %98 = tpu.matmul %95, %97, %cst_75 {dimension_numbers = #tpu.dot_dimension_numbers<[1], [0], [0], [1], [0, 0, 1, 1], [], []>} : vector<288x16xbf16>, vector<16x16xbf16>, vector<288x16xf32> -> vector<288x16xf32>
    %99 = arith.addf %94, %98 : vector<288x16xf32>
    %c23 = arith.constant 23 : index
    %c0_76 = arith.constant 0 : index
    %100 = vector.load %arg9[%c23, %c0_76] : memref<336x16xbf16, #tpu.memory_space<vmem>>, vector<288x16xbf16>
    %c3_77 = arith.constant 3 : index
    %c0_78 = arith.constant 0 : index
    %c0_79 = arith.constant 0 : index
    %101 = vector.load %arg4[%c3_77, %c0_78, %c0_79] : memref<9x16x16xbf16, #tpu.memory_space<vmem>>, vector<1x16x16xbf16>
    %102 = vector.shape_cast %101 : vector<1x16x16xbf16> to vector<16x16xbf16>
    %cst_80 = arith.constant dense<0.000000e+00> : vector<288x16xf32>
    %103 = tpu.matmul %100, %102, %cst_80 {dimension_numbers = #tpu.dot_dimension_numbers<[1], [0], [0], [1], [0, 0, 1, 1], [], []>} : vector<288x16xbf16>, vector<16x16xbf16>, vector<288x16xf32> -> vector<288x16xf32>
    %104 = arith.addf %99, %103 : vector<288x16xf32>
    %c24_81 = arith.constant 24 : index
    %c0_82 = arith.constant 0 : index
    %105 = vector.load %arg9[%c24_81, %c0_82] : memref<336x16xbf16, #tpu.memory_space<vmem>>, vector<288x16xbf16>
    %c4_83 = arith.constant 4 : index
    %c0_84 = arith.constant 0 : index
    %c0_85 = arith.constant 0 : index
    %106 = vector.load %arg4[%c4_83, %c0_84, %c0_85] : memref<9x16x16xbf16, #tpu.memory_space<vmem>>, vector<1x16x16xbf16>
    %107 = vector.shape_cast %106 : vector<1x16x16xbf16> to vector<16x16xbf16>
    %cst_86 = arith.constant dense<0.000000e+00> : vector<288x16xf32>
    %108 = tpu.matmul %105, %107, %cst_86 {dimension_numbers = #tpu.dot_dimension_numbers<[1], [0], [0], [1], [0, 0, 1, 1], [], []>} : vector<288x16xbf16>, vector<16x16xbf16>, vector<288x16xf32> -> vector<288x16xf32>
    %109 = arith.addf %104, %108 : vector<288x16xf32>
    %c25 = arith.constant 25 : index
    %c0_87 = arith.constant 0 : index
    %110 = vector.load %arg9[%c25, %c0_87] : memref<336x16xbf16, #tpu.memory_space<vmem>>, vector<288x16xbf16>
    %c5_88 = arith.constant 5 : index
    %c0_89 = arith.constant 0 : index
    %c0_90 = arith.constant 0 : index
    %111 = vector.load %arg4[%c5_88, %c0_89, %c0_90] : memref<9x16x16xbf16, #tpu.memory_space<vmem>>, vector<1x16x16xbf16>
    %112 = vector.shape_cast %111 : vector<1x16x16xbf16> to vector<16x16xbf16>
    %cst_91 = arith.constant dense<0.000000e+00> : vector<288x16xf32>
    %113 = tpu.matmul %110, %112, %cst_91 {dimension_numbers = #tpu.dot_dimension_numbers<[1], [0], [0], [1], [0, 0, 1, 1], [], []>} : vector<288x16xbf16>, vector<16x16xbf16>, vector<288x16xf32> -> vector<288x16xf32>
    %114 = arith.addf %109, %113 : vector<288x16xf32>
    %c41 = arith.constant 41 : index
    %c0_92 = arith.constant 0 : index
    %115 = vector.load %arg9[%c41, %c0_92] : memref<336x16xbf16, #tpu.memory_space<vmem>>, vector<288x16xbf16>
    %c6_93 = arith.constant 6 : index
    %c0_94 = arith.constant 0 : index
    %c0_95 = arith.constant 0 : index
    %116 = vector.load %arg4[%c6_93, %c0_94, %c0_95] : memref<9x16x16xbf16, #tpu.memory_space<vmem>>, vector<1x16x16xbf16>
    %117 = vector.shape_cast %116 : vector<1x16x16xbf16> to vector<16x16xbf16>
    %cst_96 = arith.constant dense<0.000000e+00> : vector<288x16xf32>
    %118 = tpu.matmul %115, %117, %cst_96 {dimension_numbers = #tpu.dot_dimension_numbers<[1], [0], [0], [1], [0, 0, 1, 1], [], []>} : vector<288x16xbf16>, vector<16x16xbf16>, vector<288x16xf32> -> vector<288x16xf32>
    %119 = arith.addf %114, %118 : vector<288x16xf32>
    %c42 = arith.constant 42 : index
    %c0_97 = arith.constant 0 : index
    %120 = vector.load %arg9[%c42, %c0_97] : memref<336x16xbf16, #tpu.memory_space<vmem>>, vector<288x16xbf16>
    %c7_98 = arith.constant 7 : index
    %c0_99 = arith.constant 0 : index
    %c0_100 = arith.constant 0 : index
    %121 = vector.load %arg4[%c7_98, %c0_99, %c0_100] : memref<9x16x16xbf16, #tpu.memory_space<vmem>>, vector<1x16x16xbf16>
    %122 = vector.shape_cast %121 : vector<1x16x16xbf16> to vector<16x16xbf16>
    %cst_101 = arith.constant dense<0.000000e+00> : vector<288x16xf32>
    %123 = tpu.matmul %120, %122, %cst_101 {dimension_numbers = #tpu.dot_dimension_numbers<[1], [0], [0], [1], [0, 0, 1, 1], [], []>} : vector<288x16xbf16>, vector<16x16xbf16>, vector<288x16xf32> -> vector<288x16xf32>
    %124 = arith.addf %119, %123 : vector<288x16xf32>
    %c43 = arith.constant 43 : index
    %c0_102 = arith.constant 0 : index
    %125 = vector.load %arg9[%c43, %c0_102] : memref<336x16xbf16, #tpu.memory_space<vmem>>, vector<288x16xbf16>
    %c8_103 = arith.constant 8 : index
    %c0_104 = arith.constant 0 : index
    %c0_105 = arith.constant 0 : index
    %126 = vector.load %arg4[%c8_103, %c0_104, %c0_105] : memref<9x16x16xbf16, #tpu.memory_space<vmem>>, vector<1x16x16xbf16>
    %127 = vector.shape_cast %126 : vector<1x16x16xbf16> to vector<16x16xbf16>
    %cst_106 = arith.constant dense<0.000000e+00> : vector<288x16xf32>
    %128 = tpu.matmul %125, %127, %cst_106 {dimension_numbers = #tpu.dot_dimension_numbers<[1], [0], [0], [1], [0, 0, 1, 1], [], []>} : vector<288x16xbf16>, vector<16x16xbf16>, vector<288x16xf32> -> vector<288x16xf32>
    %129 = arith.addf %124, %128 : vector<288x16xf32>
    %c0_107 = arith.constant 0 : index
    %c0_108 = arith.constant 0 : index
    %130 = vector.load %arg5[%c0_107, %c0_108] : memref<1x16xf32, #tpu.memory_space<vmem>>, vector<1x16xf32>
    %131 = vector.broadcast %130 : vector<1x16xf32> to vector<288x16xf32>
    %132 = arith.addf %129, %131 : vector<288x16xf32>
    %c0_109 = arith.constant 0 : index
    %c19_110 = arith.constant 19 : index
    %c0_111 = arith.constant 0 : index
    %133 = vector.load %arg1[%c0_109, %c19_110, %c0_111] : memref<1x342x8xbf16, #tpu.memory_space<vmem>>, vector<1x288x8xbf16>
    %134 = vector.shape_cast %133 : vector<1x288x8xbf16> to vector<288x8xbf16>
    %c0_112 = arith.constant 0 : index
    %c0_113 = arith.constant 0 : index
    %135 = vector.load %arg6[%c0_112, %c0_113] : memref<8x16xbf16, #tpu.memory_space<vmem>>, vector<8x16xbf16>
    %cst_114 = arith.constant dense<0.000000e+00> : vector<288x16xf32>
    %136 = tpu.matmul %134, %135, %cst_114 {dimension_numbers = #tpu.dot_dimension_numbers<[1], [0], [0], [1], [0, 0, 1, 1], [], []>} : vector<288x8xbf16>, vector<8x16xbf16>, vector<288x16xf32> -> vector<288x16xf32>
    %c0_115 = arith.constant 0 : index
    %c0_116 = arith.constant 0 : index
    %137 = vector.load %arg7[%c0_115, %c0_116] : memref<1x16xf32, #tpu.memory_space<vmem>>, vector<1x16xf32>
    %138 = vector.broadcast %137 : vector<1x16xf32> to vector<288x16xf32>
    %139 = arith.addf %136, %138 : vector<288x16xf32>
    %140 = arith.addf %132, %139 : vector<288x16xf32>
    %c0_117 = arith.constant 0 : index
    %c0_118 = arith.constant 0 : index
    %c0_119 = arith.constant 0 : index
    %141 = vector.load %arg8[%c0_117, %c0_118, %c0_119] : memref<1x288x16xf32, #tpu.memory_space<vmem>>, vector<1x288x16xf32>
    %142 = vector.shape_cast %141 : vector<1x288x16xf32> to vector<288x16xf32>
    %143 = vector.shape_cast %140 : vector<288x16xf32> to vector<1x288x16xf32>
    tpu.vector_store %arg8[%c0_117, %c0_118, %c0_119], %143 {strides = array<i32>} : memref<1x288x16xf32, #tpu.memory_space<vmem>>, vector<1x288x16xf32>,
    return
  }
  func.func @transform_0(%arg0: i32) -> (i32, i32, i32) {
    %c0_i32 = arith.constant 0 : i32
    %c0_i32_0 = arith.constant 0 : i32
    %c0_i32_1 = arith.constant 0 : i32
    return %arg0, %c0_i32, %c0_i32_0 : i32, i32, i32
  }
  func.func @transform_1(%arg0: i32) -> (i32, i32, i32) {
    %c0_i32 = arith.constant 0 : i32
    %c0_i32_0 = arith.constant 0 : i32
    %c0_i32_1 = arith.constant 0 : i32
    %c0_i32_2 = arith.constant 0 : i32
    return %c0_i32, %c0_i32_0, %c0_i32_1 : i32, i32, i32
  }
  func.func @transform_2(%arg0: i32) -> (i32, i32) {
    %c0_i32 = arith.constant 0 : i32
    %c0_i32_0 = arith.constant 0 : i32
    %c0_i32_1 = arith.constant 0 : i32
    return %c0_i32, %c0_i32_0 : i32, i32
  }
  func.func @transform_3(%arg0: i32) -> (i32, i32, i32) {
    %c0_i32 = arith.constant 0 : i32
    %c0_i32_0 = arith.constant 0 : i32
    %c0_i32_1 = arith.constant 0 : i32
    %c0_i32_2 = arith.constant 0 : i32
    return %c0_i32, %c0_i32_0, %c0_i32_1 : i32, i32, i32
  }
  func.func @transform_4(%arg0: i32) -> (i32, i32) {
    %c0_i32 = arith.constant 0 : i32
    %c0_i32_0 = arith.constant 0 : i32
    %c0_i32_1 = arith.constant 0 : i32
    return %c0_i32, %c0_i32_0 : i32, i32
  }
  func.func @transform_5(%arg0: i32) -> (i32, i32) {
    %c0_i32 = arith.constant 0 : i32
    %c0_i32_0 = arith.constant 0 : i32
    %c0_i32_1 = arith.constant 0 : i32
    return %c0_i32, %c0_i32_0 : i32, i32
  }
  func.func @transform_6(%arg0: i32) -> (i32, i32) {
    %c0_i32 = arith.constant 0 : i32
    %c0_i32_0 = arith.constant 0 : i32
    %c0_i32_1 = arith.constant 0 : i32
    return %c0_i32, %c0_i32_0 : i32, i32
  }
  func.func @transform_7(%arg0: i32) -> (i32, i32, i32) {
    %c0_i32 = arith.constant 0 : i32
    %c0_i32_0 = arith.constant 0 : i32
    %c0_i32_1 = arith.constant 0 : i32
    return %arg0, %c0_i32, %c0_i32_0 : i32, i32, i32
  }
}

</mosaic_0001>

<bundles_post_ra>
// kernel: res_dis_block_forward.1
= control target key start
LH: loop header
LB: loop body
LE: loop exit
PB: predicated region body
PF: predicated region fallthrough
CT: control target
= control target key end

     0   :  { %s11496_s24 = smov 0   ;;  %s16311_s0 = inlined_call_operand.vmem [shape: bf16[2,342,8], index: 0, kind: input, shape index: {}]   ;;  %s16312_s1 = inlined_call_operand.vmem [shape: bf16[9,8,16], index: 1, kind: input, shape index: {}]   ;;  %s16313_s2 = inlined_call_operand.vmem [shape: f32[1,16], index: 2, kind: input, shape index: {}]   ;;  %s16314_s3 = inlined_call_operand.vmem [shape: bf16[9,16,16], index: 3, kind: input, shape index: {}]   ;;  %s16315_s4 = inlined_call_operand.vmem [shape: f32[1,16], index: 4, kind: input, shape index: {}]   ;;  %s16316_s5 = inlined_call_operand.vmem [shape: bf16[8,16], index: 5, kind: input, shape index: {}]   ;;  %s16317_s6 = inlined_call_operand.vmem [shape: f32[1,16], index: 6, kind: input, shape index: {}]   ;;  %s16318_s7 = inlined_call_operand.vmem [shape: f32[2,288,16], index: 7, kind: output, shape index: {}]  }
   0x1 LB: > { %s9441_s25 = sadd.s32 4294967295, %s11453_s24   ;;  %p9445_p0 = scmp.ge.s32.totalorder %s11453_s24, 1  ;;  %s11453_s24 = sphi %s11496_s24, %s17_s24  }
   0x2   : > { %p237_p1 = scmp.lt.s32.totalorder %s11453_s24, 3 }
   0x4   : > { %p238_p2 = pnand %p9445_p0, %p237_p1 }
   0x6   : > { %241 = sbr.rel (%p238_p2) target bundleno = 1134 (0x46e), region = 48 }
   0xb   : > { %v9448_v0 = vld [vmem:[%s16312_s1 + $0x4] sm:$0xf]  ;;  %vm16332_vm0 = vcmask 1043456   ;;  %p269_p3 = scmp.lt.s32.totalorder %s9441_s25, 1  ;;  %v11515_v2 = vld [vmem:[%s16312_s1 + $0x8] sm:$0xf] }
   0xc   : > { %11164 = vmatprep.subr.msk.bf16.mxu0 %vm16332_vm0, %v9448_v0  ;;  %11165 = vmatprep.subr.msk.bf16.mxu1 %vm16332_vm0, %v9448_v0  ;;  %v1406_v1 = vsel %vm16332_vm0, %v9448_v0, 0  ;;  %v11520_v3 = vld [vmem:[%s16312_s1] sm:$0xf]  ;;  %vm1022_vm1 = vcmask 60416   ;;  %v16319_v8 = vmov 0   ;;  %vm16329_vm3 = vcmask 64512  }
   0xd   : > { %10441 = vmatpush3.bf16.msra.mxu0 %v1406_v1  ;;  %11163 = vmatpush3.bf16.msra.mxu1 %v1406_v1  ;;  %s17470_s25 = smov (!%p269_p3, %s9441_s25), 1  ;;  %vm16340_vm2 = vsmask.f32 7424  ;;  %vm16330_vm4 = vcmask 1046528   ;;  %vm3007_vm5 = vcmask 1045504   ;;  %vm16347_vm7 = vcmask 1044480  }
   0xe   : > { %11167 = vmatprep.subr.msk.bf16.mxu0 %vm16332_vm0, %v11515_v2  ;;  %11166 = vmatprep.subr.msk.bf16.mxu1 %vm16332_vm0, %v11520_v3  ;;  %s11175_s9 = smul.u32 172, %s17470_s25  ;;  %vm16331_vm6 = vsmask.f32 6400  ;;  %vm16346_vm8 = vsmask.f32 5376  ;;  %vm16348_vm9 = vcmask 125952  }
   0xf   : > { %s11176_s18 = smul.u32 288, %s17470_s25 }
  0x10   : > { %s11530_s12 = scalar_lea.vmem %s16311_s0, %s11175_s9 }
  0x11   : > { %v936_v4 = vld [vmem:[%s11530_s12] sm:$0xf]  ;;  %v937_v5 = vld [vmem:[%s11530_s12 + $0x4] sm:$0xf]  ;;  %v938_v6 = vld [vmem:[%s11530_s12 + $0x8] sm:$0xf]  ;;  %s16131_s22 = scalar_lea.vmem %s16318_s7, %s11176_s18 }
  0x12   : > { %v939_v7 = vld [vmem:[%s11530_s12 + $0xc] sm:$0xf]  ;;  %v979_v9 = vmax.bf16 %v16319_v8, %v936_v4  ;;  %v980_v10 = vmax.bf16 %v16319_v8, %v937_v5  ;;  %v981_v11 = vmax.bf16 %v16319_v8, %v938_v6  ;;  %v956_v13 = vld [vmem:[%s11530_s12 + $0x50] sm:$0xf]  ;;  %v957_v14 = vld [vmem:[%s11530_s12 + $0x54] sm:$0xf] }
  0x13   : > { %v982_v12 = vmax.bf16 %v16319_v8, %v939_v7  ;;  %v958_v15 = vld [vmem:[%s11530_s12 + $0x58] sm:$0xf]  ;;  %v959_v16 = vld [vmem:[%s11530_s12 + $0x5c] sm:$0xf]  ;;  %v999_v17 = vmax.bf16 %v16319_v8, %v956_v13  ;;  %v1000_v18 = vmax.bf16 %v16319_v8, %v957_v14  ;;  %v940_v20 = vld [vmem:[%s11530_s12 + $0x10] sm:$0xf] }
  0x14   : > { %1023 = vst.msk [vmem:[#allocation3] sm:$0xf] %vm1022_vm1, %v979_v9  ;;  %1024 = vst.msk [vmem:[#allocation3 + $0x4] sm:$0xf] %vm1022_vm1, %v980_v10  ;;  %v1001_v19 = vmax.bf16 %v16319_v8, %v958_v15  ;;  %v941_v21 = vld [vmem:[%s11530_s12 + $0x14] sm:$0xf]  ;;  %v1002_v22 = vmax.bf16 %v16319_v8, %v959_v16  ;;  %v983_v23 = vmax.bf16 %v16319_v8, %v940_v20 }
  0x15   : > { %1025 = vst.msk [vmem:[#allocation3 + $0x8] sm:$0xf] %vm1022_vm1, %v981_v11  ;;  %1026 = vst.msk [vmem:[#allocation3 + $0xc] sm:$0xf] %vm1022_vm1, %v982_v12  ;;  %v984_v24 = vmax.bf16 %v16319_v8, %v941_v21  ;;  %v960_v25 = vld [vmem:[%s11530_s12 + $0x60] sm:$0xf] }
  0x16   : > { %v961_v26 = vld [vmem:[%s11530_s12 + $0x64] sm:$0xf]  ;;  %v942_v27 = vld [vmem:[%s11530_s12 + $0x18] sm:$0xf]  ;;  %1043 = vst.msk [vmem:[#allocation3 + $0x50] sm:$0xf] %vm1022_vm1, %v999_v17  ;;  %v1003_v28 = vmax.bf16 %v16319_v8, %v960_v25 }
  0x17   : > { %1044 = vst.msk [vmem:[#allocation3 + $0x54] sm:$0xf] %vm1022_vm1, %v1000_v18  ;;  %1045 = vst.msk [vmem:[#allocation3 + $0x58] sm:$0xf] %vm1022_vm1, %v1001_v19  ;;  %v1004_v29 = vmax.bf16 %v16319_v8, %v961_v26  ;;  %v943_v30 = vld [vmem:[%s11530_s12 + $0x1c] sm:$0xf]  ;;  %v985_v31 = vmax.bf16 %v16319_v8, %v942_v27 }
  0x18   : > { %v962_v32 = vld [vmem:[%s11530_s12 + $0x68] sm:$0xf]  ;;  %v963_v33 = vld [vmem:[%s11530_s12 + $0x6c] sm:$0xf]  ;;  %1046 = vst.msk [vmem:[#allocation3 + $0x5c] sm:$0xf] %vm1022_vm1, %v1002_v22  ;;  %v986_v34 = vmax.bf16 %v16319_v8, %v943_v30 }
  0x19   : > { %1027 = vst.msk [vmem:[#allocation3 + $0x10] sm:$0xf] %vm1022_vm1, %v983_v23  ;;  %1028 = vst.msk [vmem:[#allocation3 + $0x14] sm:$0xf] %vm1022_vm1, %v984_v24  ;;  %v1005_v35 = vmax.bf16 %v16319_v8, %v962_v32  ;;  %v1006_v36 = vmax.bf16 %v16319_v8, %v963_v33  ;;  %v944_v37 = vld [vmem:[%s11530_s12 + $0x20] sm:$0xf] }
  0x1a   : > { %v945_v38 = vld [vmem:[%s11530_s12 + $0x24] sm:$0xf]  ;;  %v964_v39 = vld [vmem:[%s11530_s12 + $0x70] sm:$0xf]  ;;  %1047 = vst.msk [vmem:[#allocation3 + $0x60] sm:$0xf] %vm1022_vm1, %v1003_v28  ;;  %v987_v40 = vmax.bf16 %v16319_v8, %v944_v37 }
  0x1b   : > { %1048 = vst.msk [vmem:[#allocation3 + $0x64] sm:$0xf] %vm1022_vm1, %v1004_v29  ;;  %1029 = vst.msk [vmem:[#allocation3 + $0x18] sm:$0xf] %vm1022_vm1, %v985_v31  ;;  %v988_v41 = vmax.bf16 %v16319_v8, %v945_v38  ;;  %v965_v42 = vld [vmem:[%s11530_s12 + $0x74] sm:$0xf]  ;;  %v1007_v43 = vmax.bf16 %v16319_v8, %v964_v39 }
  0x1c   : > { %v946_v44 = vld [vmem:[%s11530_s12 + $0x28] sm:$0xf]  ;;  %v947_v45 = vld [vmem:[%s11530_s12 + $0x2c] sm:$0xf]  ;;  %1030 = vst.msk [vmem:[#allocation3 + $0x1c] sm:$0xf] %vm1022_vm1, %v986_v34  ;;  %v1008_v46 = vmax.bf16 %v16319_v8, %v965_v42 }
  0x1d   : > { %1049 = vst.msk [vmem:[#allocation3 + $0x68] sm:$0xf] %vm1022_vm1, %v1005_v35  ;;  %1050 = vst.msk [vmem:[#allocation3 + $0x6c] sm:$0xf] %vm1022_vm1, %v1006_v36  ;;  %v989_v47 = vmax.bf16 %v16319_v8, %v946_v44  ;;  %v990_v48 = vmax.bf16 %v16319_v8, %v947_v45  ;;  %v966_v49 = vld [vmem:[%s11530_s12 + $0x78] sm:$0xf] }
  0x1e   : > { %v967_v50 = vld [vmem:[%s11530_s12 + $0x7c] sm:$0xf]  ;;  %v948_v51 = vld [vmem:[%s11530_s12 + $0x30] sm:$0xf]  ;;  %1031 = vst.msk [vmem:[#allocation3 + $0x20] sm:$0xf] %vm1022_vm1, %v987_v40  ;;  %v1009_v52 = vmax.bf16 %v16319_v8, %v966_v49 }
  0x1f   : > { %1032 = vst.msk [vmem:[#allocation3 + $0x24] sm:$0xf] %vm1022_vm1, %v988_v41  ;;  %1051 = vst.msk [vmem:[#allocation3 + $0x70] sm:$0xf] %vm1022_vm1, %v1007_v43  ;;  %v1010_v53 = vmax.bf16 %v16319_v8, %v967_v50  ;;  %v949_v54 = vld [vmem:[%s11530_s12 + $0x34] sm:$0xf]  ;;  %v991_v55 = vmax.bf16 %v16319_v8, %v948_v51 }
  0x20   : > { %v968_v56 = vld [vmem:[%s11530_s12 + $0x80] sm:$0xf]  ;;  %v969_v57 = vld [vmem:[%s11530_s12 + $0x84] sm:$0xf]  ;;  %v1067_v58 = vld [vmem:[#allocation3] sm:$0xf]  ;;  %v992_v60 = vmax.bf16 %v16319_v8, %v949_v54 }
  0x21   : > { %v11604_v59 = vld [vmem:[#allocation3 + $0x4] sm:$0xf]  ;;  %1052 = vst.msk [vmem:[#allocation3 + $0x74] sm:$0xf] %vm1022_vm1, %v1008_v46  ;;  %1033 = vst.msk [vmem:[#allocation3 + $0x28] sm:$0xf] %vm1022_vm1, %v989_v47  ;;  %v1011_v61 = vmax.bf16 %v16319_v8, %v968_v56  ;;  %v1012_v62 = vmax.bf16 %v16319_v8, %v969_v57 }
  0x22   : > { %1034 = vst.msk [vmem:[#allocation3 + $0x2c] sm:$0xf] %vm1022_vm1, %v990_v48  ;;  %v11613_v63 = vcombine.low %v1067_v58, %v11604_v59  ;;  %v11615_v0 = vld [vmem:[#allocation3 + $0x8] sm:$0xff]   ;;  %1053 = vst.msk [vmem:[#allocation3 + $0x78] sm:$0xf] %vm1022_vm1, %v1009_v52  ;;  %v11629_v10 = vld [vmem:[#allocation3 + $0x50] sm:$0xff]  }
  0x23   : > { %1054 = vst.msk [vmem:[#allocation3 + $0x7c] sm:$0xf] %vm1022_vm1, %v1010_v53  ;;  %1035 = vst.msk [vmem:[#allocation3 + $0x30] sm:$0xf] %vm1022_vm1, %v991_v55  ;;  %v950_v1 = vld [vmem:[%s11530_s12 + $0x38] sm:$0xf] }
  0x24   : > { %1036 = vst.msk [vmem:[#allocation3 + $0x34] sm:$0xf] %vm1022_vm1, %v992_v60  ;;  %1055 = vst.msk [vmem:[#allocation3 + $0x80] sm:$0xf] %vm1022_vm1, %v1011_v61  ;;  %v993_v4 = vmax.bf16 %v16319_v8, %v950_v1  ;;  %v1202_v5 = vshrl.u32 %v11613_v63, 16  ;;  %v1204_v6 = vshll.u32 %v11613_v63, 16 }
  0x25   : > { %1056 = vst.msk [vmem:[#allocation3 + $0x84] sm:$0xf] %vm1022_vm1, %v1012_v62  ;;  %v1209_v7 = vshll.u32 %v11615_v0, 16  ;;  %v1213_v9 = vshrl.u32 %v11615_v0, 16  ;;  %v11631_v11 = vld [vmem:[#allocation3 + $0x58] sm:$0xff]   ;;  %v1900_v12 = vsel %vm16332_vm0, %v11515_v2, 0 }
  0x26   : > { %v1622_v13 = vsel %vm16332_vm0, %v11520_v3, 0  ;;  %1037 = vst.msk [vmem:[#allocation3 + $0x38] sm:$0xf] %vm1022_vm1, %v993_v4  ;;  %v1206_v14 = vrot.slane %v1204_v6, 1  ;;  %v11638_v16 = vld [vmem:[#allocation3 + $0x10] sm:$0xff]   ;;  %v11640_v17 = vld [vmem:[#allocation3 + $0x60] sm:$0xff]  }
  0x27   : > { %v1211_v15 = vrot.slane %v1209_v7, 1  ;;  %v1281_v18 = vshll.u32 %v11629_v10, 16  ;;  %v1285_v19 = vshrl.u32 %v11629_v10, 16  ;;  %v1289_v20 = vshll.u32 %v11631_v11, 16  ;;  %v11650_v26 = vld [vmem:[#allocation3 + $0x18] sm:$0xff]   ;;  %v11662_v35 = vld [vmem:[#allocation3 + $0x68] sm:$0xff]  }
  0x28   : > { %v1293_v21 = vshrl.u32 %v11631_v11, 16  ;;  %v1207_v2 = vor.u32 %v1206_v14, %v1202_v5  ;;  %v1217_v3 = vshll.u32 %v11638_v16, 16  ;;  %v1297_v23 = vshll.u32 %v11640_v17, 16  ;;  %v11657_v31 = vld [vmem:[%s16312_s1 + $0x10] sm:$0xf]  ;;  %v11665_v37 = vld [vmem:[#allocation3 + $0x20] sm:$0xff]  }
  0x29   : > { %v1215_v22 = vor.u32 %v1213_v9, %v1211_v15  ;;  %v11648_v24 = vrot.slane %v1281_v18, 1  ;;  %v1291_v25 = vrot.slane %v1289_v20, 1  ;;  %v1221_v27 = vshrl.u32 %v11638_v16, 16  ;;  %v11669_v41 = vld [vmem:[#allocation3 + $0x70] sm:$0xff]   ;;  %v11674_v42 = vld [vmem:[%s16312_s1 + $0xc] sm:$0xf] }
  0x2a   : > { %v1212_v28 = vsel %vm16340_vm2, %v1207_v2, %v1211_v15  ;;  %v1219_v29 = vrot.slane %v1217_v3, 1  ;;  %v1299_v30 = vrot.slane %v1297_v23, 1  ;;  %v1225_v34 = vshll.u32 %v11650_v26, 16  ;;  %v11679_v47 = vld [vmem:[#allocation3 + $0x28] sm:$0xff]   ;;  %v11693_v60 = vld [vmem:[#allocation3 + $0x78] sm:$0xff]  }
  0x2b   : > { %10442 = vmatprep.mubr.msk.bf16.mxu0 %vm16329_vm3, %v1212_v28  ;;  %v1287_v32 = vor.u32 %v1285_v19, %v11648_v24  ;;  %v1295_v33 = vor.u32 %v1293_v21, %v1291_v25  ;;  %v1301_v36 = vshrl.u32 %v11640_v17, 16  ;;  %v1229_v40 = vshrl.u32 %v11650_v26, 16  ;;  %v11696_v62 = vld [vmem:[#allocation3 + $0x30] sm:$0xff]   ;;  %v971_v3 = vld [vmem:[%s11530_s12 + $0x8c] sm:$0xf] }
  0x2c   : > { %v1220_v38 = vsel %vm16340_vm2, %v1215_v22, %v1219_v29  ;;  %v1223_v39 = vor.u32 %v1221_v27, %v1219_v29  ;;  %v1227_v45 = vrot.slane %v1225_v34, 1  ;;  %v1305_v48 = vshll.u32 %v11662_v35, 16  ;;  %v951_v18 = vld [vmem:[%s11530_s12 + $0x3c] sm:$0xf]  ;;  %v970_v22 = vld [vmem:[%s11530_s12 + $0x88] sm:$0xf] }
  0x2d   : > { %v1292_v43 = vsel %vm16340_vm2, %v1287_v32, %v1291_v25  ;;  %10443 = vmatmul.mubr.msk.bf16.vlgmr.msra.gmra.mxu0 %vm16329_vm3, %v1220_v38  ;;  %v1300_v44 = vsel %vm16340_vm2, %v1295_v33, %v1299_v30  ;;  %v1303_v46 = vor.u32 %v1301_v36, %v1299_v30  ;;  %v1233_v49 = vshll.u32 %v11665_v37, 16  ;;  %v952_v27 = vld [vmem:[%s11530_s12 + $0x40] sm:$0xf]  ;;  %v953_v33 = vld [vmem:[%s11530_s12 + $0x44] sm:$0xf] }
  0x2e   : > { %10462 = vmatprep.mubr.msk.bf16.mxu1 %vm16329_vm3, %v1292_v43  ;;  %10517 = vmatpush3.bf16.msra.mxu0 %v1900_v12  ;;  %v1309_v50 = vshrl.u32 %v11662_v35, 16  ;;  %v1313_v51 = vshll.u32 %v11669_v41, 16  ;;  %v1228_v52 = vsel %vm16340_vm2, %v1223_v39, %v1227_v45  ;;  %v1231_v53 = vor.u32 %v1229_v40, %v1227_v45  ;;  %v11703_v12 = vld [vmem:[#allocation3 + $0x80] sm:$0xff]   ;;  %v972_v34 = vld [vmem:[%s11530_s12 + $0x90] sm:$0xf] }
  0x2f   : > { %10463 = vmatmul.mubr.msk.bf16.vlgmr.msra.gmra.mxu1 %vm16329_vm3, %v1300_v44  ;;  %v1237_v54 = vshrl.u32 %v11665_v37, 16  ;;  %v1241_v55 = vshll.u32 %v11679_v47, 16  ;;  %11169 = vmatprep.subr.msk.bf16.mxu0 %vm16332_vm0, %v11657_v31  ;;  %v1307_v56 = vrot.slane %v1305_v48, 1  ;;  %v1235_v57 = vrot.slane %v1233_v49, 1  ;;  %v954_v39 = vld [vmem:[%s11530_s12 + $0x48] sm:$0xf] }
  0x30   : > { %10479 = vmatpush3.bf16.msra.mxu1 %v1622_v13  ;;  %10446 = vmatprep.mubr.msk.bf16.mxu0 %vm16329_vm3, %v1228_v52  ;;  %v1315_v58 = vrot.slane %v1313_v51, 1  ;;  %v1317_v61 = vshrl.u32 %v11669_v41, 16  ;;  %v1245_v4 = vshrl.u32 %v11679_v47, 16  ;;  %v1321_v14 = vshll.u32 %v11693_v60, 16  ;;  %v955_v40 = vld [vmem:[%s11530_s12 + $0x4c] sm:$0xf] }
  0x31   : > { %v1243_v1 = vrot.slane %v1241_v55, 1  ;;  %11168 = vmatprep.subr.msk.bf16.mxu1 %vm16332_vm0, %v11674_v42  ;;  %v1308_v5 = vsel %vm16340_vm2, %v1303_v46, %v1307_v56  ;;  %v1236_v6 = vsel %vm16340_vm2, %v1231_v53, %v1235_v57  ;;  %v1311_v7 = vor.u32 %v1309_v50, %v1307_v56 }
  0x32   : > { %v1239_v9 = vor.u32 %v1237_v54, %v1235_v57  ;;  %10466 = vmatprep.mubr.msk.bf16.mxu1 %vm16329_vm3, %v1308_v5  ;;  %v1319_v13 = vor.u32 %v1317_v61, %v1315_v58  ;;  %v1249_v15 = vshll.u32 %v11696_v62, 16  ;;  %v1325_v21 = vshrl.u32 %v11693_v60, 16  ;;  %v1801_v5 = vld [vmem:[#allocation3] sm:$0xe] }
  0x33   : > { %v1316_v19 = vsel %vm16340_vm2, %v1311_v7, %v1315_v58  ;;  %v1329_v2 = vshll.u32 %v11703_v12, 16  ;;  %v1323_v23 = vrot.slane %v1321_v14, 1  ;;  %v994_v25 = vmax.bf16 %v16319_v8, %v951_v18 }
  0x34   : > { %v1244_v20 = vsel %vm16340_vm2, %v1239_v9, %v1243_v1  ;;  %v1247_v28 = vor.u32 %v1245_v4, %v1243_v1  ;;  %v1251_v29 = vrot.slane %v1249_v15, 1  ;;  %v1013_v30 = vmax.bf16 %v16319_v8, %v970_v22 }
  0x35   : > { %10447 = vmatmul.mubr.msk.bf16.gmra.mxu0 %vm16329_vm3, %v1236_v6  ;;  %v1014_v32 = vmax.bf16 %v16319_v8, %v971_v3  ;;  %v1324_v36 = vsel %vm16340_vm2, %v1319_v13, %v1323_v23  ;;  %v1331_v38 = vrot.slane %v1329_v2, 1  ;;  %1038 = vst.msk [vmem:[#allocation3 + $0x3c] sm:$0xf] %vm1022_vm1, %v994_v25  ;;  %v1327_v43 = vor.u32 %v1325_v21, %v1323_v23 }
  0x36   : > { %10450 = vmatprep.mubr.msk.bf16.mxu0 %vm16329_vm3, %v1244_v20  ;;  %1057 = vst.msk [vmem:[#allocation3 + $0x88] sm:$0xf] %vm1022_vm1, %v1013_v30  ;;  %v995_v44 = vmax.bf16 %v16319_v8, %v952_v27  ;;  %v996_v45 = vmax.bf16 %v16319_v8, %v953_v33  ;;  %v1015_v46 = vmax.bf16 %v16319_v8, %v972_v34  ;;  %v1253_v52 = vshrl.u32 %v11696_v62, 16 }
  0x37   : > { %10467 = vmatmul.mubr.msk.bf16.gmra.mxu1 %vm16329_vm3, %v1316_v19  ;;  %1058 = vst.msk [vmem:[#allocation3 + $0x8c] sm:$0xf] %vm1022_vm1, %v1014_v32  ;;  %v997_v48 = vmax.bf16 %v16319_v8, %v954_v39  ;;  %v998_v49 = vmax.bf16 %v16319_v8, %v955_v40  ;;  %v1252_v50 = vsel %vm16340_vm2, %v1247_v28, %v1251_v29  ;;  %v1333_v53 = vshrl.u32 %v11703_v12, 16 }
  0x38   : > { %10470 = vmatprep.mubr.msk.bf16.mxu1 %vm16329_vm3, %v1324_v36  ;;  %1039 = vst.msk [vmem:[#allocation3 + $0x40] sm:$0xf] %vm1022_vm1, %v995_v44  ;;  %1040 = vst.msk [vmem:[#allocation3 + $0x44] sm:$0xf] %vm1022_vm1, %v996_v45  ;;  %v1332_v51 = vsel %vm16340_vm2, %v1327_v43, %v1331_v38  ;;  %v1255_v56 = vor.u32 %v1253_v52, %v1251_v29  ;;  %v9505_v28 = vcombine.low %v1801_v5, %v11604_v59  ;;  %v11789_v44 = vld [vmem:[%s16312_s1 + $0x14] sm:$0xf] }
  0x39   : > { %1059 = vst.msk [vmem:[#allocation3 + $0x90] sm:$0xf] %vm1022_vm1, %v1015_v46  ;;  %1041 = vst.msk [vmem:[#allocation3 + $0x48] sm:$0xf] %vm1022_vm1, %v997_v48  ;;  %v1335_v61 = vor.u32 %v1333_v53, %v1331_v38  ;;  %v1809_v59 = vrot.slane %v11615_v0, 1  ;;  %v2339_v43 = vsel %vm16332_vm0, %v11674_v42, 0 }
  0x3a   : > { %1042 = vst.msk [vmem:[#allocation3 + $0x4c] sm:$0xf] %vm1022_vm1, %v998_v49  ;;  %v1808_v38 = vrot.slane %v9505_v28, 1  ;;  %v2786_v45 = vsel %vm16332_vm0, %v11657_v31, 0  ;;  %v11808_v46 = vld [vmem:[%s16312_s1 + $0x18] sm:$0xf] }
  0x3b   : > { %v1817_v31 = vrot.slane %v11679_v47, 1  ;;  %v974_v53 = vld [vmem:[%s11530_s12 + $0x98] sm:$0xf] }
  0x3c   : > { %v11746_v54 = vld [vmem:[#allocation3 + $0x38] sm:$0xff]   ;;  %v1810_v40 = vsel %vm16330_vm4, %v1808_v38, %v1809_v59  ;;  %v11847_v5 = vld [vmem:[#allocation3 + $0x10] sm:$0xff]  }
  0x3d   : > { %10451 = vmatmul.mubr.msk.bf16.gmra.mxu0 %vm16329_vm3, %v1252_v50  ;;  %v1257_v57 = vshll.u32 %v11746_v54, 16  ;;  %v1261_v58 = vshrl.u32 %v11746_v54, 16  ;;  %v973_v50 = vld [vmem:[%s11530_s12 + $0x94] sm:$0xf] }
  0x3e   : > { %v11749_v55 = vld [vmem:[#allocation3 + $0x88] sm:$0xff]  }
  0x3f   : > { %10471 = vmatmul.mubr.msk.bf16.gmra.mxu1 %vm16329_vm3, %v1332_v51  ;;  %v1337_v1 = vshll.u32 %v11749_v55, 16  ;;  %v11754_v4 = vld [vmem:[#allocation3 + $0x40] sm:$0xff]   ;;  %v1259_v6 = vrot.slane %v1257_v57, 1  ;;  %v1341_v14 = vshrl.u32 %v11749_v55, 16  ;;  %v3001_v57 = vld [vmem:[#allocation3 + $0x8] sm:$0xc] }
  0x40   : > { %v11756_v7 = vld [vmem:[#allocation3 + $0x90] ss:$0 sps:$4 sm:$0x11]   ;;  %v1265_v13 = vshll.u32 %v11754_v4, 16  ;;  %v1269_v21 = vshrl.u32 %v11754_v4, 16 }
  0x41   : > { %v1339_v9 = vrot.slane %v1337_v1, 1  ;;  %v11760_v15 = vld [vmem:[#allocation3 + $0x48] sm:$0xff]   ;;  %v1260_v18 = vsel %vm16340_vm2, %v1255_v56, %v1259_v6  ;;  %v1263_v19 = vor.u32 %v1261_v58, %v1259_v6  ;;  %v1345_v20 = vshll.u32 %v11756_v7, 16  ;;  %v11849_v6 = vld [vmem:[#allocation3 + $0x18] sm:$0xff]  }
  0x42   : > { %10454 = vmatprep.mubr.msk.bf16.mxu0 %vm16329_vm3, %v1260_v18  ;;  %v1267_v22 = vrot.slane %v1265_v13, 1  ;;  %v1273_v23 = vshll.u32 %v11760_v15, 16  ;;  %v1277_v27 = vshrl.u32 %v11760_v15, 16  ;;  %v1016_v56 = vmax.bf16 %v16319_v8, %v973_v50  ;;  %v11936_v50 = vld [vmem:[#allocation3 + $0x60] sm:$0xff]  }
  0x43   : > { %v1340_v2 = vsel %vm16340_vm2, %v1335_v61, %v1339_v9  ;;  %v1343_v3 = vor.u32 %v1341_v14, %v1339_v9  ;;  %v1347_v25 = vrot.slane %v1345_v20, 1  ;;  %v1017_v58 = vmax.bf16 %v16319_v8, %v974_v53  ;;  %v11855_v14 = vld [vmem:[#allocation3 + $0x28] sm:$0xff]  }
  0x44   : > { %10474 = vmatprep.mubr.msk.bf16.mxu1 %vm16329_vm3, %v1340_v2  ;;  %v1268_v29 = vsel %vm16340_vm2, %v1263_v19, %v1267_v22  ;;  %v1271_v30 = vor.u32 %v1269_v21, %v1267_v22  ;;  %v1275_v32 = vrot.slane %v1273_v23, 1  ;;  %1060 = vst.msk [vmem:[#allocation3 + $0x94] sm:$0xf] %vm1022_vm1, %v1016_v56  ;;  %v1825_v61 = vrot.slane %v11760_v15, 1  ;;  %v11861_v21 = vld [vmem:[#allocation3 + $0x30] sm:$0xff]  }
  0x45   : > { %10455 = vmatmul.mubr.msk.bf16.gmra.mxu0 %vm16329_vm3, %v1268_v29  ;;  %v1348_v33 = vsel %vm16340_vm2, %v1343_v3, %v1347_v25  ;;  %1061 = vst.msk [vmem:[#allocation3 + $0x98] sm:$0xf] %vm1022_vm1, %v1017_v58  ;;  %v3011_v18 = vrot.slane %v11849_v6, 2  ;;  %v3015_v3 = vrot.slane %v11855_v14, 2  ;;  %v1827_v25 = vrot.slane %v11629_v10, 1 }
  0x46   : > { %v1276_v34 = vsel %vm16340_vm2, %v1271_v30, %v1275_v32  ;;  %v1279_v36 = vor.u32 %v1277_v27, %v1275_v32  ;;  %v3017_v28 = vrot.slane %v11861_v21, 2  ;;  %v1829_v29 = vrot.slane %v11631_v11, 1  ;;  %v11885_v30 = vld [vmem:[#allocation3 + $0x38] sm:$0xff]   ;;  %v11887_v32 = vld [vmem:[#allocation3 + $0x40] sm:$0xff]  }
  0x47   : > { %10475 = vmatmul.mubr.msk.bf16.gmra.mxu1 %vm16329_vm3, %v1348_v33  ;;  %10458 = vmatprep.mubr.msk.bf16.mxu0 %vm16329_vm3, %v1276_v34  ;;  %v3019_v33 = vrot.slane %v11885_v30, 2  ;;  %v1828_v34 = vsel %vm16330_vm4, %v1825_v61, %v1827_v25  ;;  %v3029_v56 = vrot.slane %v11936_v50, 2  ;;  %v1841_v58 = vrot.slane %v11749_v55, 1 }
  0x48   : > { %10480 = vmatprep.mubr.msk.bf16.mxu1 %vm16329_vm3, %v11613_v63  ;;  %v1284_v39 = vsel %vm16340_vm2, %v1279_v36, %v11648_v24  ;;  %v1811_v63 = vrot.slane %v11638_v16, 1  ;;  %v1813_v24 = vrot.slane %v11650_v26, 1  ;;  %v3021_v36 = vrot.slane %v11887_v32, 2 }
  0x49   : > { %v1830_v38 = vsel %vm16330_vm4, %v1827_v25, %v1829_v29 }
  0x4a   : > { %v1812_v42 = vsel %vm16330_vm4, %v1809_v59, %v1811_v63  ;;  %v11896_v59 = vld [vmem:[#allocation3 + $0x48] sm:$0xff]  }
  0x4d   : > { %10459 = vmatmul.mubr.msk.bf16.gmra.mxu0 %vm16329_vm3, %v1284_v39  ;;  %v11902_v39 = vsel %vm3007_vm5, %v3019_v33, %v3021_v36 }
  0x4e   : > { %10518 = vmatprep.mubr.msk.bf16.mxu0 %vm16329_vm3, %v1810_v40  ;;  %v1831_v40 = vrot.slane %v11640_v17, 1 }
  0x4f   : > { %10481 = vmatmul.mubr.msk.bf16.vlgmr.msra.gmra.mxu1 %vm16329_vm3, %v11615_v0  ;;  %v1814_v0 = vsel %vm16330_vm4, %v1811_v63, %v1813_v24  ;;  %v3023_v63 = vrot.slane %v11896_v59, 2 }
  0x50   : > { %10555 = vmatpush3.bf16.msra.mxu1 %v2339_v43  ;;  %10484 = vmatprep.mubr.msk.bf16.mxu1 %vm16329_vm3, %v11638_v16  ;;  %v1815_v16 = vrot.slane %v11665_v37, 1  ;;  %v1833_v43 = vrot.slane %v11662_v35, 1 }
  0x51   : > { %11170 = vmatprep.subr.msk.bf16.mxu1 %vm16332_vm0, %v11789_v44 }
  0x52   : > { %v1816_v48 = vsel %vm16330_vm4, %v1813_v24, %v1815_v16  ;;  %v1818_v49 = vsel %vm16330_vm4, %v1815_v16, %v1817_v31  ;;  %v11911_v24 = vld [vmem:[#allocation3 + $0x50] sm:$0xff]  }
  0x53   : > { %v3025_v16 = vrot.slane %v11911_v24, 2 }
  0x55   : > { %10519 = vmatmul.mubr.msk.bf16.vlgmr.msra.gmra.mxu0 %vm16329_vm3, %v1812_v42  ;;  %v11916_v42 = vsel %vm3007_vm5, %v3021_v36, %v3023_v63 }
  0x56   : > { %10593 = vmatpush3.bf16.msra.mxu0 %v2786_v45  ;;  %10522 = vmatprep.mubr.msk.bf16.mxu0 %vm16329_vm3, %v1814_v0  ;;  %v11918_v45 = vld [vmem:[#allocation3 + $0x58] sm:$0xff]   ;;  %v1832_v0 = vsel %vm16330_vm4, %v1829_v29, %v1831_v40 }
  0x57   : > { %10485 = vmatmul.mubr.msk.bf16.gmra.mxu1 %vm16329_vm3, %v11650_v26  ;;  %11171 = vmatprep.subr.msk.bf16.mxu0 %vm16332_vm0, %v11808_v46  ;;  %v1819_v26 = vrot.slane %v11696_v62, 1 }
  0x58   : > { %10488 = vmatprep.mubr.msk.bf16.mxu1 %vm16329_vm3, %v11665_v37  ;;  %v1821_v37 = vrot.slane %v11746_v54, 1 }
  0x59   : > { %v1820_v51 = vsel %vm16330_vm4, %v1817_v31, %v1819_v26  ;;  %v1834_v31 = vsel %vm16330_vm4, %v1831_v40, %v1833_v43  ;;  %v1843_v40 = vrot.slane %v11756_v7, 1  ;;  %v11993_v7 = vld [vmem:[#allocation3 + $0x88] sm:$0xff]  }
  0x5a   : > { %v1822_v52 = vsel %vm16330_vm4, %v1819_v26, %v1821_v37  ;;  %v11927_v26 = vsel %vm3007_vm5, %v3023_v63, %v3025_v16  ;;  %v2582_v63 = vshll.u32 %v11849_v6, 16 }
  0x5d   : > { %10523 = vmatmul.mubr.msk.bf16.gmra.mxu0 %vm16329_vm3, %v1816_v48  ;;  %v1835_v48 = vrot.slane %v11669_v41, 1 }
  0x5e   : > { %10526 = vmatprep.mubr.msk.bf16.mxu0 %vm16329_vm3, %v1818_v49  ;;  %v1837_v49 = vrot.slane %v11693_v60, 1 }
  0x5f   : > { %10489 = vmatmul.mubr.msk.bf16.gmra.mxu1 %vm16329_vm3, %v11679_v47  ;;  %v11835_v47 = vld [vmem:[#allocation3 + $0xc] sm:$0xf] }
  0x60   : > { %10492 = vmatprep.mubr.msk.bf16.mxu1 %vm16329_vm3, %v11696_v62  ;;  %v1823_v62 = vrot.slane %v11754_v4, 1  ;;  %v9583_v1 = vcombine.low %v3001_v57, %v11835_v47  ;;  %v1838_v57 = vsel %vm16330_vm4, %v1835_v48, %v1837_v49 }
  0x62   : > { %v3008_v9 = vrot.slane %v9583_v1, 2  ;;  %v1824_v13 = vsel %vm16330_vm4, %v1821_v37, %v1823_v62  ;;  %v1826_v19 = vsel %vm16330_vm4, %v1823_v62, %v1825_v61  ;;  %v1839_v62 = vrot.slane %v11703_v12, 1 }
  0x65   : > { %10527 = vmatmul.mubr.msk.bf16.gmra.mxu0 %vm16329_vm3, %v1820_v51  ;;  %v11940_v51 = vld [vmem:[#allocation3 + $0x68] sm:$0xff]  }
  0x66   : > { %10530 = vmatprep.mubr.msk.bf16.mxu0 %vm16329_vm3, %v1822_v52  ;;  %v1836_v52 = vsel %vm16330_vm4, %v1833_v43, %v1835_v48  ;;  %v2579_v43 = vshrl.u32 %v11849_v6, 16 }
  0x67   : > { %10493 = vmatmul.mubr.msk.bf16.gmra.mxu1 %vm16329_vm3, %v11746_v54  ;;  %v11852_v54 = vld [vmem:[#allocation3 + $0x20] sm:$0xff]  }
  0x68   : > { %10496 = vmatprep.mubr.msk.bf16.mxu1 %vm16329_vm3, %v11754_v4  ;;  %v3009_v4 = vrot.slane %v11847_v5, 2  ;;  %v3013_v20 = vrot.slane %v11852_v54, 2  ;;  %v2588_v48 = vshrl.u32 %v11852_v54, 16 }
  0x6a   : > { %v11864_v2 = vsel %vm3007_vm5, %v3008_v9, %v3009_v4  ;;  %v11867_v22 = vsel %vm3007_vm5, %v3009_v4, %v3011_v18  ;;  %v11872_v23 = vsel %vm3007_vm5, %v3011_v18, %v3013_v20  ;;  %v11879_v27 = vsel %vm3007_vm5, %v3013_v20, %v3015_v3  ;;  %v11966_v20 = vld [vmem:[#allocation3 + $0x78] sm:$0xff]  }
  0x6b   : > { %v2570_v9 = vshrl.u32 %v11847_v5, 16  ;;  %v2248_v18 = vrot.slane %v11847_v5, 1 }
  0x6d   : > { %10531 = vmatmul.mubr.msk.bf16.gmra.mxu0 %vm16329_vm3, %v1824_v13  ;;  %v2573_v13 = vshll.u32 %v11847_v5, 16  ;;  %v2572_v29 = vrot.slane %v2570_v9, 1  ;;  %v2597_v9 = vshrl.u32 %v11855_v14, 16 }
  0x6e   : > { %10534 = vmatprep.mubr.msk.bf16.mxu0 %vm16329_vm3, %v1826_v19  ;;  %v11964_v19 = vld [vmem:[#allocation3 + $0x70] sm:$0xff]  }
  0x6f   : > { %10497 = vmatmul.mubr.msk.bf16.gmra.mxu1 %vm16329_vm3, %v11760_v15  ;;  %v11890_v15 = vsel %vm3007_vm5, %v3015_v3, %v3017_v28  ;;  %v1840_v3 = vsel %vm16330_vm4, %v1837_v49, %v1839_v62  ;;  %v11991_v49 = vld [vmem:[#allocation3 + $0x80] sm:$0xff]  }
  0x70   : > { %10500 = vmatprep.mubr.msk.bf16.mxu1 %vm16329_vm3, %v11629_v10  ;;  %v11899_v10 = vsel %vm3007_vm5, %v3017_v28, %v3019_v33  ;;  %v3033_v28 = vrot.slane %v11964_v19, 2  ;;  %v2575_v33 = vrot.slane %v2573_v13, 2  ;;  %v2600_v13 = vshll.u32 %v11855_v14, 16 }
  0x75   : > { %10535 = vmatmul.mubr.msk.bf16.gmra.mxu0 %vm16329_vm3, %v1828_v34  ;;  %v3035_v34 = vrot.slane %v11966_v20, 2 }
  0x76   : > { %10538 = vmatprep.mubr.msk.bf16.mxu0 %vm16329_vm3, %v1830_v38 }
  0x77   : > { %10501 = vmatmul.mubr.msk.bf16.gmra.mxu1 %vm16329_vm3, %v11631_v11  ;;  %v3027_v11 = vrot.slane %v11918_v45, 2  ;;  %v11978_v38 = vsel %vm3007_vm5, %v3033_v28, %v3035_v34 }
  0x78   : > { %10504 = vmatprep.mubr.msk.bf16.mxu1 %vm16329_vm3, %v11640_v17  ;;  %v2115_v17 = vld [vmem:[#allocation3 + $0x8] sm:$0xe] }
  0x79   : > { %v11931_v37 = vsel %vm3007_vm5, %v3025_v16, %v3027_v11  ;;  %v9525_v53 = vcombine.low %v2115_v17, %v11835_v47  ;;  %v11950_v1 = vsel %vm3007_vm5, %v3027_v11, %v3029_v56  ;;  %v2252_v11 = vrot.slane %v11852_v54, 1 }
  0x7a   : > { %v1844_v17 = vsel %vm16330_vm4, %v1841_v58, %v1843_v40  ;;  %v2599_v40 = vrot.slane %v2597_v9, 1  ;;  %v2260_v9 = vrot.slane %v11887_v32, 1 }
  0x7b   : > { %v2562_v61 = vshrl.u32 %v9525_v53, 16  ;;  %v2565_v47 = vshll.u32 %v9525_v53, 16  ;;  %v2247_v4 = vrot.slane %v9525_v53, 1  ;;  %v2584_v53 = vrot.slane %v2582_v63, 2 }
  0x7c   : > { %v12031_v63 = vld [vmem:[#allocation3 + $0x98] ss:$0 sps:$4 sm:$0x33]  }
  0x7d   : > { %10539 = vmatmul.mubr.msk.bf16.gmra.mxu0 %vm16329_vm3, %v1832_v0  ;;  %v2564_v25 = vrot.slane %v2562_v61, 1  ;;  %v2249_v36 = vsel %vm16330_vm4, %v2247_v4, %v2248_v18  ;;  %v2250_v0 = vrot.slane %v11849_v6, 1  ;;  %v2590_v61 = vrot.slane %v2588_v48, 1 }
  0x7e   : > { %10542 = vmatprep.mubr.msk.bf16.mxu0 %vm16329_vm3, %v1834_v31  ;;  %v2576_v31 = vor.u32 %v2575_v33, %v2572_v29  ;;  %v12025_v33 = vld [vmem:[#allocation3 + $0x90] sm:$0xff]  }
  0x7f   : > { %10505 = vmatmul.mubr.msk.bf16.gmra.mxu1 %vm16329_vm3, %v11662_v35  ;;  %v3031_v35 = vrot.slane %v11940_v51, 2  ;;  %v2251_v6 = vsel %vm16330_vm4, %v2248_v18, %v2250_v0 }
  0x80   : > { %10508 = vmatprep.mubr.msk.bf16.mxu1 %vm16329_vm3, %v11669_v41 }
  0x81   : > { %v11954_v41 = vsel %vm3007_vm5, %v3029_v56, %v3031_v35  ;;  %v11974_v5 = vsel %vm3007_vm5, %v3031_v35, %v3033_v28  ;;  %v3037_v56 = vrot.slane %v11991_v49, 2  ;;  %v3039_v35 = vrot.slane %v11993_v7, 2  ;;  %v975_v28 = vld [vmem:[%s11530_s12 + $0x9c] sm:$0xf] }
  0x83   : > { %v12015_v4 = vsel %vm3007_vm5, %v3037_v56, %v3039_v35 }
  0x85   : > { %10543 = vmatmul.mubr.msk.bf16.gmra.mxu0 %vm16329_vm3, %v1836_v52  ;;  %v2581_v52 = vrot.slane %v2579_v43, 1  ;;  %v2602_v43 = vrot.slane %v2600_v13, 2 }
  0x86   : > { %10546 = vmatprep.mubr.msk.bf16.mxu0 %vm16329_vm3, %v1838_v57  ;;  %v3100_v57 = vsel %vm16332_vm0, %v11789_v44, 0  ;;  %v12012_v44 = vld [vmem:[%s16312_s1 + $0x1c] sm:$0xf] }
  0x87   : > { %10509 = vmatmul.mubr.msk.bf16.gmra.mxu1 %vm16329_vm3, %v11693_v60  ;;  %v1842_v60 = vsel %vm16330_vm4, %v1839_v62, %v1841_v58  ;;  %v12004_v58 = vsel %vm3007_vm5, %v3035_v34, %v3037_v56  ;;  %v2585_v18 = vor.u32 %v2584_v53, %v2581_v52  ;;  %v1018_v34 = vmax.bf16 %v16319_v8, %v975_v28 }
  0x88   : > { %10512 = vmatprep.mubr.msk.bf16.mxu1 %vm16329_vm3, %v11703_v12  ;;  %v2567_v12 = vrot.slane %v2565_v47, 2  ;;  %v3043_v52 = vrot.slane %v12031_v63, 2 }
  0x89   : > { %1062 = vst.msk [vmem:[#allocation3 + $0x9c] sm:$0xf] %vm1022_vm1, %v1018_v34 }
  0x8a   : > { %v2568_v16 = vor.u32 %v2567_v12, %v2564_v25  ;;  %v2609_v25 = vshll.u32 %v11861_v21, 16  ;;  %v2256_v12 = vrot.slane %v11861_v21, 1 }
  0x8c   : > { %v2577_v62 = vsel %vm16331_vm6, %v2568_v16, %v2576_v31  ;;  %v3041_v16 = vrot.slane %v12025_v33, 2 }
  0x8d   : > { %10547 = vmatmul.mubr.msk.bf16.gmra.mxu0 %vm16329_vm3, %v1840_v3  ;;  %v2254_v3 = vrot.slane %v11855_v14, 1 }
  0x8e   : > { %10550 = vmatprep.mubr.msk.bf16.mxu0 %vm16329_vm3, %v1842_v60  ;;  %v2606_v60 = vshrl.u32 %v11861_v21, 16  ;;  %v3539_v21 = vsel %vm16332_vm0, %v11808_v46, 0  ;;  %v2603_v46 = vor.u32 %v2602_v43, %v2599_v40  ;;  %v2633_v40 = vshrl.u32 %v11896_v59, 16 }
  0x8f   : > { %10513 = vmatmul.mubr.msk.bf16.gmra.mxu1 %vm16329_vm3, %v11749_v55  ;;  %v2591_v55 = vshll.u32 %v11852_v54, 16  ;;  %v2253_v54 = vsel %vm16330_vm4, %v2250_v0, %v2252_v11  ;;  %v2586_v0 = vsel %vm16331_vm6, %v2576_v31, %v2585_v18  ;;  %v2255_v48 = vsel %vm16330_vm4, %v2252_v11, %v2254_v3  ;;  %v12051_v11 = vld [vmem:[%s16312_s1 + $0x20] sm:$0xf] }
  0x90   : > { %10556 = vmatprep.mubr.msk.bf16.mxu1 %vm16329_vm3, %v2249_v36  ;;  %v976_v36 = vld [vmem:[%s11530_s12 + $0xa0] sm:$0xf]  ;;  %v2257_v53 = vsel %vm16330_vm4, %v2254_v3, %v2256_v12  ;;  %v12045_v31 = vsel %vm3007_vm5, %v3039_v35, %v3041_v16  ;;  %v2624_v35 = vshrl.u32 %v11887_v32, 16  ;;  %v2636_v43 = vshll.u32 %v11896_v59, 16 }
  0x91   : > { %v2593_v47 = vrot.slane %v2591_v55, 2  ;;  %v1019_v14 = vmax.bf16 %v16319_v8, %v976_v36  ;;  %v2608_v55 = vrot.slane %v2606_v60, 1 }
  0x92   : > { %v2626_v60 = vrot.slane %v2624_v35, 1 }
  0x93   : > { %v2594_v29 = vor.u32 %v2593_v47, %v2590_v61  ;;  %1063 = vst.msk [vmem:[#allocation3 + $0xa0] sm:$0xf] %vm1022_vm1, %v1019_v14  ;;  %v2258_v61 = vrot.slane %v11885_v30, 1  ;;  %v2645_v14 = vshll.u32 %v11911_v24, 16 }
  0x95   : > { %10551 = vmatmul.mubr.msk.bf16.gmra.mxu0 %vm16329_vm3, %v1844_v17  ;;  %v2611_v17 = vrot.slane %v2609_v25, 2  ;;  %v2595_v56 = vsel %vm16331_vm6, %v2585_v18, %v2594_v29  ;;  %v2604_v13 = vsel %vm16331_vm6, %v2594_v29, %v2603_v46  ;;  %v2259_v28 = vsel %vm16330_vm4, %v2256_v12, %v2258_v61 }
  0x96   : > { %10594 = vmatprep.mubr.msk.bf16.mxu0 %vm16329_vm3, %v2577_v62  ;;  %v2618_v62 = vshll.u32 %v11885_v30, 16  ;;  %v2261_v36 = vsel %vm16330_vm4, %v2258_v61, %v2260_v9  ;;  %v2642_v12 = vshrl.u32 %v11911_v24, 16 }
  0x97   : > { %10557 = vmatmul.mubr.msk.bf16.vlgmr.msra.gmra.mxu1 %vm16329_vm3, %v2251_v6  ;;  %v12054_v6 = vsel %vm3007_vm5, %v3041_v16, %v3043_v52  ;;  %v2612_v47 = vor.u32 %v2611_v17, %v2608_v55  ;;  %v4201_v16 = vld [vmem:[#allocation3 + $0x10] sm:$0x8]  ;;  %v12084_v55 = vld [vmem:[#allocation3 + $0x18] sm:$0xff]  }
  0x98   : > { %10631 = vmatpush3.bf16.msra.mxu1 %v3100_v57  ;;  %10560 = vmatprep.mubr.msk.bf16.mxu1 %vm16329_vm3, %v2253_v54  ;;  %v2615_v57 = vshrl.u32 %v11885_v30, 16  ;;  %v2627_v54 = vshll.u32 %v11887_v32, 16  ;;  %v2620_v3 = vrot.slane %v2618_v62, 2  ;;  %v2262_v30 = vrot.slane %v11896_v59, 1 }
  0x99   : > { %11172 = vmatprep.subr.msk.bf16.mxu1 %vm16332_vm0, %v12012_v44  ;;  %v2613_v34 = vsel %vm16331_vm6, %v2603_v46, %v2612_v47  ;;  %v12089_v46 = vld [vmem:[#allocation3 + $0x20] sm:$0xff]   ;;  %v2647_v62 = vrot.slane %v2645_v14, 2  ;;  %v4209_v35 = vrot.slane %v12084_v55, 3 }
  0x9a   : > { %v2617_v18 = vrot.slane %v2615_v57, 1  ;;  %v2629_v25 = vrot.slane %v2627_v54, 2  ;;  %v2644_v57 = vrot.slane %v2642_v12, 1  ;;  %v16321_v61 = vrot.slane %v12089_v46, 3 }
  0x9c   : > { %v2621_v32 = vor.u32 %v2620_v3, %v2617_v18  ;;  %v2630_v29 = vor.u32 %v2629_v25, %v2626_v60  ;;  %v2654_v18 = vshll.u32 %v11918_v45, 16  ;;  %v12105_v3 = vsel %vm16347_vm7, %v4209_v35, %v16321_v61 }
  0x9d   : > { %10595 = vmatmul.mubr.msk.bf16.vlgmr.msra.gmra.mxu0 %vm16329_vm3, %v2586_v0  ;;  %v2264_v0 = vrot.slane %v11911_v24, 1  ;;  %v2266_v60 = vrot.slane %v11918_v45, 1  ;;  %v2648_v25 = vor.u32 %v2647_v62, %v2644_v57 }
  0x9e   : > { %10669 = vmatpush3.bf16.msra.mxu0 %v3539_v21  ;;  %10598 = vmatprep.mubr.msk.bf16.mxu0 %vm16329_vm3, %v2595_v56  ;;  %v12081_v21 = vld [vmem:[#allocation3 + $0x14] sm:$0xf]  ;;  %v2622_v52 = vsel %vm16331_vm6, %v2612_v47, %v2621_v32  ;;  %v2631_v59 = vsel %vm16331_vm6, %v2621_v32, %v2630_v29  ;;  %v2638_v56 = vrot.slane %v2636_v43, 2 }
  0x9f   : > { %10561 = vmatmul.mubr.msk.bf16.gmra.mxu1 %vm16329_vm3, %v2255_v48  ;;  %11173 = vmatprep.subr.msk.bf16.mxu0 %vm16332_vm0, %v12051_v11  ;;  %v2263_v48 = vsel %vm16330_vm4, %v2260_v9, %v2262_v30  ;;  %v9661_v17 = vcombine.low %v4201_v16, %v12081_v21  ;;  %v2265_v54 = vsel %vm16330_vm4, %v2262_v30, %v2264_v0 }
  0xa0   : > { %10564 = vmatprep.mubr.msk.bf16.mxu1 %vm16329_vm3, %v2257_v53  ;;  %v2635_v53 = vrot.slane %v2633_v40, 1  ;;  %v2656_v40 = vrot.slane %v2654_v18, 2  ;;  %v2267_v43 = vsel %vm16330_vm4, %v2264_v0, %v2266_v60  ;;  %v2270_v0 = vrot.slane %v11940_v51, 1 }
  0xa1   : > { %v4208_v24 = vrot.slane %v9661_v17, 3  ;;  %v2690_v18 = vshll.u32 %v11966_v20, 16 }
  0xa2   : > { %v2639_v9 = vor.u32 %v2638_v56, %v2635_v53  ;;  %v2272_v53 = vrot.slane %v11964_v19, 1 }
  0xa3   : > { %v12096_v47 = vsel %vm16347_vm7, %v4208_v24, %v4209_v35 }
  0xa4   : > { %v2640_v30 = vsel %vm16331_vm6, %v2630_v29, %v2639_v9  ;;  %v2649_v12 = vsel %vm16331_vm6, %v2639_v9, %v2648_v25  ;;  %v2672_v29 = vshll.u32 %v11940_v51, 16 }
  0xa5   : > { %10599 = vmatmul.mubr.msk.bf16.gmra.mxu0 %vm16329_vm3, %v2604_v13  ;;  %v2651_v13 = vshrl.u32 %v11918_v45, 16 }
  0xa6   : > { %10602 = vmatprep.mubr.msk.bf16.mxu0 %vm16329_vm3, %v2613_v34  ;;  %v2663_v34 = vshll.u32 %v11936_v50, 16  ;;  %v2674_v62 = vrot.slane %v2672_v29, 2 }
  0xa7   : > { %10565 = vmatmul.mubr.msk.bf16.gmra.mxu1 %vm16329_vm3, %v2259_v28  ;;  %v2660_v28 = vshrl.u32 %v11936_v50, 16  ;;  %v2653_v32 = vrot.slane %v2651_v13, 1  ;;  %v2273_v13 = vsel %vm16330_vm4, %v2270_v0, %v2272_v53 }
  0xa8   : > { %10568 = vmatprep.mubr.msk.bf16.mxu1 %vm16329_vm3, %v2261_v36  ;;  %v2268_v36 = vrot.slane %v11936_v50, 1  ;;  %v2665_v16 = vrot.slane %v2663_v34, 2  ;;  %v2669_v50 = vshrl.u32 %v11940_v51, 16  ;;  %v2699_v34 = vshll.u32 %v11991_v49, 16 }
  0xa9   : > { %v2662_v14 = vrot.slane %v2660_v28, 1  ;;  %v2657_v45 = vor.u32 %v2656_v40, %v2653_v32  ;;  %v2696_v28 = vshrl.u32 %v11991_v49, 16  ;;  %v2692_v40 = vrot.slane %v2690_v18, 2  ;;  %v3315_v18 = vld [vmem:[#allocation3 + $0x10] sm:$0xc] }
  0xaa   : > { %v2671_v57 = vrot.slane %v2669_v50, 1  ;;  %v2271_v24 = vsel %vm16330_vm4, %v2268_v36, %v2270_v0  ;;  %v2278_v50 = vrot.slane %v11993_v7, 1  ;;  %v2714_v0 = vshrl.u32 %v12025_v33, 16 }
  0xab   : > { %v2666_v17 = vor.u32 %v2665_v16, %v2662_v14  ;;  %v2658_v56 = vsel %vm16331_vm6, %v2648_v25, %v2657_v45  ;;  %v2698_v14 = vrot.slane %v2696_v28, 1  ;;  %v2701_v16 = vrot.slane %v2699_v34, 2 }
  0xac   : > { %v2675_v51 = vor.u32 %v2674_v62, %v2671_v57 }
  0xad   : > { %10603 = vmatmul.mubr.msk.bf16.gmra.mxu0 %vm16329_vm3, %v2622_v52  ;;  %v2678_v52 = vshrl.u32 %v11964_v19, 16  ;;  %v2667_v35 = vsel %vm16331_vm6, %v2657_v45, %v2666_v17  ;;  %v2708_v45 = vshll.u32 %v11993_v7, 16  ;;  %v2702_v29 = vor.u32 %v2701_v16, %v2698_v14  ;;  %v12181_v14 = vld [vmem:[#allocation3 + $0x28] sm:$0xff]  }
  0xae   : > { %10606 = vmatprep.mubr.msk.bf16.mxu0 %vm16329_vm3, %v2631_v59  ;;  %v2681_v59 = vshll.u32 %v11964_v19, 16  ;;  %v2687_v19 = vshrl.u32 %v11966_v20, 16  ;;  %v3452_v16 = vrot.slane %v12181_v14, 2 }
  0xaf   : > { %10569 = vmatmul.mubr.msk.bf16.gmra.mxu1 %vm16329_vm3, %v2263_v48  ;;  %v2269_v48 = vsel %vm16330_vm4, %v2266_v60, %v2268_v36  ;;  %v2274_v60 = vrot.slane %v11966_v20, 1  ;;  %v2276_v36 = vrot.slane %v11991_v49, 1  ;;  %v2705_v49 = vshrl.u32 %v11993_v7, 16 }
  0xb0   : > { %10572 = vmatprep.mubr.msk.bf16.mxu1 %vm16329_vm3, %v2265_v54  ;;  %v2680_v54 = vrot.slane %v2678_v52, 1  ;;  %v2683_v9 = vrot.slane %v2681_v59, 2  ;;  %v2689_v32 = vrot.slane %v2687_v19, 1  ;;  %v2280_v52 = vrot.slane %v12025_v33, 1 }
  0xb1   : > { %v2279_v57 = vsel %vm16330_vm4, %v2276_v36, %v2278_v50 }
  0xb2   : > { %v2684_v25 = vor.u32 %v2683_v9, %v2680_v54  ;;  %v2693_v20 = vor.u32 %v2692_v40, %v2689_v32  ;;  %v2281_v7 = vsel %vm16330_vm4, %v2278_v50, %v2280_v52  ;;  %v2723_v9 = vshrl.u32 %v12031_v63, 16 }
  0xb3   : > { %v3448_v40 = vrot.slane %v12084_v55, 2 }
  0xb4   : > { %v2694_v59 = vsel %vm16331_vm6, %v2684_v25, %v2693_v20  ;;  %v2703_v62 = vsel %vm16331_vm6, %v2693_v20, %v2702_v29  ;;  %v4300_v20 = vsel %vm16332_vm0, %v12051_v11, 0 }
  0xb5   : > { %10607 = vmatmul.mubr.msk.bf16.gmra.mxu0 %vm16329_vm3, %v2640_v30  ;;  %v2676_v30 = vsel %vm16331_vm6, %v2666_v17, %v2675_v51  ;;  %v2717_v17 = vshll.u32 %v12025_v33, 16 }
  0xb6   : > { %10610 = vmatprep.mubr.msk.bf16.mxu0 %vm16329_vm3, %v2649_v12  ;;  %v2685_v12 = vsel %vm16331_vm6, %v2675_v51, %v2684_v25  ;;  %v2725_v25 = vrot.slane %v2723_v9, 1 }
  0xb7   : > { %10573 = vmatmul.mubr.msk.bf16.gmra.mxu1 %vm16329_vm3, %v2267_v43  ;;  %v2275_v43 = vsel %vm16330_vm4, %v2272_v53, %v2274_v60  ;;  %v2707_v53 = vrot.slane %v2705_v49, 1  ;;  %v2719_v54 = vrot.slane %v2717_v17, 2  ;;  %v12196_v49 = vld [vmem:[#allocation3 + $0x38] sm:$0xff]   ;;  %v12213_v17 = vld [vmem:[#allocation3 + $0x48] sm:$0xff]  }
  0xb8   : > { %10576 = vmatprep.mubr.msk.bf16.mxu1 %vm16329_vm3, %v2269_v48  ;;  %v2277_v48 = vsel %vm16330_vm4, %v2274_v60, %v2276_v36 }
  0xbd   : > { %10611 = vmatmul.mubr.msk.bf16.gmra.mxu0 %vm16329_vm3, %v2658_v56  ;;  %v2710_v56 = vrot.slane %v2708_v45, 2  ;;  %v3456_v45 = vrot.slane %v12196_v49, 2 }
  0xbe   : > { %10614 = vmatprep.mubr.msk.bf16.mxu0 %vm16329_vm3, %v2667_v35  ;;  %v2716_v35 = vrot.slane %v2714_v0, 1 }
  0xbf   : > { %10577 = vmatmul.mubr.msk.bf16.gmra.mxu1 %vm16329_vm3, %v2271_v24  ;;  %v11295_v24 = vld [vmem:[#allocation3 + $0x98] ss:$0 sps:$4 sm:$0x11]   ;;  %v2711_v33 = vor.u32 %v2710_v56, %v2707_v53  ;;  %v3460_v56 = vrot.slane %v12213_v17, 2 }
  0xc0   : > { %10580 = vmatprep.mubr.msk.bf16.mxu1 %vm16329_vm3, %v2273_v13  ;;  %v2726_v13 = vshll.u32 %v12031_v63, 16  ;;  %v2282_v51 = vrot.slane %v11295_v24, 1  ;;  %v2720_v19 = vor.u32 %v2719_v54, %v2716_v35  ;;  %v12240_v54 = vld [vmem:[#allocation3 + $0x50] sm:$0xff]  }
  0xc1   : > { %v2712_v60 = vsel %vm16331_vm6, %v2702_v29, %v2711_v33  ;;  %v12210_v29 = vld [vmem:[#allocation3 + $0x40] sm:$0xff]  }
  0xc2   : > { %v2728_v28 = vrot.slane %v2726_v13, 2  ;;  %v2283_v34 = vsel %vm16330_vm4, %v2280_v52, %v2282_v51  ;;  %v2721_v36 = vsel %vm16331_vm6, %v2711_v33, %v2720_v19  ;;  %v3458_v53 = vrot.slane %v12210_v29, 2  ;;  %v12243_v33 = vld [vmem:[#allocation3 + $0x58] sm:$0xff]  }
  0xc4   : > { %v2729_v63 = vor.u32 %v2728_v28, %v2725_v25  ;;  %v3459_v35 = vsel %vm3007_vm5, %v3456_v45, %v3458_v53 }
  0xc5   : > { %10615 = vmatmul.mubr.msk.bf16.gmra.mxu0 %vm16329_vm3, %v2676_v30  ;;  %v12168_v30 = vcombine.low %v3315_v18, %v12081_v21  ;;  %v3986_v21 = vsel %vm16332_vm0, %v12012_v44, 0  ;;  %v12192_v44 = vld [vmem:[#allocation3 + $0x30] sm:$0xff]   ;;  %v3464_v18 = vrot.slane %v12243_v33, 2 }
  0xc6   : > { %10618 = vmatprep.mubr.msk.bf16.mxu0 %vm16329_vm3, %v2685_v12 }
  0xc7   : > { %10581 = vmatmul.mubr.msk.bf16.gmra.mxu1 %vm16329_vm3, %v2275_v43  ;;  %v3447_v32 = vrot.slane %v12168_v30, 2  ;;  %v2730_v43 = vsel %vm16331_vm6, %v2720_v19, %v2729_v63  ;;  %v3462_v19 = vrot.slane %v12240_v54, 2 }
  0xc8   : > { %10584 = vmatprep.mubr.msk.bf16.mxu1 %vm16329_vm3, %v2277_v48 }
  0xc9   : > { %v3449_v12 = vsel %vm3007_vm5, %v3447_v32, %v3448_v40  ;;  %v3465_v63 = vsel %vm3007_vm5, %v3462_v19, %v3464_v18  ;;  %v12273_v32 = vld [vmem:[#allocation3 + $0x68] sm:$0xff]  }
  0xcd   : > { %10619 = vmatmul.mubr.msk.bf16.gmra.mxu0 %vm16329_vm3, %v2694_v59 }
  0xce   : > { %10622 = vmatprep.mubr.msk.bf16.mxu0 %vm16329_vm3, %v2703_v62 }
  0xcf   : > { %10585 = vmatmul.mubr.msk.bf16.gmra.mxu1 %vm16329_vm3, %v2279_v57 }
  0xd0   : > { %10588 = vmatprep.mubr.msk.bf16.mxu1 %vm16329_vm3, %v2281_v7  ;;  %v3461_v7 = vsel %vm3007_vm5, %v3458_v53, %v3460_v56 }
  0xd5   : > { %10623 = vmatmul.mubr.msk.bf16.gmra.mxu0 %vm16329_vm3, %v2712_v60 }
  0xd6   : > { %10626 = vmatprep.mubr.msk.bf16.mxu0 %vm16329_vm3, %v2721_v36  ;;  %v12270_v36 = vld [vmem:[#allocation3 + $0x60] sm:$0xff]  }
  0xd7   : > { %10589 = vmatmul.mubr.msk.bf16.gmra.mxu1 %vm16329_vm3, %v2283_v34  ;;  %v3463_v34 = vsel %vm3007_vm5, %v3460_v56, %v3462_v19 }
  0xd8   : > { %10632 = vmatprep.mubr.msk.bf16.mxu1 %vm16329_vm3, %v11864_v2  ;;  %v3450_v2 = vrot.slane %v12089_v46, 2 }
  0xda   : > { %v3451_v48 = vsel %vm3007_vm5, %v3448_v40, %v3450_v2 }
  0xdd   : > { %10627 = vmatmul.mubr.msk.bf16.gmra.mxu0 %vm16329_vm3, %v2730_v43 }
  0xde   : > { %10670 = vmatprep.mubr.msk.bf16.mxu0 %vm16329_vm3, %v3449_v12 }
  0xdf   : > { %10633 = vmatmul.mubr.msk.bf16.vlgmr.msra.gmra.mxu1 %vm16329_vm3, %v11867_v22  ;;  %v3453_v22 = vsel %vm3007_vm5, %v3450_v2, %v3452_v16  ;;  %v3468_v2 = vrot.slane %v12273_v32, 2 }
  0xe0   : > { %10707 = vmatpush3.bf16.msra.mxu1 %v3986_v21  ;;  %10636 = vmatprep.mubr.msk.bf16.mxu1 %vm16329_vm3, %v11872_v23  ;;  %v3454_v23 = vrot.slane %v12192_v44, 2  ;;  %v3466_v21 = vrot.slane %v12270_v36, 2 }
  0xe2   : > { %v3455_v50 = vsel %vm3007_vm5, %v3452_v16, %v3454_v23  ;;  %v3457_v0 = vsel %vm3007_vm5, %v3454_v23, %v3456_v45  ;;  %v3469_v23 = vsel %vm3007_vm5, %v3466_v21, %v3468_v2  ;;  %v12301_v45 = vld [vmem:[#allocation3 + $0x78] sm:$0xff]  }
  0xe3   : > { %v3472_v56 = vrot.slane %v12301_v45, 2 }
  0xe5   : > { %10671 = vmatmul.mubr.msk.bf16.vlgmr.msra.gmra.mxu0 %vm16329_vm3, %v3451_v48 }
  0xe6   : > { %10745 = vmatpush3.bf16.msra.mxu0 %v4300_v20  ;;  %10674 = vmatprep.mubr.msk.bf16.mxu0 %vm16329_vm3, %v3453_v22  ;;  %v12298_v22 = vld [vmem:[#allocation3 + $0x70] sm:$0xff]  }
  0xe7   : > { %10637 = vmatmul.mubr.msk.bf16.gmra.mxu1 %vm16329_vm3, %v11879_v27 }
  0xe8   : > { %10640 = vmatprep.mubr.msk.bf16.mxu1 %vm16329_vm3, %v11890_v15 }
  0xed   : > { %v12207_v11 = vpop.f32.mrf.mxu0  ;;  %10675 = vmatmul.mubr.msk.bf16.gmra.mxu0 %vm16329_vm3, %v3455_v50 }
  0xee   : > { %10678 = vmatprep.mubr.msk.bf16.mxu0 %vm16329_vm3, %v3457_v0  ;;  %v3470_v0 = vrot.slane %v12298_v22, 2 }
  0xef   : > { %v12215_v27 = vpop.f32.mrf.mxu1  ;;  %v12217_v52 = vpop.f32.mrf.mxu0  ;;  %10641 = vmatmul.mubr.msk.bf16.gmra.mxu1 %vm16329_vm3, %v11899_v10 }
  0xf0   : > { %10644 = vmatprep.mubr.msk.bf16.mxu1 %vm16329_vm3, %v11902_v39 }
  0xf1   : > { %v12222_v15 = vpop.f32.mrf.mxu1  ;;  %v12224_v59 = vpop.f32.mrf.mxu0 }
  0xf3   : > { %v12231_v57 = vpop.f32.mrf.mxu1  ;;  %v12233_v62 = vpop.f32.mrf.mxu0 }
  0xf5   : > { %v12235_v24 = vpop.f32.mrf.mxu1  ;;  %v12237_v10 = vpop.f32.mrf.mxu0  ;;  %10679 = vmatmul.mubr.msk.bf16.gmra.mxu0 %vm16329_vm3, %v3459_v35 }
  0xf6   : > { %10682 = vmatprep.mubr.msk.bf16.mxu0 %vm16329_vm3, %v3461_v7 }
  0xf7   : > { %v12245_v9 = vpop.f32.mrf.mxu1  ;;  %v12247_v39 = vpop.f32.mrf.mxu0  ;;  %10645 = vmatmul.mubr.msk.bf16.gmra.mxu1 %vm16329_vm3, %v11916_v42 }
  0xf8   : > { %10648 = vmatprep.mubr.msk.bf16.mxu1 %vm16329_vm3, %v11927_v26 }
  0xf9   : > { %v12252_v13 = vpop.f32.mrf.mxu1  ;;  %v12254_v51 = vpop.f32.mrf.mxu0 }
  0xfb   : > { %v12261_v60 = vpop.f32.mrf.mxu1  ;;  %v12263_v25 = vpop.f32.mrf.mxu0 }
  0xfc   : > { %16487 = vst [vmem:[#allocation4_spill] sm:$0xff] %v12261_v60 }
  0xfd   : > { %v12265_v28 = vpop.f32.mrf.mxu1  ;;  %v12267_v42 = vpop.f32.mrf.mxu0  ;;  %10683 = vmatmul.mubr.msk.bf16.gmra.mxu0 %vm16329_vm3, %v3463_v34 }
  0xfe   : > { %16488 = vst [vmem:[#allocation5_spill] sm:$0xff] %v12265_v28  ;;  %10686 = vmatprep.mubr.msk.bf16.mxu0 %vm16329_vm3, %v3465_v63  ;;  %v3473_v63 = vsel %vm3007_vm5, %v3470_v0, %v3472_v56 }
  0xff   : > { %v12275_v40 = vpop.f32.mrf.mxu1  ;;  %v12277_v26 = vpop.f32.mrf.mxu0  ;;  %10649 = vmatmul.mubr.msk.bf16.gmra.mxu1 %vm16329_vm3, %v11931_v37  ;;  %v3467_v37 = vsel %vm3007_vm5, %v3464_v18, %v3466_v21  ;;  %v3471_v18 = vsel %vm3007_vm5, %v3468_v2, %v3470_v0  ;;  %v12329_v21 = vld [vmem:[#allocation3 + $0x88] sm:$0xff]  }
 0x100   : > { %16489 = vst [vmem:[#allocation6_spill] sm:$0xff] %v12275_v40  ;;  %10652 = vmatprep.mubr.msk.bf16.mxu1 %vm16329_vm3, %v11950_v1  ;;  %16497 = vst [vmem:[#allocation14_spill] sm:$0xff] %v12329_v21  ;;  %v3476_v0 = vrot.slane %v12329_v21, 2 }
 0x101   : > { %v12282_v43 = vpop.f32.mrf.mxu1  ;;  %v12284_v12 = vpop.f32.mrf.mxu0 }
 0x102   : > { %16490 = vst [vmem:[#allocation7_spill] sm:$0xff] %v12282_v43  ;;  %v12360_v43 = vld [vmem:[#allocation3 + $0x98] sm:$0xff]  }
 0x103   : > { %v12291_v16 = vpop.f32.mrf.mxu1  ;;  %v12293_v48 = vpop.f32.mrf.mxu0  ;;  %16499 = vst [vmem:[#allocation16_spill] sm:$0xff] %v12360_v43 }
 0x104   : > { %16491 = vst [vmem:[#allocation8_spill] sm:$0xff] %v12291_v16 }
 0x105   : > { %v12295_v20 = vpop.f32.mrf.mxu1  ;;  %v12303_v50 = vpop.f32.mrf.mxu0  ;;  %10687 = vmatmul.mubr.msk.bf16.gmra.mxu0 %vm16329_vm3, %v3467_v37 }
 0x106   : > { %16492 = vst [vmem:[#allocation9_spill] sm:$0xff] %v12295_v20  ;;  %10690 = vmatprep.mubr.msk.bf16.mxu0 %vm16329_vm3, %v3469_v23  ;;  %v12354_v20 = vld [vmem:[#allocation3 + $0x90] sm:$0xff]  }
 0x107   : > { %v12306_v1 = vpop.f32.mrf.mxu1  ;;  %10653 = vmatmul.mubr.msk.bf16.gmra.mxu1 %vm16329_vm3, %v11954_v41  ;;  %v12312_v53 = vpop.f32.mrf.mxu0  ;;  %v12324_v41 = vld [vmem:[#allocation3 + $0x80] sm:$0xff]  }
 0x108   : > { %16493 = vst [vmem:[#allocation10_spill] sm:$0xff] %v12306_v1  ;;  %10656 = vmatprep.mubr.msk.bf16.mxu1 %vm16329_vm3, %v11974_v5  ;;  %16496 = vst [vmem:[#allocation13_spill] sm:$0xff] %v12324_v41  ;;  %v3474_v2 = vrot.slane %v12324_v41, 2 }
 0x109   : > { %v12317_v35 = vpop.f32.mrf.mxu1  ;;  %v12319_v7 = vpop.f32.mrf.mxu0 }
 0x10a   : > { %16494 = vst [vmem:[#allocation11_spill] sm:$0xff] %v12317_v35 }
 0x10b   : > { %v12321_v19 = vpop.f32.mrf.mxu1  ;;  %v12326_v34 = vpop.f32.mrf.mxu0 }
 0x10c   : > { %16495 = vst [vmem:[#allocation12_spill] sm:$0xff] %v12321_v19 }
 0x10d   : > { %v12331_v37 = vpop.f32.mrf.mxu1  ;;  %v12333_v5 = vpop.f32.mrf.mxu0  ;;  %10691 = vmatmul.mubr.msk.bf16.gmra.mxu0 %vm16329_vm3, %v3471_v18  ;;  %v3765_v18 = vshll.u32 %v12168_v30, 16 }
 0x10e   : > { %16498 = vst [vmem:[#allocation15_spill] sm:$0xff] %v12331_v37  ;;  %10694 = vmatprep.mubr.msk.bf16.mxu0 %vm16329_vm3, %v3473_v63  ;;  %v3762_v37 = vshrl.u32 %v12168_v30, 16  ;;  %v3773_v63 = vshll.u32 %v12084_v55, 16  ;;  %v3477_v30 = vsel %vm3007_vm5, %v3474_v2, %v3476_v0 }
 0x10f   : > { %v10482_v23 = vpop.f32.mrf.mxu1  ;;  %10657 = vmatmul.mubr.msk.bf16.gmra.mxu1 %vm16329_vm3, %v11978_v38  ;;  %v12341_v61 = vpop.f32.mrf.mxu0  ;;  %v3770_v38 = vshrl.u32 %v12084_v55, 16  ;;  %v3767_v28 = vrot.slane %v3765_v18, 3 }
 0x110   : > { %v1667_v8 = vadd.f32 %v10482_v23, %v12207_v11  ;;  %10660 = vmatprep.mubr.msk.bf16.mxu1 %vm16329_vm3, %v12004_v58  ;;  %v3475_v23 = vsel %vm3007_vm5, %v3472_v56, %v3474_v2  ;;  %v3764_v40 = vrot.slane %v3762_v37, 2  ;;  %v3779_v37 = vshrl.u32 %v12089_v46, 16 }
 0x111   : > { %v1658_v19 = vpop.f32.mrf.mxu1  ;;  %v12351_v1 = vpop.f32.mrf.mxu0  ;;  %v3772_v60 = vrot.slane %v3770_v38, 2 }
 0x112   : > { %v1659_v35 = vadd.f32 %v1658_v19, %v12217_v52  ;;  %v3775_v52 = vrot.slane %v3773_v63, 3  ;;  %v3768_v38 = vor.u32 %v3767_v28, %v3764_v40  ;;  %v11315_v28 = vld [vmem:[#allocation3 + $0xa0] ss:$0 sps:$4 sm:$0x33]  }
 0x113   : > { %v10483_v11 = vpop.f32.mrf.mxu1  ;;  %v12357_v16 = vpop.f32.mrf.mxu0 }
 0x114   : > { %v1670_v58 = vadd.f32 %v10483_v11, %v12224_v59  ;;  %v3478_v59 = vrot.slane %v12354_v20, 2  ;;  %v3788_v11 = vshrl.u32 %v12181_v14, 16 }
 0x115   : > { %v1661_v55 = vpop.f32.mrf.mxu1  ;;  %v10520_v21 = vpop.f32.mrf.mxu0  ;;  %10695 = vmatmul.mubr.msk.bf16.gmra.mxu0 %vm16329_vm3, %v3475_v23  ;;  %v3791_v23 = vshll.u32 %v12181_v14, 16 }
 0x116   : > { %v1662_v19 = vadd.f32 %v1661_v55, %v12233_v62  ;;  %v12364_v41 = vadd.f32 %v10520_v21, %v1667_v8  ;;  %10698 = vmatprep.mubr.msk.bf16.mxu0 %vm16329_vm3, %v3477_v30  ;;  %v3480_v62 = vrot.slane %v12360_v43, 2  ;;  %v3782_v8 = vshll.u32 %v12089_v46, 16 }
 0x117   : > { %v10486_v56 = vpop.f32.mrf.mxu1  ;;  %10661 = vmatmul.mubr.msk.bf16.gmra.mxu1 %vm16329_vm3, %v12015_v4  ;;  %v1936_v18 = vpop.f32.mrf.mxu0  ;;  %v3776_v4 = vor.u32 %v3775_v52, %v3772_v60  ;;  %v3781_v60 = vrot.slane %v3779_v37, 2  ;;  %v3793_v43 = vrot.slane %v3791_v23, 3 }
 0x118   : > { %16500 = vst [vmem:[#allocation17_spill] sm:$0xff] %v12364_v41  ;;  %v1683_v2 = vadd.f32 %v10486_v56, %v12237_v10  ;;  %10664 = vmatprep.mubr.msk.bf16.mxu1 %vm16329_vm3, %v12045_v31  ;;  %v12376_v63 = vadd.f32 %v1936_v18, %v1659_v35  ;;  %v3479_v31 = vsel %vm3007_vm5, %v3476_v0, %v3478_v59  ;;  %v3784_v52 = vrot.slane %v3782_v8, 3 }
 0x119   : > { %v1674_v21 = vpop.f32.mrf.mxu1  ;;  %v10521_v10 = vpop.f32.mrf.mxu0  ;;  %v3481_v35 = vsel %vm3007_vm5, %v3478_v59, %v3480_v62 }
 0x11a   : > { %16501 = vst [vmem:[#allocation18_spill] sm:$0xff] %v12376_v63  ;;  %v1675_v30 = vadd.f32 %v1674_v21, %v12247_v39  ;;  %v12381_v56 = vadd.f32 %v10521_v10, %v1670_v58  ;;  %v3777_v39 = vsel %vm16346_vm8, %v3768_v38, %v3776_v4  ;;  %v3790_v21 = vrot.slane %v3788_v11, 2 }
 0x11b   : > { %v10487_v55 = vpop.f32.mrf.mxu1  ;;  %v1939_v41 = vpop.f32.mrf.mxu0  ;;  %v3806_v11 = vshrl.u32 %v12196_v49, 16 }
 0x11c   : > { %16502 = vst [vmem:[#allocation19_spill] sm:$0xff] %v12381_v56  ;;  %v1686_v40 = vadd.f32 %v10487_v55, %v12254_v51  ;;  %v12386_v63 = vadd.f32 %v1939_v41, %v1662_v19  ;;  %v3482_v51 = vrot.slane %v11315_v28, 2  ;;  %v3797_v41 = vshrl.u32 %v12192_v44, 16 }
 0x11d   : > { %v1677_v18 = vpop.f32.mrf.mxu1  ;;  %v10524_v10 = vpop.f32.mrf.mxu0  ;;  %10699 = vmatmul.mubr.msk.bf16.gmra.mxu0 %vm16329_vm3, %v3479_v31  ;;  %v3800_v19 = vshll.u32 %v12192_v44, 16 }
 0x11e   : > { %v1678_v58 = vadd.f32 %v1677_v18, %v12263_v25  ;;  %v12391_v56 = vadd.f32 %v10524_v10, %v1683_v2  ;;  %10702 = vmatprep.mubr.msk.bf16.mxu0 %vm16329_vm3, %v3481_v35  ;;  %v3785_v25 = vor.u32 %v3784_v52, %v3781_v60  ;;  %v3794_v2 = vor.u32 %v3793_v43, %v3790_v21 }
 0x11f   : > { %v10490_v0 = vpop.f32.mrf.mxu1  ;;  %10665 = vmatmul.mubr.msk.bf16.gmra.mxu1 %vm16329_vm3, %v12054_v6  ;;  %v1952_v37 = vpop.f32.mrf.mxu0  ;;  %v3809_v6 = vshll.u32 %v12196_v49, 16  ;;  %v3799_v35 = vrot.slane %v3797_v41, 2  ;;  %v3802_v18 = vrot.slane %v3800_v19, 3  ;;  %v3808_v10 = vrot.slane %v3806_v11, 2 }
 0x120   : > { %v1699_v59 = vadd.f32 %v10490_v0, %v12267_v42  ;;  %10708 = vmatprep.mubr.msk.bf16.mxu1 %vm16329_vm3, %v3777_v39  ;;  %v12400_v8 = vadd.f32 %v1952_v37, %v1675_v30  ;;  %v3483_v42 = vsel %vm3007_vm5, %v3480_v62, %v3482_v51  ;;  %v3786_v30 = vsel %vm16346_vm8, %v3776_v4, %v3785_v25 }
 0x121   : > { %v1690_v38 = vpop.f32.mrf.mxu1  ;;  %v10525_v55 = vpop.f32.mrf.mxu0  ;;  %v3795_v21 = vsel %vm16346_vm8, %v3785_v25, %v3794_v2  ;;  %v4213_v41 = vrot.slane %v12181_v14, 3  ;;  %v3818_v19 = vshll.u32 %v12210_v29, 16 }
 0x122   : > { %v1691_v23 = vadd.f32 %v1690_v38, %v12277_v26  ;;  %v12405_v28 = vadd.f32 %v10525_v55, %v1686_v40  ;;  %v3811_v26 = vrot.slane %v3809_v6, 3  ;;  %v3824_v38 = vshrl.u32 %v12213_v17, 16 }
 0x123   : > { %v10491_v31 = vpop.f32.mrf.mxu1  ;;  %v1955_v52 = vpop.f32.mrf.mxu0 }
 0x124   : > { %v1702_v60 = vadd.f32 %v10491_v31, %v12284_v12  ;;  %v12410_v39 = vadd.f32 %v1955_v52, %v1678_v58  ;;  %v3803_v12 = vor.u32 %v3802_v18, %v3799_v35  ;;  %v3812_v25 = vor.u32 %v3811_v26, %v3808_v10 }
 0x125   : > { %v1693_v43 = vpop.f32.mrf.mxu1  ;;  %v10528_v40 = vpop.f32.mrf.mxu0  ;;  %10703 = vmatmul.mubr.msk.bf16.gmra.mxu0 %vm16329_vm3, %v3483_v42  ;;  %v16503_v35 = vrot.slane %v12089_v46, 3  ;;  %v3820_v52 = vrot.slane %v3818_v19, 3  ;;  %v4215_v46 = vrot.slane %v12192_v44, 3  ;;  %v3842_v19 = vshrl.u32 %v12243_v33, 16 }
 0x126   : > { %v1694_v0 = vadd.f32 %v1693_v43, %v12293_v48  ;;  %v12415_v51 = vadd.f32 %v10528_v40, %v1699_v59  ;;  %10746 = vmatprep.mubr.msk.bf16.mxu0 %vm16329_vm3, %v12096_v47  ;;  %v3815_v48 = vshrl.u32 %v12210_v29, 16  ;;  %v3827_v47 = vshll.u32 %v12213_v17, 16 }
 0x127   : > { %v10494_v62 = vpop.f32.mrf.mxu1  ;;  %10709 = vmatmul.mubr.msk.bf16.vlgmr.msra.gmra.mxu1 %vm16329_vm3, %v3786_v30  ;;  %v1968_v58 = vpop.f32.mrf.mxu0  ;;  %v3804_v14 = vsel %vm16346_vm8, %v3794_v2, %v3803_v12  ;;  %v3836_v40 = vshll.u32 %v12240_v54, 16  ;;  %v3845_v44 = vshll.u32 %v12243_v33, 16 }
 0x128   : > { %v1715_v4 = vadd.f32 %v10494_v62, %v12303_v50  ;;  %10712 = vmatprep.mubr.msk.bf16.mxu1 %vm16329_vm3, %v3795_v21  ;;  %v12425_v59 = vadd.f32 %v1968_v58, %v1691_v23  ;;  %v4214_v23 = vsel %vm16347_vm7, %v16503_v35, %v4213_v41  ;;  %v3817_v18 = vrot.slane %v3815_v48, 2 }
 0x129   : > { %v1706_v37 = vpop.f32.mrf.mxu1  ;;  %v10529_v50 = vpop.f32.mrf.mxu0  ;;  %v3826_v21 = vrot.slane %v3824_v38, 2  ;;  %v3829_v10 = vrot.slane %v3827_v47, 3 }
 0x12a   : > { %v1707_v11 = vadd.f32 %v1706_v37, %v12312_v53  ;;  %v12430_v55 = vadd.f32 %v10529_v50, %v1702_v60  ;;  %v3813_v53 = vsel %vm16346_vm8, %v3803_v12, %v3812_v25  ;;  %v3821_v12 = vor.u32 %v3820_v52, %v3817_v18 }
 0x12b   : > { %v10495_v6 = vpop.f32.mrf.mxu1  ;;  %v1971_v42 = vpop.f32.mrf.mxu0  ;;  %v3830_v48 = vor.u32 %v3829_v10, %v3826_v21  ;;  %v3844_v52 = vrot.slane %v3842_v19, 2  ;;  %v3851_v10 = vshrl.u32 %v12270_v36, 16 }
 0x12c   : > { %v1718_v31 = vadd.f32 %v10495_v6, %v12319_v7  ;;  %v12437_v43 = vadd.f32 %v1971_v42, %v1694_v0  ;;  %v3833_v0 = vshrl.u32 %v12240_v54, 16 }
 0x12d   : > { %v1709_v30 = vpop.f32.mrf.mxu1  ;;  %v10532_v26 = vpop.f32.mrf.mxu0  ;;  %10747 = vmatmul.mubr.msk.bf16.vlgmr.msra.gmra.mxu0 %vm16329_vm3, %v12105_v3  ;;  %v4217_v3 = vrot.slane %v12196_v49, 3 }
 0x12e   : > { %v1710_v60 = vadd.f32 %v1709_v30, %v12326_v34  ;;  %v12443_v2 = vadd.f32 %v10532_v26, %v1715_v4  ;;  %10750 = vmatprep.mubr.msk.bf16.mxu0 %vm16329_vm3, %v4214_v23  ;;  %v3835_v6 = vrot.slane %v3833_v0, 2  ;;  %v3847_v30 = vrot.slane %v3845_v44, 3 }
 0x12f   : > { %v10498_v7 = vpop.f32.mrf.mxu1  ;;  %10713 = vmatmul.mubr.msk.bf16.gmra.mxu1 %vm16329_vm3, %v3804_v14  ;;  %v1984_v34 = vpop.f32.mrf.mxu0  ;;  %v3838_v14 = vrot.slane %v3836_v40, 3  ;;  %v4218_v35 = vsel %vm16347_vm7, %v4215_v46, %v4217_v3  ;;  %v3854_v26 = vshll.u32 %v12270_v36, 16  ;;  %v3853_v44 = vrot.slane %v3851_v10, 2 }
 0x130   : > { %v1731_v62 = vadd.f32 %v10498_v7, %v12333_v5  ;;  %10716 = vmatprep.mubr.msk.bf16.mxu1 %vm16329_vm3, %v3813_v53  ;;  %v12453_v58 = vadd.f32 %v1984_v34, %v1707_v11  ;;  %v4216_v5 = vsel %vm16347_vm7, %v4213_v41, %v4215_v46  ;;  %v3822_v11 = vsel %vm16346_vm8, %v3812_v25, %v3821_v12 }
 0x131   : > { %v1722_v4 = vpop.f32.mrf.mxu1  ;;  %v10533_v38 = vpop.f32.mrf.mxu0  ;;  %v4219_v25 = vrot.slane %v12210_v29, 3  ;;  %v3860_v7 = vshrl.u32 %v12273_v32, 16  ;;  %v3863_v46 = vshll.u32 %v12273_v32, 16  ;;  %v3881_v10 = vshll.u32 %v12301_v45, 16 }
 0x132   : > { %v1723_v37 = vadd.f32 %v1722_v4, %v12341_v61  ;;  %v12458_v50 = vadd.f32 %v10533_v38, %v1718_v31  ;;  %v3831_v61 = vsel %vm16346_vm8, %v3821_v12, %v3830_v48 }
 0x133   : > { %v10499_v47 = vpop.f32.mrf.mxu1  ;;  %v1987_v42 = vpop.f32.mrf.mxu0  ;;  %v4220_v19 = vsel %vm16347_vm7, %v4217_v3, %v4219_v25  ;;  %v3872_v3 = vshll.u32 %v12298_v22, 16 }
 0x134   : > { %v1734_v49 = vadd.f32 %v10499_v47, %v12351_v1  ;;  %v12464_v18 = vadd.f32 %v1987_v42, %v1710_v60  ;;  %v3839_v1 = vor.u32 %v3838_v14, %v3835_v6  ;;  %v3856_v47 = vrot.slane %v3854_v26, 3 }
 0x135   : > { %v1725_v23 = vpop.f32.mrf.mxu1  ;;  %v10536_v53 = vpop.f32.mrf.mxu0  ;;  %10751 = vmatmul.mubr.msk.bf16.gmra.mxu0 %vm16329_vm3, %v4216_v5  ;;  %v3862_v5 = vrot.slane %v3860_v7, 2  ;;  %v3865_v6 = vrot.slane %v3863_v46, 3  ;;  %v3874_v7 = vrot.slane %v3872_v3, 3 }
 0x136   : > { %v1726_v31 = vadd.f32 %v1725_v23, %v12357_v16  ;;  %v12469_v21 = vadd.f32 %v10536_v53, %v1731_v62  ;;  %10754 = vmatprep.mubr.msk.bf16.mxu0 %vm16329_vm3, %v4218_v35  ;;  %v4221_v16 = vrot.slane %v12213_v17, 3  ;;  %v3848_v62 = vor.u32 %v3847_v30, %v3844_v52 }
 0x137   : > { %v10502_v41 = vpop.f32.mrf.mxu1  ;;  %10717 = vmatmul.mubr.msk.bf16.gmra.mxu1 %vm16329_vm3, %v3822_v11  ;;  %v2000_v60 = vpop.f32.mrf.mxu0  ;;  %v3840_v4 = vsel %vm16346_vm8, %v3830_v48, %v3839_v1  ;;  %v3869_v48 = vshrl.u32 %v12298_v22, 16  ;;  %v3857_v30 = vor.u32 %v3856_v47, %v3853_v44  ;;  %v4225_v53 = vrot.slane %v12243_v33, 3 }
 0x138   : > { %10720 = vmatprep.mubr.msk.bf16.mxu1 %vm16329_vm3, %v3831_v61  ;;  %v12480_v40 = vadd.f32 %v2000_v60, %v1723_v37  ;;  %v4222_v38 = vsel %vm16347_vm7, %v4219_v25, %v4221_v16  ;;  %v1747_v14 = vadd.f32 %v10502_v41, %v12215_v27  ;;  %v3849_v11 = vsel %vm16346_vm8, %v3839_v1, %v3848_v62 }
 0x139   : > { %v1738_v0 = vpop.f32.mrf.mxu1  ;;  %v10537_v34 = vpop.f32.mrf.mxu0  ;;  %v4223_v27 = vrot.slane %v12240_v54, 3  ;;  %v3878_v25 = vshrl.u32 %v12301_v45, 16  ;;  %v3871_v26 = vrot.slane %v3869_v48, 2  ;;  %v3883_v47 = vrot.slane %v3881_v10, 3  ;;  %v16507_v10 = vld [vmem:[#allocation5_spill] sm:$0xff] }
 0x13a   : > { %v12482_v29 = vadd.f32 %v10537_v34, %v1734_v49  ;;  %v1739_v35 = vadd.f32 %v1738_v0, %v12222_v15  ;;  %v4229_v48 = vrot.slane %v12273_v32, 3 }
 0x13b   : > { %v10503_v12 = vpop.f32.mrf.mxu1  ;;  %v2003_v17 = vpop.f32.mrf.mxu0  ;;  %v4224_v34 = vsel %vm16347_vm7, %v4221_v16, %v4223_v27  ;;  %v11317_v16 = vld [vmem:[%s16314_s3 + $0x8] sm:$0xff]  }
 0x13c   : > { %v12488_v42 = vadd.f32 %v2003_v17, %v1726_v31  ;;  %v3866_v31 = vor.u32 %v3865_v6, %v3862_v5  ;;  %v1750_v41 = vadd.f32 %v10503_v12, %v12231_v57  ;;  %v3858_v57 = vsel %vm16346_vm8, %v3848_v62, %v3857_v30  ;;  %10782 = vmatprep.subr.bf16.mxu1 %v11317_v16 }
 0x13d   : > { %v1741_v37 = vpop.f32.mrf.mxu1  ;;  %v10540_v49 = vpop.f32.mrf.mxu0  ;;  %10755 = vmatmul.mubr.msk.bf16.gmra.mxu0 %vm16329_vm3, %v4220_v19  ;;  %v3875_v5 = vor.u32 %v3874_v7, %v3871_v26  ;;  %10783 = vmatpush3.bf16.msra.mxu1 %v11317_v16  ;;  %v16509_v16 = vld [vmem:[#allocation7_spill] sm:$0xff] }
 0x13e   : > { %v12495_v61 = vadd.f32 %v10540_v49, %v1747_v14  ;;  %10758 = vmatprep.mubr.msk.bf16.mxu0 %vm16329_vm3, %v4222_v38  ;;  %v1742_v54 = vadd.f32 %v1741_v37, %v12235_v24  ;;  %v3867_v12 = vsel %vm16346_vm8, %v3857_v30, %v3866_v31  ;;  %v3880_v38 = vrot.slane %v3878_v25, 2  ;;  %v16504_v37 = vld [vmem:[#allocation13_spill] sm:$0xff] }
 0x13f   : > { %v10506_v23 = vpop.f32.mrf.mxu1  ;;  %10721 = vmatmul.mubr.msk.bf16.gmra.mxu1 %vm16329_vm3, %v3840_v4  ;;  %v2016_v52 = vpop.f32.mrf.mxu0  ;;  %v4226_v4 = vsel %vm16347_vm7, %v4223_v27, %v4225_v53  ;;  %v3890_v3 = vshll.u32 %v16504_v37, 16  ;;  %v11318_v27 = vld [vmem:[%s16314_s3] sm:$0xff]   ;;  %v3876_v32 = vsel %vm16346_vm8, %v3866_v31, %v3875_v5 }
 0x140   : > { %10724 = vmatprep.mubr.msk.bf16.mxu1 %vm16329_vm3, %v3849_v11  ;;  %v12503_v15 = vadd.f32 %v2016_v52, %v1739_v35  ;;  %v1763_v19 = vadd.f32 %v10506_v23, %v12245_v9  ;;  %v4227_v9 = vrot.slane %v12270_v36, 3  ;;  %v3887_v11 = vshrl.u32 %v16504_v37, 16  ;;  %v16505_v35 = vld [vmem:[#allocation14_spill] sm:$0xff]  ;;  %v16506_v52 = vld [vmem:[#allocation4_spill] sm:$0xff]  ;;  %10820 = vmatprep.subr.bf16.mxu0 %v11318_v27 }
 0x141   : > { %v1754_v1 = vpop.f32.mrf.mxu1  ;;  %v10541_v60 = vpop.f32.mrf.mxu0  ;;  %v3899_v23 = vshll.u32 %v16505_v35, 16  ;;  %10821 = vmatpush3.bf16.msra.mxu0 %v11318_v27 }
 0x142   : > { %v12508_v0 = vadd.f32 %v10541_v60, %v1750_v41  ;;  %v1755_v62 = vadd.f32 %v1754_v1, %v12252_v13  ;;  %v3896_v13 = vshrl.u32 %v16505_v35, 16  ;;  %v3884_v1 = vor.u32 %v3883_v47, %v3880_v38 }
 0x143   : > { %v10507_v46 = vpop.f32.mrf.mxu1  ;;  %v2019_v33 = vpop.f32.mrf.mxu0 }
 0x144   : > { %v12515_v17 = vadd.f32 %v2019_v33, %v1742_v54  ;;  %v1766_v36 = vadd.f32 %v10507_v46, %v16506_v52  ;;  %v4228_v54 = vsel %vm16347_vm7, %v4225_v53, %v4227_v9  ;;  %v4230_v46 = vsel %vm16347_vm7, %v4227_v9, %v4229_v48 }
 0x145   : > { %v1757_v44 = vpop.f32.mrf.mxu1  ;;  %v10544_v24 = vpop.f32.mrf.mxu0  ;;  %10759 = vmatmul.mubr.msk.bf16.gmra.mxu0 %vm16329_vm3, %v4224_v34  ;;  %v3889_v34 = vrot.slane %v3887_v11, 2  ;;  %v4231_v53 = vrot.slane %v12298_v22, 3  ;;  %v3908_v9 = vshll.u32 %v12354_v20, 16  ;;  %v4233_v22 = vrot.slane %v12301_v45, 3 }
 0x146   : > { %v12522_v14 = vadd.f32 %v10544_v24, %v1763_v19  ;;  %10762 = vmatprep.mubr.msk.bf16.mxu0 %vm16329_vm3, %v4226_v4  ;;  %v1758_v60 = vadd.f32 %v1757_v44, %v16507_v10  ;;  %v3901_v4 = vrot.slane %v3899_v23, 3  ;;  %v16508_v19 = vld [vmem:[#allocation6_spill] sm:$0xff]  ;;  %v3885_v44 = vsel %vm16346_vm8, %v3875_v5, %v3884_v1  ;;  %v16510_v23 = vld [vmem:[#allocation8_spill] sm:$0xff] }
 0x147   : > { %v10510_v6 = vpop.f32.mrf.mxu1  ;;  %10725 = vmatmul.mubr.msk.bf16.gmra.mxu1 %vm16329_vm3, %v3858_v57  ;;  %v2032_v49 = vpop.f32.mrf.mxu0  ;;  %v3892_v57 = vrot.slane %v3890_v3, 3 }
 0x148   : > { %10728 = vmatprep.mubr.msk.bf16.mxu1 %vm16329_vm3, %v3867_v12  ;;  %v12537_v41 = vadd.f32 %v2032_v49, %v1755_v62  ;;  %v3898_v12 = vrot.slane %v3896_v13, 2  ;;  %v1779_v38 = vadd.f32 %v10510_v6, %v16508_v19  ;;  %v3905_v6 = vshrl.u32 %v12354_v20, 16 }
 0x149   : > { %v1770_v30 = vpop.f32.mrf.mxu1  ;;  %v10545_v25 = vpop.f32.mrf.mxu0  ;;  %v3893_v5 = vor.u32 %v3892_v57, %v3889_v34  ;;  %v3910_v57 = vrot.slane %v3908_v9, 3 }
 0x14a   : > { %v12541_v7 = vadd.f32 %v10545_v25, %v1766_v36  ;;  %v1771_v62 = vadd.f32 %v1770_v30, %v16509_v16  ;;  %v3902_v13 = vor.u32 %v3901_v4, %v3898_v12  ;;  %v16511_v30 = vld [vmem:[#allocation16_spill] sm:$0xff]  ;;  %v3907_v34 = vrot.slane %v3905_v6, 2  ;;  %v16514_v6 = vld [vmem:[#allocation11_spill] sm:$0xff] }
 0x14b   : > { %v10511_v26 = vpop.f32.mrf.mxu1  ;;  %v2035_v33 = vpop.f32.mrf.mxu0  ;;  %v3914_v25 = vshrl.u32 %v16511_v30, 16  ;;  %v4234_v4 = vsel %vm16347_vm7, %v4231_v53, %v4233_v22 }
 0x14c   : > { %v12546_v31 = vadd.f32 %v2035_v33, %v1758_v60  ;;  %v1782_v27 = vadd.f32 %v10511_v26, %v16510_v23  ;;  %v4232_v60 = vsel %vm16347_vm7, %v4229_v48, %v4231_v53  ;;  %v3894_v26 = vsel %vm16346_vm8, %v3884_v1, %v3893_v5  ;;  %v16515_v23 = vld [vmem:[#allocation17_spill] sm:$0xff] }
 0x14d   : > { %v1773_v47 = vpop.f32.mrf.mxu1  ;;  %v10548_v24 = vpop.f32.mrf.mxu0  ;;  %10763 = vmatmul.mubr.msk.bf16.gmra.mxu0 %vm16329_vm3, %v4228_v54  ;;  %v16512_v54 = vld [vmem:[#allocation9_spill] sm:$0xff]  ;;  %v3903_v12 = vsel %vm16346_vm8, %v3893_v5, %v3902_v13  ;;  %v3911_v53 = vor.u32 %v3910_v57, %v3907_v34  ;;  %v16517_v34 = vld [vmem:[#allocation18_spill] sm:$0xff] }
 0x14e   : > { %v12552_v49 = vadd.f32 %v10548_v24, %v1779_v38  ;;  %10766 = vmatprep.mubr.msk.bf16.mxu0 %vm16329_vm3, %v4230_v46  ;;  %v1774_v33 = vadd.f32 %v1773_v47, %v16512_v54  ;;  %v12572_v38 = vld [vmem:[#allocation3 + $0xa0] ss:$0 sps:$4 sm:$0x77]   ;;  %v3916_v47 = vrot.slane %v3914_v25, 2  ;;  %v4237_v25 = vrot.slane %v16505_v35, 3 }
 0x14f   : > { %v10514_v11 = vpop.f32.mrf.mxu1  ;;  %10729 = vmatmul.mubr.msk.bf16.gmra.mxu1 %vm16329_vm3, %v3876_v32  ;;  %v2048_v3 = vpop.f32.mrf.mxu0  ;;  %v3917_v32 = vshll.u32 %v16511_v30, 16 }
 0x150   : > { %10732 = vmatprep.mubr.msk.bf16.mxu1 %vm16329_vm3, %v3885_v44  ;;  %v12561_v36 = vadd.f32 %v2048_v3, %v1771_v62  ;;  %v16513_v44 = vld [vmem:[#allocation10_spill] sm:$0xff] }
 0x151   : > { %v1786_v52 = vpop.f32.mrf.mxu1  ;;  %v10549_v10 = vpop.f32.mrf.mxu0  ;;  %v1795_v24 = vadd.f32 %v10514_v11, %v16513_v44  ;;  %v3919_v62 = vrot.slane %v3917_v32, 3  ;;  %v4235_v11 = vrot.slane %v16504_v37, 3  ;;  %v3923_v32 = vshrl.u32 %v12572_v38, 16 }
 0x152   : > { %v12567_v19 = vadd.f32 %v10549_v10, %v1782_v27  ;;  %v1787_v9 = vadd.f32 %v1786_v52, %v16514_v6  ;;  %v3926_v52 = vshll.u32 %v12572_v38, 16 }
 0x153   : > { %v10515_v46 = vpop.f32.mrf.mxu1  ;;  %v2051_v45 = vpop.f32.mrf.mxu0  ;;  %v4236_v35 = vsel %vm16347_vm7, %v4233_v22, %v4235_v11 }
 0x154   : > { %v12577_v48 = vadd.f32 %v2051_v45, %v1774_v33 }
 0x155   : > { %v12575_v16 = vpop.f32.mrf.mxu1  ;;  %v10552_v3 = vpop.f32.mrf.mxu0  ;;  %10767 = vmatmul.mubr.msk.bf16.gmra.mxu0 %vm16329_vm3, %v4232_v60  ;;  %v16516_v60 = vld [vmem:[#allocation12_spill] sm:$0xff] }
 0x156   : > { %v12581_v1 = vadd.f32 %v10552_v3, %v1795_v24  ;;  %10770 = vmatprep.mubr.msk.bf16.mxu0 %vm16329_vm3, %v4234_v4  ;;  %v1798_v54 = vadd.f32 %v10515_v46, %v16516_v60  ;;  %v16518_v24 = vld [vmem:[#allocation19_spill] sm:$0xff]  ;;  %v4238_v46 = vsel %vm16347_vm7, %v4235_v11, %v4237_v25 }
 0x157   : > { %v10558_v5 = vpop.f32.mrf.mxu1  ;;  %10733 = vmatmul.mubr.msk.bf16.gmra.mxu1 %vm16329_vm3, %v3894_v26  ;;  %v2064_v10 = vpop.f32.mrf.mxu0  ;;  %v3920_v26 = vor.u32 %v3919_v62, %v3916_v47 }
 0x158   : > { %v2520_v27 = vadd.f32 %v10558_v5, %v16515_v23  ;;  %10736 = vmatprep.mubr.msk.bf16.mxu1 %vm16329_vm3, %v3903_v12  ;;  %v12592_v33 = vadd.f32 %v2064_v10, %v1787_v9  ;;  %v3912_v12 = vsel %vm16346_vm8, %v3902_v13, %v3911_v53  ;;  %v3925_v9 = vrot.slane %v3923_v32, 2 }
 0x159   : > { %v2375_v45 = vpop.f32.mrf.mxu1  ;;  %v10553_v37 = vpop.f32.mrf.mxu0  ;;  %v3928_v5 = vrot.slane %v3926_v52, 3  ;;  %v3921_v47 = vsel %vm16346_vm8, %v3911_v53, %v3920_v26  ;;  %v4239_v13 = vrot.slane %v12354_v20, 3  ;;  %v4241_v53 = vrot.slane %v16511_v30, 3 }
 0x15a   : > { %v2518_v57 = vadd.f32 %v2375_v45, %v16517_v34  ;;  %v12595_v4 = vadd.f32 %v10553_v37, %v1798_v54  ;;  %v287_v20 = vlaneseq }
 0x15b   : > { %v10559_v44 = vpop.f32.mrf.mxu1  ;;  %v12600_v6 = vpop.f32.mrf.mxu0  ;;  %v3929_v32 = vor.u32 %v3928_v5, %v3925_v9  ;;  %v4242_v30 = vsel %vm16347_vm7, %v4239_v13, %v4241_v53 }
 0x15c   : > { %v2521_v3 = vadd.f32 %v10559_v44, %v16518_v24  ;;  %v4240_v44 = vsel %vm16347_vm7, %v4237_v25, %v4239_v13  ;;  %v12634_v25 = vshrl.u32 %v287_v20, 7 }
 0x15d   : > { %v12603_v23 = vpop.f32.mrf.mxu1  ;;  %v10596_v62 = vpop.f32.mrf.mxu0  ;;  %10771 = vmatmul.mubr.msk.bf16.gmra.mxu0 %vm16329_vm3, %v4236_v35  ;;  %v3930_v35 = vsel %vm16346_vm8, %v3920_v26, %v3929_v32 }
 0x15e   : > { %v12607_v60 = vadd.f32 %v10596_v62, %v2520_v27  ;;  %10774 = vmatprep.mubr.msk.bf16.mxu0 %vm16329_vm3, %v4238_v46 }
 0x15f   : > { %v10562_v10 = vpop.f32.mrf.mxu1  ;;  %10737 = vmatmul.mubr.msk.bf16.gmra.mxu1 %vm16329_vm3, %v3912_v12  ;;  %v2822_v11 = vpop.f32.mrf.mxu0 }
 0x160   : > { %v2524_v22 = vadd.f32 %v10562_v10, %v12391_v56  ;;  %10740 = vmatprep.mubr.msk.bf16.mxu1 %vm16329_vm3, %v3921_v47  ;;  %v12615_v54 = vadd.f32 %v2822_v11, %v2518_v57  ;;  %v12644_v11 = vadd.s32 16, %v12634_v25 }
 0x161   : > { %v2391_v52 = vpop.f32.mrf.mxu1  ;;  %v10597_v45 = vpop.f32.mrf.mxu0 }
 0x162   : > { %v2522_v27 = vadd.f32 %v2391_v52, %v12400_v8  ;;  %v12618_v37 = vadd.f32 %v10597_v45, %v2521_v3 }
 0x163   : > { %v10563_v34 = vpop.f32.mrf.mxu1  ;;  %v12622_v12 = vpop.f32.mrf.mxu0 }
 0x164   : > { %v2525_v56 = vadd.f32 %v10563_v34, %v12405_v28  ;;  %v4243_v28 = vrot.slane %v12572_v38, 3  ;;  %v12655_v45 = vmul.u32.u64.low 3817748708, %v12644_v11  ;;  %v12656_v34 = vmul.u32.u64.high 3817748708, %v12644_v11, %v12655_v45 }
 0x165   : > { %v12626_v24 = vpop.f32.mrf.mxu1  ;;  %v10600_v57 = vpop.f32.mrf.mxu0  ;;  %10775 = vmatmul.mubr.msk.bf16.gmra.mxu0 %vm16329_vm3, %v4240_v44 }
 0x166   : > { %v12629_v46 = vadd.f32 %v10600_v57, %v2524_v22  ;;  %10778 = vmatprep.mubr.msk.bf16.mxu0 %vm16329_vm3, %v4242_v30  ;;  %v4244_v22 = vsel %vm16347_vm7, %v4241_v53, %v4243_v28  ;;  %v12675_v30 = vmul.u32.u64.low 3817748708, %v12634_v25  ;;  %v12676_v57 = vmul.u32.u64.high 3817748708, %v12634_v25, %v12675_v30 }
 0x167   : > { %v10566_v8 = vpop.f32.mrf.mxu1  ;;  %10741 = vmatmul.mubr.msk.bf16.gmra.mxu1 %vm16329_vm3, %v3930_v35  ;;  %v2838_v3 = vpop.f32.mrf.mxu0 }
 0x168   : > { %v2528_v26 = vadd.f32 %v10566_v8, %v12415_v51  ;;  %v12637_v5 = vadd.f32 %v2838_v3, %v2522_v27 }
 0x169   : > { %v2407_v9 = vpop.f32.mrf.mxu1  ;;  %v10601_v62 = vpop.f32.mrf.mxu0 }
 0x16a   : > { %v2526_v47 = vadd.f32 %v2407_v9, %v12425_v59  ;;  %v12640_v13 = vadd.f32 %v10601_v62, %v2525_v56  ;;  %v16521_v56 = vmov 0   ;;  %v12684_v9 = vadd.s32 24, %v12634_v25 }
 0x16b   : > { %v10567_v10 = vpop.f32.mrf.mxu1  ;;  %v12647_v32 = vpop.f32.mrf.mxu0  ;;  %281 = vst.msk [vmem:[#allocation2] sm:$0xf] %vm16348_vm9, %v16521_v56  ;;  %282 = vst.msk [vmem:[#allocation2 + $0x4] sm:$0xf] %vm16348_vm9, %v16521_v56 }
 0x16c   : > { %v2529_v38 = vadd.f32 %v10567_v10, %v12430_v55  ;;  %283 = vst.msk [vmem:[#allocation2 + $0x8] sm:$0xf] %vm16348_vm9, %v16521_v56  ;;  %284 = vst.msk [vmem:[#allocation2 + $0x9c] sm:$0xf] %vm16348_vm9, %v16521_v56 }
 0x16d   : > { %v12649_v51 = vpop.f32.mrf.mxu1  ;;  %v10604_v52 = vpop.f32.mrf.mxu0  ;;  %10779 = vmatmul.mubr.msk.bf16.gmra.mxu0 %vm16329_vm3, %v4244_v22  ;;  %285 = vst.msk [vmem:[#allocation2 + $0xa0] sm:$0xf] %vm16348_vm9, %v16521_v56  ;;  %286 = vst.msk [vmem:[#allocation2 + $0xa4] sm:$0xf] %vm16348_vm9, %v16521_v56  ;;  %v352_v22 = vshrl.u32 %v12656_v34, 4  ;;  %v12702_v56 = vadd.s32 48, %v12634_v25 }
 0x16e   : > { %v12652_v59 = vadd.f32 %v10604_v52, %v2528_v26  ;;  %v330_v34 = vshrl.u32 %v12676_v57, 4  ;;  %v12722_v57 = vadd.s32 32, %v12634_v25 }
 0x16f   : > { %v10570_v27 = vpop.f32.mrf.mxu1  ;;  %v2854_v44 = vpop.f32.mrf.mxu0 }
 0x170   : > { %16519 = vst [vmem:[#allocation13_spill] sm:$0xff] %v12652_v59  ;;  %v2532_v53 = vadd.f32 %v10570_v27, %v12443_v2  ;;  %v12659_v55 = vadd.f32 %v2854_v44, %v2526_v47 }
 0x171   : > { %v2423_v20 = vpop.f32.mrf.mxu1  ;;  %v10605_v35 = vpop.f32.mrf.mxu0 }
 0x172   : > { %16520 = vst [vmem:[#allocation14_spill] sm:$0xff] %v12659_v55  ;;  %v2530_v2 = vadd.f32 %v2423_v20, %v12453_v58  ;;  %v12678_v28 = vadd.f32 %v10605_v35, %v2529_v38  ;;  %v12693_v38 = vmul.u32.u64.low 3817748708, %v12684_v9  ;;  %v12694_v45 = vmul.u32.u64.high 3817748708, %v12684_v9, %v12693_v38 }
 0x173   : > { %v10571_v8 = vpop.f32.mrf.mxu1  ;;  %v12681_v3 = vpop.f32.mrf.mxu0 }
 0x174   : > { %16522 = vst [vmem:[#allocation4_spill] sm:$0xff] %v12678_v28  ;;  %v2533_v26 = vadd.f32 %v10571_v8, %v12458_v50  ;;  %v12697_v50 = vadd.s32 8, %v12634_v25  ;;  %v363_v59 = vshrl.u32 %v12694_v45, 4 }
 0x175   : > { %v12686_v47 = vpop.f32.mrf.mxu1  ;;  %v10608_v62 = vpop.f32.mrf.mxu0 }
 0x176   : > { %v12688_v58 = vadd.f32 %v10608_v62, %v2532_v53 }
 0x177   : > { %v10574_v10 = vpop.f32.mrf.mxu1  ;;  %v2870_v27 = vpop.f32.mrf.mxu0 }
 0x178   : > { %16523 = vst [vmem:[#allocation5_spill] sm:$0xff] %v12688_v58  ;;  %v2536_v52 = vadd.f32 %v10574_v10, %v12469_v21  ;;  %v12699_v20 = vadd.f32 %v2870_v27, %v2530_v2  ;;  %v353_v10 = vmul.u32 18, %v352_v22 }
 0x179   : > { %v2439_v44 = vpop.f32.mrf.mxu1  ;;  %v10609_v35 = vpop.f32.mrf.mxu0  ;;  %v12712_v38 = vmul.u32.u64.low 3817748708, %v12697_v50  ;;  %v12713_v2 = vmul.u32.u64.high 3817748708, %v12697_v50, %v12712_v38 }
 0x17a   : > { %16524 = vst [vmem:[#allocation6_spill] sm:$0xff] %v12699_v20  ;;  %v2534_v53 = vadd.f32 %v2439_v44, %v12480_v40  ;;  %v12706_v30 = vadd.f32 %v10609_v35, %v2533_v26  ;;  %v12718_v20 = vmul.u32.u64.low 3817748708, %v12702_v56  ;;  %v12719_v40 = vmul.u32.u64.high 3817748708, %v12702_v56, %v12718_v20 }
 0x17b   : > { %v10575_v21 = vpop.f32.mrf.mxu1  ;;  %v12709_v62 = vpop.f32.mrf.mxu0  ;;  %v331_v44 = vmul.u32 18, %v330_v34  ;;  %v12735_v28 = vsub.s32 %v12644_v11, %v353_v10 }
 0x17c   : > { %16525 = vst [vmem:[#allocation7_spill] sm:$0xff] %v12706_v30  ;;  %v2537_v8 = vadd.f32 %v10575_v21, %v12482_v29  ;;  %v12725_v29 = vadd.s32 56, %v12634_v25  ;;  %v16527_v21 = vld [vmem:[#allocation15_spill] sm:$0xff]  ;;  %v2519_v30 = vadd.f32 %v12603_v23, %v12386_v63 }
 0x17d   : > { %v12715_v27 = vpop.f32.mrf.mxu1  ;;  %v10612_v26 = vpop.f32.mrf.mxu0  ;;  %v1790_v38 = vadd.f32 %v12575_v16, %v16527_v21  ;;  %16528 = vst [vmem:[#allocation16_spill] sm:$0xff] %v12735_v28  ;;  %v12746_v63 = vsub.s32 %v12634_v25, %v331_v44  ;;  %vm722_vm10 = vcmp.ne.s32.totalorder %v12735_v28, 0  ;;  %vm758_vm11 = vcmp.lt.s32.totalorder %v12735_v28, 0 }
 0x17e   : > { %v12727_v22 = vadd.f32 %v10612_v26, %v2536_v52  ;;  %v12741_v52 = vmul.u32.u64.low 3817748708, %v12722_v57  ;;  %v12742_v26 = vmul.u32.u64.high 3817748708, %v12722_v57, %v12741_v52  ;;  %vm12803_vm14 = vmand %vm758_vm11, %vm722_vm10 }
 0x17f   : > { %v10578_v35 = vpop.f32.mrf.mxu1  ;;  %v2886_v20 = vpop.f32.mrf.mxu0  ;;  %16530 = vst [vmem:[#allocation10_spill] sm:$0xff] %v12746_v63  ;;  %v12753_v11 = vadd.f32 %v12600_v6, %v1790_v38  ;;  %v2527_v6 = vadd.f32 %v12649_v51, %v12437_v43  ;;  %vm720_vm12 = vcmp.ne.s32.totalorder %v12746_v63, 0  ;;  %vm756_vm13 = vcmp.lt.s32.totalorder %v12746_v63, 0 }
 0x180   : > { %16526 = vst [vmem:[#allocation8_spill] sm:$0xff] %v12727_v22  ;;  %v2540_v58 = vadd.f32 %v10578_v35, %v12495_v61  ;;  %v12737_v34 = vadd.f32 %v2886_v20, %v2534_v53  ;;  %v12749_v61 = vmul.u32.u64.low 3817748708, %v12725_v29  ;;  %v12750_v23 = vmul.u32.u64.high 3817748708, %v12725_v29, %v12749_v61  ;;  %vm12816_vm15 = vmand %vm756_vm13, %vm720_vm12 }
 0x181   : > { %v2455_v55 = vpop.f32.mrf.mxu1  ;;  %v10613_v21 = vpop.f32.mrf.mxu0  ;;  %v12756_v53 = vadd.f32 %v12622_v12, %v2519_v30  ;;  %v341_v35 = vshrl.u32 %v12713_v2, 4  ;;  %v12767_v20 = vadd.s32 40, %v12634_v25  ;;  %v364_v30 = vmul.u32 18, %v363_v59 }
 0x182   : > { %16529 = vst [vmem:[#allocation9_spill] sm:$0xff] %v12737_v34  ;;  %v2538_v16 = vadd.f32 %v2455_v55, %v12503_v15  ;;  %v12758_v10 = vadd.f32 %v10613_v21, %v2537_v8  ;;  %v2523_v15 = vadd.f32 %v12626_v24, %v12410_v39  ;;  %v396_v8 = vshrl.u32 %v12719_v40, 4 }
 0x183   : > { %v10579_v45 = vpop.f32.mrf.mxu1  ;;  %v12763_v44 = vpop.f32.mrf.mxu0  ;;  %v12781_v24 = vadd.s32 80, %v12634_v25  ;;  %v12787_v51 = vadd.s32 18, %v12746_v63  ;;  %v12790_v59 = vadd.s32 64, %v12634_v25  ;;  %v342_v52 = vmul.u32 18, %v341_v35 }
 0x184   : > { %16531 = vst [vmem:[#allocation11_spill] sm:$0xff] %v12758_v10  ;;  %v2541_v55 = vadd.f32 %v10579_v45, %v12508_v0  ;;  %v12777_v0 = vadd.s32 18, %v12735_v28  ;;  %v12794_v21 = vmul.u32.u64.low 3817748708, %v12767_v20  ;;  %v12795_v61 = vmul.u32.u64.high 3817748708, %v12767_v20, %v12794_v21 }
 0x185   : > { %v12771_v12 = vpop.f32.mrf.mxu1  ;;  %v10616_v39 = vpop.f32.mrf.mxu0  ;;  %16534 = vst [vmem:[#allocation18_spill] sm:$0xff] %v12787_v51  ;;  %v374_v35 = vshrl.u32 %v12742_v26, 4  ;;  %v12838_v34 = vadd.f32 %v12681_v3, %v2527_v6 }
 0x186   : > { %16532 = vst [vmem:[#allocation17_spill] sm:$0xff] %v12777_v0  ;;  %v12783_v43 = vadd.f32 %v10616_v39, %v2540_v58  ;;  %v16536_v58 = vmov 0  ;;  %v12808_v39 = vsub.s32 %v12684_v9, %v364_v30 }
 0x187   : > { %v10582_v2 = vpop.f32.mrf.mxu1  ;;  %v2902_v38 = vpop.f32.mrf.mxu0  ;;  %v16537_v58 = vsel %vm12803_vm14, 4294967295, %v16536_v58  ;;  %v375_v3 = vmul.u32 18, %v374_v35 }
 0x188   : > { %16533 = vst [vmem:[#allocation12_spill] sm:$0xff] %v12783_v43  ;;  %v2544_v40 = vadd.f32 %v10582_v2, %v12522_v14  ;;  %v12797_v10 = vadd.f32 %v2902_v38, %v2538_v16  ;;  %16538 = vst [vmem:[#allocation15_spill] sm:$0xff] %v16537_v58  ;;  %v397_v14 = vmul.u32 18, %v396_v8  ;;  %v16540_v16 = vmov 0 }
 0x189   : > { %v2471_v45 = vpop.f32.mrf.mxu1  ;;  %16539 = vst [vmem:[#allocation20_spill] sm:$0xff] %v12808_v39  ;;  %v10617_v21 = vpop.f32.mrf.mxu0  ;;  %v16541_v16 = vsel %vm12816_vm15, 4294967295, %v16540_v16  ;;  %v407_v38 = vshrl.u32 %v12750_v23, 4  ;;  %v12835_v43 = vadd.f32 %v12647_v32, %v2523_v15  ;;  %vm723_vm1 = vcmp.ne.s32.totalorder %v12808_v39, 0 }
 0x18a   : > { %16535 = vst [vmem:[#allocation19_spill] sm:$0xff] %v12797_v10  ;;  %v2542_v2 = vadd.f32 %v2471_v45, %v12537_v41  ;;  %16542 = vst [vmem:[#allocation21_spill] sm:$0xff] %v16541_v16  ;;  %v12822_v10 = vmul.u32.u64.low 3817748708, %v12781_v24  ;;  %v12823_v9 = vmul.u32.u64.high 3817748708, %v12781_v24, %v12822_v10  ;;  %v12825_v8 = vadd.f32 %v10617_v21, %v2541_v55 }
 0x18b   : > { %v10583_v30 = vpop.f32.mrf.mxu1  ;;  %v12828_v41 = vmul.u32.u64.low 3817748708, %v12790_v59  ;;  %v12829_v26 = vmul.u32.u64.high 3817748708, %v12790_v59, %v12828_v41  ;;  %v12832_v45 = vadd.s32 88, %v12634_v25  ;;  %v12841_v22 = vpop.f32.mrf.mxu0  ;;  %v12844_v10 = vsub.s32 %v12697_v50, %v342_v52 }
 0x18c   : > { %v2545_v23 = vadd.f32 %v10583_v30, %v12541_v7  ;;  %v12848_v55 = vadd.f32 %v12686_v47, %v12464_v18  ;;  %vm759_vm5 = vcmp.lt.s32.totalorder %v12808_v39, 0  ;;  %v12863_v18 = vadd.s32 18, %v12808_v39 }
 0x18d   : > { %16543 = vst [vmem:[#allocation22_spill] sm:$0xff] %v12844_v10  ;;  %v12850_v21 = vpop.f32.mrf.mxu1  ;;  %v10620_v15 = vpop.f32.mrf.mxu0  ;;  %v408_v47 = vmul.u32 18, %v407_v38  ;;  %v12868_v52 = vsub.s32 %v12702_v56, %v397_v14  ;;  %v12871_v30 = vmul.u32.u64.low 3817748708, %v12832_v45  ;;  %v12872_v41 = vmul.u32.u64.high 3817748708, %v12832_v45, %v12871_v30  ;;  %vm12916_vm3 = vmand %vm759_vm5, %vm723_vm1 }
 0x18e   : > { %v12865_v6 = vadd.f32 %v10620_v15, %v2544_v40  ;;  %vm721_vm10 = vcmp.ne.s32.totalorder %v12844_v10, 0  ;;  %vm757_vm11 = vcmp.lt.s32.totalorder %v12844_v10, 0  ;;  %v385_v32 = vshrl.u32 %v12795_v61, 4 }
 0x18f   : > { %v10586_v50 = vpop.f32.mrf.mxu1  ;;  %16544 = vst [vmem:[#allocation23_spill] sm:$0xff] %v12868_v52  ;;  %v2918_v7 = vpop.f32.mrf.mxu0  ;;  %v12881_v40 = vadd.s32 18, %v12844_v10  ;;  %v12884_v56 = vsub.s32 %v12722_v57, %v375_v3  ;;  %v12887_v14 = vadd.s32 72, %v12634_v25  ;;  %v12893_v61 = vsub.s32 %v12725_v29, %v408_v47  ;;  %vm12930_vm0 = vmand %vm757_vm11, %vm721_vm10  ;;  %v4921_v10 = vld [vmem:[#allocation2] sm:$0x8] }
 0x190   : > { %v2548_v35 = vadd.f32 %v10586_v50, %v12552_v49  ;;  %v12878_v63 = vadd.f32 %v2918_v7, %v2542_v2  ;;  %v2535_v49 = vadd.f32 %v12715_v27, %v12488_v42  ;;  %v440_v2 = vshrl.u32 %v12823_v9, 4 }
 0x191   : > { %v2487_v38 = vpop.f32.mrf.mxu1  ;;  %16546 = vst [vmem:[#allocation25_spill] sm:$0xff] %v12881_v40  ;;  %16547 = vst [vmem:[#allocation26_spill] sm:$0xff] %v12884_v56  ;;  %v10621_v50 = vpop.f32.mrf.mxu0  ;;  %vm726_vm12 = vcmp.ne.s32.totalorder %v12868_v52, 0  ;;  %vm762_vm13 = vcmp.lt.s32.totalorder %v12868_v52, 0  ;;  %v418_v57 = vshrl.u32 %v12829_v26, 4  ;;  %v386_v27 = vmul.u32 18, %v385_v32 }
 0x192   : > { %16545 = vst [vmem:[#allocation24_spill] sm:$0xff] %v12878_v63  ;;  %v2546_v15 = vadd.f32 %v2487_v38, %v12561_v36  ;;  %16548 = vst [vmem:[#allocation27_spill] sm:$0xff] %v12893_v61  ;;  %v12896_v30 = vadd.f32 %v10621_v50, %v2545_v23  ;;  %v12905_v36 = vadd.s32 18, %v12868_v52  ;;  %v12908_v29 = vadd.s32 112, %v12634_v25 }
 0x193   : > { %v10587_v7 = vpop.f32.mrf.mxu1  ;;  %v12902_v42 = vpop.f32.mrf.mxu0  ;;  %vm724_vm4 = vcmp.ne.s32.totalorder %v12884_v56, 0  ;;  %vm760_vm6 = vcmp.lt.s32.totalorder %v12884_v56, 0  ;;  %v16553_v47 = vmov 0  ;;  %v12935_v38 = vadd.s32 18, %v12884_v56  ;;  %vm12948_vm10 = vmand %vm762_vm13, %vm726_vm12 }
 0x194   : > { %16549 = vst [vmem:[#allocation28_spill] sm:$0xff] %v12896_v30  ;;  %v2549_v3 = vadd.f32 %v10587_v7, %v12567_v19  ;;  %16550 = vst [vmem:[#allocation29_spill] sm:$0xff] %v12905_v36  ;;  %v12923_v19 = vmul.u32.u64.low 3817748708, %v12887_v14  ;;  %v12924_v26 = vmul.u32.u64.high 3817748708, %v12887_v14, %v12923_v19  ;;  %v16554_v47 = vsel %vm12930_vm0, 4294967295, %v16553_v47  ;;  %v11322_v7 = vld [vmem:[%s16314_s3 + $0x10] sm:$0xff]  }
 0x195   : > { %v12910_v9 = vpop.f32.mrf.mxu1  ;;  %v10624_v32 = vpop.f32.mrf.mxu0  ;;  %16555 = vst [vmem:[#allocation30_spill] sm:$0xff] %v16554_v47  ;;  %16556 = vst [vmem:[#allocation31_spill] sm:$0xff] %v12935_v38  ;;  %vm727_vm1 = vcmp.ne.s32.totalorder %v12893_v61, 0  ;;  %vm763_vm5 = vcmp.lt.s32.totalorder %v12893_v61, 0  ;;  %v441_v50 = vmul.u32 18, %v440_v2  ;;  %v16558_v16 = vmov 0  ;;  %10858 = vmatprep.subr.bf16.mxu1 %v11322_v7 }
 0x196   : > { %v12942_v51 = vadd.f32 %v10624_v32, %v2548_v35  ;;  %v16559_v16 = vsel %vm12948_vm10, 4294967295, %v16558_v16  ;;  %v12953_v28 = vadd.s32 18, %v12893_v61  ;;  %v419_v0 = vmul.u32 18, %v418_v57  ;;  %vm12961_vm11 = vmand %vm760_vm6, %vm724_vm4 }
 0x197   : > { %v10590_v19 = vpop.f32.mrf.mxu1  ;;  %16560 = vst [vmem:[#allocation33_spill] sm:$0xff] %v16559_v16  ;;  %v451_v2 = vshrl.u32 %v12872_v41, 4  ;;  %v2934_v30 = vpop.f32.mrf.mxu0  ;;  %v16562_v35 = vmov 0  ;;  %v12966_v32 = vsub.s32 %v12767_v20, %v386_v27  ;;  %v12977_v41 = vadd.f32 %v12709_v62, %v12848_v55  ;;  %vm12993_vm4 = vmand %vm763_vm5, %vm727_vm1 }
 0x198   : > { %16557 = vst [vmem:[#allocation32_spill] sm:$0xff] %v12942_v51  ;;  %16561 = vst [vmem:[#allocation34_spill] sm:$0xff] %v12953_v28  ;;  %v2552_v58 = vadd.f32 %v10590_v19, %v12581_v1  ;;  %v16563_v35 = vsel %vm12961_vm11, 4294967295, %v16562_v35  ;;  %v12969_v51 = vmul.u32.u64.low 3817748708, %v12908_v29  ;;  %v12970_v63 = vmul.u32.u64.high 3817748708, %v12908_v29, %v12969_v51  ;;  %v11323_v1 = vld [vmem:[%s16314_s3 + $0x18] sm:$0xff]  }
 0x199   : > { %16564 = vst [vmem:[#allocation35_spill] sm:$0xff] %v16563_v35  ;;  %16565 = vst [vmem:[#allocation36_spill] sm:$0xff] %v12966_v32  ;;  %v2503_v57 = vpop.f32.mrf.mxu1  ;;  %v12979_v19 = vadd.f32 %v2934_v30, %v2546_v15  ;;  %v16566_v62 = vmov 0  ;;  %v12998_v55 = vadd.f32 %v12763_v44, %v2535_v49  ;;  %v10625_v30 = vpop.f32.mrf.mxu0  ;;  %v13006_v7 = vsub.s32 %v12781_v24, %v441_v50  ;;  %10896 = vmatprep.subr.bf16.mxu0 %v11323_v1 }
 0x19a   : > { %v16567_v62 = vsel %vm12993_vm4, 4294967295, %v16566_v62  ;;  %v2550_v15 = vadd.f32 %v2503_v57, %v12592_v33  ;;  %v13008_v20 = vadd.f32 %v10625_v30, %v2549_v3  ;;  %v13015_v33 = vsub.s32 %v12790_v59, %v419_v0  ;;  %v4883_v57 = vld [vmem:[#allocation2 + $0x4] sm:$0xf] }
 0x19b   : > { %16568 = vst [vmem:[#allocation37_spill] sm:$0xff] %v16567_v62  ;;  %16569 = vst [vmem:[#allocation38_spill] sm:$0xff] %v13006_v7  ;;  %v10591_v51 = vpop.f32.mrf.mxu1  ;;  %v452_v49 = vmul.u32 18, %v451_v2  ;;  %v2539_v27 = vadd.f32 %v12771_v12, %v12515_v17  ;;  %v13020_v50 = vpop.f32.mrf.mxu0  ;;  %vm725_vm6 = vcmp.ne.s32.totalorder %v12966_v32, 0  ;;  %vm761_vm12 = vcmp.lt.s32.totalorder %v12966_v32, 0 }
 0x19c   : > { %16570 = vst [vmem:[#allocation39_spill] sm:$0xff] %v13015_v33  ;;  %v2553_v24 = vadd.f32 %v10591_v51, %v12595_v4  ;;  %v13031_v0 = vadd.s32 18, %v12966_v32  ;;  %v429_v17 = vshrl.u32 %v12924_v26, 4  ;;  %v13035_v4 = vadd.s32 96, %v12634_v25  ;;  %vm13079_vm8 = vmand %vm761_vm12, %vm725_vm6 }
 0x19d   : > { %v13027_v1 = vpop.f32.mrf.mxu1  ;;  %v10628_v12 = vpop.f32.mrf.mxu0  ;;  %vm730_vm13 = vcmp.ne.s32.totalorder %v13006_v7, 0  ;;  %vm766_vm1 = vcmp.lt.s32.totalorder %v13006_v7, 0  ;;  %v13039_v59 = vcombine.low %v4921_v10, %v4883_v57  ;;  %v13042_v2 = vadd.s32 120, %v12634_v25 }
 0x19e   : > { %16571 = vst [vmem:[#allocation40_spill] sm:$0xff] %v13031_v0  ;;  %v13044_v51 = vadd.f32 %v10628_v12, %v2552_v58  ;;  %v13047_v3 = vadd.s32 18, %v13006_v7  ;;  %vm728_vm5 = vcmp.ne.s32.totalorder %v13015_v33, 0  ;;  %v13051_v26 = vsub.s32 %v12832_v45, %v452_v49  ;;  %vm13095_vm6 = vmand %vm766_vm1, %vm730_vm13 }
 0x19f   : > { %16572 = vst [vmem:[#allocation41_spill] sm:$0xff] %v13039_v59  ;;  %v10634_v30 = vpop.f32.mrf.mxu1  ;;  %v2950_v61 = vpop.f32.mrf.mxu0  ;;  %vm764_vm2 = vcmp.lt.s32.totalorder %v13015_v33, 0  ;;  %v484_v10 = vshrl.u32 %v12970_v63, 4  ;;  %v13057_v28 = vadd.s32 104, %v12634_v25  ;;  %v430_v62 = vmul.u32 18, %v429_v17 }
 0x1a0   : > { %16573 = vst [vmem:[#allocation42_spill] sm:$0xff] %v13047_v3  ;;  %16574 = vst [vmem:[#allocation43_spill] sm:$0xff] %v13051_v26  ;;  %v3281_v44 = vadd.f32 %v10634_v30, %v12607_v60  ;;  %v13059_v58 = vadd.f32 %v2950_v61, %v2550_v15  ;;  %v13062_v56 = vmul.u32.u64.low 3817748708, %v13035_v4  ;;  %v13063_v38 = vmul.u32.u64.high 3817748708, %v13035_v4, %v13062_v56 }
 0x1a1   : > { %v3136_v12 = vpop.f32.mrf.mxu1  ;;  %v10629_v49 = vpop.f32.mrf.mxu0  ;;  %v13067_v60 = vmul.u32.u64.low 3817748708, %v13042_v2  ;;  %v13068_v30 = vmul.u32.u64.high 3817748708, %v13042_v2, %v13067_v60  ;;  %v13071_v63 = vadd.s32 144, %v12634_v25  ;;  %v16575_v15 = vmov 0  ;;  %v4882_v56 = vld [vmem:[#allocation2] sm:$0xc]  ;;  %vm13114_vm12 = vmand %vm764_vm2, %vm728_vm5 }
 0x1a2   : > { %v3279_v45 = vadd.f32 %v3136_v12, %v12615_v54  ;;  %v13073_v35 = vadd.f32 %v10629_v49, %v2553_v24  ;;  %v16576_v15 = vsel %vm13079_vm8, 4294967295, %v16575_v15  ;;  %v13084_v54 = vadd.s32 18, %v13015_v33 }
 0x1a3   : > { %v10635_v61 = vpop.f32.mrf.mxu1  ;;  %16577 = vst [vmem:[#allocation44_spill] sm:$0xff] %v16576_v15  ;;  %vm731_vm7 = vcmp.ne.s32.totalorder %v13051_v26, 0  ;;  %vm767_vm9 = vcmp.lt.s32.totalorder %v13051_v26, 0  ;;  %v13089_v17 = vpop.f32.mrf.mxu0  ;;  %v16579_v12 = vmov 0  ;;  %v485_v49 = vmul.u32 18, %v484_v10 }
 0x1a4   : > { %16578 = vst [vmem:[#allocation45_spill] sm:$0xff] %v13084_v54  ;;  %v3282_v24 = vadd.f32 %v10635_v61, %v12618_v37  ;;  %v16580_v12 = vsel %vm13095_vm6, 4294967295, %v16579_v12  ;;  %v13100_v60 = vmul.u32.u64.low 3817748708, %v13057_v28  ;;  %v13101_v52 = vmul.u32.u64.high 3817748708, %v13057_v28, %v13100_v60  ;;  %vm13132_vm2 = vmand %vm767_vm9, %vm731_vm7 }
 0x1a5   : > { %16581 = vst [vmem:[#allocation46_spill] sm:$0xff] %v16580_v12  ;;  %v2543_v36 = vadd.f32 %v12850_v21, %v12546_v31  ;;  %v13106_v37 = vadd.f32 %v12841_v22, %v2539_v27  ;;  %v13108_v61 = vpop.f32.mrf.mxu1  ;;  %v16582_v16 = vmov 0  ;;  %v13119_v10 = vadd.s32 18, %v13051_v26  ;;  %v10672_v31 = vpop.f32.mrf.mxu0 }
 0x1a6   : > { %v16583_v16 = vsel %vm13114_vm12, 4294967295, %v16582_v16  ;;  %v13122_v60 = vsub.s32 %v12887_v14, %v430_v62  ;;  %v16587_v21 = vmov 0  ;;  %v9757_v27 = vcombine.low %v4882_v56, %v4883_v57 }
 0x1a7   : > { %16584 = vst [vmem:[#allocation47_spill] sm:$0xff] %v16583_v16  ;;  %16585 = vst [vmem:[#allocation48_spill] sm:$0xff] %v13119_v10  ;;  %v16588_v21 = vsel %vm13132_vm2, 4294967295, %v16587_v21  ;;  %v13137_v40 = vmul.u32.u64.low 3817748708, %v13071_v63  ;;  %v13138_v47 = vmul.u32.u64.high 3817748708, %v13071_v63, %v13137_v40  ;;  %v13141_v14 = vadd.f32 %v12902_v42, %v2543_v36  ;;  %v10638_v62 = vpop.f32.mrf.mxu1  ;;  %v3575_v0 = vpop.f32.mrf.mxu0 }
 0x1a8   : > { %16586 = vst [vmem:[#allocation49_spill] sm:$0xff] %v13122_v60  ;;  %16589 = vst [vmem:[#allocation50_spill] sm:$0xff] %v16588_v21  ;;  %v13143_v39 = vadd.f32 %v10672_v31, %v3281_v44  ;;  %v2547_v57 = vadd.f32 %v12910_v9, %v12577_v48  ;;  %v3285_v56 = vadd.f32 %v10638_v62, %v12629_v46  ;;  %vm729_vm7 = vcmp.ne.s32.totalorder %v13122_v60, 0 }
 0x1a9   : > { %v13158_v42 = vsub.s32 %v12908_v29, %v485_v49  ;;  %v3152_v36 = vpop.f32.mrf.mxu1  ;;  %v13160_v44 = vadd.f32 %v3575_v0, %v3279_v45  ;;  %v462_v48 = vshrl.u32 %v13063_v38, 4  ;;  %v10673_v9 = vpop.f32.mrf.mxu0  ;;  %v495_v62 = vshrl.u32 %v13068_v30, 4 }
 0x1aa   : > { %v3283_v46 = vadd.f32 %v3152_v36, %v12637_v5  ;;  %v5297_v32 = vshrl.u32 %v9757_v27, 16  ;;  %v5300_v29 = vshll.u32 %v9757_v27, 16  ;;  %v13170_v40 = vadd.f32 %v10673_v9, %v3282_v24 }
 0x1ab   : > { %16590 = vst [vmem:[#allocation51_spill] sm:$0xff] %v13158_v42  ;;  %v10639_v49 = vpop.f32.mrf.mxu1  ;;  %vm765_vm9 = vcmp.lt.s32.totalorder %v13122_v60, 0  ;;  %v13174_v0 = vadd.s32 18, %v13122_v60  ;;  %v13177_v45 = vadd.s32 128, %v12634_v25  ;;  %v13180_v31 = vpop.f32.mrf.mxu0  ;;  %vm734_vm13 = vcmp.ne.s32.totalorder %v13158_v42, 0 }
 0x1ac   : > { %16591 = vst [vmem:[#allocation52_spill] sm:$0xff] %v13170_v40  ;;  %v3286_v38 = vadd.f32 %v10639_v49, %v12640_v13  ;;  %v473_v5 = vshrl.u32 %v13101_v52, 4  ;;  %v13185_v30 = vadd.s32 152, %v12634_v25  ;;  %vm770_vm1 = vcmp.lt.s32.totalorder %v13158_v42, 0  ;;  %vm13207_vm5 = vmand %vm765_vm9, %vm729_vm7 }
 0x1ad   : > { %16592 = vst [vmem:[#allocation53_spill] sm:$0xff] %v13174_v0  ;;  %v13187_v24 = vpop.f32.mrf.mxu1  ;;  %v13191_v27 = vadd.s32 18, %v13158_v42  ;;  %v463_v36 = vmul.u32 18, %v462_v48  ;;  %v13194_v9 = vadd.s32 136, %v12634_v25  ;;  %v10676_v13 = vpop.f32.mrf.mxu0  ;;  %v496_v49 = vmul.u32 18, %v495_v62  ;;  %vm13241_vm7 = vmand %vm770_vm1, %vm734_vm13  ;;  %v16607_v0 = vld [vmem:[#allocation4_spill] sm:$0xff] }
 0x1ae   : > { %v13196_v22 = vrot.slane %v5297_v32, 2  ;;  %v13198_v26 = vrot.slane %v5300_v29, 3  ;;  %v528_v52 = vshrl.u32 %v13138_v47, 4  ;;  %v13201_v21 = vadd.f32 %v10676_v13, %v3285_v56  ;;  %v16600_v29 = vld [vmem:[#allocation13_spill] sm:$0xff] }
 0x1af   : > { %16593 = vst [vmem:[#allocation54_spill] sm:$0xff] %v13191_v27  ;;  %v10642_v10 = vpop.f32.mrf.mxu1  ;;  %v16597_v48 = vmov 0  ;;  %v13212_v33 = vmul.u32.u64.low 3817748708, %v13177_v45  ;;  %v13213_v62 = vmul.u32.u64.high 3817748708, %v13177_v45, %v13212_v33  ;;  %v13216_v32 = vadd.s32 176, %v12634_v25  ;;  %v3591_v54 = vpop.f32.mrf.mxu0 }
 0x1b0   : > { %16594 = vst [vmem:[#allocation55_spill] sm:$0xff] %v13196_v22  ;;  %16595 = vst [vmem:[#allocation56_spill] sm:$0xff] %v13198_v26  ;;  %v16598_v48 = vsel %vm13207_vm5, 4294967295, %v16597_v48  ;;  %v3289_v47 = vadd.f32 %v10642_v10, %v16600_v29  ;;  %v474_v56 = vmul.u32 18, %v473_v5  ;;  %v13223_v3 = vadd.f32 %v3591_v54, %v3283_v46  ;;  %v16625_v22 = vld [vmem:[#allocation7_spill] sm:$0xff] }
 0x1b1   : > { %16596 = vst [vmem:[#allocation57_spill] sm:$0xff] %v13201_v21  ;;  %16599 = vst [vmem:[#allocation58_spill] sm:$0xff] %v16598_v48  ;;  %v13220_v13 = vmul.u32.u64.low 3817748708, %v13185_v30  ;;  %v13221_v16 = vmul.u32.u64.high 3817748708, %v13185_v30, %v13220_v13  ;;  %v3168_v7 = vpop.f32.mrf.mxu1  ;;  %v13226_v12 = vmul.u32.u64.low 3817748708, %v13194_v9  ;;  %v13227_v15 = vmul.u32.u64.high 3817748708, %v13194_v9, %v13226_v12  ;;  %v10677_v40 = vpop.f32.mrf.mxu0 }
 0x1b2   : > { %v13230_v33 = vadd.s32 160, %v12634_v25  ;;  %v16601_v21 = vld [vmem:[#allocation14_spill] sm:$0xff]  ;;  %v16602_v54 = vmov 0  ;;  %v13246_v12 = vsub.s32 %v13035_v4, %v463_v36  ;;  %v529_v46 = vmul.u32 18, %v528_v52 }
 0x1b3   : > { %v3287_v59 = vadd.f32 %v3168_v7, %v16601_v21  ;;  %v16603_v54 = vsel %vm13241_vm7, 4294967295, %v16602_v54  ;;  %v10643_v5 = vpop.f32.mrf.mxu1  ;;  %v13248_v7 = vadd.f32 %v10677_v40, %v3286_v38  ;;  %v13251_v21 = vsub.s32 %v13042_v2, %v496_v49  ;;  %v13263_v36 = vpop.f32.mrf.mxu0 }
 0x1b4   : > { %16604 = vst [vmem:[#allocation13_spill] sm:$0xff] %v16603_v54  ;;  %16605 = vst [vmem:[#allocation14_spill] sm:$0xff] %v13246_v12  ;;  %v13254_v29 = vmul.u32.u64.low 3817748708, %v13216_v32  ;;  %v13255_v13 = vmul.u32.u64.high 3817748708, %v13216_v32, %v13254_v29  ;;  %v2551_v10 = vadd.f32 %v13027_v1, %v12753_v11  ;;  %v13260_v60 = vadd.f32 %v13020_v50, %v2547_v57 }
 0x1b5   : > { %16606 = vst [vmem:[#allocation59_spill] sm:$0xff] %v13251_v21  ;;  %v3290_v4 = vadd.f32 %v10643_v5, %v16607_v0  ;;  %v13266_v40 = vsub.s32 %v13057_v28, %v474_v56  ;;  %v13268_v38 = vpop.f32.mrf.mxu1  ;;  %v13277_v50 = vmul.u32.u64.low 3817748708, %v13230_v33  ;;  %v13278_v1 = vmul.u32.u64.high 3817748708, %v13230_v33, %v13277_v50  ;;  %v10680_v57 = vpop.f32.mrf.mxu0  ;;  %v16611_v5 = vld [vmem:[#allocation5_spill] sm:$0xff] }
 0x1b6   : > { %vm732_vm9 = vcmp.ne.s32.totalorder %v13246_v12, 0  ;;  %v13283_v28 = vadd.s32 18, %v13246_v12  ;;  %v13286_v0 = vsub.s32 %v13071_v63, %v529_v46  ;;  %v13289_v49 = vadd.f32 %v13089_v17, %v2551_v10 }
 0x1b7   : > { %16608 = vst [vmem:[#allocation4_spill] sm:$0xff] %v13266_v40  ;;  %v10646_v52 = vpop.f32.mrf.mxu1  ;;  %v13291_v56 = vadd.f32 %v10680_v57, %v3289_v47  ;;  %v3607_v50 = vpop.f32.mrf.mxu0  ;;  %v13297_v11 = vadd.s32 18, %v13251_v21  ;;  %v506_v63 = vshrl.u32 %v13213_v62, 4  ;;  %vm16613_vm5 = vcmp.lt.s32.totalorder %v13246_v12, 0 }
 0x1b8   : > { %16609 = vst [vmem:[#allocation60_spill] sm:$0xff] %v13283_v28  ;;  %16610 = vst [vmem:[#allocation61_spill] sm:$0xff] %v13286_v0  ;;  %v3293_v29 = vadd.f32 %v10646_v52, %v16611_v5  ;;  %v13301_v17 = vadd.f32 %v3607_v50, %v3287_v59  ;;  %v16614_v47 = vmov 0  ;;  %vm769_vm7 = vcmp.lt.s32.totalorder %v13266_v40, 0  ;;  %v16617_v52 = vld [vmem:[#allocation6_spill] sm:$0xff] }
 0x1b9   : > { %16612 = vst [vmem:[#allocation5_spill] sm:$0xff] %v13297_v11  ;;  %v3184_v46 = vpop.f32.mrf.mxu1  ;;  %vm13307_vm1 = vmand %vm16613_vm5, %vm732_vm9  ;;  %v539_v10 = vshrl.u32 %v13221_v16, 4  ;;  %v517_v57 = vshrl.u32 %v13227_v15, 4  ;;  %v10681_v62 = vpop.f32.mrf.mxu0  ;;  %vm16618_vm13 = vcmp.ne.s32.totalorder %v13251_v21, 0  ;;  %vm16619_vm2 = vcmp.lt.s32.totalorder %v13251_v21, 0 }
 0x1ba   : > { %v16615_v47 = vsel %vm13307_vm1, 4294967295, %v16614_v47  ;;  %v3291_v5 = vadd.f32 %v3184_v46, %v16617_v52  ;;  %vm13319_vm12 = vmand %vm16619_vm2, %vm16618_vm13  ;;  %v16620_v59 = vmov 0  ;;  %vm738_vm5 = vcmp.ne.s32.totalorder %v13286_v0, 0 }
 0x1bb   : > { %16616 = vst [vmem:[#allocation62_spill] sm:$0xff] %v16615_v47  ;;  %v16621_v59 = vsel %vm13319_vm12, 4294967295, %v16620_v59  ;;  %vm774_vm9 = vcmp.lt.s32.totalorder %v13286_v0, 0  ;;  %v13326_v50 = vadd.s32 184, %v12634_v25  ;;  %v3280_v16 = vadd.f32 %v13108_v61, %v12756_v53  ;;  %v10647_v15 = vpop.f32.mrf.mxu1  ;;  %v13337_v42 = vpop.f32.mrf.mxu0 }
 0x1bc   : > { %16622 = vst [vmem:[#allocation6_spill] sm:$0xff] %v16621_v59  ;;  %v13330_v46 = vadd.f32 %v10681_v62, %v3290_v4  ;;  %v13333_v52 = vadd.s32 18, %v13266_v40  ;;  %v572_v2 = vshrl.u32 %v13255_v13, 4  ;;  %v3294_v26 = vadd.f32 %v10647_v15, %v16625_v22  ;;  %vm13364_vm1 = vmand %vm774_vm9, %vm738_vm5 }
 0x1bd   : > { %vm16626_vm2 = vcmp.ne.s32.totalorder %v13266_v40, 0  ;;  %v16627_v53 = vmov 0  ;;  %v13352_v61 = vadd.s32 18, %v13286_v0  ;;  %v507_v13 = vmul.u32 18, %v506_v63  ;;  %v13354_v22 = vpop.f32.mrf.mxu1  ;;  %v10684_v28 = vpop.f32.mrf.mxu0 }
 0x1be   : > { %16623 = vst [vmem:[#allocation63_spill] sm:$0xff] %v13330_v46  ;;  %16624 = vst [vmem:[#allocation64_spill] sm:$0xff] %v13333_v52  ;;  %v16631_v62 = vmov 0  ;;  %v540_v15 = vmul.u32 18, %v539_v10  ;;  %v518_v27 = vmul.u32 18, %v517_v57  ;;  %v550_v12 = vshrl.u32 %v13278_v1, 4 }
 0x1bf   : > { %vm13347_vm13 = vmand %vm769_vm7, %vm16626_vm2  ;;  %16630 = vst [vmem:[#allocation65_spill] sm:$0xff] %v13352_v61  ;;  %v16632_v62 = vsel %vm13364_vm1, 4294967295, %v16631_v62  ;;  %v13370_v63 = vadd.f32 %v13180_v31, %v3280_v16  ;;  %v13373_v47 = vmul.u32.u64.low 3817748708, %v13326_v50  ;;  %v13374_v59 = vmul.u32.u64.high 3817748708, %v13326_v50, %v13373_v47  ;;  %v10650_v21 = vpop.f32.mrf.mxu1  ;;  %v16635_v16 = vld [vmem:[#allocation8_spill] sm:$0xff]  ;;  %v3623_v54 = vpop.f32.mrf.mxu0 }
 0x1c0   : > { %v16628_v53 = vsel %vm13347_vm13, 4294967295, %v16627_v53  ;;  %16633 = vst [vmem:[#allocation66_spill] sm:$0xff] %v16632_v62  ;;  %v13377_v4 = vadd.s32 168, %v12634_v25  ;;  %v13379_v11 = vadd.f32 %v10684_v28, %v3293_v29  ;;  %v573_v1 = vmul.u32 18, %v572_v2 }
 0x1c1   : > { %16629 = vst [vmem:[#allocation7_spill] sm:$0xff] %v16628_v53  ;;  %v13386_v31 = vadd.s32 208, %v12634_v25  ;;  %v3284_v57 = vadd.f32 %v13187_v24, %v12835_v43  ;;  %v3297_v47 = vadd.f32 %v10650_v21, %v16635_v16  ;;  %v13396_v29 = vsub.s32 %v13177_v45, %v507_v13  ;;  %v3200_v53 = vpop.f32.mrf.mxu1  ;;  %v16639_v24 = vld [vmem:[#allocation9_spill] sm:$0xff]  ;;  %v10685_v16 = vpop.f32.mrf.mxu0 }
 0x1c2   : > { %16634 = vst [vmem:[#allocation67_spill] sm:$0xff] %v13379_v11  ;;  %v13398_v10 = vadd.f32 %v3623_v54, %v3291_v5  ;;  %v13401_v2 = vsub.s32 %v13185_v30, %v540_v15  ;;  %v13404_v40 = vsub.s32 %v13194_v9, %v518_v27  ;;  %v551_v43 = vmul.u32 18, %v550_v12  ;;  %v16642_v5 = vld [vmem:[#allocation11_spill] sm:$0xff] }
 0x1c3   : > { %v3295_v21 = vadd.f32 %v3200_v53, %v16639_v24  ;;  %v13408_v52 = vmul.u32.u64.low 3817748708, %v13377_v4  ;;  %v13409_v62 = vmul.u32.u64.high 3817748708, %v13377_v4, %v13408_v52  ;;  %v13412_v45 = vadd.s32 192, %v12634_v25  ;;  %v10651_v13 = vpop.f32.mrf.mxu1  ;;  %v13427_v15 = vpop.f32.mrf.mxu0 }
 0x1c4   : > { %16636 = vst [vmem:[#allocation8_spill] sm:$0xff] %v13398_v10  ;;  %16637 = vst [vmem:[#allocation68_spill] sm:$0xff] %v13401_v2  ;;  %v13414_v54 = vadd.f32 %v10685_v16, %v3294_v26  ;;  %v13417_v30 = vsub.s32 %v13216_v32, %v573_v1  ;;  %v13420_v27 = vmul.u32.u64.low 3817748708, %v13386_v31  ;;  %v13421_v9 = vmul.u32.u64.high 3817748708, %v13386_v31, %v13420_v27 }
 0x1c5   : > { %16638 = vst [vmem:[#allocation69_spill] sm:$0xff] %v13404_v40  ;;  %v13424_v12 = vadd.f32 %v13263_v36, %v3284_v57  ;;  %v3298_v53 = vadd.f32 %v10651_v13, %v16642_v5  ;;  %v13431_v26 = vpop.f32.mrf.mxu1  ;;  %v13434_v32 = vadd.s32 18, %v13396_v29  ;;  %v13441_v36 = vadd.s32 216, %v12634_v25  ;;  %v10688_v57 = vpop.f32.mrf.mxu0  ;;  %v16645_v5 = vld [vmem:[#allocation12_spill] sm:$0xff] }
 0x1c6   : > { %16640 = vst [vmem:[#allocation9_spill] sm:$0xff] %v13414_v54  ;;  %16641 = vst [vmem:[#allocation70_spill] sm:$0xff] %v13417_v30  ;;  %v13437_v52 = vmul.u32.u64.low 3817748708, %v13412_v45  ;;  %v13438_v1 = vmul.u32.u64.high 3817748708, %v13412_v45, %v13437_v52  ;;  %v13447_v24 = vsub.s32 %v13230_v33, %v551_v43  ;;  %v13449_v13 = vadd.f32 %v10688_v57, %v3297_v47 }
 0x1c7   : > { %v10654_v16 = vpop.f32.mrf.mxu1  ;;  %v583_v27 = vshrl.u32 %v13374_v59, 4  ;;  %v3639_v28 = vpop.f32.mrf.mxu0  ;;  %vm16646_vm9 = vcmp.ne.s32.totalorder %v13396_v29, 0  ;;  %vm16647_vm2 = vcmp.lt.s32.totalorder %v13396_v29, 0  ;;  %v16648_v0 = vmov 0 }
 0x1c8   : > { %16643 = vst [vmem:[#allocation11_spill] sm:$0xff] %v13447_v24  ;;  %16644 = vst [vmem:[#allocation71_spill] sm:$0xff] %v13449_v13  ;;  %v3301_v52 = vadd.f32 %v10654_v16, %v16645_v5  ;;  %v13465_v33 = vmul.u32.u64.low 3817748708, %v13441_v36  ;;  %v13466_v47 = vmul.u32.u64.high 3817748708, %v13441_v36, %v13465_v33  ;;  %v13468_v57 = vadd.f32 %v3639_v28, %v3295_v21 }
 0x1c9   : > { %vm13459_vm7 = vmand %vm16647_vm2, %vm16646_vm9  ;;  %v3216_v43 = vpop.f32.mrf.mxu1  ;;  %vm16651_vm1 = vcmp.ne.s32.totalorder %v13401_v2, 0  ;;  %vm16652_vm5 = vcmp.lt.s32.totalorder %v13401_v2, 0  ;;  %v16653_v59 = vmov 0  ;;  %v13479_v16 = vadd.s32 18, %v13401_v2  ;;  %v16659_v33 = vld [vmem:[#allocation19_spill] sm:$0xff]  ;;  %v10689_v21 = vpop.f32.mrf.mxu0 }
 0x1ca   : > { %v16649_v0 = vsel %vm13459_vm7, 4294967295, %v16648_v0  ;;  %16650 = vst [vmem:[#allocation12_spill] sm:$0xff] %v13468_v57  ;;  %vm13474_vm12 = vmand %vm16652_vm5, %vm16651_vm1  ;;  %v13482_v5 = vadd.s32 18, %v13404_v40  ;;  %v13485_v61 = vadd.s32 18, %v13417_v30  ;;  %v3299_v28 = vadd.f32 %v3216_v43, %v16659_v33 }
 0x1cb   : > { %v16654_v59 = vsel %vm13474_vm12, 4294967295, %v16653_v59  ;;  %16656 = vst [vmem:[#allocation73_spill] sm:$0xff] %v13479_v16  ;;  %vm16660_vm9 = vcmp.ne.s32.totalorder %v13404_v40, 0  ;;  %vm16661_vm2 = vcmp.lt.s32.totalorder %v13404_v40, 0  ;;  %v16662_v57 = vmov 0  ;;  %v10655_v10 = vpop.f32.mrf.mxu1 }
 0x1cc   : > { %16655 = vst [vmem:[#allocation72_spill] sm:$0xff] %v16654_v59  ;;  %16657 = vst [vmem:[#allocation74_spill] sm:$0xff] %v13482_v5  ;;  %vm740_vm5 = vcmp.ne.s32.totalorder %v13447_v24, 0  ;;  %vm776_vm13 = vcmp.lt.s32.totalorder %v13447_v24, 0  ;;  %v561_v13 = vshrl.u32 %v13409_v62, 4  ;;  %v3288_v54 = vadd.f32 %v13268_v38, %v12838_v34  ;;  %v13513_v62 = vpop.f32.mrf.mxu0 }
 0x1cd   : > { %16658 = vst [vmem:[#allocation75_spill] sm:$0xff] %v13485_v61  ;;  %vm13492_vm1 = vmand %vm16661_vm2, %vm16660_vm9  ;;  %v13501_v43 = vadd.f32 %v10689_v21, %v3298_v53  ;;  %vm16665_vm6 = vcmp.ne.s32.totalorder %v13417_v30, 0  ;;  %vm16666_vm8 = vcmp.lt.s32.totalorder %v13417_v30, 0  ;;  %v16667_v33 = vmov 0 }
 0x1ce   : > { %v16663_v57 = vsel %vm13492_vm1, 4294967295, %v16662_v57  ;;  %vm13507_vm9 = vmand %vm16666_vm8, %vm16665_vm6  ;;  %v584_v11 = vmul.u32 18, %v583_v27  ;;  %v616_v48 = vshrl.u32 %v13421_v9, 4  ;;  %v3302_v46 = vadd.f32 %v10655_v10, %v12825_v8  ;;  %v13526_v27 = vpop.f32.mrf.mxu1 }
 0x1cf   : > { %16664 = vst [vmem:[#allocation19_spill] sm:$0xff] %v16663_v57  ;;  %v16668_v33 = vsel %vm13507_vm9, 4294967295, %v16667_v33  ;;  %v13520_v38 = vadd.s32 18, %v13447_v24  ;;  %v594_v53 = vshrl.u32 %v13438_v1, 4  ;;  %v13524_v21 = vadd.f32 %v13337_v42, %v3288_v54  ;;  %vm13540_vm8 = vmand %vm776_vm13, %vm740_vm5  ;;  %v10692_v1 = vpop.f32.mrf.mxu0 }
 0x1d0   : > { %16669 = vst [vmem:[#allocation76_spill] sm:$0xff] %v16668_v33  ;;  %v16671_v9 = vmov 0  ;;  %v13545_v42 = vadd.s32 200, %v12634_v25  ;;  %v13549_v54 = vadd.f32 %v13354_v22, %v12977_v41  ;;  %v562_v8 = vmul.u32 18, %v561_v13  ;;  %v10658_v40 = vpop.f32.mrf.mxu1 }
 0x1d1   : > { %16670 = vst [vmem:[#allocation77_spill] sm:$0xff] %v13520_v38  ;;  %v16672_v9 = vsel %vm13540_vm8, 4294967295, %v16671_v9  ;;  %v13556_v34 = vadd.s32 240, %v12634_v25  ;;  %v13558_v5 = vadd.f32 %v10692_v1, %v3301_v52  ;;  %v13561_v57 = vsub.s32 %v13326_v50, %v584_v11  ;;  %v3655_v16 = vpop.f32.mrf.mxu0  ;;  %v16680_v38 = vld [vmem:[#allocation28_spill] sm:$0xff] }
 0x1d2   : > { %16673 = vst [vmem:[#allocation78_spill] sm:$0xff] %v16672_v9  ;;  %v617_v2 = vmul.u32 18, %v616_v48  ;;  %v13564_v41 = vadd.s32 224, %v12634_v25  ;;  %v3305_v22 = vadd.f32 %v10658_v40, %v12865_v6  ;;  %v595_v10 = vmul.u32 18, %v594_v53  ;;  %v3232_v52 = vpop.f32.mrf.mxu1  ;;  %v16676_v6 = vld [vmem:[#allocation24_spill] sm:$0xff] }
 0x1d3   : > { %16674 = vst [vmem:[#allocation79_spill] sm:$0xff] %v13558_v5  ;;  %v627_v30 = vshrl.u32 %v13466_v47, 4  ;;  %v13572_v1 = vadd.f32 %v3655_v16, %v3299_v28  ;;  %v13575_v11 = vmul.u32.u64.low 3817748708, %v13545_v42  ;;  %v13576_v48 = vmul.u32.u64.high 3817748708, %v13545_v42, %v13575_v11  ;;  %v10693_v61 = vpop.f32.mrf.mxu0 }
 0x1d4   : > { %v13579_v50 = vadd.s32 248, %v12634_v25  ;;  %v3303_v40 = vadd.f32 %v3232_v52, %v16676_v6  ;;  %v13583_v33 = vsub.s32 %v13377_v4, %v562_v8  ;;  %v10659_v47 = vpop.f32.mrf.mxu1  ;;  %v13589_v16 = vadd.f32 %v10693_v61, %v3302_v46 }
 0x1d5   : > { %16675 = vst [vmem:[#allocation80_spill] sm:$0xff] %v13572_v1  ;;  %v13586_v53 = vmul.u32.u64.low 3817748708, %v13556_v34  ;;  %v13587_v13 = vmul.u32.u64.high 3817748708, %v13556_v34, %v13586_v53  ;;  %v13592_v28 = vsub.s32 %v13386_v31, %v617_v2  ;;  %v3306_v52 = vadd.f32 %v10659_v47, %v16680_v38  ;;  %v13599_v6 = vpop.f32.mrf.mxu0 }
 0x1d6   : > { %16677 = vst [vmem:[#allocation24_spill] sm:$0xff] %v13583_v33  ;;  %16678 = vst [vmem:[#allocation81_spill] sm:$0xff] %v13589_v16  ;;  %v13595_v11 = vmul.u32.u64.low 3817748708, %v13564_v41  ;;  %v13596_v24 = vmul.u32.u64.high 3817748708, %v13564_v41, %v13595_v11  ;;  %v13604_v4 = vsub.s32 %v13412_v45, %v595_v10  ;;  %v13606_v46 = vpop.f32.mrf.mxu1  ;;  %v13609_v61 = vadd.s32 18, %v13561_v57 }
 0x1d7   : > { %16679 = vst [vmem:[#allocation82_spill] sm:$0xff] %v13592_v28  ;;  %v628_v31 = vmul.u32 18, %v627_v30  ;;  %v13612_v2 = vmul.u32.u64.low 3817748708, %v13579_v50  ;;  %v13613_v8 = vmul.u32.u64.high 3817748708, %v13579_v50, %v13612_v2  ;;  %v3296_v38 = vadd.f32 %v13431_v26, %v12998_v55  ;;  %v10696_v53 = vpop.f32.mrf.mxu0  ;;  %v16683_v11 = vld [vmem:[#allocation32_spill] sm:$0xff] }
 0x1d8   : > { %16681 = vst [vmem:[#allocation28_spill] sm:$0xff] %v13604_v4  ;;  %v13620_v45 = vadd.s32 18, %v13583_v33  ;;  %v10662_v10 = vpop.f32.mrf.mxu1  ;;  %v13622_v47 = vadd.f32 %v10696_v53, %v3305_v22  ;;  %v13627_v30 = vadd.s32 232, %v12634_v25  ;;  %vm16684_vm2 = vcmp.ne.s32.totalorder %v13561_v57, 0 }
 0x1d9   : > { %v3309_v55 = vadd.f32 %v10662_v10, %v16683_v11  ;;  %v3671_v26 = vpop.f32.mrf.mxu0  ;;  %vm16685_vm5 = vcmp.lt.s32.totalorder %v13561_v57, 0  ;;  %v16686_v2 = vmov 0  ;;  %v13639_v22 = vadd.s32 18, %v13592_v28 }
 0x1da   : > { %16682 = vst [vmem:[#allocation83_spill] sm:$0xff] %v13622_v47  ;;  %vm13634_vm8 = vmand %vm16685_vm5, %vm16684_vm2  ;;  %vm744_vm13 = vcmp.ne.s32.totalorder %v13604_v4, 0  ;;  %v3248_v53 = vpop.f32.mrf.mxu1  ;;  %v13643_v47 = vadd.f32 %v3671_v26, %v3303_v40  ;;  %vm16690_vm9 = vcmp.ne.s32.totalorder %v13583_v33, 0  ;;  %vm16691_vm1 = vcmp.lt.s32.totalorder %v13583_v33, 0 }
 0x1db   : > { %v16687_v2 = vsel %vm13634_vm8, 4294967295, %v16686_v2  ;;  %16688 = vst [vmem:[#allocation32_spill] sm:$0xff] %v13639_v22  ;;  %vm13649_vm12 = vmand %vm16691_vm1, %vm16690_vm9  ;;  %v16692_v10 = vmov 0  ;;  %v13654_v11 = vadd.s32 18, %v13604_v4  ;;  %v13657_v9 = vsub.s32 %v13441_v36, %v628_v31  ;;  %v10697_v40 = vpop.f32.mrf.mxu0 }
 0x1dc   : > { %16689 = vst [vmem:[#allocation84_spill] sm:$0xff] %v13643_v47  ;;  %v16693_v10 = vsel %vm13649_vm12, 4294967295, %v16692_v10  ;;  %v605_v16 = vshrl.u32 %v13576_v48, 4  ;;  %v3307_v1 = vadd.f32 %v3248_v53, %v12979_v19  ;;  %vm16696_vm2 = vcmp.ne.s32.totalorder %v13592_v28, 0  ;;  %v10663_v19 = vpop.f32.mrf.mxu1 }
 0x1dd   : > { %16694 = vst [vmem:[#allocation85_spill] sm:$0xff] %v13654_v11  ;;  %16695 = vst [vmem:[#allocation86_spill] sm:$0xff] %v13657_v9  ;;  %vm16697_vm5 = vcmp.lt.s32.totalorder %v13592_v28, 0  ;;  %v16698_v26 = vmov 0  ;;  %v660_v47 = vshrl.u32 %v13587_v13, 4  ;;  %v13676_v36 = vadd.f32 %v13427_v15, %v13549_v54  ;;  %v13699_v53 = vpop.f32.mrf.mxu0 }
 0x1de   : > { %vm13665_vm6 = vmand %vm16697_vm5, %vm16696_vm2  ;;  %v13671_v5 = vmul.u32.u64.low 3817748708, %v13627_v30  ;;  %v13672_v59 = vmul.u32.u64.high 3817748708, %v13627_v30, %v13671_v5  ;;  %v13678_v48 = vadd.f32 %v10697_v40, %v3306_v52  ;;  %vm16702_vm1 = vcmp.lt.s32.totalorder %v13604_v4, 0  ;;  %v13705_v31 = vpop.f32.mrf.mxu1 }
 0x1df   : > { %v16699_v26 = vsel %vm13665_vm6, 4294967295, %v16698_v26  ;;  %vm13688_vm9 = vmand %vm16702_vm1, %vm744_vm13  ;;  %v16703_v13 = vmov 0  ;;  %v638_v5 = vshrl.u32 %v13596_v24, 4  ;;  %v3300_v15 = vadd.f32 %v13526_v27, %v13106_v37 }
 0x1e0   : > { %16700 = vst [vmem:[#allocation87_spill] sm:$0xff] %v16699_v26  ;;  %16701 = vst [vmem:[#allocation88_spill] sm:$0xff] %v13678_v48  ;;  %v16704_v13 = vsel %vm13688_vm9, 4294967295, %v16703_v13  ;;  %v13696_v54 = vadd.f32 %v13513_v62, %v3296_v38  ;;  %v3310_v52 = vadd.f32 %v10663_v19, %v13008_v20  ;;  %v606_v37 = vmul.u32 18, %v605_v16  ;;  %v10700_v20 = vpop.f32.mrf.mxu0  ;;  %v10666_v40 = vpop.f32.mrf.mxu1 }
 0x1e1   : > { %16705 = vst [vmem:[#allocation89_spill] sm:$0xff] %v16704_v13  ;;  %v671_v62 = vshrl.u32 %v13613_v8, 4  ;;  %v322_v27 = vadd.s32 272, %v12634_v25  ;;  %v661_v19 = vmul.u32 18, %v660_v47  ;;  %v13719_v48 = vadd.f32 %v10700_v20, %v3309_v55 }
 0x1e2   : > { %v13722_v16 = vadd.s32 18, %v13657_v9  ;;  %v639_v8 = vmul.u32 18, %v638_v5  ;;  %v13725_v24 = vadd.s32 256, %v12634_v25  ;;  %v3313_v28 = vadd.f32 %v10666_v40, %v13044_v51  ;;  %v3687_v22 = vpop.f32.mrf.mxu0  ;;  %v3264_v13 = vpop.f32.mrf.mxu1 }
 0x1e3   : > { %16706 = vst [vmem:[#allocation90_spill] sm:$0xff] %v13719_v48  ;;  %v649_v38 = vshrl.u32 %v13672_v59, 4  ;;  %v13729_v4 = vmul.u32.u64.low 3817748708, %v322_v27  ;;  %v13730_v11 = vmul.u32.u64.high 3817748708, %v322_v27, %v13729_v4  ;;  %v13732_v47 = vadd.f32 %v3687_v22, %v3307_v1 }
 0x1e4   : > { %16707 = vst [vmem:[#allocation91_spill] sm:$0xff] %v13722_v16  ;;  %v13735_v55 = vsub.s32 %v13545_v42, %v606_v37  ;;  %v672_v20 = vmul.u32 18, %v671_v62  ;;  %v13738_v5 = vadd.s32 280, %v12634_v25  ;;  %v13741_v48 = vadd.f32 %v13599_v6, %v3300_v15  ;;  %v10701_v40 = vpop.f32.mrf.mxu0  ;;  %v10667_v26 = vpop.f32.mrf.mxu1 }
 0x1e5   : > { %16708 = vst [vmem:[#allocation92_spill] sm:$0xff] %v13732_v47  ;;  %v3311_v51 = vadd.f32 %v3264_v13, %v13059_v58  ;;  %v13745_v59 = vsub.s32 %v13556_v34, %v661_v19  ;;  %v650_v4 = vmul.u32 18, %v649_v38  ;;  %v13747_v1 = vadd.f32 %v10701_v40, %v3310_v52 }
 0x1e6   : > { %16709 = vst [vmem:[#allocation93_spill] sm:$0xff] %v13735_v55  ;;  %v13750_v42 = vsub.s32 %v13564_v41, %v639_v8  ;;  %v13753_v22 = vmul.u32.u64.low 3817748708, %v13725_v24  ;;  %v13754_v37 = vmul.u32.u64.high 3817748708, %v13725_v24, %v13753_v22  ;;  %v3304_v6 = vadd.f32 %v13606_v46, %v13141_v14  ;;  %v13759_v13 = vpop.f32.mrf.mxu0  ;;  %v13765_v52 = vpop.f32.mrf.mxu1 }
 0x1e7   : > { %16710 = vst [vmem:[#allocation94_spill] sm:$0xff] %v13747_v1  ;;  %v3314_v58 = vadd.f32 %v10667_v26, %v13073_v35  ;;  %v704_v34 = vshrl.u32 %v13730_v11, 4  ;;  %v13763_v15 = vadd.s32 264, %v12634_v25  ;;  %v13769_v41 = vsub.s32 %v13579_v50, %v672_v20  ;;  %v16744_v1 = vld [vmem:[#allocation10_spill] sm:$0xff] }
 0x1e8   : > { %16711 = vst [vmem:[#allocation95_spill] sm:$0xff] %v13750_v42  ;;  %v13772_v62 = vmul.u32.u64.low 3817748708, %v13738_v5  ;;  %v13773_v38 = vmul.u32.u64.high 3817748708, %v13738_v5, %v13772_v62  ;;  %v10704_v14 = vpop.f32.mrf.mxu0  ;;  %v13777_v35 = vadd.s32 18, %v13735_v55  ;;  %v13781_v25 = vsub.s32 %v13627_v30, %v650_v4  ;;  %v10710_v11 = vpop.f32.mrf.mxu1 }
 0x1e9   : > { %16712 = vst [vmem:[#allocation96_spill] sm:$0xff] %v13769_v41  ;;  %v13783_v46 = vadd.f32 %v10704_v14, %v3313_v28  ;;  %v705_v50 = vmul.u32 18, %v704_v34  ;;  %vm16714_vm9 = vcmp.ne.s32.totalorder %v13657_v9, 0  ;;  %vm16715_vm1 = vcmp.lt.s32.totalorder %v13657_v9, 0  ;;  %v16726_v62 = vld [vmem:[#allocation16_spill] sm:$0xff] }
 0x1ea   : > { %v3703_v26 = vpop.f32.mrf.mxu0  ;;  %vm13791_vm6 = vmand %vm16715_vm1, %vm16714_vm9  ;;  %v16716_v19 = vmov 0  ;;  %v682_v28 = vshrl.u32 %v13754_v37, 4  ;;  %v13798_v30 = vmul.u32.u64.low 3817748708, %v13763_v15  ;;  %v13799_v8 = vmul.u32.u64.high 3817748708, %v13763_v15, %v13798_v30  ;;  %v4022_v40 = vpop.f32.mrf.mxu1 }
 0x1eb   : > { %16713 = vst [vmem:[#allocation97_spill] sm:$0xff] %v13783_v46  ;;  %v16717_v19 = vsel %vm13791_vm6, 4294967295, %v16716_v19  ;;  %v13801_v20 = vadd.f32 %v3703_v26, %v3311_v51  ;;  %vm16720_vm13 = vcmp.ne.s32.totalorder %v13735_v55, 0  ;;  %vm16721_vm5 = vcmp.lt.s32.totalorder %v13735_v55, 0  ;;  %v16725_v51 = vld [vmem:[#allocation17_spill] sm:$0xff]  ;;  %v16743_v46 = vld [vmem:[#allocation18_spill] sm:$0xff] }
 0x1ec   : > { %16718 = vst [vmem:[#allocation98_spill] sm:$0xff] %v16717_v19  ;;  %vm13807_vm12 = vmand %vm16721_vm5, %vm16720_vm13  ;;  %v13813_v22 = vsub.s32 %v322_v27, %v705_v50  ;;  %v10705_v37 = vpop.f32.mrf.mxu0  ;;  %v16727_v14 = vsel %vm12803_vm14, %v16725_v51, %v16726_v62  ;;  %vm16730_vm13 = vcmp.ne.s32.totalorder %v13745_v59, 0  ;;  %vm16731_vm5 = vcmp.lt.s32.totalorder %v13745_v59, 0  ;;  %v10711_v51 = vpop.f32.mrf.mxu1 }
 0x1ed   : > { %16719 = vst [vmem:[#allocation99_spill] sm:$0xff] %v13801_v20  ;;  %vm13820_vm2 = vcmp.lt.s32.totalorder %v16727_v14, 16  ;;  %vm13828_vm8 = vmand %vm16731_vm5, %vm16730_vm13  ;;  %v13833_v27 = vadd.s32 18, %v13745_v59  ;;  %v13836_v50 = vadd.s32 18, %v13750_v42  ;;  %v13840_v34 = vadd.f32 %v10705_v37, %v3314_v58 }
 0x1ee   : > { %vm16736_vm13 = vcmp.ne.s32.totalorder %v13750_v42, 0  ;;  %vm16737_vm5 = vcmp.lt.s32.totalorder %v13750_v42, 0  ;;  %v16738_v14 = vmov 0  ;;  %v13855_v20 = vadd.s32 18, %v13769_v41  ;;  %v3706_v37 = vpop.f32.mrf.mxu0  ;;  %v4025_v19 = vpop.f32.mrf.mxu1 }
 0x1ef   : > { %16734 = vst [vmem:[#allocation15_spill] sm:$0xff] %v13836_v50  ;;  %16735 = vst [vmem:[#allocation17_spill] sm:$0xff] %v13840_v34  ;;  %v13858_v58 = vadd.s32 18, %v13781_v25  ;;  %v16745_v62 = vsel %vm12816_vm15, %v16743_v46, %v16744_v1  ;;  %v16750_v9 = vmov 0  ;;  %vm754_vm6 = vcmp.ne.s32.totalorder %v13813_v22, 0 }
 0x1f0   : > { %vm13850_vm9 = vmand %vm16737_vm5, %vm16736_vm13  ;;  %16741 = vst [vmem:[#allocation100_spill] sm:$0xff] %v13855_v20  ;;  %vm13865_vm1 = vcmp.lt.s32.totalorder %v16745_v62, 16  ;;  %vm16748_vm13 = vcmp.ne.s32.totalorder %v13769_v41, 0  ;;  %vm16749_vm5 = vcmp.lt.s32.totalorder %v13769_v41, 0  ;;  %v683_v34 = vmul.u32 18, %v682_v28 }
 0x1f1   : > { %v16739_v14 = vsel %vm13850_vm9, 4294967295, %v16738_v14  ;;  %vm13873_vm14 = vmand %vm16749_vm5, %vm16748_vm13  ;;  %v715_v16 = vshrl.u32 %v13773_v38, 4  ;;  %v3308_v1 = vadd.f32 %v13705_v31, %v13260_v60  ;;  %v13883_v46 = vadd.f32 %v13699_v53, %v3304_v6  ;;  %v10748_v60 = vpop.f32.mrf.mxu0  ;;  %v13901_v31 = vld [vmem:[%s16313_s2] ss:$0 sm:$0xff] }
 0x1f2   : > { %16740 = vst [vmem:[#allocation16_spill] sm:$0xff] %v16739_v14  ;;  %v16751_v9 = vsel %vm13873_vm14, 4294967295, %v16750_v9  ;;  %v4167_v62 = vadd.f32 %v10710_v11, %v13143_v39  ;;  %vm16753_vm15 = vcmp.ne.s32.totalorder %v13781_v25, 0  ;;  %vm16754_vm13 = vcmp.lt.s32.totalorder %v13781_v25, 0  ;;  %v16758_v39 = vld [vmem:[#allocation20_spill] sm:$0xff] }
 0x1f3   : > { %16752 = vst [vmem:[#allocation21_spill] sm:$0xff] %v16751_v9  ;;  %vm13894_vm5 = vmand %vm16754_vm13, %vm16753_vm15  ;;  %v16755_v38 = vmov 0  ;;  %v16759_v53 = vsel %vm12916_vm3, %v12863_v18, %v16758_v39  ;;  %v13921_v33 = vadd.s32 18, %v13813_v22  ;;  %v693_v23 = vshrl.u32 %v13799_v8, 4  ;;  %v4336_v8 = vpop.f32.mrf.mxu0 }
 0x1f4   : > { %v16756_v38 = vsel %vm13894_vm5, 4294967295, %v16755_v38  ;;  %vm13908_vm7 = vcmp.lt.s32.totalorder %v16759_v53, 16  ;;  %v13925_v18 = vadd.f32 %v13759_v13, %v3308_v1  ;;  %v4165_v39 = vadd.f32 %v4022_v40, %v13160_v44  ;;  %v10714_v53 = vpop.f32.mrf.mxu1  ;;  %v16767_v40 = vld [vmem:[#allocation25_spill] sm:$0xff]  ;;  %v16768_v1 = vld [vmem:[#allocation22_spill] sm:$0xff] }
 0x1f5   : > { %16757 = vst [vmem:[#allocation18_spill] sm:$0xff] %v16756_v38  ;;  %v4481_v55 = vadd.f32 %v10748_v60, %v4167_v62  ;;  %vm16763_vm3 = vcmp.lt.s32.totalorder %v13813_v22, 0  ;;  %v16764_v28 = vmov 0  ;;  %v3312_v13 = vadd.f32 %v13765_v52, %v13289_v49  ;;  %v16772_v49 = vld [vmem:[#allocation52_spill] sm:$0xff]  ;;  %v10749_v50 = vpop.f32.mrf.mxu0  ;;  %v16777_v38 = vld [vmem:[#allocation23_spill] sm:$0xff] }
 0x1f6   : > { %16762 = vst [vmem:[#allocation10_spill] sm:$0xff] %v13925_v18  ;;  %vm13936_vm15 = vmand %vm16763_vm3, %vm754_vm6  ;;  %v16769_v62 = vsel %vm12930_vm0, %v16767_v40, %v16768_v1  ;;  %v13956_v41 = vsub.s32 %v13725_v24, %v683_v34  ;;  %v716_v20 = vmul.u32 18, %v715_v16  ;;  %v4168_v52 = vadd.f32 %v10711_v51, %v16772_v49  ;;  %v4038_v9 = vpop.f32.mrf.mxu1  ;;  %v16773_v40 = vld [vmem:[#allocation41_spill] sm:$0xff]  ;;  %v16783_v49 = vld [vmem:[#allocation31_spill] sm:$0xff] }
 0x1f7   : > { %v16765_v28 = vsel %vm13936_vm15, 4294967295, %v16764_v28  ;;  %vm13947_vm13 = vcmp.lt.s32.totalorder %v16769_v62, 16  ;;  %v4524_v44 = vadd.f32 %v13901_v31, %v4481_v55  ;;  %v4479_v42 = vadd.f32 %v4336_v8, %v4165_v39  ;;  %v16776_v18 = vld [vmem:[#allocation29_spill] sm:$0xff]  ;;  %v16784_v1 = vld [vmem:[#allocation26_spill] sm:$0xff]  ;;  %v16790_v8 = vld [vmem:[#allocation27_spill] sm:$0xff] }
 0x1f8   : > { %v13961_v62 = vadd.f32 %v3706_v37, %v3312_v13  ;;  %v16778_v11 = vsel %vm12948_vm10, %v16776_v18, %v16777_v38  ;;  %v694_v55 = vmul.u32 18, %v693_v23  ;;  %v4166_v37 = vadd.f32 %v4025_v19, %v13370_v63  ;;  %v10715_v39 = vpop.f32.mrf.mxu1  ;;  %v16781_v38 = vld [vmem:[#allocation57_spill] sm:$0xff]  ;;  %v4339_v18 = vpop.f32.mrf.mxu0 }
 0x1f9   : > { %vm13968_vm0 = vcmp.lt.s32.totalorder %v16778_v11, 16  ;;  %v4560_v34 = vmax.f32 %v4524_v44, 0.0  ;;  %v4522_v14 = vadd.f32 %v13901_v31, %v4479_v42  ;;  %v4482_v13 = vadd.f32 %v10749_v50, %v4168_v52  ;;  %v16844_v51 = vld [vmem:[#allocation53_spill] sm:$0xff] }
 0x1fa   : > { %16774 = vst [vmem:[#allocation20_spill] sm:$0xff] %v13961_v62  ;;  %v4171_v11 = vadd.f32 %v10714_v53, %v16781_v38  ;;  %v16785_v62 = vsel %vm12961_vm11, %v16783_v49, %v16784_v1  ;;  %v13992_v63 = vsub.s32 %v13738_v5, %v716_v20  ;;  %v4041_v23 = vpop.f32.mrf.mxu1  ;;  %v4480_v53 = vadd.f32 %v4339_v18, %v4166_v37  ;;  %v10752_v1 = vpop.f32.mrf.mxu0  ;;  %v16789_v38 = vld [vmem:[#allocation34_spill] sm:$0xff]  ;;  %v16852_v16 = vld [vmem:[#allocation13_spill] sm:$0xff] }
 0x1fb   : > { %vm13985_vm10 = vcmp.lt.s32.totalorder %v16785_v62, 16  ;;  %v4668_v42 = vsel %vm13820_vm2, %v4560_v34, 0.0  ;;  %v4558_v19 = vmax.f32 %v4522_v14, 0.0  ;;  %v4525_v50 = vadd.f32 %v13901_v31, %v4482_v13  ;;  %v16796_v62 = vld [vmem:[#allocation44_spill] sm:$0xff]  ;;  %v16854_v5 = vld [vmem:[#allocation54_spill] sm:$0xff] }
 0x1fc   : > { %v10045_v52 = vpack.c.bf16 %v4668_v42, %v4668_v42  ;;  %v4169_v44 = vadd.f32 %v4038_v9, %v13223_v3  ;;  %v16791_v49 = vsel %vm12993_vm4, %v16789_v38, %v16790_v8  ;;  %v14008_v20 = vadd.s32 18, %v13956_v41  ;;  %v10718_v34 = vpop.f32.mrf.mxu1  ;;  %v4352_v42 = vpop.f32.mrf.mxu0  ;;  %v16798_v38 = vld [vmem:[#allocation40_spill] sm:$0xff] }
 0x1fd   : > { %vm14003_vm11 = vcmp.lt.s32.totalorder %v16791_v49, 16  ;;  %v14011_v26 = vsub.s32 %v13763_v15, %v694_v55  ;;  %v4666_v37 = vsel %vm13865_vm1, %v4558_v19, 0.0  ;;  %v4561_v3 = vmax.f32 %v4525_v50, 0.0  ;;  %v16799_v8 = vld [vmem:[#allocation36_spill] sm:$0xff]  ;;  %v16805_v49 = vld [vmem:[#allocation42_spill] sm:$0xff] }
 0x1fe   : > { %v4523_v9 = vadd.f32 %v13901_v31, %v4480_v53  ;;  %v4485_v14 = vadd.f32 %v10752_v1, %v4171_v11  ;;  %vm16795_vm2 = vcmask 125952   ;;  %v10043_v13 = vpack.c.bf16 %v4666_v37, %v4666_v37  ;;  %v16803_v1 = vld [vmem:[#allocation46_spill] sm:$0xff] }
 0x1ff   : > { %16794 = vst [vmem:[#allocation30_spill] sm:$0xff] %v14011_v26  ;;  %4848 = vst.msk [vmem:[#allocation2 + $0x14] sm:$0xf] %vm16795_vm2, %v10045_v52  ;;  %v4172_v18 = vadd.f32 %v10715_v39, %v13248_v7  ;;  %vm16797_vm4 = vnez %v16796_v62  ;;  %v4669_v47 = vsel %vm13908_vm7, %v4561_v3, 0.0  ;;  %v4054_v39 = vpop.f32.mrf.mxu1  ;;  %v4483_v19 = vadd.f32 %v4352_v42, %v4169_v44  ;;  %v10753_v52 = vpop.f32.mrf.mxu0  ;;  %v16806_v37 = vld [vmem:[#allocation38_spill] sm:$0xff]  ;;  %v16815_v42 = vld [vmem:[#allocation47_spill] sm:$0xff] }
 0x200   : > { %v16800_v15 = vsel %vm16797_vm4, %v16798_v38, %v16799_v8  ;;  %v4559_v11 = vmax.f32 %v4523_v9, 0.0  ;;  %v4528_v7 = vadd.f32 %v13901_v31, %v4485_v14  ;;  %4846 = vst.msk [vmem:[#allocation2 + $0xc] sm:$0xf] %vm16795_vm2, %v10043_v13  ;;  %v10046_v50 = vpack.c.bf16 %v4669_v47, %v4669_v47  ;;  %v16817_v8 = vld [vmem:[#allocation45_spill] sm:$0xff] }
 0x201   : > { %vm14023_vm3 = vcmp.lt.s32.totalorder %v16800_v15, 16  ;;  %v4170_v53 = vadd.f32 %v4041_v23, %v13424_v12  ;;  %vm16804_vm4 = vnez %v16803_v1  ;;  %v4526_v12 = vadd.f32 %v13901_v31, %v4483_v19  ;;  %v10719_v23 = vpop.f32.mrf.mxu1  ;;  %v4355_v60 = vpop.f32.mrf.mxu0  ;;  %v16818_v15 = vld [vmem:[#allocation39_spill] sm:$0xff]  ;;  %v16872_v38 = vld [vmem:[#allocation5_spill] sm:$0xff] }
 0x202   : > { %v16807_v62 = vsel %vm16804_vm4, %v16805_v49, %v16806_v37  ;;  %v4667_v6 = vsel %vm13947_vm13, %v4559_v11, 0.0  ;;  %v4564_v44 = vmax.f32 %v4528_v7, 0.0  ;;  %v4486_v3 = vadd.f32 %v10753_v52, %v4172_v18  ;;  %v16881_v18 = vld [vmem:[#allocation64_spill] sm:$0xff] }
 0x203   : > { %vm14039_vm6 = vcmp.lt.s32.totalorder %v16807_v62, 16  ;;  %vm16810_vm2 = vcmp.ne.s32.totalorder %v13956_v41, 0  ;;  %vm16811_vm4 = vcmp.lt.s32.totalorder %v13956_v41, 0  ;;  %vm16814_vm5 = vcmask 125952   ;;  %v4057_v52 = vpop.f32.mrf.mxu1  ;;  %v10756_v24 = vpop.f32.mrf.mxu0 }
 0x204   : > { %vm14052_vm15 = vmand %vm16811_vm4, %vm16810_vm2  ;;  %4849 = vst.msk [vmem:[#allocation2 + $0x18] sm:$0xf] %vm16814_vm5, %v10046_v50  ;;  %v10044_v14 = vpack.c.bf16 %v4667_v6, %v4667_v6  ;;  %v4175_v13 = vadd.f32 %v10718_v34, %v13291_v56  ;;  %vm16816_vm13 = vnez %v16815_v42  ;;  %vm16822_vm2 = vcmp.ne.s32.totalorder %v13992_v63, 0  ;;  %v16831_v6 = vld [vmem:[#allocation50_spill] sm:$0xff] }
 0x205   : > { %v16819_v47 = vsel %vm16816_vm13, %v16817_v8, %v16818_v15  ;;  %vm16823_vm4 = vcmp.lt.s32.totalorder %v13992_v63, 0  ;;  %v14076_v56 = vadd.s32 18, %v13992_v63  ;;  %v14079_v34 = vadd.s32 18, %v14011_v26  ;;  %v10722_v15 = vpop.f32.mrf.mxu1 }
 0x206   : > { %vm14063_vm1 = vcmp.lt.s32.totalorder %v16819_v47, 16  ;;  %vm14071_vm14 = vmand %vm16823_vm4, %vm16822_vm2  ;;  %v4672_v7 = vsel %vm13968_vm0, %v4564_v44, 0.0  ;;  %v4562_v19 = vmax.f32 %v4526_v12, 0.0  ;;  %v4529_v50 = vadd.f32 %v13901_v31, %v4486_v3  ;;  %v16833_v44 = vld [vmem:[#allocation48_spill] sm:$0xff]  ;;  %v16834_v12 = vld [vmem:[#allocation43_spill] sm:$0xff] }
 0x207   : > { %v4484_v1 = vadd.f32 %v4355_v60, %v4170_v53  ;;  %vm16826_vm5 = vcmp.ne.s32.totalorder %v14011_v26, 0  ;;  %vm16827_vm13 = vcmp.lt.s32.totalorder %v14011_v26, 0  ;;  %vm16830_vm4 = vcmask 125952   ;;  %v16845_v60 = vld [vmem:[#allocation49_spill] sm:$0xff] }
 0x208   : > { %vm14088_vm2 = vmand %vm16827_vm13, %vm16826_vm5  ;;  %4847 = vst.msk [vmem:[#allocation2 + $0x10] sm:$0xf] %vm16830_vm4, %v10044_v14  ;;  %v10049_v37 = vpack.c.bf16 %v4672_v7, %v4672_v7  ;;  %v4173_v62 = vadd.f32 %v4054_v39, %v13301_v17  ;;  %vm16832_vm0 = vnez %v16831_v6  ;;  %v16838_v14 = vshrl.u32 %v16773_v40, 16  ;;  %v16841_v6 = vld [vmem:[#allocation63_spill] sm:$0xff] }
 0x209   : > { %v16835_v3 = vsel %vm16832_vm0, %v16833_v44, %v16834_v12  ;;  %v4670_v17 = vsel %vm13985_vm10, %v4562_v19, 0.0  ;;  %v4565_v39 = vmax.f32 %v4529_v50, 0.0  ;;  %v4527_v8 = vadd.f32 %v13901_v31, %v4484_v1  ;;  %vm16840_vm5 = vmmov %vm16830_vm4  ;;  %v4368_v12 = vpop.f32.mrf.mxu0  ;;  %v4070_v50 = vpop.f32.mrf.mxu1 }
 0x20a   : > { %vm14099_vm7 = vcmp.lt.s32.totalorder %v16835_v3, 16  ;;  %v14109_v42 = vrot.slane %v16838_v14, 3  ;;  %v4489_v47 = vadd.f32 %v10756_v24, %v4175_v13  ;;  %4852 = vst.msk [vmem:[#allocation2 + $0x24] sm:$0xf] %vm16840_vm5, %v10049_v37  ;;  %v10047_v7 = vpack.c.bf16 %v4670_v17, %v4670_v17  ;;  %v16842_v3 = vld [vmem:[#allocation58_spill] sm:$0xff]  ;;  %vm16849_vm10 = vmmov %vm16840_vm5  ;;  %v16850_v17 = vld [vmem:[#allocation67_spill] sm:$0xff] }
 0x20b   : > { %v4176_v44 = vadd.f32 %v10719_v23, %v16841_v6  ;;  %vm16843_vm13 = vnez %v16842_v3  ;;  %v4673_v13 = vsel %vm14003_vm11, %v4565_v39, 0.0  ;;  %v4563_v19 = vmax.f32 %v4527_v8, 0.0  ;;  %v14136_v37 = vld [vmem:[#allocation2 + $0x8] sm:$0xff]   ;;  %v16851_v3 = vld [vmem:[#allocation8_spill] sm:$0xff]  ;;  %v10757_v23 = vpop.f32.mrf.mxu0 }
 0x20c   : > { %16839 = vst [vmem:[#allocation25_spill] sm:$0xff] %v14109_v42  ;;  %v16846_v14 = vsel %vm16843_vm13, %v16844_v51, %v16845_v60  ;;  %v4532_v51 = vadd.f32 %v13901_v31, %v4489_v47  ;;  %v4487_v1 = vadd.f32 %v4368_v12, %v4173_v62  ;;  %4850 = vst.msk [vmem:[#allocation2 + $0x1c] sm:$0xf] %vm16849_vm10, %v10047_v7  ;;  %vm16853_vm0 = vnez %v16852_v16  ;;  %v16855_v39 = vld [vmem:[#allocation51_spill] sm:$0xff] }
 0x20d   : > { %vm14121_vm4 = vcmp.lt.s32.totalorder %v16846_v14, 16  ;;  %v10050_v24 = vpack.c.bf16 %v4673_v13, %v4673_v13  ;;  %v4174_v60 = vadd.f32 %v4057_v52, %v13524_v21  ;;  %v4179_v6 = vadd.f32 %v10722_v15, %v16850_v17  ;;  %v10723_v52 = vpop.f32.mrf.mxu1  ;;  %v16859_v13 = vld [vmem:[#allocation9_spill] sm:$0xff]  ;;  %v11442_v42 = vld [vmem:[%s16314_s3 + $0x10] sm:$0xff]  }
 0x20e   : > { %v4177_v14 = vadd.f32 %v4070_v50, %v16851_v3  ;;  %v16856_v8 = vsel %vm16853_vm0, %v16854_v5, %v16855_v39  ;;  %v4671_v62 = vsel %vm14023_vm3, %v4563_v19, 0.0  ;;  %v4568_v7 = vmax.f32 %v4532_v51, 0.0  ;;  %v4371_v50 = vpop.f32.mrf.mxu0  ;;  %v16860_v3 = vld [vmem:[#allocation62_spill] sm:$0xff]  ;;  %v16862_v5 = vld [vmem:[#allocation60_spill] sm:$0xff]  ;;  %vm16867_vm3 = vmmov %vm16840_vm5 }
 0x20f   : > { %vm14147_vm11 = vcmp.lt.s32.totalorder %v16856_v8, 16  ;;  %v4530_v21 = vadd.f32 %v13901_v31, %v4487_v1  ;;  %v4490_v15 = vadd.f32 %v10757_v23, %v4176_v44  ;;  %4853 = vst.msk [vmem:[#allocation2 + $0x28] sm:$0xf] %vm16840_vm5, %v10050_v24  ;;  %v10048_v12 = vpack.c.bf16 %v4671_v62, %v4671_v62  ;;  %v16863_v39 = vld [vmem:[#allocation14_spill] sm:$0xff]  ;;  %v4073_v1 = vpop.f32.mrf.mxu1  ;;  %v14170_v62 = vld [vmem:[#allocation2 + $0x10] sm:$0xff]  }
 0x210   : > { %v4180_v16 = vadd.f32 %v10723_v52, %v16859_v13  ;;  %v5019_v17 = vrot.slane %v14136_v37, 3  ;;  %vm16861_vm13 = vnez %v16860_v3  ;;  %v16442_v19 = vshrl.u32 %v14136_v37, 16  ;;  %v10760_v3 = vpop.f32.mrf.mxu0 }
 0x211   : > { %v16864_v8 = vsel %vm16861_vm13, %v16862_v5, %v16863_v39  ;;  %v4676_v44 = vsel %vm14039_vm6, %v4568_v7, 0.0  ;;  %v4566_v23 = vmax.f32 %v4530_v21, 0.0  ;;  %v4533_v51 = vadd.f32 %v13901_v31, %v4490_v15  ;;  %4851 = vst.msk [vmem:[#allocation2 + $0x20] sm:$0xf] %vm16867_vm3, %v10048_v12  ;;  %v16873_v7 = vld [vmem:[#allocation59_spill] sm:$0xff] }
 0x212   : > { %vm14162_vm10 = vcmp.lt.s32.totalorder %v16864_v8, 16  ;;  %v4488_v24 = vadd.f32 %v4371_v50, %v4174_v60  ;;  %v10053_v52 = vpack.c.bf16 %v4676_v44, %v4676_v44  ;;  %v4178_v13 = vadd.f32 %v4073_v1, %v13676_v36  ;;  %v16870_v8 = vld [vmem:[#allocation6_spill] sm:$0xff]  ;;  %v10726_v44 = vpop.f32.mrf.mxu1 }
 0x213   : > { %v16868_v5 = vrot.slane %v16773_v40, 3  ;;  %vm16869_vm0 = vcmask 1044480   ;;  %vm16871_vm5 = vnez %v16870_v8  ;;  %v5307_v60 = vrot.slane %v16442_v19, 2  ;;  %v16878_v8 = vld [vmem:[#allocation71_spill] sm:$0xff] }
 0x214   : > { %v16874_v21 = vsel %vm16871_vm5, %v16872_v38, %v16873_v7  ;;  %v4674_v36 = vsel %vm14063_vm1, %v4566_v23, 0.0  ;;  %v4569_v12 = vmax.f32 %v4533_v51, 0.0  ;;  %v4531_v50 = vadd.f32 %v13901_v31, %v4488_v24  ;;  %4856 = vst.msk [vmem:[#allocation2 + $0x34] sm:$0xf] %vm16867_vm3, %v10053_v52  ;;  %v4384_v7 = vpop.f32.mrf.mxu0  ;;  %v16879_v40 = vld [vmem:[#allocation7_spill] sm:$0xff]  ;;  %v16882_v23 = vld [vmem:[#allocation4_spill] sm:$0xff]  ;;  %vm16886_vm5 = vmmov %vm16867_vm3 }
 0x215   : > { %v5020_v39 = vsel %vm16869_vm0, %v16868_v5, %v5019_v17  ;;  %vm14182_vm6 = vcmp.lt.s32.totalorder %v16874_v21, 16  ;;  %v4493_v1 = vadd.f32 %v10760_v3, %v4179_v6  ;;  %vm16877_vm13 = vcmask 130048   ;;  %v16928_v24 = vld [vmem:[#allocation81_spill] sm:$0xff] }
 0x216   : > { %10784 = vmatprep.mubr.msk.bf16.mxu1 %vm16877_vm13, %v5020_v39  ;;  %v10051_v5 = vpack.c.bf16 %v4674_v36, %v4674_v36  ;;  %v4183_v38 = vadd.f32 %v10726_v44, %v16878_v8  ;;  %v5021_v21 = vrot.slane %v14170_v62, 3  ;;  %v16445_v19 = vshll.u32 %v14136_v37, 16  ;;  %v4086_v39 = vpop.f32.mrf.mxu1  ;;  %v14208_v44 = vld [vmem:[#allocation2 + $0x18] sm:$0xff]  }
 0x217   : > { %vm16880_vm0 = vnez %v16879_v40  ;;  %v4677_v6 = vsel %vm14099_vm7, %v4569_v12, 0.0  ;;  %v4567_v52 = vmax.f32 %v4531_v50, 0.0  ;;  %v4536_v3 = vadd.f32 %v13901_v31, %v4493_v1  ;;  %v11344_v40 = vld [vmem:[%s16314_s3 + $0x20] sm:$0xff]  }
 0x218   : > { %v16883_v51 = vsel %vm16880_vm0, %v16881_v18, %v16882_v23  ;;  %v4491_v36 = vadd.f32 %v4384_v7, %v4177_v14  ;;  %4854 = vst.msk [vmem:[#allocation2 + $0x2c] sm:$0xf] %vm16886_vm5, %v10051_v5  ;;  %v10054_v8 = vpack.c.bf16 %v4677_v6, %v4677_v6  ;;  %v16887_v18 = vld [vmem:[#allocation12_spill] sm:$0xff]  ;;  %vm16888_vm13 = vcmask 1044480   ;;  %v16889_v50 = vld [vmem:[#allocation66_spill] sm:$0xff]  ;;  %v16891_v14 = vld [vmem:[#allocation65_spill] sm:$0xff] }
 0x219   : > { %vm14201_vm1 = vcmp.lt.s32.totalorder %v16883_v51, 16  ;;  %v4181_v23 = vadd.f32 %v4086_v39, %v16887_v18  ;;  %v10761_v51 = vpop.f32.mrf.mxu0  ;;  %v5022_v53 = vsel %vm16888_vm13, %v5019_v17, %v5021_v21  ;;  %v5310_v12 = vrot.slane %v16445_v19, 3  ;;  %v16892_v1 = vld [vmem:[#allocation61_spill] sm:$0xff]  ;;  %v10727_v18 = vpop.f32.mrf.mxu1 }
 0x21a   : > { %vm16890_vm7 = vnez %v16889_v50  ;;  %v4675_v5 = vsel %vm14121_vm4, %v4567_v52, 0.0  ;;  %v4572_v6 = vmax.f32 %v4536_v3, 0.0  ;;  %v4534_v39 = vadd.f32 %v13901_v31, %v4491_v36  ;;  %4857 = vst.msk [vmem:[#allocation2 + $0x38] sm:$0xf] %vm16886_vm5, %v10054_v8  ;;  %v11443_v3 = vld [vmem:[%s16314_s3 + $0x18] sm:$0xff]  }
 0x21b   : > { %v16893_v7 = vsel %vm16890_vm7, %v16891_v14, %v16892_v1  ;;  %v4494_v17 = vadd.f32 %v10761_v51, %v4180_v16  ;;  %vm16896_vm0 = vcmask 130048   ;;  %v10052_v50 = vpack.c.bf16 %v4675_v5, %v4675_v5  ;;  %v4387_v1 = vpop.f32.mrf.mxu0  ;;  %v4089_v8 = vpop.f32.mrf.mxu1  ;;  %vm16901_vm7 = vmmov %vm16886_vm5 }
 0x21c   : > { %vm14223_vm3 = vcmp.lt.s32.totalorder %v16893_v7, 16  ;;  %10785 = vmatmul.mubr.msk.bf16.vlgmr.msra.gmra.mxu1 %vm16896_vm0, %v5022_v53  ;;  %v4184_v19 = vadd.f32 %v10727_v18, %v13501_v43  ;;  %v14233_v14 = vor.u32 %v5310_v12, %v5307_v60  ;;  %v5023_v52 = vrot.slane %v14208_v44, 3  ;;  %v16903_v12 = vld [vmem:[#allocation55_spill] sm:$0xff] }
 0x21d   : > { %10859 = vmatpush3.bf16.msra.mxu1 %v11442_v42  ;;  %vm16897_vm4 = vnez %v16649_v0  ;;  %v4680_v43 = vsel %vm14147_vm11, %v4572_v6, 0.0  ;;  %v4570_v60 = vmax.f32 %v4534_v39, 0.0  ;;  %v4537_v36 = vadd.f32 %v13901_v31, %v4494_v17  ;;  %4855 = vst.msk [vmem:[#allocation2 + $0x30] sm:$0xf] %vm16901_vm7, %v10052_v50  ;;  %v16902_v0 = vld [vmem:[#allocation56_spill] sm:$0xff]  ;;  %v10764_v47 = vpop.f32.mrf.mxu0 }
 0x21e   : > { %v16898_v16 = vsel %vm16897_vm4, %v13434_v32, %v13396_v29  ;;  %v4492_v51 = vadd.f32 %v4387_v1, %v4178_v13  ;;  %10934 = vmatprep.subr.bf16.mxu1 %v11344_v40  ;;  %v10057_v53 = vpack.c.bf16 %v4680_v43, %v4680_v43  ;;  %v16904_v29 = vor.u32 %v16902_v0, %v16903_v12  ;;  %v16907_v6 = vld [vmem:[#allocation72_spill] sm:$0xff]  ;;  %v16909_v13 = vld [vmem:[#allocation73_spill] sm:$0xff]  ;;  %v10730_v1 = vpop.f32.mrf.mxu1  ;;  %v16917_v43 = vld [vmem:[#allocation79_spill] sm:$0xff] }
 0x21f   : > { %vm14244_vm13 = vcmp.lt.s32.totalorder %v16898_v16, 16  ;;  %vm16905_vm0 = vsmask.f32 5376  ;;  %v14258_v7 = vadd.f32 %v4089_v8, %v13696_v54  ;;  %vm16906_vm11 = vcmask 1044480   ;;  %v16910_v40 = vld [vmem:[#allocation68_spill] sm:$0xff] }
 0x220   : > { %v5312_v32 = vsel %vm16905_vm0, %v16904_v29, %v14233_v14  ;;  %v5024_v5 = vsel %vm16906_vm11, %v5021_v21, %v5023_v52  ;;  %vm16908_vm5 = vnez %v16907_v6  ;;  %v4678_v17 = vsel %vm14162_vm10, %v4570_v60, 0.0  ;;  %v14277_v21 = vld [vmem:[#allocation2 + $0x20] sm:$0xff]   ;;  %v4400_v60 = vpop.f32.mrf.mxu0  ;;  %v4102_v12 = vpop.f32.mrf.mxu1 }
 0x221   : > { %v16911_v39 = vsel %vm16908_vm5, %v16909_v13, %v16910_v40  ;;  %v4573_v50 = vmax.f32 %v4537_v36, 0.0  ;;  %vm16914_vm7 = vcmask 130048   ;;  %v4535_v54 = vadd.f32 %v13901_v31, %v4492_v51 }
 0x222   : > { %vm14268_vm4 = vcmp.lt.s32.totalorder %v16911_v39, 16  ;;  %10822 = vmatprep.mubr.msk.bf16.mxu0 %vm16914_vm7, %v5312_v32  ;;  %v4497_v42 = vadd.f32 %v10764_v47, %v4183_v38  ;;  %vm16915_vm0 = vmmov %vm16914_vm7  ;;  %vm16916_vm11 = vcmask 125952   ;;  %v10055_v16 = vpack.c.bf16 %v4678_v17, %v4678_v17  ;;  %v10765_v13 = vpop.f32.mrf.mxu0 }
 0x223   : > { %10788 = vmatprep.mubr.msk.bf16.mxu1 %vm16915_vm0, %v5024_v5  ;;  %4860 = vst.msk [vmem:[#allocation2 + $0x44] sm:$0xf] %vm16916_vm11, %v10057_v53  ;;  %v4187_v8 = vadd.f32 %v10730_v1, %v16917_v43  ;;  %v5314_v0 = vshrl.u32 %v14170_v62, 16  ;;  %v5317_v55 = vshll.u32 %v14170_v62, 16  ;;  %v4681_v36 = vsel %vm14182_vm6, %v4573_v50, 0.0  ;;  %vm16918_vm10 = vmmov %vm16916_vm11  ;;  %v16919_v5 = vld [vmem:[#allocation80_spill] sm:$0xff] }
 0x224   : > { %v4571_v51 = vmax.f32 %v4535_v54, 0.0  ;;  %v4540_v38 = vadd.f32 %v13901_v31, %v4497_v42  ;;  %v4495_v29 = vadd.f32 %v4400_v60, %v4181_v23  ;;  %4858 = vst.msk [vmem:[#allocation2 + $0x3c] sm:$0xf] %vm16918_vm10, %v10055_v16  ;;  %v10058_v32 = vpack.c.bf16 %v4681_v36, %v4681_v36  ;;  %v10731_v23 = vpop.f32.mrf.mxu1  ;;  %v16920_v50 = vld [vmem:[#allocation19_spill] sm:$0xff]  ;;  %v16922_v54 = vld [vmem:[#allocation74_spill] sm:$0xff]  ;;  %v16923_v1 = vld [vmem:[#allocation69_spill] sm:$0xff] }
 0x225   : > { %v5316_v53 = vrot.slane %v5314_v0, 2  ;;  %v5319_v47 = vrot.slane %v5317_v55, 3  ;;  %v14292_v6 = vadd.f32 %v4102_v12, %v16919_v5  ;;  %v4498_v17 = vadd.f32 %v10765_v13, %v4184_v19  ;;  %vm16927_vm7 = vmmov %vm16918_vm10  ;;  %v16929_v19 = vld [vmem:[#allocation76_spill] sm:$0xff]  ;;  %v16931_v12 = vld [vmem:[#allocation75_spill] sm:$0xff] }
 0x226   : > { %v4679_v15 = vsel %vm14201_vm1, %v4571_v51, 0.0  ;;  %v4576_v40 = vmax.f32 %v4540_v38, 0.0  ;;  %v4538_v39 = vadd.f32 %v13901_v31, %v4495_v29  ;;  %vm16921_vm6 = vnez %v16920_v50  ;;  %4861 = vst.msk [vmem:[#allocation2 + $0x48] sm:$0xf] %vm16927_vm7, %v10058_v32  ;;  %v4403_v38 = vpop.f32.mrf.mxu0  ;;  %v16932_v29 = vld [vmem:[#allocation70_spill] sm:$0xff]  ;;  %v4105_v50 = vpop.f32.mrf.mxu1  ;;  %vm16936_vm11 = vmmov %vm16927_vm7 }
 0x227   : > { %v16924_v42 = vsel %vm16921_vm6, %v16922_v54, %v16923_v1  ;;  %v10056_v43 = vpack.c.bf16 %v4679_v15, %v4679_v15  ;;  %v5320_v60 = vor.u32 %v5319_v47, %v5316_v53  ;;  %v14308_v36 = vadd.f32 %v10731_v23, %v16928_v24  ;;  %v11345_v32 = vld [vmem:[%s16314_s3 + $0x28] sm:$0xff]  }
 0x228   : > { %vm14302_vm5 = vcmp.lt.s32.totalorder %v16924_v42, 16  ;;  %v5025_v51 = vrot.slane %v14277_v21, 3  ;;  %vm16930_vm1 = vnez %v16929_v19  ;;  %v4684_v53 = vsel %vm14223_vm3, %v4576_v40, 0.0  ;;  %v14327_v54 = vld [vmem:[#allocation2 + $0x28] sm:$0xff]   ;;  %v10768_v40 = vpop.f32.mrf.mxu0  ;;  %v10734_v19 = vpop.f32.mrf.mxu1 }
 0x229   : > { %v16933_v5 = vsel %vm16930_vm1, %v16931_v12, %v16932_v29  ;;  %v4574_v47 = vmax.f32 %v4538_v39, 0.0  ;;  %v4541_v15 = vadd.f32 %v13901_v31, %v4498_v17  ;;  %v5323_v23 = vshrl.u32 %v14208_v44, 16  ;;  %4859 = vst.msk [vmem:[#allocation2 + $0x40] sm:$0xf] %vm16936_vm11, %v10056_v43  ;;  %v16941_v12 = vld [vmem:[#allocation78_spill] sm:$0xff]  ;;  %v16944_v29 = vld [vmem:[#allocation11_spill] sm:$0xff] }
 0x22a   : > { %vm14316_vm0 = vcmp.lt.s32.totalorder %v16933_v5, 16  ;;  %v10061_v1 = vpack.c.bf16 %v4684_v53, %v4684_v53  ;;  %vm16937_vm10 = vsmask.f32 5376  ;;  %vm16938_vm6 = vcmask 1044480  }
 0x22b   : > { %v5321_v42 = vsel %vm16937_vm10, %v14233_v14, %v5320_v60  ;;  %v5026_v24 = vsel %vm16938_vm6, %v5023_v52, %v5025_v51  ;;  %v5326_v26 = vshll.u32 %v14208_v44, 16  ;;  %vm16939_vm3 = vcmask 130048   ;;  %v16943_v52 = vld [vmem:[#allocation77_spill] sm:$0xff] }
 0x22c   : > { %10823 = vmatmul.mubr.msk.bf16.vlgmr.msra.gmra.mxu0 %vm16939_vm3, %v5321_v42  ;;  %v4682_v39 = vsel %vm14244_vm13, %v4574_v47, 0.0  ;;  %v4577_v17 = vmax.f32 %v4541_v15, 0.0  ;;  %vm16940_vm7 = vmmov %vm16939_vm3  ;;  %v5325_v43 = vrot.slane %v5323_v23, 2  ;;  %v14343_v14 = vadd.f32 %v4105_v50, %v13741_v48  ;;  %v16949_v50 = vld [vmem:[#allocation83_spill] sm:$0xff] }
 0x22d   : > { %10789 = vmatmul.mubr.msk.bf16.gmra.mxu1 %vm16940_vm7, %v5026_v24  ;;  %vm16942_vm1 = vnez %v16941_v12  ;;  %vm16948_vm13 = vcmask 125952   ;;  %10897 = vmatpush3.bf16.msra.mxu0 %v11443_v3  ;;  %v10059_v47 = vpack.c.bf16 %v4682_v39, %v4682_v39  ;;  %v5328_v48 = vrot.slane %v5326_v26, 3  ;;  %v4416_v24 = vpop.f32.mrf.mxu0 }
 0x22e   : > { %v16945_v5 = vsel %vm16942_vm1, %v16943_v52, %v16944_v29  ;;  %4864 = vst.msk [vmem:[#allocation2 + $0x54] sm:$0xf] %vm16948_vm13, %v10061_v1  ;;  %v4496_v15 = vadd.f32 %v4403_v38, %v14258_v7  ;;  %v14362_v42 = vadd.f32 %v10734_v19, %v16949_v50  ;;  %vm16950_vm10 = vnez %v16687_v2  ;;  %v4118_v38 = vpop.f32.mrf.mxu1  ;;  %v14377_v19 = vld [vmem:[#allocation2 + $0x30] sm:$0xff]   ;;  %vm16954_vm3 = vmmov %vm16948_vm13 }
 0x22f   : > { %vm14350_vm11 = vcmp.lt.s32.totalorder %v16945_v5, 16  ;;  %v16951_v1 = vsel %vm16950_vm10, %v13609_v61, %v13561_v57  ;;  %v4685_v39 = vsel %vm14268_vm4, %v4577_v17, 0.0  ;;  %v4501_v52 = vadd.f32 %v10768_v40, %v4187_v8  ;;  %10972 = vmatprep.subr.bf16.mxu0 %v11345_v32  ;;  %4862 = vst.msk [vmem:[#allocation2 + $0x4c] sm:$0xf] %vm16954_vm3, %v10059_v47  ;;  %v10769_v3 = vpop.f32.mrf.mxu0  ;;  %v16956_v17 = vld [vmem:[#allocation84_spill] sm:$0xff]  ;;  %vm16957_vm7 = vmmov %vm16954_vm3 }
 0x230   : > { %vm14369_vm6 = vcmp.lt.s32.totalorder %v16951_v1, 16  ;;  %v5027_v29 = vrot.slane %v14327_v54, 3  ;;  %v16449_v7 = vshrl.u32 %v14277_v21, 16  ;;  %v10062_v2 = vpack.c.bf16 %v4685_v39, %v4685_v39  ;;  %v10735_v32 = vpop.f32.mrf.mxu1 }
 0x231   : > { %v5329_v57 = vor.u32 %v5328_v48, %v5325_v43  ;;  %v4539_v61 = vadd.f32 %v13901_v31, %v4496_v15  ;;  %v16446_v5 = vshll.u32 %v14277_v21, 16  ;;  %v4544_v18 = vadd.f32 %v13901_v31, %v4501_v52  ;;  %v4419_v52 = vpop.f32.mrf.mxu0 }
 0x232   : > { %vm16955_vm4 = vcmask 1044480   ;;  %v5334_v40 = vrot.slane %v16449_v7, 2  ;;  %v14387_v50 = vadd.f32 %v4118_v38, %v16956_v17  ;;  %4865 = vst.msk [vmem:[#allocation2 + $0x58] sm:$0xf] %vm16957_vm7, %v10062_v2  ;;  %vm16958_vm1 = vsmask.f32 5376 }
 0x233   : > { %v5028_v8 = vsel %vm16955_vm4, %v5025_v51, %v5027_v29  ;;  %v5330_v43 = vsel %vm16958_vm1, %v5320_v60, %v5329_v57  ;;  %v4575_v47 = vmax.f32 %v4539_v61, 0.0  ;;  %vm16959_vm13 = vcmask 130048   ;;  %v16961_v51 = vld [vmem:[#allocation24_spill] sm:$0xff]  ;;  %v17000_v7 = vld [vmem:[#allocation94_spill] sm:$0xff] }
 0x234   : > { %10792 = vmatprep.mubr.msk.bf16.mxu1 %vm16959_vm13, %v5028_v8  ;;  %v5337_v48 = vrot.slane %v16446_v5, 3  ;;  %v4499_v15 = vadd.f32 %v4416_v24, %v14292_v6  ;;  %vm16960_vm10 = vnez %v16693_v10  ;;  %vm16965_vm4 = vmmov %vm16959_vm13  ;;  %v4580_v60 = vmax.f32 %v4544_v18, 0.0  ;;  %v16966_v38 = vld [vmem:[#allocation88_spill] sm:$0xff]  ;;  %v4121_v24 = vpop.f32.mrf.mxu1  ;;  %v16967_v10 = vld [vmem:[#allocation87_spill] sm:$0xff] }
 0x235   : > { %v16962_v1 = vsel %vm16960_vm10, %v13620_v45, %v16961_v51  ;;  %10826 = vmatprep.mubr.msk.bf16.mxu0 %vm16965_vm4, %v5330_v43  ;;  %v14406_v2 = vadd.f32 %v10735_v32, %v16966_v38  ;;  %v4502_v61 = vadd.f32 %v10769_v3, %v14308_v36  ;;  %v5029_v6 = vrot.slane %v14377_v19, 3  ;;  %v16969_v8 = vld [vmem:[#allocation32_spill] sm:$0xff]  ;;  %v16970_v45 = vld [vmem:[#allocation82_spill] sm:$0xff]  ;;  %v10772_v3 = vpop.f32.mrf.mxu0 }
 0x236   : > { %vm14400_vm3 = vcmp.lt.s32.totalorder %v16962_v1, 16  ;;  %vm16968_vm7 = vnez %v16967_v10  ;;  %v4683_v18 = vsel %vm14302_vm5, %v4575_v47, 0.0  ;;  %v5338_v43 = vor.u32 %v5337_v48, %v5334_v40  ;;  %v14423_v1 = vld [vmem:[#allocation2 + $0x38] sm:$0xff]   ;;  %vm16976_vm5 = vmmov %vm16965_vm4 }
 0x237   : > { %v16971_v17 = vsel %vm16968_vm7, %v16969_v8, %v16970_v45  ;;  %v4542_v32 = vadd.f32 %v13901_v31, %v4499_v15  ;;  %v16448_v36 = vshrl.u32 %v14327_v54, 16  ;;  %v10060_v38 = vpack.c.bf16 %v4683_v18, %v4683_v18  ;;  %v4432_v48 = vpop.f32.mrf.mxu0  ;;  %vm16978_vm7 = vmmov %vm16976_vm5  ;;  %v16981_v18 = vld [vmem:[#allocation85_spill] sm:$0xff] }
 0x238   : > { %vm14415_vm1 = vcmp.lt.s32.totalorder %v16971_v17, 16  ;;  %v4688_v10 = vsel %vm14316_vm0, %v4580_v60, 0.0  ;;  %v4545_v8 = vadd.f32 %v13901_v31, %v4502_v61  ;;  %vm16974_vm13 = vcmask 1044480   ;;  %v10738_v17 = vpop.f32.mrf.mxu1  ;;  %v16979_v61 = vld [vmem:[#allocation89_spill] sm:$0xff] }
 0x239   : > { %v5030_v45 = vsel %vm16974_vm13, %v5027_v29, %v5029_v6  ;;  %v10065_v5 = vpack.c.bf16 %v4688_v10, %v4688_v10  ;;  %vm16975_vm10 = vsmask.f32 5376  ;;  %v4578_v40 = vmax.f32 %v4542_v32, 0.0  ;;  %v16982_v32 = vld [vmem:[#allocation28_spill] sm:$0xff] }
 0x23a   : > { %v5339_v16 = vsel %vm16975_vm10, %v5329_v57, %v5338_v43  ;;  %10793 = vmatmul.mubr.msk.bf16.gmra.mxu1 %vm16976_vm5, %v5030_v45  ;;  %v5343_v47 = vrot.slane %v16448_v36, 2  ;;  %vm16977_vm4 = vcmask 125952   ;;  %v4581_v13 = vmax.f32 %v4545_v8, 0.0  ;;  %v4134_v57 = vpop.f32.mrf.mxu1  ;;  %v16987_v8 = vld [vmem:[#allocation90_spill] sm:$0xff] }
 0x23b   : > { %4863 = vst.msk [vmem:[#allocation2 + $0x50] sm:$0xf] %vm16977_vm4, %v10060_v38  ;;  %10827 = vmatmul.mubr.msk.bf16.gmra.mxu0 %vm16978_vm7, %v5339_v16  ;;  %v16447_v15 = vshll.u32 %v14327_v54, 16  ;;  %v14437_v29 = vadd.f32 %v4121_v24, %v13883_v46  ;;  %v4500_v60 = vadd.f32 %v4419_v52, %v14343_v14  ;;  %vm16980_vm0 = vnez %v16979_v61  ;;  %vm16986_vm10 = vmmov %vm16977_vm4  ;;  %v16988_v24 = vld [vmem:[#allocation98_spill] sm:$0xff]  ;;  %v16990_v16 = vld [vmem:[#allocation91_spill] sm:$0xff] }
 0x23c   : > { %v16983_v10 = vsel %vm16980_vm0, %v16981_v18, %v16982_v32  ;;  %4868 = vst.msk [vmem:[#allocation2 + $0x64] sm:$0xf] %vm16986_vm10, %v10065_v5  ;;  %v4686_v38 = vsel %vm14350_vm11, %v4578_v40, 0.0  ;;  %v14453_v46 = vadd.f32 %v10738_v17, %v16987_v8  ;;  %v4505_v14 = vadd.f32 %v10772_v3, %v14362_v42  ;;  %v16991_v61 = vld [vmem:[#allocation86_spill] sm:$0xff]  ;;  %v10773_v5 = vpop.f32.mrf.mxu0  ;;  %v10739_v3 = vpop.f32.mrf.mxu1  ;;  %vm16996_vm7 = vmmov %vm16986_vm10 }
 0x23d   : > { %vm14445_vm13 = vcmp.lt.s32.totalorder %v16983_v10, 16  ;;  %v5031_v52 = vrot.slane %v14423_v1, 3  ;;  %vm16989_vm5 = vnez %v16988_v24  ;;  %v10063_v10 = vpack.c.bf16 %v4686_v38, %v4686_v38  ;;  %vm16999_vm0 = vmmov %vm16996_vm7 }
 0x23e   : > { %v16992_v18 = vsel %vm16989_vm5, %v16990_v16, %v16991_v61  ;;  %v4689_v53 = vsel %vm14369_vm6, %v4581_v13, 0.0  ;;  %v5346_v17 = vrot.slane %v16447_v15, 3  ;;  %v4543_v42 = vadd.f32 %v13901_v31, %v4500_v60  ;;  %v14474_v61 = vld [vmem:[#allocation2 + $0x40] sm:$0xff]   ;;  %v16998_v60 = vld [vmem:[#allocation92_spill] sm:$0xff] }
 0x23f   : > { %vm14462_vm4 = vcmp.lt.s32.totalorder %v16992_v18, 16  ;;  %v10066_v40 = vpack.c.bf16 %v4689_v53, %v4689_v53  ;;  %v4548_v8 = vadd.f32 %v13901_v31, %v4505_v14  ;;  %vm16995_vm11 = vcmask 1044480   ;;  %v4435_v18 = vpop.f32.mrf.mxu0  ;;  %4866 = vst.msk [vmem:[#allocation2 + $0x5c] sm:$0xf] %vm16996_vm7, %v10063_v10  ;;  %v4137_v53 = vpop.f32.mrf.mxu1 }
 0x240   : > { %v5032_v24 = vsel %vm16995_vm11, %v5029_v6, %v5031_v52  ;;  %v5350_v16 = vshrl.u32 %v14377_v19, 16  ;;  %v5347_v12 = vor.u32 %v5346_v17, %v5343_v47  ;;  %v4579_v13 = vmax.f32 %v4543_v42, 0.0  ;;  %v17001_v47 = vld [vmem:[#allocation93_spill] sm:$0xff] }
 0x241   : > { %vm16997_vm6 = vcmask 130048   ;;  %v5353_v38 = vshll.u32 %v14377_v19, 16  ;;  %v14480_v15 = vadd.f32 %v4134_v57, %v16998_v60  ;;  %4869 = vst.msk [vmem:[#allocation2 + $0x68] sm:$0xf] %vm16999_vm0, %v10066_v40  ;;  %v4584_v6 = vmax.f32 %v4548_v8, 0.0  ;;  %v10776_v42 = vpop.f32.mrf.mxu0 }
 0x242   : > { %10796 = vmatprep.mubr.msk.bf16.mxu1 %vm16997_vm6, %v5032_v24  ;;  %v5352_v14 = vrot.slane %v5350_v16, 2  ;;  %v4503_v36 = vadd.f32 %v4432_v48, %v14387_v50  ;;  %v14487_v10 = vadd.f32 %v10739_v3, %v17000_v7  ;;  %v17002_v17 = vsel %vm13807_vm12, %v13777_v35, %v17001_v47  ;;  %v10742_v48 = vpop.f32.mrf.mxu1  ;;  %vm17009_vm11 = vmmov %vm16997_vm6 }
 0x243   : > { %vm14494_vm10 = vcmp.lt.s32.totalorder %v17002_v17, 16  ;;  %vm17005_vm5 = vsmask.f32 5376  ;;  %v4687_v8 = vsel %vm14400_vm3, %v4579_v13, 0.0  ;;  %v5355_v50 = vrot.slane %v5353_v38, 3 }
 0x244   : > { %v5348_v40 = vsel %vm17005_vm5, %v5338_v43, %v5347_v12  ;;  %v4506_v7 = vadd.f32 %v10773_v5, %v14406_v2  ;;  %v17006_v35 = vsel %vm13828_vm8, %v13833_v27, %v13745_v59  ;;  %v10064_v43 = vpack.c.bf16 %v4687_v8, %v4687_v8  ;;  %v4448_v5 = vpop.f32.mrf.mxu0  ;;  %v14520_v27 = vld [vmem:[#allocation2 + $0x48] sm:$0xff]   ;;  %v4150_v60 = vpop.f32.mrf.mxu1  ;;  %vm17010_vm8 = vmmov %vm16999_vm0 }
 0x245   : > { %vm14509_vm12 = vcmp.lt.s32.totalorder %v17006_v35, 16  ;;  %10830 = vmatprep.mubr.msk.bf16.mxu0 %vm17009_vm11, %v5348_v40  ;;  %v4692_v39 = vsel %vm14415_vm1, %v4584_v6, 0.0  ;;  %v4546_v3 = vadd.f32 %v13901_v31, %v4503_v36  ;;  %v5033_v2 = vrot.slane %v14474_v61, 3  ;;  %v17012_v36 = vld [vmem:[#allocation10_spill] sm:$0xff]  ;;  %vm17013_vm1 = vmmov %vm16999_vm0 }
 0x246   : > { %v10069_v24 = vpack.c.bf16 %v4692_v39, %v4692_v39  ;;  %v5356_v30 = vor.u32 %v5355_v50, %v5352_v14  ;;  %v4549_v13 = vadd.f32 %v13901_v31, %v4506_v7  ;;  %v5359_v59 = vshrl.u32 %v14423_v1, 16  ;;  %4867 = vst.msk [vmem:[#allocation2 + $0x60] sm:$0xf] %vm17010_vm8, %v10064_v43  ;;  %v10777_v40 = vpop.f32.mrf.mxu0  ;;  %vm17014_vm7 = vmmov %vm17005_vm5  ;;  %v17017_v43 = vld [vmem:[#allocation95_spill] sm:$0xff] }
 0x247   : > { %v4582_v47 = vmax.f32 %v4546_v3, 0.0  ;;  %vm17011_vm3 = vcmask 1044480   ;;  %v5362_v6 = vshll.u32 %v14423_v1, 16  ;;  %v14526_v17 = vadd.f32 %v4137_v53, %v17012_v36  ;;  %vm17021_vm5 = vmmov %vm16997_vm6  ;;  %v17026_v36 = vld [vmem:[#allocation96_spill] sm:$0xff]  ;;  %v14884_v1 = vld [vmem:[#allocation2 + $0x44] sm:$0xf] }
 0x248   : > { %v5034_v51 = vsel %vm17011_vm3, %v5031_v52, %v5033_v2  ;;  %4872 = vst.msk [vmem:[#allocation2 + $0x74] sm:$0xf] %vm17013_vm1, %v10069_v24  ;;  %v5357_v14 = vsel %vm17014_vm7, %v5347_v12, %v5356_v30  ;;  %v4585_v8 = vmax.f32 %v4549_v13, 0.0  ;;  %v5361_v50 = vrot.slane %v5359_v59, 2  ;;  %v17016_v52 = vld [vmem:[#allocation15_spill] sm:$0xff]  ;;  %v17022_v24 = vld [vmem:[#allocation97_spill] sm:$0xff]  ;;  %vm17031_vm8 = vmmov %vm17011_vm3 }
 0x249   : > { %10797 = vmatmul.mubr.msk.bf16.gmra.mxu1 %vm16997_vm6, %v5034_v51  ;;  %v4504_v7 = vadd.f32 %v4435_v18, %v14437_v29  ;;  %v17018_v39 = vsel %vm13850_vm9, %v17016_v52, %v17017_v43  ;;  %10831 = vmatmul.mubr.msk.bf16.gmra.mxu0 %vm17021_vm5, %v5357_v14  ;;  %v4690_v12 = vsel %vm14445_vm13, %v4582_v47, 0.0  ;;  %v5364_v3 = vrot.slane %v5362_v6, 3  ;;  %v17023_v18 = vld [vmem:[#allocation21_spill] sm:$0xff]  ;;  %v17025_v51 = vld [vmem:[#allocation100_spill] sm:$0xff]  ;;  %v4451_v14 = vpop.f32.mrf.mxu0  ;;  %vm17030_vm13 = vmmov %vm17013_vm1 }
 0x24a   : > { %vm14539_vm0 = vcmp.lt.s32.totalorder %v17018_v39, 16  ;;  %v4199_v13 = vadd.f32 %v10742_v48, %v17022_v24  ;;  %v4509_v29 = vadd.f32 %v10776_v42, %v14453_v46  ;;  %vm17024_vm11 = vnez %v17023_v18  ;;  %v10743_v39 = vpop.f32.mrf.mxu1  ;;  %vm17034_vm3 = vmmov %vm17014_vm7 }
 0x24b   : > { %v17027_v35 = vsel %vm17024_vm11, %v17025_v51, %v17026_v36  ;;  %v10067_v43 = vpack.c.bf16 %v4690_v12, %v4690_v12  ;;  %v4693_v45 = vsel %vm14462_vm4, %v4585_v8, 0.0  ;;  %v4547_v47 = vadd.f32 %v13901_v31, %v4504_v7  ;;  %v14565_v51 = vld [vmem:[#allocation2 + $0x50] sm:$0xff]   ;;  %vm17033_vm4 = vmmov %vm17013_vm1 }
 0x24c   : > { %vm14555_vm9 = vcmp.lt.s32.totalorder %v17027_v35, 16  ;;  %v5035_v48 = vrot.slane %v14520_v27, 3  ;;  %v10070_v46 = vpack.c.bf16 %v4693_v45, %v4693_v45  ;;  %v5365_v42 = vor.u32 %v5364_v3, %v5361_v50  ;;  %v17032_v8 = vld [vmem:[#allocation99_spill] sm:$0xff]  ;;  %v10780_v35 = vpop.f32.mrf.mxu0  ;;  %vm17035_vm1 = vmmov %vm17021_vm5  ;;  %v17036_v45 = vld [vmem:[#allocation18_spill] sm:$0xff] }
 0x24d   : > { %v4552_v24 = vadd.f32 %v13901_v31, %v4509_v29  ;;  %v5368_v18 = vshrl.u32 %v14474_v61, 16  ;;  %4870 = vst.msk [vmem:[#allocation2 + $0x6c] sm:$0xf] %vm17030_vm13, %v10067_v43  ;;  %v4583_v36 = vmax.f32 %v4547_v47, 0.0  ;;  %v5371_v32 = vshll.u32 %v14474_v61, 16  ;;  %vm17041_vm5 = vmmov %vm17035_vm1 }
 0x24e   : > { %v5036_v12 = vsel %vm17031_vm8, %v5033_v2, %v5035_v48  ;;  %v4197_v7 = vadd.f32 %v4150_v60, %v17032_v8  ;;  %4873 = vst.msk [vmem:[#allocation2 + $0x78] sm:$0xf] %vm17033_vm4, %v10070_v46  ;;  %v5366_v50 = vsel %vm17034_vm3, %v5356_v30, %v5365_v42  ;;  %v4507_v43 = vadd.f32 %v4448_v5, %v14480_v15  ;;  %v17042_v46 = vld [vmem:[#allocation17_spill] sm:$0xff]  ;;  %v4153_v5 = vpop.f32.mrf.mxu1 }
 0x24f   : > { %v4588_v3 = vmax.f32 %v4552_v24, 0.0  ;;  %10800 = vmatprep.mubr.msk.bf16.mxu1 %vm17035_vm1, %v5036_v12  ;;  %v5370_v29 = vrot.slane %v5368_v18, 2  ;;  %vm17037_vm7 = vnez %v17036_v45  ;;  %10834 = vmatprep.mubr.msk.bf16.mxu0 %vm17041_vm5, %v5366_v50  ;;  %v4691_v30 = vsel %vm14494_vm10, %v4583_v36, 0.0  ;;  %v14606_v8 = vld [vmem:[#allocation2 + $0x58] sm:$0xff]   ;;  %vm17047_vm10 = vmmov %vm17033_vm4 }
 0x250   : > { %v17038_v2 = vsel %vm17037_vm7, %v13858_v58, %v13781_v25  ;;  %v5373_v47 = vrot.slane %v5371_v32, 3  ;;  %v4200_v24 = vadd.f32 %v10743_v39, %v17042_v46  ;;  %v4510_v15 = vadd.f32 %v10777_v40, %v14487_v10  ;;  %vm17055_vm7 = vmmov %vm17035_vm1 }
 0x251   : > { %vm14582_vm6 = vcmp.lt.s32.totalorder %v17038_v2, 16  ;;  %vm17043_vm11 = vnez %v16765_v28  ;;  %v10068_v12 = vpack.c.bf16 %v4691_v30, %v4691_v30  ;;  %v4696_v57 = vsel %vm14509_vm12, %v4588_v3, 0.0  ;;  %v17048_v3 = vld [vmem:[#allocation20_spill] sm:$0xff]  ;;  %vm17058_vm5 = vmmov %vm17035_vm1 }
 0x252   : > { %v17044_v25 = vsel %vm17043_vm11, %v13921_v33, %v13813_v22  ;;  %v4550_v36 = vadd.f32 %v13901_v31, %v4507_v43  ;;  %v5037_v39 = vrot.slane %v14565_v51, 3  ;;  %v10073_v10 = vpack.c.bf16 %v4696_v57, %v4696_v57  ;;  %v4464_v22 = vpop.f32.mrf.mxu0 }
 0x253   : > { %vm14598_vm13 = vcmp.lt.s32.totalorder %v17044_v25, 16  ;;  %v5374_v40 = vor.u32 %v5373_v47, %v5370_v29  ;;  %v4553_v28 = vadd.f32 %v13901_v31, %v4510_v15  ;;  %v5377_v33 = vshrl.u32 %v14520_v27, 16  ;;  %4871 = vst.msk [vmem:[#allocation2 + $0x70] sm:$0xf] %vm17047_vm10, %v10068_v12  ;;  %vm17064_vm10 = vmmov %vm17034_vm3 }
 0x254   : > { %v4586_v50 = vmax.f32 %v4550_v36, 0.0  ;;  %v5038_v45 = vsel %vm17031_vm8, %v5035_v48, %v5037_v39  ;;  %v5380_v4 = vshll.u32 %v14520_v27, 16  ;;  %v4198_v43 = vadd.f32 %v4153_v5, %v17048_v3  ;;  %4876 = vst.msk [vmem:[#allocation2 + $0x84] sm:$0xf] %vm17033_vm4, %v10073_v10  ;;  %v10781_v5 = vpop.f32.mrf.mxu0 }
 0x255   : > { %v17049_v2 = vsel %vm14052_vm15, %v14008_v20, %v13956_v41  ;;  %v5375_v31 = vsel %vm17034_vm3, %v5365_v42, %v5374_v40  ;;  %v4589_v30 = vmax.f32 %v4553_v28, 0.0  ;;  %10801 = vmatmul.mubr.msk.bf16.gmra.mxu1 %vm17035_vm1, %v5038_v45  ;;  %v5379_v48 = vrot.slane %v5377_v33, 2  ;;  %v17059_v28 = vld [vmem:[#allocation30_spill] sm:$0xff] }
 0x256   : > { %vm14619_vm12 = vcmp.lt.s32.totalorder %v17049_v2, 16  ;;  %v4508_v47 = vadd.f32 %v4451_v14, %v14526_v17  ;;  %v17052_v41 = vsel %vm14071_vm14, %v14076_v56, %v13992_v63  ;;  %10835 = vmatmul.mubr.msk.bf16.gmra.mxu0 %vm17055_vm7, %v5375_v31  ;;  %v4694_v9 = vsel %vm14539_vm0, %v4586_v50, 0.0  ;;  %v14644_v14 = vld [vmem:[#allocation2 + $0x60] sm:$0xff]   ;;  %vm17056_vm14 = vmmov %vm17031_vm8 }
 0x257   : > { %vm14634_vm15 = vcmp.lt.s32.totalorder %v17052_v41, 16  ;;  %v5382_v42 = vrot.slane %v5380_v4, 3  ;;  %v4513_v46 = vadd.f32 %v10780_v35, %v4199_v13  ;;  %v5039_v17 = vrot.slane %v14606_v8, 3  ;;  %v11444_v56 = vld [vmem:[%s16313_s2] ss:$0 sm:$0xff]  ;;  %vm17057_vm0 = vmmov %vm17033_vm4 }
 0x258   : > { %v10071_v11 = vpack.c.bf16 %v4694_v9, %v4694_v9  ;;  %v4697_v63 = vsel %vm14555_vm9, %v4589_v30, 0.0  ;;  %v4551_v15 = vadd.f32 %v11444_v56, %v4508_v47  ;;  %v5386_v53 = vshrl.u32 %v14565_v51, 16  ;;  %vm17063_vm11 = vmmov %vm17057_vm0 }
 0x259   : > { %v10074_v25 = vpack.c.bf16 %v4697_v63, %v4697_v63  ;;  %v5383_v12 = vor.u32 %v5382_v42, %v5379_v48  ;;  %v4556_v57 = vadd.f32 %v11444_v56, %v4513_v46  ;;  %v5040_v13 = vsel %vm17056_vm14, %v5037_v39, %v5039_v17  ;;  %v14667_v39 = vld [vmem:[#allocation2 + $0x68] sm:$0xff]   ;;  %vm17065_vm8 = vmmov %vm17035_vm1  ;;  %v4467_v48 = vpop.f32.mrf.mxu0 }
 0x25a   : > { %4874 = vst.msk [vmem:[#allocation2 + $0x7c] sm:$0xf] %vm17057_vm0, %v10071_v11  ;;  %v4587_v35 = vmax.f32 %v4551_v15, 0.0  ;;  %10804 = vmatprep.mubr.msk.bf16.mxu1 %vm17058_vm5, %v5040_v13  ;;  %v5388_v52 = vrot.slane %v5386_v53, 2  ;;  %v5389_v36 = vshll.u32 %v14565_v51, 16  ;;  %v4511_v10 = vadd.f32 %v4464_v22, %v4197_v7  ;;  %vm17067_vm4 = vmmov %vm17035_vm1 }
 0x25b   : > { %v17060_v50 = vsel %vm14088_vm2, %v14079_v34, %v17059_v28  ;;  %4877 = vst.msk [vmem:[#allocation2 + $0x88] sm:$0xf] %vm17063_vm11, %v10074_v25  ;;  %v5384_v3 = vsel %vm17064_vm10, %v5374_v40, %v5383_v12  ;;  %v4592_v2 = vmax.f32 %v4556_v57, 0.0  ;;  %v4514_v31 = vadd.f32 %v10781_v5, %v4200_v24  ;;  %vm17066_vm2 = vmmov %vm17056_vm14  ;;  %v14687_v5 = vld [vmem:[#allocation2 + $0x70] sm:$0xff]  }
 0x25c   : > { %vm14663_vm9 = vcmp.lt.s32.totalorder %v17060_v50, 16  ;;  %v5041_v30 = vrot.slane %v14644_v14, 3  ;;  %10838 = vmatprep.mubr.msk.bf16.mxu0 %vm17065_vm8, %v5384_v3  ;;  %v4695_v49 = vsel %vm14582_vm6, %v4587_v35, 0.0  ;;  %v5391_v34 = vrot.slane %v5389_v36, 3  ;;  %vm17068_vm6 = vmmov %vm17057_vm0 }
 0x25d   : > { %v4554_v7 = vadd.f32 %v11444_v56, %v4511_v10  ;;  %v16463_v22 = vshrl.u32 %v14606_v8, 16  ;;  %v10072_v47 = vpack.c.bf16 %v4695_v49, %v4695_v49  ;;  %v4700_v40 = vsel %vm14598_vm13, %v4592_v2, 0.0  ;;  %vm17069_vm13 = vmmov %vm17057_vm0 }
 0x25e   : > { %v4557_v41 = vadd.f32 %v11444_v56, %v4514_v31  ;;  %v5042_v24 = vsel %vm17066_vm2, %v5039_v17, %v5041_v30  ;;  %v10077_v9 = vpack.c.bf16 %v4700_v40, %v4700_v40  ;;  %v5392_v42 = vor.u32 %v5391_v34, %v5388_v52  ;;  %vm17070_vm7 = vmmov %vm17066_vm2 }
 0x25f   : > { %v4590_v46 = vmax.f32 %v4554_v7, 0.0  ;;  %10805 = vmatmul.mubr.msk.bf16.gmra.mxu1 %vm17067_vm4, %v5042_v24  ;;  %v5397_v60 = vrot.slane %v16463_v22, 2  ;;  %4875 = vst.msk [vmem:[#allocation2 + $0x80] sm:$0xf] %vm17068_vm6, %v10072_v47  ;;  %v16462_v63 = vshll.u32 %v14606_v8, 16  ;;  %v4512_v15 = vadd.f32 %v4467_v48, %v4198_v43  ;;  %vm17073_vm14 = vmmov %vm17057_vm0 }
 0x260   : > { %v4593_v11 = vmax.f32 %v4557_v41, 0.0  ;;  %v5043_v58 = vrot.slane %v14667_v39, 3  ;;  %4880 = vst.msk [vmem:[#allocation2 + $0x94] sm:$0xf] %vm17069_vm13, %v10077_v9  ;;  %v5393_v17 = vsel %vm17034_vm3, %v5383_v12, %v5392_v42  ;;  %v16461_v57 = vshrl.u32 %v14644_v14, 16  ;;  %vm17075_vm5 = vmmov %vm17066_vm2 }
 0x261   : > { %v4698_v25 = vsel %vm14619_vm12, %v4590_v46, 0.0  ;;  %v16460_v13 = vshll.u32 %v14644_v14, 16  ;;  %10839 = vmatmul.mubr.msk.bf16.gmra.mxu0 %vm17035_vm1, %v5393_v17  ;;  %v5400_v52 = vrot.slane %v16462_v63, 3  ;;  %v4555_v10 = vadd.f32 %v11444_v56, %v4512_v15  ;;  %v14700_v28 = vld [vmem:[#allocation2 + $0x78] sm:$0xff]   ;;  %vm17071_vm12 = vmmov %vm17057_vm0  ;;  %v14792_v22 = vld [vmem:[#allocation2 + $0x20] sm:$0xf] }
 0x262   : > { %v10075_v35 = vpack.c.bf16 %v4698_v25, %v4698_v25  ;;  %v4701_v43 = vsel %vm14634_vm15, %v4593_v11, 0.0  ;;  %v5044_v29 = vsel %vm17070_vm7, %v5041_v30, %v5043_v58  ;;  %v5406_v50 = vrot.slane %v16461_v57, 2  ;;  %vm17072_vm15 = vmmov %vm17035_vm1 }
 0x263   : > { %v10078_v12 = vpack.c.bf16 %v4701_v43, %v4701_v43  ;;  %v5409_v3 = vrot.slane %v16460_v13, 3  ;;  %v5401_v2 = vor.u32 %v5400_v52, %v5397_v60  ;;  %v4591_v20 = vmax.f32 %v4555_v10, 0.0  ;;  %10808 = vmatprep.mubr.msk.bf16.mxu1 %vm17072_vm15, %v5044_v29  ;;  %vm17074_vm0 = vmmov %vm17034_vm3  ;;  %v6069_v52 = vld [vmem:[#allocation2 + $0x8] sm:$0x8] }
 0x264   : > { %4878 = vst.msk [vmem:[#allocation2 + $0x8c] sm:$0xf] %vm17071_vm12, %v10075_v35  ;;  %v5045_v31 = vrot.slane %v14687_v5, 3  ;;  %v16459_v56 = vshrl.u32 %v14667_v39, 16  ;;  %v16458_v30 = vshll.u32 %v14667_v39, 16  ;;  %v5047_v34 = vrot.slane %v14700_v28, 3  ;;  %vm17076_vm11 = vmmov %vm17035_vm1 }
 0x265   : > { %4881 = vst.msk [vmem:[#allocation2 + $0x98] sm:$0xf] %vm17073_vm14, %v10078_v12  ;;  %v5410_v49 = vor.u32 %v5409_v3, %v5406_v50  ;;  %v16457_v7 = vshrl.u32 %v14687_v5, 16  ;;  %v5402_v48 = vsel %vm17074_vm0, %v5392_v42, %v5401_v2  ;;  %v4699_v47 = vsel %vm14663_vm9, %v4591_v20, 0.0  ;;  %vm17077_vm10 = vmmov %vm17074_vm0  ;;  %v17082_v50 = vld [vmem:[#allocation41_spill] sm:$0xff] }
 0x266   : > { %v5046_v40 = vsel %vm17075_vm5, %v5043_v58, %v5045_v31  ;;  %v5415_v41 = vrot.slane %v16459_v56, 2  ;;  %10842 = vmatprep.mubr.msk.bf16.mxu0 %vm17076_vm11, %v5402_v48  ;;  %v10076_v24 = vpack.c.bf16 %v4699_v47, %v4699_v47  ;;  %vm17078_vm8 = vmmov %vm17035_vm1  ;;  %v5418_v46 = vrot.slane %v16458_v30, 3  ;;  %v14727_v60 = vld [vmem:[#allocation2 + $0x80] sm:$0xff]  }
 0x267   : > { %v5411_v9 = vsel %vm17077_vm10, %v5401_v2, %v5410_v49  ;;  %10809 = vmatmul.mubr.msk.bf16.gmra.mxu1 %vm17078_vm8, %v5046_v40  ;;  %v5048_v42 = vsel %vm17066_vm2, %v5045_v31, %v5047_v34  ;;  %vm17079_vm9 = vmmov %vm17035_vm1  ;;  %v5424_v45 = vrot.slane %v16457_v7, 2  ;;  %v16455_v11 = vshll.u32 %v14687_v5, 16  ;;  %v14789_v7 = vld [vmem:[#allocation2 + $0x1c] sm:$0xf] }
 0x268   : > { %10812 = vmatprep.mubr.msk.bf16.mxu1 %vm17079_vm9, %v5048_v42  ;;  %v16453_v15 = vshrl.u32 %v14700_v28, 16  ;;  %v16452_v58 = vshll.u32 %v14700_v28, 16  ;;  %vm17080_vm4 = vmmov %vm17068_vm6  ;;  %v5419_v17 = vor.u32 %v5418_v46, %v5415_v41  ;;  %v5049_v25 = vrot.slane %v14727_v60, 3  ;;  %v14754_v41 = vld [vmem:[#allocation2 + $0xc] sm:$0xf] }
 0x269   : > { %4879 = vst.msk [vmem:[#allocation2 + $0x90] sm:$0xf] %vm17080_vm4, %v10076_v24  ;;  %v16451_v35 = vshrl.u32 %v14727_v60, 16  ;;  %v16450_v43 = vshll.u32 %v14727_v60, 16  ;;  %vm17081_vm6 = vmmov %vm17035_vm1  ;;  %v5427_v10 = vrot.slane %v16455_v11, 3  ;;  %v17083_v3 = vshll.u32 %v17082_v50, 16 }
 0x26a   : > { %10843 = vmatmul.mubr.msk.bf16.gmra.mxu0 %vm17081_vm6, %v5411_v9  ;;  %v5433_v12 = vrot.slane %v16453_v15, 2  ;;  %v5436_v29 = vrot.slane %v16452_v58, 3  ;;  %vm17084_vm13 = vmmov %vm17074_vm0  ;;  %v17086_v47 = vshrl.u32 %v14136_v37, 16  ;;  %vm5710_vm5 = vsmask.f32 4352 }
 0x26b   : > { %v5717_v2 = vrot.slane %v17083_v3, 4  ;;  %v5420_v20 = vsel %vm17084_vm13, %v5410_v49, %v5419_v17  ;;  %vm17085_vm3 = vmmov %vm17066_vm2  ;;  %v14750_v48 = vld [vmem:[#allocation2 + $0x88] sm:$0xff]   ;;  %v5428_v24 = vor.u32 %v5427_v10, %v5424_v45  ;;  %v5442_v46 = vrot.slane %v16451_v35, 2  ;;  %v14761_v49 = vld [vmem:[#allocation2 + $0x10] sm:$0xf] }
 0x26c   : > { %v5050_v31 = vsel %vm17085_vm3, %v5047_v34, %v5049_v25  ;;  %v5719_v40 = vrot.slane %v17086_v47, 3  ;;  %10846 = vmatprep.mubr.msk.bf16.mxu0 %vm17035_vm1, %v5420_v20  ;;  %v5437_v9 = vor.u32 %v5436_v29, %v5433_v12  ;;  %v5445_v42 = vrot.slane %v16450_v43, 3  ;;  %v14763_v34 = vld [vmem:[#allocation2 + $0x18] sm:$0xf]  ;;  %v14770_v10 = vld [vmem:[#allocation2 + $0x14] sm:$0xf]  ;;  %vm17088_vm7 = vmmov %vm17074_vm0 }
 0x26d   : > { %v5051_v50 = vrot.slane %v14750_v48, 3  ;;  %v16454_v3 = vshrl.u32 %v14750_v48, 16  ;;  %v16456_v47 = vshll.u32 %v14750_v48, 16  ;;  %v17087_v20 = vshll.u32 %v14136_v37, 16  ;;  %vm17089_vm12 = vmmov %vm17035_vm1 }
 0x26e   : > { %v9801_v12 = vcombine.low %v6069_v52, %v14754_v41  ;;  %v5429_v29 = vsel %vm17088_vm7, %v5419_v17, %v5428_v24  ;;  %vm17090_vm15 = vmmov %vm17066_vm2  ;;  %v9802_v52 = vcombine.low %v14761_v49, %v14770_v10  ;;  %v17101_v44 = vshrl.u32 %v14277_v21, 16 }
 0x26f   : > { %v5720_v45 = vrot.slane %v17087_v20, 4  ;;  %10813 = vmatmul.mubr.msk.bf16.gmra.mxu1 %vm17089_vm12, %v5050_v31  ;;  %v5052_v43 = vsel %vm17090_vm15, %v5049_v25, %v5051_v50  ;;  %v5451_v35 = vrot.slane %v16454_v3, 2  ;;  %v5454_v58 = vrot.slane %v16456_v47, 3  ;;  %vm17091_vm14 = vmmov %vm17074_vm0  ;;  %v17094_v31 = vld [vmem:[#allocation25_spill] sm:$0xff] }
 0x270   : > { %v5438_v15 = vsel %vm17091_vm14, %v5428_v24, %v5437_v9  ;;  %vm17092_vm0 = vmmov %vm17035_vm1  ;;  %v11339_v37 = vld [vmem:[#allocation2 + $0x90] ss:$0 sps:$4 sm:$0x77]   ;;  %v5718_v20 = vor.u32 %v5717_v2, %v17094_v31  ;;  %v5446_v24 = vor.u32 %v5445_v42, %v5442_v46  ;;  %v6203_v30 = vshrl.u32 %v9801_v12, 16 }
 0x271   : > { %10816 = vmatprep.mubr.msk.bf16.mxu1 %vm17092_vm0, %v5052_v43  ;;  %vm17093_vm11 = vmmov %vm17092_vm0  ;;  %v5053_v25 = vrot.slane %v11339_v37, 3  ;;  %v5458_v3 = vshrl.u32 %v11339_v37, 16  ;;  %v5461_v11 = vshll.u32 %v11339_v37, 16  ;;  %v5455_v47 = vor.u32 %v5454_v58, %v5451_v35 }
 0x272   : > { %10847 = vmatmul.mubr.msk.bf16.gmra.mxu0 %vm17093_vm11, %v5429_v29  ;;  %vm17095_vm10 = vmmov %vm17092_vm0  ;;  %v5721_v43 = vor.u32 %v5720_v45, %v5719_v40  ;;  %v6206_v13 = vshll.u32 %v9801_v12, 16  ;;  %v6211_v17 = vshrl.u32 %v9802_v52, 16  ;;  %v6214_v57 = vshll.u32 %v9802_v52, 16 }
 0x273   : > { %10850 = vmatprep.mubr.msk.bf16.mxu0 %vm17095_vm10, %v5438_v15  ;;  %vm17096_vm8 = vmmov %vm17066_vm2  ;;  %v5460_v63 = vrot.slane %v5458_v3, 2  ;;  %v5463_v29 = vrot.slane %v5461_v11, 3  ;;  %v5723_v2 = vrot.slane %v5314_v0, 3  ;;  %v5724_v15 = vrot.slane %v5317_v55, 4  ;;  %v14807_v0 = vld [vmem:[#allocation2 + $0x24] sm:$0xf] }
 0x274   : > { %v5054_v56 = vsel %vm17096_vm8, %v5051_v50, %v5053_v25  ;;  %v5727_v58 = vrot.slane %v5323_v23, 3  ;;  %v5728_v35 = vrot.slane %v5326_v26, 4  ;;  %vm17097_vm2 = vmmov %vm17088_vm7  ;;  %v5722_v11 = vsel %vm5710_vm5, %v5718_v20, %v5721_v43 }
 0x275   : > { %v5447_v40 = vsel %vm17097_vm2, %v5437_v9, %v5446_v24  ;;  %vm17098_vm9 = vmmov %vm17092_vm0  ;;  %v9803_v46 = vcombine.low %v14763_v34, %v14789_v7  ;;  %v6205_v42 = vrot.slane %v6203_v30, 3  ;;  %v6208_v55 = vrot.slane %v6206_v13, 4 }
 0x276   : > { %vm17099_vm4 = vmmov %vm17097_vm2  ;;  %v5729_v23 = vor.u32 %v5728_v35, %v5727_v58  ;;  %v5731_v26 = vrot.slane %v17101_v44, 3  ;;  %v6213_v9 = vrot.slane %v6211_v17, 3  ;;  %v6216_v50 = vrot.slane %v6214_v57, 4 }
 0x277   : > { %10817 = vmatmul.mubr.msk.bf16.gmra.mxu1 %vm17098_vm9, %v5054_v56  ;;  %v5456_v62 = vsel %vm17099_vm4, %v5446_v24, %v5455_v47  ;;  %vm17100_vm6 = vmmov %vm17092_vm0  ;;  %v17102_v56 = vshll.u32 %v14277_v21, 16  ;;  %v5464_v45 = vor.u32 %v5463_v29, %v5460_v63  ;;  %v5725_v30 = vor.u32 %v5724_v15, %v5723_v2  ;;  %v14827_v63 = vld [vmem:[%s16314_s3 + $0x30] sm:$0xff]   ;;  %v14831_v15 = vld [vmem:[#allocation2 + $0x2c] sm:$0xf] }
 0x278   : > { %10860 = vmatprep.mubr.msk.bf16.mxu1 %vm17100_vm6, %v5722_v11  ;;  %vm17103_vm13 = vmmov %vm17092_vm0  ;;  %v9804_v12 = vcombine.low %v14792_v22, %v14807_v0  ;;  %v6209_v13 = vor.u32 %v6208_v55, %v6205_v42  ;;  %v6220_v52 = vshrl.u32 %v9803_v46, 16  ;;  %v5739_v25 = vrot.slane %v5350_v16, 3  ;;  %v14850_v55 = vld [vmem:[#allocation2 + $0x34] sm:$0xf] }
 0x279   : > { %v5732_v3 = vrot.slane %v17102_v56, 4  ;;  %vm17104_vm3 = vmmov %vm17092_vm0  ;;  %v6217_v17 = vor.u32 %v6216_v50, %v6213_v9  ;;  %v6223_v57 = vshll.u32 %v9803_v46, 16  ;;  %v5740_v31 = vrot.slane %v5353_v38, 4 }
 0x27a   : > { %10851 = vmatmul.mubr.msk.bf16.gmra.mxu0 %vm17103_vm13, %v5447_v40  ;;  %vm17105_vm1 = vmmov %vm17097_vm2  ;;  %v5726_v24 = vsel %vm5710_vm5, %v5721_v43, %v5725_v30  ;;  %v6229_v29 = vshrl.u32 %v9804_v12, 16  ;;  %v6232_v2 = vshll.u32 %v9804_v12, 16  ;;  %v5730_v16 = vsel %vm5710_vm5, %v5725_v30, %v5729_v23  ;;  %v14839_v40 = vld [vmem:[#allocation2 + $0x30] sm:$0xf]  ;;  %v14845_v43 = vld [vmem:[#allocation2 + $0x28] sm:$0xf] }
 0x27b   : > { %10854 = vmatprep.mubr.msk.bf16.mxu0 %vm17104_vm3, %v5456_v62  ;;  %v5733_v37 = vor.u32 %v5732_v3, %v5731_v26  ;;  %v5465_v20 = vsel %vm17105_vm1, %v5455_v47, %v5464_v45  ;;  %vm17106_vm7 = vmmov %vm17092_vm0  ;;  %v17107_v19 = vshrl.u32 %v14327_v54, 16  ;;  %v17108_v58 = vshll.u32 %v14327_v54, 16  ;;  %v11445_v47 = vld [vmem:[%s16314_s3 + $0x20] sm:$0xff]  }
 0x27c   : > { %v5741_v11 = vor.u32 %v5740_v31, %v5739_v25  ;;  %vm17109_vm12 = vmmov %vm17092_vm0  ;;  %v6218_v46 = vsel %vm5710_vm5, %v6209_v13, %v6217_v17  ;;  %v6222_v42 = vrot.slane %v6220_v52, 3  ;;  %v6225_v62 = vrot.slane %v6223_v57, 4  ;;  %v14861_v25 = vld [vmem:[#allocation2 + $0x3c] sm:$0xf] }
 0x27d   : > { %v5734_v21 = vsel %vm5710_vm5, %v5729_v23, %v5733_v37  ;;  %v5735_v38 = vrot.slane %v17107_v19, 3  ;;  %v5736_v35 = vrot.slane %v17108_v58, 4  ;;  %v9805_v54 = vcombine.low %v14845_v43, %v14831_v15  ;;  %vm17110_vm15 = vmmov %vm17092_vm0 }
 0x27e   : > { %v6231_v23 = vrot.slane %v6229_v29, 3  ;;  %v6234_v44 = vrot.slane %v6232_v2, 4  ;;  %v9806_v26 = vcombine.low %v14839_v40, %v14850_v55  ;;  %v5747_v9 = vrot.slane %v5368_v18, 3  ;;  %vm17111_vm14 = vmmov %vm17092_vm0 }
 0x27f   : > { %10861 = vmatmul.mubr.msk.bf16.vlgmr.msra.gmra.mxu1 %vm17106_vm7, %v5726_v24  ;;  %v5737_v50 = vor.u32 %v5736_v35, %v5735_v38  ;;  %v5748_v56 = vrot.slane %v5371_v32, 4  ;;  %v6226_v3 = vor.u32 %v6225_v62, %v6222_v42  ;;  %v6238_v45 = vshrl.u32 %v9805_v54, 16  ;;  %v14871_v32 = vld [vmem:[#allocation2 + $0x40] sm:$0xf]  ;;  %vm17112_vm11 = vmmov %vm17092_vm0  ;;  %v14879_v24 = vld [vmem:[%s16314_s3 + $0x38] sm:$0xff]  }
 0x280   : > { %10864 = vmatprep.mubr.msk.bf16.mxu1 %vm17109_vm12, %v5730_v16  ;;  %10935 = vmatpush3.bf16.msra.mxu1 %v11445_v47  ;;  %v6241_v30 = vshll.u32 %v9805_v54, 16  ;;  %v6235_v12 = vor.u32 %v6234_v44, %v6231_v23  ;;  %v6247_v13 = vshrl.u32 %v9806_v26, 16  ;;  %v6250_v52 = vshll.u32 %v9806_v26, 16  ;;  %vm17113_vm10 = vmmov %vm17092_vm0 }
 0x281   : > { %11010 = vmatprep.subr.bf16.mxu1 %v14827_v63  ;;  %v14863_v57 = vor.u32 %v5748_v56, %v5747_v9  ;;  %v5738_v18 = vsel %vm5710_vm5, %v5733_v37, %v5737_v50  ;;  %v5743_v31 = vrot.slane %v5359_v59, 3  ;;  %v5744_v61 = vrot.slane %v5362_v6, 4  ;;  %vm17114_vm8 = vmmov %vm17092_vm0  ;;  %v14904_v56 = vld [vmem:[#allocation2 + $0x48] sm:$0xf] }
 0x282   : > { %10855 = vmatmul.mubr.msk.bf16.gmra.mxu0 %vm17110_vm15, %v5465_v20  ;;  %v14874_v20 = vld [vmem:[#allocation2 + $0x38] sm:$0xf]  ;;  %v6240_v37 = vrot.slane %v6238_v45, 3  ;;  %v6243_v29 = vrot.slane %v6241_v30, 4  ;;  %v6236_v6 = vsel %vm5710_vm5, %v6226_v3, %v6235_v12  ;;  %v6249_v2 = vrot.slane %v6247_v13, 3  ;;  %vm17115_vm2 = vmmov %vm17092_vm0 }
 0x283   : > { %10898 = vmatprep.mubr.msk.bf16.mxu0 %vm17111_vm14, %v6218_v46  ;;  %v9807_v59 = vcombine.low %v14874_v20, %v14861_v25  ;;  %v6252_v16 = vrot.slane %v6250_v52, 4  ;;  %v9808_v19 = vcombine.low %v14871_v32, %v14884_v1  ;;  %v5745_v38 = vor.u32 %v5744_v61, %v5743_v31  ;;  %v14895_v46 = vld [vmem:[#allocation2 + $0x4c] sm:$0xf]  ;;  %vm17116_vm9 = vmmov %vm17092_vm0 }
 0x284   : > { %v6244_v58 = vor.u32 %v6243_v29, %v6240_v37  ;;  %v5742_v62 = vsel %vm5710_vm5, %v5737_v50, %v5741_v11  ;;  %v5751_v26 = vrot.slane %v5377_v33, 3  ;;  %v5752_v9 = vrot.slane %v5380_v4, 4  ;;  %vm17117_vm4 = vmmov %vm17092_vm0  ;;  %v14923_v29 = vld [vmem:[#allocation2 + $0x5c] sm:$0xf] }
 0x285   : > { %v6256_v35 = vshrl.u32 %v9807_v59, 16  ;;  %v6259_v47 = vshll.u32 %v9807_v59, 16  ;;  %v6253_v42 = vor.u32 %v6252_v16, %v6249_v2  ;;  %v6265_v54 = vshrl.u32 %v9808_v19, 16  ;;  %vm17118_vm6 = vmmov %vm17092_vm0 }
 0x286   : > { %v6268_v23 = vshll.u32 %v9808_v19, 16  ;;  %v5746_v44 = vsel %vm5710_vm5, %v5741_v11, %v5745_v38  ;;  %v9809_v50 = vcombine.low %v14904_v56, %v14895_v46  ;;  %v6245_v45 = vsel %vm5710_vm5, %v6235_v12, %v6244_v58  ;;  %v14912_v11 = vld [vmem:[#allocation2 + $0x54] sm:$0xf]  ;;  %v14927_v19 = vld [vmem:[#allocation2 + $0x60] sm:$0xf]  ;;  %vm17119_vm13 = vmmov %vm17092_vm0 }
 0x287   : > { %10865 = vmatmul.mubr.msk.bf16.gmra.mxu1 %vm17092_vm0, %v5734_v21  ;;  %v6227_v21 = vsel %vm5710_vm5, %v6217_v17, %v6226_v3  ;;  %v11446_v17 = vld [vmem:[%s16314_s3 + $0x28] sm:$0xff]   ;;  %v14906_v3 = vld [vmem:[#allocation2 + $0x50] sm:$0xf]  ;;  %v6258_v30 = vrot.slane %v6256_v35, 3  ;;  %v6261_v13 = vrot.slane %v6259_v47, 4  ;;  %v6254_v27 = vsel %vm5710_vm5, %v6244_v58, %v6253_v42  ;;  %vm17122_vm3 = vmmov %vm17092_vm0 }
 0x288   : > { %10868 = vmatprep.mubr.msk.bf16.mxu1 %vm17112_vm11, %v5738_v18  ;;  %v6267_v33 = vrot.slane %v6265_v54, 3  ;;  %v6270_v4 = vrot.slane %v6268_v23, 4  ;;  %v9810_v52 = vcombine.low %v14906_v3, %v14912_v11  ;;  %v5753_v18 = vor.u32 %v5752_v9, %v5751_v26  ;;  %v14936_v35 = vld [vmem:[#allocation2 + $0x58] sm:$0xf]  ;;  %v14941_v54 = vld [vmem:[#allocation2 + $0x64] sm:$0xf]  ;;  %vm17123_vm1 = vmmov %vm17092_vm0 }
 0x289   : > { %v6274_v31 = vshrl.u32 %v9809_v50, 16  ;;  %v6277_v61 = vshll.u32 %v9809_v50, 16  ;;  %v5755_v12 = vrot.slane %v5386_v53, 3  ;;  %v5756_v37 = vrot.slane %v5389_v36, 4  ;;  %vm17124_vm7 = vmmov %vm17092_vm0 }
 0x28a   : > { %10899 = vmatmul.mubr.msk.bf16.vlgmr.msra.gmra.mxu0 %vm17113_vm10, %v6227_v21  ;;  %v6262_v21 = vor.u32 %v6261_v13, %v6258_v30  ;;  %v6271_v59 = vor.u32 %v6270_v4, %v6267_v33  ;;  %v6283_v2 = vshrl.u32 %v9810_v52, 16  ;;  %v6286_v16 = vshll.u32 %v9810_v52, 16  ;;  %v14955_v52 = vld [vmem:[#allocation2 + $0x70] sm:$0xf]  ;;  %vm17129_vm12 = vmmov %vm17092_vm0 }
 0x28b   : > { %10973 = vmatpush3.bf16.msra.mxu0 %v11446_v17  ;;  %10902 = vmatprep.mubr.msk.bf16.mxu0 %vm17114_vm8, %v6236_v6  ;;  %v5750_v6 = vsel %vm5710_vm5, %v5745_v38, %v14863_v57  ;;  %v5754_v17 = vsel %vm5710_vm5, %v14863_v57, %v5753_v18  ;;  %v17120_v53 = vshrl.u32 %v14606_v8, 16  ;;  %v17121_v51 = vshll.u32 %v14606_v8, 16  ;;  %vm17130_vm15 = vmmov %vm17092_vm0 }
 0x28c   : > { %11048 = vmatprep.subr.bf16.mxu0 %v14879_v24  ;;  %v6276_v38 = vrot.slane %v6274_v31, 3  ;;  %v6279_v47 = vrot.slane %v6277_v61, 4  ;;  %v6263_v23 = vsel %vm5710_vm5, %v6253_v42, %v6262_v21  ;;  %v5757_v57 = vor.u32 %v5756_v37, %v5755_v12  ;;  %v14958_v37 = vld [vmem:[#allocation2 + $0x68] sm:$0xf]  ;;  %vm17131_vm14 = vmmov %vm17092_vm0 }
 0x28d   : > { %v5759_v58 = vrot.slane %v17120_v53, 3  ;;  %v5760_v36 = vrot.slane %v17121_v51, 4  ;;  %v6272_v8 = vsel %vm5710_vm5, %v6262_v21, %v6271_v59  ;;  %v6285_v26 = vrot.slane %v6283_v2, 3  ;;  %vm17134_vm11 = vmmov %vm17092_vm0 }
 0x28e   : > { %v6288_v9 = vrot.slane %v6286_v16, 4  ;;  %v6280_v30 = vor.u32 %v6279_v47, %v6276_v38  ;;  %v17126_v33 = vshll.u32 %v14644_v14, 16  ;;  %v5758_v31 = vsel %vm5710_vm5, %v5753_v18, %v5757_v57  ;;  %vm17137_vm10 = vmmov %vm17092_vm0 }
 0x28f   : > { %10869 = vmatmul.mubr.msk.bf16.gmra.mxu1 %vm17115_vm2, %v5742_v62  ;;  %v9811_v62 = vcombine.low %v14936_v35, %v14923_v29  ;;  %v5761_v50 = vor.u32 %v5760_v36, %v5759_v58  ;;  %v17127_v2 = vshrl.u32 %v14667_v39, 16  ;;  %v14966_v58 = vld [vmem:[#allocation2 + $0x74] sm:$0xf]  ;;  %vm17138_vm8 = vmmov %vm17092_vm0 }
 0x290   : > { %10872 = vmatprep.mubr.msk.bf16.mxu1 %vm17116_vm9, %v5746_v44  ;;  %v9812_v44 = vcombine.low %v14927_v19, %v14941_v54  ;;  %v5764_v4 = vrot.slane %v17126_v33, 4  ;;  %v9814_v51 = vcombine.low %v14955_v52, %v14966_v58  ;;  %v6281_v36 = vsel %vm5710_vm5, %v6271_v59, %v6280_v30  ;;  %vm17139_vm2 = vmmov %vm17092_vm0 }
 0x291   : > { %v6292_v13 = vshrl.u32 %v9811_v62, 16  ;;  %v6295_v61 = vshll.u32 %v9811_v62, 16  ;;  %v5767_v16 = vrot.slane %v17127_v2, 3  ;;  %v5762_v18 = vsel %vm5710_vm5, %v5757_v57, %v5761_v50  ;;  %vm17142_vm9 = vmmov %vm17092_vm0 }
 0x292   : > { %10903 = vmatmul.mubr.msk.bf16.gmra.mxu0 %vm17117_vm4, %v6245_v45  ;;  %v14949_v45 = vld [vmem:[#allocation2 + $0x6c] sm:$0xf]  ;;  %v6301_v21 = vshrl.u32 %v9812_v44, 16  ;;  %v6304_v12 = vshll.u32 %v9812_v44, 16  ;;  %v6319_v59 = vshrl.u32 %v9814_v51, 16  ;;  %vm17145_vm4 = vmmov %vm17092_vm0 }
 0x293   : > { %10906 = vmatprep.mubr.msk.bf16.mxu0 %vm17118_vm6, %v6254_v27  ;;  %v17125_v27 = vshrl.u32 %v14644_v14, 16  ;;  %v9813_v14 = vcombine.low %v14958_v37, %v14949_v45  ;;  %v6294_v38 = vrot.slane %v6292_v13, 3  ;;  %vm17146_vm6 = vmmov %vm17092_vm0 }
 0x294   : > { %v6303_v62 = vrot.slane %v6301_v21, 3 }
 0x295   : > { %v5763_v42 = vrot.slane %v17125_v27, 3  ;;  %v6322_v27 = vshll.u32 %v9814_v51, 16 }
 0x297   : > { %10873 = vmatmul.mubr.msk.bf16.gmra.mxu1 %vm17119_vm13, %v5750_v6  ;;  %v6289_v6 = vor.u32 %v6288_v9, %v6285_v26  ;;  %v5765_v47 = vor.u32 %v5764_v4, %v5763_v42  ;;  %v6310_v26 = vshrl.u32 %v9813_v14, 16  ;;  %v6313_v9 = vshll.u32 %v9813_v14, 16  ;;  %vm17147_vm13 = vmmov %vm17092_vm0 }
 0x298   : > { %10876 = vmatprep.mubr.msk.bf16.mxu1 %vm17122_vm3, %v5754_v17  ;;  %v17128_v17 = vshll.u32 %v14667_v39, 16  ;;  %v6297_v39 = vrot.slane %v6295_v61, 4  ;;  %v17132_v4 = vshrl.u32 %v14687_v5, 16  ;;  %v14982_v61 = vld [vmem:[#allocation2 + $0x7c] sm:$0xf]  ;;  %v6324_v14 = vrot.slane %v6322_v27, 4  ;;  %vm17148_vm3 = vmmov %vm17092_vm0 }
 0x299   : > { %v5766_v13 = vsel %vm5710_vm5, %v5761_v50, %v5765_v47  ;;  %v6315_v2 = vrot.slane %v6313_v9, 4  ;;  %v6321_v50 = vrot.slane %v6319_v59, 3 }
 0x29a   : > { %10907 = vmatmul.mubr.msk.bf16.gmra.mxu0 %vm17123_vm1, %v6263_v23  ;;  %v5768_v53 = vrot.slane %v17128_v17, 4  ;;  %v6306_v23 = vrot.slane %v6304_v12, 4  ;;  %v6298_v42 = vor.u32 %v6297_v39, %v6294_v38  ;;  %v6312_v12 = vrot.slane %v6310_v26, 3  ;;  %v14996_v39 = vld [vmem:[#allocation2 + $0x78] sm:$0xf]  ;;  %vm17149_vm1 = vmmov %vm17092_vm0 }
 0x29b   : > { %10910 = vmatprep.mubr.msk.bf16.mxu0 %vm17124_vm7, %v6272_v8  ;;  %v6290_v8 = vsel %vm5710_vm5, %v6280_v30, %v6289_v6  ;;  %v6325_v27 = vor.u32 %v6324_v14, %v6321_v50  ;;  %v15023_v50 = vld [vmem:[#allocation2 + $0x8c] sm:$0xf]  ;;  %v11361_v14 = vld [vmem:[#allocation2 + $0x90] ss:$0 sps:$4 sm:$0xff]   ;;  %vm17150_vm7 = vmmov %vm17092_vm0 }
 0x29c   : > { %v5769_v57 = vor.u32 %v5768_v53, %v5767_v16  ;;  %v6307_v33 = vor.u32 %v6306_v23, %v6303_v62  ;;  %v17133_v16 = vshll.u32 %v14687_v5, 16  ;;  %v14989_v53 = vld [vmem:[#allocation2 + $0x80] sm:$0xf]  ;;  %v9815_v5 = vcombine.low %v14996_v39, %v14982_v61 }
 0x29d   : > { %v6299_v23 = vsel %vm5710_vm5, %v6289_v6, %v6298_v42  ;;  %v6316_v9 = vor.u32 %v6315_v2, %v6312_v12  ;;  %v9853_v6 = vcombine.low %v14949_v45, %v14955_v52 }
 0x29e   : > { %v5770_v30 = vsel %vm5710_vm5, %v5765_v47, %v5769_v57  ;;  %v5772_v17 = vrot.slane %v17133_v16, 4  ;;  %v15001_v47 = vld [vmem:[#allocation2 + $0x84] sm:$0xf]  ;;  %v6308_v26 = vsel %vm5710_vm5, %v6298_v42, %v6307_v33  ;;  %v6328_v16 = vshrl.u32 %v9815_v5, 16 }
 0x29f   : > { %10877 = vmatmul.mubr.msk.bf16.gmra.mxu1 %vm17129_vm12, %v5758_v31  ;;  %v5771_v31 = vrot.slane %v17132_v4, 3  ;;  %v17140_v4 = vshrl.u32 %v14727_v60, 16  ;;  %v6317_v2 = vsel %vm5710_vm5, %v6307_v33, %v6316_v9  ;;  %v6326_v33 = vsel %vm5710_vm5, %v6316_v9, %v6325_v27  ;;  %vm17151_vm12 = vmmov %vm17092_vm0 }
 0x2a0   : > { %10880 = vmatprep.mubr.msk.bf16.mxu1 %vm17130_vm15, %v5762_v18  ;;  %v17135_v18 = vshrl.u32 %v14700_v28, 16  ;;  %vm17152_vm15 = vmmov %vm17092_vm0 }
 0x2a1   : > { %v5773_v59 = vor.u32 %v5772_v17, %v5771_v31 }
 0x2a2   : > { %10911 = vmatmul.mubr.msk.bf16.gmra.mxu0 %vm17131_vm14, %v6281_v36  ;;  %v5775_v51 = vrot.slane %v17135_v18, 3  ;;  %v17136_v36 = vshll.u32 %v14700_v28, 16  ;;  %v6331_v18 = vshll.u32 %v9815_v5, 16  ;;  %vm17154_vm14 = vmmov %vm17092_vm0 }
 0x2a3   : > { %10914 = vmatprep.mubr.msk.bf16.mxu0 %vm17092_vm0, %v6290_v8  ;;  %v9816_v8 = vcombine.low %v14989_v53, %v15001_v47  ;;  %v5774_v17 = vsel %vm5710_vm5, %v5769_v57, %v5773_v59 }
 0x2a4   : > { %v5776_v38 = vrot.slane %v17136_v36, 4  ;;  %v17141_v36 = vshll.u32 %v14727_v60, 16 }
 0x2a5   : > { %v6337_v12 = vshrl.u32 %v9816_v8, 16  ;;  %v6340_v31 = vshll.u32 %v9816_v8, 16 }
 0x2a6   : > { %v5780_v28 = vrot.slane %v17141_v36, 4  ;;  %v6333_v36 = vrot.slane %v6331_v18, 4  ;;  %v5791_v18 = vshll.u32 %v11361_v14, 16 }
 0x2a7   : > { %10881 = vmatmul.mubr.msk.bf16.gmra.mxu1 %vm17134_vm11, %v5766_v13  ;;  %v5777_v13 = vor.u32 %v5776_v38, %v5775_v51  ;;  %v17143_v38 = vshrl.u32 %v14750_v48, 16  ;;  %v15039_v51 = vld [vmem:[#allocation2 + $0x88] sm:$0xf]  ;;  %v6342_v42 = vrot.slane %v6340_v31, 4  ;;  %vm17155_vm11 = vmmov %vm17092_vm0 }
 0x2a8   : > { %10884 = vmatprep.mubr.msk.bf16.mxu1 %vm17137_vm10, %v5770_v30  ;;  %v5779_v30 = vrot.slane %v17140_v4, 3  ;;  %v6330_v4 = vrot.slane %v6328_v16, 3  ;;  %v5788_v16 = vshrl.u32 %v11361_v14, 16  ;;  %v5793_v44 = vrot.slane %v5791_v18, 4  ;;  %vm17157_vm10 = vmmov %vm17092_vm0 }
 0x2a9   : > { %v5778_v60 = vsel %vm5710_vm5, %v5773_v59, %v5777_v13  ;;  %v5783_v5 = vrot.slane %v17143_v38, 3  ;;  %v6339_v59 = vrot.slane %v6337_v12, 3  ;;  %v15043_v38 = vld [vmem:[#allocation2 + $0x94] sm:$0xf] }
 0x2aa   : > { %10915 = vmatmul.mubr.msk.bf16.gmra.mxu0 %vm17138_vm8, %v6299_v23  ;;  %v17144_v23 = vshll.u32 %v14750_v48, 16  ;;  %v9817_v48 = vcombine.low %v15039_v51, %v15023_v50  ;;  %v6334_v12 = vor.u32 %v6333_v36, %v6330_v4  ;;  %v5790_v21 = vrot.slane %v5788_v16, 3  ;;  %v11364_v16 = vld [vmem:[#allocation2 + $0xc] sm:$0xff]   ;;  %vm17159_vm8 = vmmov %vm17092_vm0 }
 0x2ab   : > { %10918 = vmatprep.mubr.msk.bf16.mxu0 %vm17139_vm2, %v6308_v26  ;;  %v15033_v26 = vld [vmem:[#allocation2 + $0x90] sm:$0xf]  ;;  %vm17160_vm2 = vmmov %vm17092_vm0 }
 0x2ac   : > { %v5784_v8 = vrot.slane %v17144_v23, 4  ;;  %v9818_v9 = vcombine.low %v15033_v26, %v15043_v38  ;;  %v6343_v23 = vor.u32 %v6342_v42, %v6339_v59  ;;  %v6346_v57 = vshrl.u32 %v9817_v48, 16 }
 0x2ae   : > { %v6355_v62 = vshrl.u32 %v9818_v9, 16  ;;  %v6358_v14 = vshll.u32 %v9818_v9, 16  ;;  %v6344_v4 = vsel %vm5710_vm5, %v6334_v12, %v6343_v23  ;;  %v6348_v36 = vrot.slane %v6346_v57, 3 }
 0x2af   : > { %10885 = vmatmul.mubr.msk.bf16.gmra.mxu1 %vm17142_vm9, %v5774_v17  ;;  %v5781_v17 = vor.u32 %v5780_v28, %v5779_v30  ;;  %v9851_v28 = vcombine.low %v14923_v29, %v14927_v19  ;;  %v5785_v30 = vor.u32 %v5784_v8, %v5783_v5  ;;  %v15063_v8 = vld [vmem:[#allocation2 + $0x98] sm:$0xf]  ;;  %v5794_v9 = vor.u32 %v5793_v44, %v5790_v21  ;;  %v15080_v21 = vld [vmem:[#allocation2 + $0x24] sm:$0xff]  }
 0x2b0   : > { %10888 = vmatprep.mubr.msk.bf16.mxu1 %vm17145_vm4, %v5778_v60  ;;  %v9852_v60 = vcombine.low %v14941_v54, %v14958_v37  ;;  %v7075_v44 = vshll.u32 %v11364_v16, 16  ;;  %vm17161_vm9 = vsmask.f32 7424  ;;  %vm17162_vm4 = vmmov %vm17092_vm0 }
 0x2b1   : > { %v5782_v31 = vsel %vm5710_vm5, %v5777_v13, %v5781_v17  ;;  %v5786_v5 = vsel %vm5710_vm5, %v5781_v17, %v5785_v30  ;;  %v6360_v17 = vrot.slane %v6358_v14, 4 }
 0x2b2   : > { %10919 = vmatmul.mubr.msk.bf16.gmra.mxu0 %vm17146_vm6, %v6317_v2  ;;  %v6349_v2 = vshll.u32 %v9817_v48, 16  ;;  %v6357_v48 = vrot.slane %v6355_v62, 3  ;;  %v5795_v62 = vsel %vm5710_vm5, %v5785_v30, %v5794_v9  ;;  %v7077_v30 = vrot.slane %v7075_v44, 1  ;;  %vm17166_vm6 = vmmov %vm17092_vm0 }
 0x2b3   : > { %10922 = vmatprep.mubr.msk.bf16.mxu0 %vm17147_vm13, %v6326_v33  ;;  %v6335_v33 = vsel %vm5710_vm5, %v6325_v27, %v6334_v12  ;;  %v16464_v9 = vshrl.u32 %v15080_v21, 16  ;;  %vm17167_vm13 = vmmov %vm17161_vm9 }
 0x2b4   : > { %v6351_v59 = vrot.slane %v6349_v2, 4  ;;  %v6361_v2 = vor.u32 %v6360_v17, %v6357_v48  ;;  %v11369_v48 = vld [vmem:[#allocation2 + $0x1c] sm:$0xff]   ;;  %v16470_v17 = vshll.u32 %v15080_v21, 16 }
 0x2b6   : > { %v6352_v12 = vor.u32 %v6351_v59, %v6348_v36 }
 0x2b7   : > { %10889 = vmatmul.mubr.msk.bf16.gmra.mxu1 %vm17148_vm3, %v5782_v31  ;;  %v9819_v31 = vcombine.low %v15063_v8, %v15063_v8  ;;  %vm17168_vm3 = vmmov %vm17092_vm0 }
 0x2b8   : > { %10892 = vmatprep.mubr.msk.bf16.mxu1 %vm17149_vm1, %v5786_v5  ;;  %v6353_v36 = vsel %vm5710_vm5, %v6343_v23, %v6352_v12  ;;  %v6362_v59 = vsel %vm5710_vm5, %v6352_v12, %v6361_v2  ;;  %v8384_v23 = vrot.slane %v16470_v17, 2  ;;  %v15100_v12 = vld [vmem:[%s16314_s3 + $0x40] sm:$0xff]   ;;  %vm17169_vm1 = vmmov %vm17161_vm9 }
 0x2b9   : > { %v6364_v14 = vshrl.u32 %v9819_v31, 16  ;;  %v6367_v5 = vshll.u32 %v9819_v31, 16 }
 0x2ba   : > { %10923 = vmatmul.mubr.msk.bf16.gmra.mxu0 %vm17150_vm7, %v6335_v33  ;;  %v17153_v33 = vcombine.low %v14754_v41, %v14761_v49  ;;  %v7073_v41 = vshrl.u32 %v11364_v16, 16  ;;  %v17156_v16 = vcombine.low %v14770_v10, %v14763_v34  ;;  %v11373_v10 = vld [vmem:[#allocation2 + $0x2c] sm:$0xff]   ;;  %vm17170_vm7 = vmmov %vm17092_vm0 }
 0x2bb   : > { %10926 = vmatprep.mubr.msk.bf16.mxu0 %vm17151_vm12, %v6344_v4  ;;  %v11365_v4 = vld [vmem:[#allocation2 + $0x14] sm:$0xff]   ;;  %v6366_v31 = vrot.slane %v6364_v14, 3  ;;  %vm17171_vm12 = vcmask 1043456  }
 0x2bc   : > { %v7080_v49 = vshll.u32 %v11365_v4, 16  ;;  %v7078_v44 = vor.u32 %v7077_v30, %v7073_v41 }
 0x2be   : > { %v7082_v14 = vrot.slane %v7080_v49, 1  ;;  %v7104_v49 = vshll.u32 %v11373_v10, 16 }
 0x2bf   : > { %10893 = vmatmul.mubr.msk.bf16.gmra.mxu1 %vm17152_vm15, %v5795_v62  ;;  %v6369_v62 = vrot.slane %v6367_v5, 4  ;;  %v17158_v5 = vcombine.low %v14789_v7, %v14792_v22  ;;  %v7084_v22 = vshrl.u32 %v11365_v4, 16  ;;  %v15130_v4 = vld [vmem:[%s16316_s5] sm:$0xf]  ;;  %vm17173_vm15 = vmmov %vm17092_vm0 }
 0x2c0   : > { %10936 = vmatprep.mubr.msk.bf16.mxu1 %vm17154_vm14, %v17153_v33  ;;  %v8383_v33 = vrot.slane %v16464_v9, 1  ;;  %v11370_v9 = vld [vmem:[#allocation2 + $0x24] sm:$0xff]   ;;  %vm17175_vm14 = vmmov %vm17092_vm0 }
 0x2c1   : > { %v7096_v41 = vshll.u32 %v11370_v9, 16 }
 0x2c2   : > { %10927 = vmatmul.mubr.msk.bf16.gmra.mxu0 %vm17092_vm0, %v6353_v36  ;;  %v7088_v36 = vshll.u32 %v11369_v48, 16  ;;  %v15102_v57 = vor.u32 %v8384_v23, %v8383_v33  ;;  %v7086_v33 = vor.u32 %v7084_v22, %v7082_v14  ;;  %v17165_v23 = vcombine.low %v14831_v15, %v14839_v40  ;;  %v11378_v15 = vld [vmem:[#allocation2 + $0x44] sm:$0xff]   ;;  %v11381_v40 = vld [vmem:[#allocation2 + $0x4c] sm:$0xff]  }
 0x2c3   : > { %10930 = vmatprep.mubr.msk.bf16.mxu0 %vm17155_vm11, %v6362_v59  ;;  %v6370_v59 = vor.u32 %v6369_v62, %v6366_v31  ;;  %v7083_v31 = vsel %vm17161_vm9, %v7078_v44, %v7082_v14  ;;  %v7092_v62 = vshrl.u32 %v11369_v48, 16  ;;  %v11374_v44 = vld [vmem:[#allocation2 + $0x34] sm:$0xff]   ;;  %v11377_v48 = vld [vmem:[#allocation2 + $0x3c] sm:$0xff]   ;;  %v7100_v14 = vshrl.u32 %v11370_v9, 16  ;;  %vm17177_vm11 = vmmov %vm17160_vm2 }
 0x2c4   : > { %v7090_v34 = vrot.slane %v7088_v36, 1 }
 0x2c5   : > { %v6371_v30 = vsel %vm5710_vm5, %v6361_v2, %v6370_v59  ;;  %vm17164_vm5 = vmmov %vm17092_vm0  ;;  %v7098_v2 = vrot.slane %v7096_v41, 1  ;;  %v7108_v59 = vshrl.u32 %v11373_v10, 16  ;;  %v7136_v41 = vshll.u32 %v11381_v40, 16 }
 0x2c6   : > { %v7094_v7 = vor.u32 %v7092_v62, %v7090_v34  ;;  %v7091_v36 = vsel %vm17167_vm13, %v7086_v33, %v7090_v34  ;;  %v17172_v62 = vcombine.low %v14850_v55, %v14874_v20  ;;  %v17174_v10 = vcombine.low %v14861_v25, %v14871_v32  ;;  %vm17176_vm0 = vmmov %vm17169_vm1  ;;  %v11386_v55 = vld [vmem:[#allocation2 + $0x64] sm:$0xff]  }
 0x2c7   : > { %10937 = vmatmul.mubr.msk.bf16.vlgmr.msra.gmra.mxu1 %vm17157_vm10, %v17156_v16  ;;  %v7112_v16 = vshll.u32 %v11374_v44, 16  ;;  %v7102_v34 = vor.u32 %v7100_v14, %v7098_v2  ;;  %vm17178_vm10 = vmmov %vm17176_vm0  ;;  %v7124_v20 = vshrl.u32 %v11377_v48, 16  ;;  %v7116_v25 = vshrl.u32 %v11374_v44, 16 }
 0x2c8   : > { %10940 = vmatprep.mubr.msk.bf16.mxu1 %vm17159_vm8, %v17158_v5  ;;  %11011 = vmatpush3.bf16.msra.mxu1 %v14827_v63  ;;  %v17163_v63 = vcombine.low %v14807_v0, %v14845_v43  ;;  %v7099_v0 = vsel %vm17169_vm1, %v7094_v7, %v7098_v2  ;;  %v7106_v43 = vrot.slane %v7104_v49, 1  ;;  %v7120_v5 = vshll.u32 %v11377_v48, 16  ;;  %v11385_v7 = vld [vmem:[#allocation2 + $0x5c] sm:$0xff]   ;;  %vm17179_vm8 = vmmov %vm17160_vm2 }
 0x2c9   : > { %11086 = vmatprep.subr.bf16.mxu1 %v15100_v12  ;;  %v7114_v22 = vrot.slane %v7112_v16, 1  ;;  %v7152_v32 = vshll.u32 %v11385_v7, 16  ;;  %v7140_v16 = vshrl.u32 %v11381_v40, 16  ;;  %v17180_v48 = vcombine.low %v14884_v1, %v14904_v56  ;;  %vm17181_vm9 = vmmov %vm17176_vm0 }
 0x2ca   : > { %10931 = vmatmul.mubr.msk.bf16.gmra.mxu0 %vm17160_vm2, %v6371_v30  ;;  %v7110_v30 = vor.u32 %v7108_v59, %v7106_v43  ;;  %v7107_v9 = vsel %vm17176_vm0, %v7102_v34, %v7106_v43  ;;  %v7122_v49 = vrot.slane %v7120_v5, 1  ;;  %v7132_v43 = vshrl.u32 %v11378_v15, 16  ;;  %vm17186_vm13 = vmmov %vm17160_vm2 }
 0x2cb   : > { %10974 = vmatprep.mubr.msk.bf16.mxu0 %vm17162_vm4, %v7083_v31  ;;  %v11382_v31 = vld [vmem:[#allocation2 + $0x54] sm:$0xff]   ;;  %v7118_v14 = vor.u32 %v7116_v25, %v7114_v22  ;;  %v7160_v34 = vshll.u32 %v11386_v55, 16  ;;  %v17182_v40 = vcombine.low %v14895_v46, %v14906_v3  ;;  %vm17183_vm4 = vmmov %vm17160_vm2  ;;  %v7164_v46 = vshrl.u32 %v11386_v55, 16 }
 0x2cc   : > { %v7115_v33 = vsel %vm17178_vm10, %v7110_v30, %v7114_v22  ;;  %v7126_v59 = vor.u32 %v7124_v20, %v7122_v49  ;;  %v15154_v30 = vld [vmem:[#allocation2 + $0x6c] sm:$0xff]   ;;  %v7148_v22 = vshrl.u32 %v11382_v31, 16  ;;  %v7156_v20 = vshrl.u32 %v11385_v7, 16  ;;  %vm17188_vm1 = vmmov %vm17176_vm0 }
 0x2cd   : > { %v7168_v3 = vshll.u32 %v15154_v30, 16  ;;  %vm17195_vm10 = vmmov %vm17160_vm2 }
 0x2cf   : > { %10941 = vmatmul.mubr.msk.bf16.gmra.mxu1 %vm17164_vm5, %v17163_v63  ;;  %v7144_v63 = vshll.u32 %v11382_v31, 16  ;;  %vm17184_vm5 = vmmov %vm17176_vm0  ;;  %v15177_v31 = vld [vmem:[#allocation2 + $0x3c] sm:$0xff]  }
 0x2d0   : > { %10944 = vmatprep.mubr.msk.bf16.mxu1 %vm17166_vm6, %v17165_v23  ;;  %v7138_v23 = vrot.slane %v7136_v41, 1  ;;  %vm17185_vm6 = vmmov %vm17176_vm0 }
 0x2d1   : > { %v7146_v5 = vrot.slane %v7144_v63, 1 }
 0x2d2   : > { %10975 = vmatmul.mubr.msk.bf16.vlgmr.msra.gmra.mxu0 %vm17168_vm3, %v7091_v36  ;;  %v15150_v36 = vld [vmem:[#allocation2 + $0x1c] sm:$0xff]   ;;  %vm17187_vm3 = vmmov %vm17160_vm2 }
 0x2d3   : > { %11049 = vmatpush3.bf16.msra.mxu0 %v14879_v24  ;;  %10978 = vmatprep.mubr.msk.bf16.mxu0 %vm17170_vm7, %v7099_v0  ;;  %v7128_v24 = vshll.u32 %v11378_v15, 16  ;;  %v15152_v0 = vld [vmem:[#allocation2 + $0x2c] sm:$0xff]   ;;  %v16472_v44 = vshll.u32 %v15150_v36, 16  ;;  %v16468_v41 = vshrl.u32 %v15150_v36, 16  ;;  %v7123_v15 = vsel %vm17181_vm9, %v7118_v14, %v7122_v49  ;;  %vm17189_vm7 = vmmov %vm17176_vm0 }
 0x2d4   : > { %11174 = vmatprep.subr.msk.bf16.mxu0 %vm17171_vm12, %v15130_v4  ;;  %v16465_v1 = vshrl.u32 %v15152_v0, 16  ;;  %v16467_v25 = vshll.u32 %v15152_v0, 16  ;;  %v7150_v49 = vor.u32 %v7148_v22, %v7146_v5  ;;  %vm17191_vm12 = vmmov %vm17160_vm2 }
 0x2d5   : > { %v7130_v2 = vrot.slane %v7128_v24, 1  ;;  %v7142_v24 = vor.u32 %v7140_v16, %v7138_v23  ;;  %v8379_v7 = vrot.slane %v16468_v41, 1 }
 0x2d6   : > { %v8388_v22 = vrot.slane %v16467_v25, 2  ;;  %v15231_v25 = vld [vmem:[#allocation2 + $0x64] sm:$0xff]  }
 0x2d7   : > { %10945 = vmatmul.mubr.msk.bf16.gmra.mxu1 %vm17173_vm15, %v17172_v62  ;;  %v7134_v62 = vor.u32 %v7132_v43, %v7130_v2  ;;  %v7131_v56 = vsel %vm17184_vm5, %v7126_v59, %v7130_v2  ;;  %v7162_v43 = vrot.slane %v7160_v34, 1  ;;  %v15182_v59 = vld [vmem:[#allocation2 + $0x44] sm:$0xff]   ;;  %v15192_v34 = vld [vmem:[#allocation2 + $0x7c] sm:$0xff]   ;;  %vm17192_vm15 = vsmask.f32 6400  ;;  %vm17200_vm5 = vmmov %vm17160_vm2 }
 0x2d8   : > { %10948 = vmatprep.mubr.msk.bf16.mxu1 %vm17175_vm14, %v17174_v10  ;;  %v15162_v10 = vld [vmem:[#allocation2 + $0x34] sm:$0xff]   ;;  %vm17193_vm14 = vmmov %vm17160_vm2  ;;  %v16480_v17 = vshrl.u32 %v15231_v25, 16 }
 0x2d9   : > { %v7139_v63 = vsel %vm17185_vm6, %v7134_v62, %v7138_v23  ;;  %v16466_v2 = vshrl.u32 %v15162_v10, 16  ;;  %v8380_v23 = vrot.slane %v16472_v44, 2  ;;  %v7172_v62 = vshrl.u32 %v15154_v30, 16  ;;  %vm17201_vm6 = vmmov %vm17160_vm2 }
 0x2da   : > { %10979 = vmatmul.mubr.msk.bf16.gmra.mxu0 %vm17177_vm11, %v7107_v9  ;;  %v7154_v9 = vrot.slane %v7152_v32, 1  ;;  %v7147_v32 = vsel %vm17188_vm1, %v7142_v24, %v7146_v5  ;;  %v8387_v5 = vrot.slane %v16465_v1, 1  ;;  %v15198_v24 = vld [vmem:[#allocation2 + $0x4c] sm:$0xff]   ;;  %v17190_v30 = vcombine.low %v14912_v11, %v14936_v35  ;;  %vm17194_vm11 = vmmov %vm17192_vm15 }
 0x2db   : > { %10982 = vmatprep.mubr.msk.bf16.mxu0 %vm17179_vm8, %v7115_v33  ;;  %v15169_v33 = vld [vmem:[#allocation2 + $0x74] sm:$0xff]   ;;  %v8391_v1 = vrot.slane %v16466_v2, 1  ;;  %v15229_v2 = vld [vmem:[#allocation2 + $0x5c] sm:$0xff]   ;;  %v16477_v41 = vshrl.u32 %v15198_v24, 16  ;;  %vm17196_vm8 = vmmov %vm17176_vm0  ;;  %v8415_v37 = vrot.slane %v16480_v17, 1 }
 0x2dc   : > { %v15189_v55 = vsel %vm17189_vm7, %v7150_v49, %v7154_v9  ;;  %v7158_v16 = vor.u32 %v7156_v20, %v7154_v9  ;;  %v7176_v14 = vshll.u32 %v15169_v33, 16  ;;  %v7166_v9 = vor.u32 %v7164_v46, %v7162_v43  ;;  %vm17197_vm9 = vmmov %vm17194_vm11 }
 0x2dd   : > { %v16473_v20 = vshll.u32 %v15177_v31, 16  ;;  %v16471_v49 = vshrl.u32 %v15177_v31, 16  ;;  %v8389_v46 = vor.u32 %v8388_v22, %v8387_v5  ;;  %v16483_v27 = vshll.u32 %v15229_v2, 16  ;;  %vm17205_vm1 = vmmov %vm17160_vm2 }
 0x2de   : > { %v7163_v11 = vsel %vm17176_vm0, %v7158_v16, %v7162_v43  ;;  %v15225_v35 = vrot.slane %v7176_v14, 1  ;;  %v15247_v16 = vld [vmem:[#allocation2 + $0x6c] sm:$0xff]  }
 0x2df   : > { %10949 = vmatmul.mubr.msk.bf16.gmra.mxu1 %vm17160_vm2, %v17180_v48  ;;  %v16469_v48 = vshll.u32 %v15162_v10, 16  ;;  %v15237_v29 = vsel %vm17194_vm11, %v15102_v57, %v8389_v46  ;;  %v8395_v14 = vrot.slane %v16471_v49, 1  ;;  %v8396_v22 = vrot.slane %v16473_v20, 2  ;;  %v15262_v49 = vld [vmem:[#allocation2 + $0x84] sm:$0xff]   ;;  %v15266_v20 = vpop.f32.mrf.mxu1  ;;  %vm17218_vm11 = vmmov %vm17205_vm1 }
 0x2e0   : > { %10952 = vmatprep.mubr.msk.bf16.mxu1 %vm17183_vm4, %v17182_v40  ;;  %v15202_v40 = vor.u32 %v8380_v23, %v8379_v7  ;;  %v16474_v7 = vshrl.u32 %v15182_v59, 16  ;;  %vm17198_vm4 = vmmov %vm17197_vm9 }
 0x2e1   : > { %v8392_v19 = vrot.slane %v16469_v48, 2  ;;  %v15258_v48 = vld [vmem:[#allocation2 + $0x74] sm:$0xff]   ;;  %v8397_v44 = vor.u32 %v8396_v22, %v8395_v14  ;;  %v16482_v14 = vshll.u32 %v15231_v25, 16  ;;  %v16484_v22 = vshrl.u32 %v15247_v16, 16  ;;  %vm17206_vm7 = vmmov %vm17198_vm4 }
 0x2e2   : > { %10983 = vmatmul.mubr.msk.bf16.gmra.mxu0 %vm17186_vm13, %v7123_v15  ;;  %v15200_v15 = vld [vmem:[#allocation2 + $0x54] sm:$0xff]   ;;  %v15218_v23 = vsel %vm17192_vm15, %v15202_v40, %v15102_v57  ;;  %v16479_v57 = vshll.u32 %v15198_v24, 16  ;;  %vm17202_vm13 = vmmov %vm17198_vm4 }
 0x2e3   : > { %10986 = vmatprep.mubr.msk.bf16.mxu0 %vm17187_vm3, %v7131_v56  ;;  %v7170_v56 = vrot.slane %v7168_v3, 1  ;;  %v7184_v3 = vshll.u32 %v15192_v34, 16  ;;  %v16476_v5 = vshrl.u32 %v15200_v15, 16  ;;  %vm17204_vm3 = vmmov %vm17160_vm2  ;;  %v8419_v54 = vrot.slane %v16484_v22, 1 }
 0x2e4   : > { %v17210_v22 = vshll.u32 %v15247_v16, 16  ;;  %vm17212_vm15 = vmmov %vm17198_vm4 }
 0x2e5   : > { %v15245_v43 = vor.u32 %v7172_v62, %v7170_v56  ;;  %v8393_v62 = vor.u32 %v8392_v19, %v8391_v1  ;;  %v8403_v1 = vrot.slane %v16477_v41, 1  ;;  %v15276_v19 = vrot.slane %v7184_v3, 1 }
 0x2e6   : > { %v8404_v41 = vrot.slane %v16479_v57, 2  ;;  %v8412_v57 = vrot.slane %v16483_v27, 2 }
 0x2e7   : > { %10953 = vmatmul.mubr.msk.bf16.gmra.mxu1 %vm17191_vm12, %v17190_v30  ;;  %v16475_v30 = vshll.u32 %v15182_v59, 16  ;;  %v15272_v18 = vsel %vm17197_vm9, %v8389_v46, %v8393_v62  ;;  %v15283_v42 = vsel %vm17198_vm4, %v8393_v62, %v8397_v44  ;;  %v15289_v46 = vpop.f32.mrf.mxu1  ;;  %vm17208_vm12 = vmmov %vm17198_vm4 }
 0x2e8   : > { %10956 = vmatprep.mubr.msk.bf16.mxu1 %vm17193_vm14, %v9851_v28  ;;  %v15243_v28 = vsel %vm17196_vm8, %v7166_v9, %v7170_v56  ;;  %v16478_v9 = vshll.u32 %v15200_v15, 16  ;;  %v16481_v56 = vshrl.u32 %v15229_v2, 16  ;;  %17199 = vst [vmem:[#allocation22_spill] sm:$0xff] %v15283_v42  ;;  %v8405_v52 = vor.u32 %v8404_v41, %v8403_v1  ;;  %vm17214_vm14 = vmmov %vm17198_vm4 }
 0x2e9   : > { %v15306_v62 = vpop.f32.mrf.mxu1  ;;  %vm17222_vm8 = vmmov %vm17198_vm4 }
 0x2ea   : > { %10987 = vmatmul.mubr.msk.bf16.gmra.mxu0 %vm17195_vm10, %v7139_v63  ;;  %v8399_v63 = vrot.slane %v16474_v7, 1  ;;  %v8407_v7 = vrot.slane %v16476_v5, 1  ;;  %v16485_v5 = vshrl.u32 %v15258_v48, 16  ;;  %v8408_v13 = vrot.slane %v16478_v9, 2  ;;  %v15310_v9 = vld [vmem:[#allocation2 + $0x94] sm:$0xff]   ;;  %vm17221_vm10 = vmmov %vm17205_vm1 }
 0x2eb   : > { %10990 = vmatprep.mubr.msk.bf16.mxu0 %vm17160_vm2, %v7147_v32  ;;  %v8400_v32 = vrot.slane %v16475_v30, 2  ;;  %v15280_v30 = vld [vmem:[#allocation2 + $0x7c] sm:$0xff]   ;;  %vm17229_vm2 = vmmov %vm17205_vm1 }
 0x2ec   : > { %vm17230_vm9 = vmmov %vm17198_vm4 }
 0x2ed   : > { %v8401_v3 = vor.u32 %v8400_v32, %v8399_v63  ;;  %v8411_v63 = vrot.slane %v16481_v56, 1  ;;  %v15308_v32 = vld [vmem:[#allocation2 + $0x8c] sm:$0xff]   ;;  %v5153_v56 = vpop.f32.mrf.mxu1  ;;  %vm17232_vm4 = vmmov %vm17205_vm1 }
 0x2ef   : > { %10957 = vmatmul.mubr.msk.bf16.gmra.mxu1 %vm17200_vm5, %v9852_v60  ;;  %v15313_v45 = vsel %vm17202_vm13, %v8397_v44, %v8401_v3  ;;  %v8416_v60 = vrot.slane %v16482_v14, 2  ;;  %v8423_v44 = vrot.slane %v16485_v5, 1  ;;  %v15330_v41 = vsel %vm17206_vm7, %v8401_v3, %v8405_v52  ;;  %vm17233_vm5 = vmmov %vm17206_vm7 }
 0x2f0   : > { %10960 = vmatprep.mubr.msk.bf16.mxu1 %vm17201_vm6, %v9853_v6  ;;  %17203 = vst [vmem:[#allocation52_spill] sm:$0xff] %v15313_v45  ;;  %v8409_v6 = vor.u32 %v8408_v13, %v8407_v7  ;;  %17207 = vst [vmem:[#allocation33_spill] sm:$0xff] %v15330_v41  ;;  %v15335_v7 = vld [vmem:[#allocation2 + $0x18] sm:$0xf]  ;;  %v8413_v14 = vor.u32 %v8412_v57, %v8411_v63  ;;  %v17211_v3 = vshrl.u32 %v15262_v49, 16  ;;  %v15344_v41 = vld [vmem:[#allocation2 + $0x9c] sm:$0xff]  }
 0x2f1   : > { %v8417_v27 = vor.u32 %v8416_v60, %v8415_v37  ;;  %v17216_v37 = vshll.u32 %v15258_v48, 16  ;;  %v7179_v63 = vsel %vm17176_vm0, %v15245_v43, %v15225_v35  ;;  %v15362_v13 = vld [vmem:[#allocation2 + $0x84] sm:$0xff]   ;;  %vm17235_vm6 = vmmov %vm17233_vm5 }
 0x2f2   : > { %10991 = vmatmul.mubr.msk.bf16.gmra.mxu0 %vm17204_vm3, %v15189_v55  ;;  %v15333_v55 = vsel %vm17208_vm12, %v8405_v52, %v8409_v6  ;;  %v8431_v17 = vrot.slane %v17211_v3, 1  ;;  %v15348_v1 = vsel %vm17212_vm15, %v8409_v6, %v8413_v14  ;;  %v17217_v3 = vcombine.low %v14966_v58, %v14996_v39  ;;  %v10824_v52 = vpop.f32.mrf.mxu0  ;;  %vm17238_vm13 = vmmov %vm17233_vm5 }
 0x2f3   : > { %10994 = vmatprep.mubr.msk.bf16.mxu0 %vm17205_vm1, %v7163_v11  ;;  %17209 = vst [vmem:[#allocation29_spill] sm:$0xff] %v15333_v55  ;;  %v8420_v11 = vrot.slane %v17210_v22, 2  ;;  %v7493_v55 = vld [vmem:[#allocation2 + $0x14] sm:$0xf]  ;;  %17213 = vst [vmem:[#allocation23_spill] sm:$0xff] %v15348_v1  ;;  %v15351_v57 = vsel %vm17214_vm14, %v8413_v14, %v8417_v27  ;;  %v8424_v60 = vrot.slane %v17216_v37, 2  ;;  %v17220_v37 = vcombine.low %v14982_v61, %v14989_v53  ;;  %v10790_v14 = vpop.f32.mrf.mxu1 }
 0x2f4   : > { %17215 = vst [vmem:[#allocation57_spill] sm:$0xff] %v15351_v57  ;;  %v15365_v6 = vcombine.low %v7493_v55, %v15335_v7  ;;  %v17224_v39 = vshll.u32 %v15280_v30, 16  ;;  %v17225_v55 = vshll.u32 %v15262_v49, 16  ;;  %v11397_v57 = vld [vmem:[#allocation2 + $0x8c] sm:$0xff]   ;;  %v17226_v1 = vshrl.u32 %v15310_v9, 16  ;;  %vm17242_vm3 = vmmov %vm17205_vm1 }
 0x2f5   : > { %v8421_v22 = vor.u32 %v8420_v11, %v8419_v54  ;;  %v17219_v54 = vshrl.u32 %v15280_v30, 16  ;;  %v8425_v58 = vor.u32 %v8424_v60, %v8423_v44  ;;  %v17227_v53 = vshrl.u32 %v15308_v32, 16  ;;  %v5166_v45 = vpop.f32.mrf.mxu1  ;;  %vm17245_vm7 = vmmov %vm17233_vm5 }
 0x2f6   : > { %v8432_v5 = vrot.slane %v17225_v55, 2  ;;  %v8439_v61 = vrot.slane %v17226_v1, 1  ;;  %v15391_v60 = vadd.f32 %v10824_v52, %v15266_v20  ;;  %v7188_v1 = vshrl.u32 %v15192_v34, 16  ;;  %vm17247_vm12 = vmmov %vm17176_vm0 }
 0x2f7   : > { %10961 = vmatmul.mubr.msk.bf16.gmra.mxu1 %vm17218_vm11, %v17217_v3  ;;  %v8427_v11 = vrot.slane %v17219_v54, 1  ;;  %v15375_v43 = vsel %vm17222_vm8, %v8417_v27, %v8421_v22  ;;  %v8428_v3 = vrot.slane %v17224_v39, 2  ;;  %v17228_v27 = vshll.u32 %v15308_v32, 16  ;;  %vm17249_vm15 = vmmov %vm17205_vm1 }
 0x2f8   : > { %10964 = vmatprep.mubr.msk.bf16.mxu1 %vm17221_vm10, %v17220_v37  ;;  %17223 = vst [vmem:[#allocation35_spill] sm:$0xff] %v15375_v43  ;;  %v8435_v37 = vrot.slane %v17227_v53, 1  ;;  %v15394_v39 = vsel %vm17230_vm9, %v8421_v22, %v8425_v58  ;;  %v8433_v54 = vor.u32 %v8432_v5, %v8431_v17  ;;  %v7192_v53 = vshll.u32 %v15362_v13, 16  ;;  %v5560_v43 = vpop.f32.mrf.mxu0  ;;  %vm17250_vm14 = vmmov %vm17176_vm0 }
 0x2f9   : > { %v8436_v44 = vrot.slane %v17228_v27, 2  ;;  %17231 = vst [vmem:[#allocation31_spill] sm:$0xff] %v15394_v39  ;;  %v8429_v55 = vor.u32 %v8428_v3, %v8427_v11  ;;  %v17237_v17 = vshll.u32 %v15310_v9, 16  ;;  %v7180_v34 = vshrl.u32 %v15169_v33, 16  ;;  %v10791_v11 = vpop.f32.mrf.mxu1  ;;  %vm17251_vm0 = vmmov %vm17205_vm1 }
 0x2fa   : > { %10995 = vmatmul.mubr.msk.bf16.gmra.mxu0 %vm17229_vm2, %v15243_v28  ;;  %v15401_v28 = vadd.f32 %v5560_v43, %v15289_v46  ;;  %v7190_v22 = vor.u32 %v7188_v1, %v15276_v19  ;;  %v7200_v3 = vshll.u32 %v11397_v57, 16  ;;  %v17241_v33 = vcombine.low %v15001_v47, %v15039_v51  ;;  %vm17253_vm11 = vmmov %vm17233_vm5 }
 0x2fb   : > { %10998 = vmatprep.mubr.msk.bf16.mxu0 %vm17232_vm4, %v7179_v63  ;;  %v8437_v42 = vor.u32 %v8436_v44, %v8435_v37  ;;  %v15404_v20 = vsel %vm17233_vm5, %v8425_v58, %v8429_v55  ;;  %v15407_v52 = vsel %vm17235_vm6, %v8429_v55, %v8433_v54  ;;  %v8440_v5 = vrot.slane %v17237_v17, 2  ;;  %v10825_v63 = vpop.f32.mrf.mxu0  ;;  %v5169_v27 = vpop.f32.mrf.mxu1  ;;  %vm17256_vm10 = vmmov %vm17251_vm0 }
 0x2fc   : > { %17234 = vst [vmem:[#allocation26_spill] sm:$0xff] %v15404_v20  ;;  %17236 = vst [vmem:[#allocation37_spill] sm:$0xff] %v15407_v52  ;;  %v7629_v37 = vshll.u32 %v15365_v6, 16  ;;  %v15415_v46 = vadd.f32 %v10825_v63, %v15306_v62  ;;  %v17240_v44 = vshrl.u32 %v15344_v41, 16  ;;  %v7182_v17 = vor.u32 %v7180_v34, %v15225_v35 }
 0x2fd   : > { %v15418_v43 = vsel %vm17238_vm13, %v8433_v54, %v8437_v42  ;;  %v8441_v58 = vor.u32 %v8440_v5, %v8439_v61  ;;  %v5563_v1 = vpop.f32.mrf.mxu0  ;;  %v17243_v52 = vshll.u32 %v15344_v41, 16  ;;  %v7194_v63 = vrot.slane %v7192_v53, 1  ;;  %v11398_v5 = vld [vmem:[#allocation2 + $0x94] sm:$0xff]   ;;  %vm17257_vm8 = vmmov %vm17247_vm12 }
 0x2fe   : > { %17239 = vst [vmem:[#allocation34_spill] sm:$0xff] %v15418_v43  ;;  %v8443_v55 = vrot.slane %v17240_v44, 1  ;;  %v17244_v54 = vcombine.low %v15023_v50, %v15033_v26  ;;  %v15433_v61 = vadd.f32 %v5563_v1, %v5153_v56  ;;  %v7187_v47 = vsel %vm17247_vm12, %v7182_v17, %v15276_v19  ;;  %v10794_v50 = vpop.f32.mrf.mxu1  ;;  %vm17258_vm2 = vmmov %vm17251_vm0 }
 0x2ff   : > { %10965 = vmatmul.mubr.msk.bf16.gmra.mxu1 %vm17242_vm3, %v17241_v33  ;;  %v8444_v62 = vrot.slane %v17243_v52, 2  ;;  %v15436_v35 = vsel %vm17245_vm7, %v8437_v42, %v8441_v58  ;;  %v7631_v51 = vrot.slane %v7629_v37, 1  ;;  %v7195_v53 = vsel %vm17250_vm14, %v7190_v22, %v7194_v63  ;;  %v10828_v26 = vpop.f32.mrf.mxu0  ;;  %vm17259_vm9 = vmmov %vm17257_vm8 }
 0x300   : > { %10968 = vmatprep.mubr.msk.bf16.mxu1 %vm17205_vm1, %v17244_v54  ;;  %17246 = vst [vmem:[#allocation27_spill] sm:$0xff] %v15436_v35  ;;  %v7202_v52 = vrot.slane %v7200_v3, 1  ;;  %v7627_v56 = vshrl.u32 %v15365_v6, 16  ;;  %v17252_v42 = vshll.u32 %v15150_v36, 16  ;;  %v15452_v37 = vadd.f32 %v10828_v26, %v10790_v14  ;;  %v5182_v33 = vpop.f32.mrf.mxu1  ;;  %vm17261_vm4 = vmmov %vm17251_vm0 }
 0x301   : > { %v15440_v34 = vor.u32 %v8444_v62, %v8443_v55  ;;  %v7204_v55 = vshrl.u32 %v11397_v57, 16  ;;  %v7208_v17 = vshll.u32 %v11398_v5, 16  ;;  %v7196_v22 = vshrl.u32 %v15362_v13, 16  ;;  %v5576_v3 = vpop.f32.mrf.mxu0  ;;  %v11402_v62 = vld [vmem:[#allocation2 + $0x9c] ss:$0 sps:$4 sm:$0x11]   ;;  %vm17262_vm5 = vmmov %vm17257_vm8 }
 0x302   : > { %10999 = vmatmul.mubr.msk.bf16.gmra.mxu0 %vm17249_vm15, %v7187_v47  ;;  %v7636_v44 = vrot.slane %v17252_v42, 1  ;;  %v7632_v1 = vor.u32 %v7631_v51, %v7627_v56  ;;  %v15455_v47 = vadd.f32 %v5576_v3, %v5166_v45  ;;  %v10795_v6 = vpop.f32.mrf.mxu1  ;;  %v7216_v45 = vshll.u32 %v11402_v62, 16  ;;  %vm17264_vm6 = vmmov %vm17251_vm0  ;;  %v8047_v3 = vld [vmem:[#allocation2 + $0x14] sm:$0xe] }
 0x303   : > { %17248 = vst [vmem:[#allocation44_spill] sm:$0xff] %v15440_v34  ;;  %11002 = vmatprep.mubr.msk.bf16.mxu0 %vm17251_vm0, %v7195_v53  ;;  %v15450_v19 = vsel %vm17253_vm11, %v8441_v58, %v15440_v34  ;;  %v7206_v54 = vor.u32 %v7204_v55, %v7202_v52  ;;  %v7198_v53 = vor.u32 %v7196_v22, %v7194_v63  ;;  %v10829_v42 = vpop.f32.mrf.mxu0  ;;  %v7210_v14 = vrot.slane %v7208_v17, 1  ;;  %vm17267_vm13 = vmmov %vm17262_vm5 }
 0x304   : > { %17254 = vst [vmem:[#allocation40_spill] sm:$0xff] %v15450_v19  ;;  %v17255_v58 = vcombine.low %v15043_v38, %v15063_v8  ;;  %v7637_v57 = vsel %vm17257_vm8, %v7632_v1, %v7636_v44  ;;  %v15462_v26 = vadd.f32 %v10829_v42, %v10791_v11  ;;  %v5185_v56 = vpop.f32.mrf.mxu1  ;;  %v17260_v63 = vshll.u32 %v15080_v21, 16  ;;  %vm17268_vm3 = vmmov %vm17251_vm0 }
 0x305   : > { %v7203_v13 = vsel %vm17259_vm9, %v7198_v53, %v7202_v52  ;;  %v5579_v51 = vpop.f32.mrf.mxu0  ;;  %v7211_v38 = vsel %vm17262_vm5, %v7206_v54, %v7210_v14  ;;  %v17263_v8 = vshrl.u32 %v15150_v36, 16  ;;  %v7212_v11 = vshrl.u32 %v11398_v5, 16  ;;  %vm17269_vm1 = vmmov %vm17262_vm5 }
 0x306   : > { %v7644_v55 = vrot.slane %v17260_v63, 1  ;;  %v15472_v17 = vadd.f32 %v5579_v51, %v5169_v27  ;;  %v17265_v52 = vshll.u32 %v15152_v0, 16  ;;  %v15478_v62 = vcombine.low %v8047_v3, %v15335_v7  ;;  %vm17270_vm7 = vmmov %vm17251_vm0 }
 0x307   : > { %10969 = vmatmul.mubr.msk.bf16.gmra.mxu1 %vm17256_vm10, %v17255_v58  ;;  %v7640_v22 = vor.u32 %v17263_v8, %v7636_v44  ;;  %v7214_v53 = vor.u32 %v7212_v11, %v7210_v14  ;;  %v7218_v42 = vrot.slane %v7216_v45, 1  ;;  %v17266_v54 = vshrl.u32 %v15080_v21, 16  ;;  %vm17271_vm12 = vmmov %vm17269_vm1 }
 0x308   : > { %11012 = vmatprep.mubr.msk.bf16.mxu1 %vm17258_vm2, %v7637_v57  ;;  %v7652_v1 = vrot.slane %v17265_v52, 1  ;;  %v8055_v27 = vrot.slane %v15150_v36, 1  ;;  %v8054_v7 = vrot.slane %v15478_v62, 1  ;;  %vm17273_vm15 = vmmov %vm17251_vm0  ;;  %vm17274_vm14 = vcmask 1046528  }
 0x309   : > { %v10798_v58 = vpop.f32.mrf.mxu1  ;;  %v7648_v57 = vor.u32 %v17266_v54, %v7644_v55  ;;  %v7645_v5 = vsel %vm17267_vm13, %v7640_v22, %v7644_v55  ;;  %v7219_v45 = vsel %vm17271_vm12, %v7214_v53, %v7218_v42  ;;  %v17275_v11 = vshrl.u32 %v15152_v0, 16  ;;  %vm17278_vm11 = vmmov %vm17269_vm1 }
 0x30a   : > { %11003 = vmatmul.mubr.msk.bf16.gmra.mxu0 %vm17261_vm4, %v7203_v13  ;;  %v10832_v13 = vpop.f32.mrf.mxu0  ;;  %v8056_v8 = vsel %vm17274_vm14, %v8054_v7, %v8055_v27  ;;  %vm17279_vm10 = vmmov %vm17251_vm0  ;;  %vm17281_vm2 = vcmask 1043456   ;;  %v17324_v19 = vshrl.u32 %v15258_v48, 16  ;;  %v17335_v43 = vshrl.u32 %v15262_v49, 16 }
 0x30b   : > { %11006 = vmatprep.mubr.msk.bf16.mxu0 %vm17264_vm6, %v7211_v38  ;;  %v15484_v44 = vadd.f32 %v10832_v13, %v10794_v50  ;;  %v7653_v51 = vsel %vm17269_vm1, %v7648_v57, %v7652_v1  ;;  %v5198_v63 = vpop.f32.mrf.mxu1  ;;  %v17272_v50 = vshll.u32 %v15162_v10, 16  ;;  %v7656_v3 = vor.u32 %v17275_v11, %v7652_v1  ;;  %vm17280_vm8 = vmmov %vm17269_vm1 }
 0x30c   : > { %v5592_v14 = vpop.f32.mrf.mxu0  ;;  %v17277_v57 = vshrl.u32 %v15162_v10, 16  ;;  %v8057_v1 = vrot.slane %v15080_v21, 1  ;;  %vm17282_vm9 = vmmov %vm17251_vm0  ;;  %v17287_v11 = vshrl.u32 %v15177_v31, 16 }
 0x30d   : > { %v15492_v38 = vadd.f32 %v5592_v14, %v5182_v33  ;;  %v10799_v36 = vpop.f32.mrf.mxu1  ;;  %v7660_v55 = vrot.slane %v17272_v50, 1  ;;  %v17276_v33 = vshll.u32 %v15177_v31, 16  ;;  %vm17283_vm4 = vmmov %vm17274_vm14 }
 0x30e   : > { %v10833_v22 = vpop.f32.mrf.mxu0  ;;  %v8058_v50 = vsel %vm17283_vm4, %v8055_v27, %v8057_v1  ;;  %vm17285_vm5 = vmmov %vm17251_vm0  ;;  %v17289_v27 = vshll.u32 %v15198_v24, 16 }
 0x30f   : > { %11013 = vmatmul.mubr.msk.bf16.vlgmr.msra.gmra.mxu1 %vm17268_vm3, %v7645_v5  ;;  %v15501_v52 = vadd.f32 %v10833_v22, %v10795_v6  ;;  %v7668_v53 = vrot.slane %v17276_v33, 1  ;;  %v7664_v13 = vor.u32 %v17277_v57, %v7660_v55  ;;  %v8059_v5 = vrot.slane %v15152_v0, 1  ;;  %vm17286_vm6 = vmmov %vm17283_vm4 }
 0x310   : > { %11016 = vmatprep.mubr.msk.bf16.mxu1 %vm17270_vm7, %v7653_v51  ;;  %11087 = vmatpush3.bf16.msra.mxu1 %v15100_v12  ;;  %v5201_v12 = vpop.f32.mrf.mxu1  ;;  %v5595_v42 = vpop.f32.mrf.mxu0  ;;  %v7661_v51 = vsel %vm17278_vm11, %v7656_v3, %v7660_v55  ;;  %v17284_v55 = vshll.u32 %v15182_v59, 16  ;;  %vm17288_vm13 = vmmov %vm17251_vm0  ;;  %v7684_v33 = vrot.slane %v17289_v27, 1 }
 0x311   : > { %v15505_v54 = vadd.f32 %v5595_v42, %v5185_v56  ;;  %v7669_v6 = vsel %vm17280_vm8, %v7664_v13, %v7668_v53  ;;  %v8060_v21 = vsel %vm17286_vm6, %v8057_v1, %v8059_v5  ;;  %v7672_v3 = vor.u32 %v17287_v11, %v7668_v53  ;;  %vm17291_vm3 = vmmov %vm17269_vm1 }
 0x312   : > { %11007 = vmatmul.mubr.msk.bf16.gmra.mxu0 %vm17273_vm15, %v7219_v45  ;;  %v9135_v45 = vsel %vm17281_vm2, %v15130_v4, 0  ;;  %vm17292_vm1 = vmmov %vm17251_vm0 }
 0x313   : > { %11050 = vmatprep.mubr.msk.bf16.mxu0 %vm17251_vm0, %v8056_v8  ;;  %v7676_v8 = vrot.slane %v17284_v55, 1  ;;  %vm17293_vm7 = vmmov %vm17291_vm3 }
 0x314   : > { %vm17294_vm12 = vmmov %vm17251_vm0 }
 0x315   : > { %v10802_v7 = vpop.f32.mrf.mxu1  ;;  %v7677_v53 = vsel %vm17291_vm3, %v7672_v3, %v7676_v8  ;;  %vm17295_vm15 = vmmov %vm17283_vm4 }
 0x316   : > { %v10836_v14 = vpop.f32.mrf.mxu0  ;;  %vm17297_vm14 = vmmov %vm17251_vm0 }
 0x317   : > { %11017 = vmatmul.mubr.msk.bf16.gmra.mxu1 %vm17279_vm10, %v7661_v51  ;;  %v15517_v56 = vadd.f32 %v10836_v14, %v10798_v58  ;;  %v5214_v0 = vpop.f32.mrf.mxu1  ;;  %v17290_v51 = vshrl.u32 %v15182_v59, 16  ;;  %v8063_v14 = vrot.slane %v15177_v31, 1  ;;  %vm17298_vm0 = vmmov %vm17283_vm4 }
 0x318   : > { %11020 = vmatprep.mubr.msk.bf16.mxu1 %vm17282_vm9, %v7669_v6  ;;  %v5608_v22 = vpop.f32.mrf.mxu0  ;;  %vm17300_vm11 = vmmov %vm17292_vm1 }
 0x319   : > { %v15527_v4 = vadd.f32 %v5608_v22, %v5198_v63  ;;  %v10803_v58 = vpop.f32.mrf.mxu1  ;;  %v7680_v1 = vor.u32 %v17290_v51, %v7676_v8  ;;  %v8061_v63 = vrot.slane %v15162_v10, 1  ;;  %v17296_v22 = vshll.u32 %v15200_v15, 16  ;;  %vm17303_vm10 = vmmov %vm17291_vm3 }
 0x31a   : > { %11051 = vmatmul.mubr.msk.bf16.vlgmr.msra.gmra.mxu0 %vm17285_vm5, %v8058_v50  ;;  %v10837_v42 = vpop.f32.mrf.mxu0  ;;  %v17299_v10 = vshrl.u32 %v15198_v24, 16  ;;  %vm17304_vm8 = vmmov %vm17292_vm1 }
 0x31b   : > { %11125 = vmatpush3.bf16.msra.mxu0 %v9135_v45  ;;  %11054 = vmatprep.mubr.msk.bf16.mxu0 %vm17288_vm13, %v8060_v21  ;;  %v15531_v57 = vadd.f32 %v10837_v42, %v10799_v36  ;;  %v5217_v13 = vpop.f32.mrf.mxu1  ;;  %v7685_v55 = vsel %vm17293_vm7, %v7680_v1, %v7684_v33  ;;  %v8062_v36 = vsel %vm17295_vm15, %v8059_v5, %v8061_v63  ;;  %v7692_v11 = vrot.slane %v17296_v22, 1  ;;  %vm17305_vm2 = vmmov %vm17291_vm3 }
 0x31c   : > { %v5611_v6 = vpop.f32.mrf.mxu0  ;;  %v7688_v8 = vor.u32 %v17299_v10, %v7684_v33  ;;  %v17301_v42 = vshll.u32 %v15229_v2, 16  ;;  %v8065_v22 = vrot.slane %v15182_v59, 1  ;;  %vm17306_vm9 = vmmov %vm17292_vm1 }
 0x31d   : > { %v15537_v45 = vadd.f32 %v5611_v6, %v5201_v12  ;;  %v8064_v12 = vsel %vm17298_vm0, %v8061_v63, %v8063_v14  ;;  %v8067_v63 = vrot.slane %v15198_v24, 1  ;;  %vm17307_vm4 = vmmov %vm17298_vm0  ;;  %v17308_v24 = vshll.u32 %v15231_v25, 16 }
 0x31e   : > { %v7700_v5 = vrot.slane %v17301_v42, 1  ;;  %v7693_v33 = vsel %vm17303_vm10, %v7688_v8, %v7692_v11  ;;  %v8066_v42 = vsel %vm17307_vm4, %v8063_v14, %v8065_v22  ;;  %vm17309_vm5 = vmmov %vm17292_vm1  ;;  %v17311_v8 = vshrl.u32 %v15229_v2, 16 }
 0x31f   : > { %v10806_v50 = vpop.f32.mrf.mxu1  ;;  %11021 = vmatmul.mubr.msk.bf16.gmra.mxu1 %vm17292_vm1, %v7677_v53  ;;  %v17302_v53 = vshrl.u32 %v15200_v15, 16  ;;  %vm17310_vm6 = vmmov %vm17298_vm0 }
 0x320   : > { %11024 = vmatprep.mubr.msk.bf16.mxu1 %vm17294_vm12, %v7685_v55  ;;  %v8068_v59 = vsel %vm17310_vm6, %v8065_v22, %v8067_v63  ;;  %vm17312_vm13 = vmmov %vm17292_vm1  ;;  %v8071_v22 = vrot.slane %v15229_v2, 1  ;;  %v17319_v2 = vshll.u32 %v15258_v48, 16 }
 0x321   : > { %v5230_v21 = vpop.f32.mrf.mxu1  ;;  %v10840_v31 = vpop.f32.mrf.mxu0  ;;  %v7696_v55 = vor.u32 %v17302_v53, %v7692_v11  ;;  %v7708_v11 = vrot.slane %v17308_v24, 1  ;;  %v7704_v53 = vor.u32 %v17311_v8, %v7700_v5  ;;  %v17314_v24 = vshrl.u32 %v15231_v25, 16  ;;  %vm17315_vm3 = vmmov %vm17305_vm2 }
 0x322   : > { %11055 = vmatmul.mubr.msk.bf16.gmra.mxu0 %vm17297_vm14, %v8062_v36  ;;  %v15550_v3 = vadd.f32 %v10840_v31, %v10802_v7  ;;  %vm17316_vm7 = vmmov %vm17305_vm2 }
 0x323   : > { %11058 = vmatprep.mubr.msk.bf16.mxu0 %vm17300_vm11, %v8064_v12  ;;  %v10807_v27 = vpop.f32.mrf.mxu1  ;;  %v5624_v51 = vpop.f32.mrf.mxu0  ;;  %v7701_v12 = vsel %vm17305_vm2, %v7696_v55, %v7700_v5  ;;  %v7709_v5 = vsel %vm17315_vm3, %v7704_v53, %v7708_v11  ;;  %vm17317_vm12 = vmmov %vm17292_vm1 }
 0x324   : > { %v15555_v1 = vadd.f32 %v5624_v51, %v5214_v0  ;;  %vm17318_vm15 = vmmov %vm17298_vm0 }
 0x325   : > { %v5233_v6 = vpop.f32.mrf.mxu1  ;;  %v10841_v36 = vpop.f32.mrf.mxu0  ;;  %vm17320_vm14 = vmmov %vm17292_vm1 }
 0x326   : > { %v15561_v7 = vadd.f32 %v10841_v36, %v10803_v58  ;;  %v17313_v36 = vshll.u32 %v15247_v16, 16  ;;  %vm17322_vm11 = vmmov %vm17292_vm1 }
 0x327   : > { %v10810_v31 = vpop.f32.mrf.mxu1  ;;  %11025 = vmatmul.mubr.msk.bf16.gmra.mxu1 %vm17304_vm8, %v7693_v33  ;;  %v5627_v0 = vpop.f32.mrf.mxu0  ;;  %vm17325_vm10 = vmmov %vm17305_vm2 }
 0x328   : > { %11028 = vmatprep.mubr.msk.bf16.mxu1 %vm17306_vm9, %v7701_v12  ;;  %v15567_v10 = vadd.f32 %v5627_v0, %v5217_v13  ;;  %v7716_v14 = vrot.slane %v17313_v36, 1  ;;  %vm17326_vm8 = vmmov %vm17292_vm1 }
 0x329   : > { %v5246_v51 = vpop.f32.mrf.mxu1  ;;  %vm17327_vm9 = vmmov %vm17292_vm1 }
 0x32a   : > { %v10844_v58 = vpop.f32.mrf.mxu0  ;;  %11059 = vmatmul.mubr.msk.bf16.gmra.mxu0 %vm17309_vm5, %v8066_v42  ;;  %v7712_v42 = vor.u32 %v17314_v24, %v7708_v11  ;;  %v7724_v11 = vrot.slane %v17319_v2, 1  ;;  %vm17328_vm4 = vmmov %vm17298_vm0 }
 0x32b   : > { %v15576_v55 = vadd.f32 %v10844_v58, %v10806_v50  ;;  %11062 = vmatprep.mubr.msk.bf16.mxu0 %vm17312_vm13, %v8068_v59  ;;  %v10811_v13 = vpop.f32.mrf.mxu1  ;;  %v8069_v58 = vrot.slane %v15200_v15, 1  ;;  %vm17330_vm5 = vmmov %vm17292_vm1 }
 0x32c   : > { %v5640_v33 = vpop.f32.mrf.mxu0  ;;  %v7717_v8 = vsel %vm17316_vm7, %v7712_v42, %v7716_v14  ;;  %vm17331_vm6 = vmmov %vm17298_vm0 }
 0x32d   : > { %v15581_v12 = vadd.f32 %v5640_v33, %v5230_v21  ;;  %v5249_v0 = vpop.f32.mrf.mxu1  ;;  %v8070_v33 = vsel %vm17318_vm15, %v8067_v63, %v8069_v58  ;;  %v8072_v15 = vsel %vm17298_vm0, %v8069_v58, %v8071_v22  ;;  %v8075_v58 = vrot.slane %v15247_v16, 1  ;;  %vm17333_vm13 = vmmov %vm17292_vm1 }
 0x32e   : > { %v10845_v34 = vpop.f32.mrf.mxu0  ;;  %vm17336_vm3 = vmmov %vm17305_vm2 }
 0x32f   : > { %v15587_v50 = vadd.f32 %v10845_v34, %v10807_v27  ;;  %v10814_v59 = vpop.f32.mrf.mxu1  ;;  %11029 = vmatmul.mubr.msk.bf16.gmra.mxu1 %vm17292_vm1, %v7709_v5  ;;  %v17321_v27 = vshrl.u32 %v15247_v16, 16  ;;  %v17323_v5 = vshll.u32 %v15280_v30, 16  ;;  %v17329_v16 = vshll.u32 %v15262_v49, 16  ;;  %vm17337_vm7 = vmmov %vm17305_vm2 }
 0x330   : > { %v5643_v21 = vpop.f32.mrf.mxu0  ;;  %11032 = vmatprep.mubr.msk.bf16.mxu1 %vm17317_vm12, %v7717_v8  ;;  %vm17339_vm12 = vmmov %vm17292_vm1 }
 0x331   : > { %v15593_v36 = vadd.f32 %v5643_v21, %v5233_v6  ;;  %v5262_v24 = vpop.f32.mrf.mxu1  ;;  %v7720_v53 = vor.u32 %v17321_v27, %v7716_v14  ;;  %v7732_v63 = vrot.slane %v17323_v5, 1  ;;  %vm17340_vm15 = vmmov %vm17298_vm0 }
 0x332   : > { %v10848_v34 = vpop.f32.mrf.mxu0  ;;  %11063 = vmatmul.mubr.msk.bf16.gmra.mxu0 %vm17320_vm14, %v8070_v33  ;;  %v7728_v33 = vor.u32 %v17324_v19, %v7724_v11  ;;  %vm17341_vm14 = vmmov %vm17292_vm1 }
 0x333   : > { %v15602_v42 = vadd.f32 %v10848_v34, %v10810_v31  ;;  %11066 = vmatprep.mubr.msk.bf16.mxu0 %vm17322_vm11, %v8072_v15  ;;  %v10815_v6 = vpop.f32.mrf.mxu1  ;;  %v7725_v14 = vsel %vm17325_vm10, %v7720_v53, %v7724_v11  ;;  %v8073_v34 = vrot.slane %v15231_v25, 1  ;;  %v7740_v11 = vrot.slane %v17329_v16, 1  ;;  %vm17344_vm11 = vmmov %vm17292_vm1 }
 0x334   : > { %v5656_v8 = vpop.f32.mrf.mxu0  ;;  %v7733_v27 = vsel %vm17305_vm2, %v7728_v33, %v7732_v63  ;;  %vm17348_vm10 = vmmov %vm17305_vm2 }
 0x335   : > { %v15607_v21 = vadd.f32 %v5656_v8, %v5246_v51  ;;  %v5265_v2 = vpop.f32.mrf.mxu1  ;;  %v8074_v19 = vsel %vm17328_vm4, %v8071_v22, %v8073_v34  ;;  %v8076_v25 = vsel %vm17331_vm6, %v8073_v34, %v8075_v58  ;;  %v8079_v34 = vrot.slane %v15280_v30, 1  ;;  %vm17352_vm4 = vmmov %vm17298_vm0 }
 0x336   : > { %v10849_v35 = vpop.f32.mrf.mxu0  ;;  %vm17354_vm6 = vmmov %vm17298_vm0 }
 0x337   : > { %v15613_v31 = vadd.f32 %v10849_v35, %v10811_v13  ;;  %v10818_v15 = vpop.f32.mrf.mxu1  ;;  %11033 = vmatmul.mubr.msk.bf16.gmra.mxu1 %vm17326_vm8, %v7725_v14  ;;  %v17332_v13 = vshrl.u32 %v15280_v30, 16  ;;  %v17334_v14 = vshll.u32 %v15308_v32, 16  ;;  %v15648_v30 = vld [vmem:[#allocation2 + $0xa4] ss:$0 sps:$4 sm:$0x11]   ;;  %vm17349_vm8 = vmmov %vm17292_vm1 }
 0x338   : > { %v5659_v51 = vpop.f32.mrf.mxu0  ;;  %11036 = vmatprep.mubr.msk.bf16.mxu1 %vm17327_vm9, %v7733_v27  ;;  %vm17351_vm9 = vmmov %vm17292_vm1 }
 0x339   : > { %v15619_v5 = vadd.f32 %v5659_v51, %v5249_v0  ;;  %v5278_v8 = vpop.f32.mrf.mxu1  ;;  %v7736_v53 = vor.u32 %v17332_v13, %v7732_v63  ;;  %v7748_v22 = vrot.slane %v17334_v14, 1 }
 0x33a   : > { %v10852_v35 = vpop.f32.mrf.mxu0  ;;  %11067 = vmatmul.mubr.msk.bf16.gmra.mxu0 %vm17330_vm5, %v8074_v19  ;;  %v7744_v19 = vor.u32 %v17335_v43, %v7740_v11  ;;  %vm17353_vm5 = vmmov %vm17292_vm1 }
 0x33b   : > { %v15628_v33 = vadd.f32 %v10852_v35, %v10814_v59  ;;  %11070 = vmatprep.mubr.msk.bf16.mxu0 %vm17333_vm13, %v8076_v25  ;;  %v10819_v0 = vpop.f32.mrf.mxu1  ;;  %v7741_v63 = vsel %vm17336_vm3, %v7736_v53, %v7740_v11  ;;  %v8077_v35 = vrot.slane %v15258_v48, 1  ;;  %vm17355_vm13 = vmmov %vm17292_vm1 }
 0x33c   : > { %v5672_v27 = vpop.f32.mrf.mxu0  ;;  %v7749_v13 = vsel %vm17337_vm7, %v7744_v19, %v7748_v22  ;;  %v17342_v19 = vshrl.u32 %v15308_v32, 16  ;;  %vm17356_vm3 = vmmov %vm17305_vm2  ;;  %vm17357_vm7 = vsmask.f32 6400 }
 0x33d   : > { %v15633_v51 = vadd.f32 %v5672_v27, %v5262_v24  ;;  %v5281_v16 = vpop.f32.mrf.mxu1  ;;  %v17338_v24 = vshll.u32 %v15310_v9, 16  ;;  %v8080_v53 = vsel %vm17298_vm0, %v8077_v35, %v8079_v34 }
 0x33e   : > { %v10853_v20 = vpop.f32.mrf.mxu0 }
 0x33f   : > { %v15639_v59 = vadd.f32 %v10853_v20, %v10815_v6  ;;  %v10862_v25 = vpop.f32.mrf.mxu1  ;;  %11037 = vmatmul.mubr.msk.bf16.gmra.mxu1 %vm17292_vm1, %v7741_v63  ;;  %v7756_v14 = vrot.slane %v17338_v24, 1  ;;  %v8078_v20 = vsel %vm17340_vm15, %v8075_v58, %v8077_v35  ;;  %v7752_v63 = vor.u32 %v17342_v19, %v7748_v22  ;;  %vm17359_vm15 = vmmov %vm17298_vm0 }
 0x340   : > { %v5675_v27 = vpop.f32.mrf.mxu0  ;;  %v6035_v43 = vadd.f32 %v10862_v25, %v15391_v60  ;;  %11040 = vmatprep.mubr.msk.bf16.mxu1 %vm17339_vm12, %v7749_v13  ;;  %v17346_v58 = vshll.u32 %v15344_v41, 16  ;;  %vm17358_vm12 = vmmov %vm17292_vm1 }
 0x341   : > { %v15650_v11 = vadd.f32 %v5675_v27, %v5265_v2  ;;  %v5890_v48 = vpop.f32.mrf.mxu1  ;;  %v17345_v2 = vshrl.u32 %v15310_v9, 16 }
 0x342   : > { %v10856_v6 = vpop.f32.mrf.mxu0  ;;  %11071 = vmatmul.mubr.msk.bf16.gmra.mxu0 %vm17341_vm14, %v8078_v20  ;;  %v6033_v24 = vadd.f32 %v5890_v48, %v15401_v28  ;;  %v7764_v27 = vrot.slane %v17346_v58, 1  ;;  %v7770_v20 = vshll.u32 %v15648_v30, 16  ;;  %v8375_v48 = vshll.u32 %v15478_v62, 16  ;;  %vm17360_vm14 = vmmov %vm17292_vm1 }
 0x343   : > { %v15658_v60 = vadd.f32 %v10856_v6, %v10818_v15  ;;  %11074 = vmatprep.mubr.msk.bf16.mxu0 %vm17344_vm11, %v8080_v53  ;;  %v10863_v25 = vpop.f32.mrf.mxu1  ;;  %v7760_v13 = vor.u32 %v17345_v2, %v7756_v14  ;;  %v8372_v15 = vshrl.u32 %v15478_v62, 16  ;;  %v8083_v53 = vrot.slane %v15308_v32, 1  ;;  %vm17361_vm11 = vmmov %vm17292_vm1 }
 0x344   : > { %v5688_v39 = vpop.f32.mrf.mxu0  ;;  %v6036_v35 = vadd.f32 %v10863_v25, %v15415_v46  ;;  %v7757_v2 = vsel %vm17348_vm10, %v7752_v63, %v7756_v14  ;;  %v8081_v46 = vrot.slane %v15262_v49, 1  ;;  %v11423_v14 = vld [vmem:[%s11530_s12 + $0x10] sm:$0xff]   ;;  %vm17362_vm10 = vmmov %vm17298_vm0 }
 0x345   : > { %17343 = vst [vmem:[#allocation36_spill] sm:$0xff] %v15658_v60  ;;  %v15667_v22 = vadd.f32 %v5688_v39, %v5278_v8  ;;  %v5893_v28 = vpop.f32.mrf.mxu1  ;;  %v7765_v39 = vsel %vm17305_vm2, %v7760_v13, %v7764_v27  ;;  %v11422_v8 = vld [vmem:[%s11530_s12 + $0x8] sm:$0xfe]   ;;  %v17350_v60 = vshrl.u32 %v15344_v41, 16  ;;  %vm17364_vm2 = vmmov %vm17292_vm1 }
 0x346   : > { %v10857_v6 = vpop.f32.mrf.mxu0  ;;  %v6034_v19 = vadd.f32 %v5893_v28, %v15433_v61  ;;  %v7772_v61 = vrot.slane %v7770_v20, 1  ;;  %v8082_v49 = vsel %vm17352_vm4, %v8079_v34, %v8081_v46  ;;  %v8374_v28 = vrot.slane %v8372_v15, 1  ;;  %vm17366_vm4 = vmmov %vm17292_vm1 }
 0x347   : > { %17347 = vst [vmem:[#allocation46_spill] sm:$0xff] %v15667_v22  ;;  %v15674_v58 = vadd.f32 %v10857_v6, %v10819_v0  ;;  %v10866_v25 = vpop.f32.mrf.mxu1  ;;  %11041 = vmatmul.mubr.msk.bf16.gmra.mxu1 %vm17349_vm8, %v7757_v2  ;;  %v7768_v32 = vor.u32 %v17350_v60, %v7764_v27  ;;  %v8377_v6 = vrot.slane %v8375_v48, 2  ;;  %v8084_v13 = vsel %vm17354_vm6, %v8081_v46, %v8083_v53  ;;  %vm17363_vm8 = vmmov %vm17292_vm1 }
 0x348   : > { %v5691_v22 = vpop.f32.mrf.mxu0  ;;  %v6039_v62 = vadd.f32 %v10866_v25, %v15452_v37  ;;  %11044 = vmatprep.mubr.msk.bf16.mxu1 %vm17351_vm9, %v7765_v39  ;;  %v8911_v27 = vshrl.u32 %v11422_v8, 16  ;;  %v8919_v15 = vshrl.u32 %v11423_v14, 16  ;;  %v8922_v48 = vshll.u32 %v11423_v14, 16  ;;  %v11424_v14 = vld [vmem:[%s11530_s12 + $0x18] sm:$0xff]   ;;  %vm17365_vm9 = vmmov %vm17357_vm7 }
 0x349   : > { %v15685_v0 = vadd.f32 %v5691_v22, %v5281_v16  ;;  %v5906_v63 = vpop.f32.mrf.mxu1  ;;  %v8914_v16 = vshll.u32 %v11422_v8, 16  ;;  %v7773_v22 = vsel %vm17356_vm3, %v7768_v32, %v7772_v61  ;;  %vm17368_vm6 = vmmov %vm17357_vm7 }
 0x34a   : > { %v10900_v2 = vpop.f32.mrf.mxu0  ;;  %11075 = vmatmul.mubr.msk.bf16.gmra.mxu0 %vm17353_vm5, %v8082_v49  ;;  %v6037_v37 = vadd.f32 %v5906_v63, %v15455_v47  ;;  %v8378_v49 = vor.u32 %v8377_v6, %v8374_v28  ;;  %v8087_v63 = vrot.slane %v15344_v41, 1  ;;  %v8924_v41 = vrot.slane %v8922_v48, 2  ;;  %vm17371_vm3 = vmmov %vm17292_vm1 }
 0x34b   : > { %v15691_v25 = vadd.f32 %v10900_v2, %v6035_v43  ;;  %11078 = vmatprep.mubr.msk.bf16.mxu0 %vm17355_vm13, %v8084_v13  ;;  %v10867_v60 = vpop.f32.mrf.mxu1  ;;  %v8085_v43 = vrot.slane %v15310_v9, 1  ;;  %v8916_v61 = vrot.slane %v8914_v16, 2  ;;  %v8921_v9 = vrot.slane %v8919_v15, 1  ;;  %v11425_v13 = vld [vmem:[%s11530_s12 + $0x20] sm:$0xff]   ;;  %vm17369_vm13 = vmmov %vm17292_vm1 }
 0x34c   : > { %v6466_v20 = vpop.f32.mrf.mxu0  ;;  %v6040_v34 = vadd.f32 %v10867_v60, %v15462_v26  ;;  %v8382_v32 = vsel %vm17357_vm7, %v8378_v49, %v15202_v40  ;;  %v8089_v16 = vrot.slane %v15648_v30, 1  ;;  %v8931_v48 = vshll.u32 %v11424_v14, 16 }
 0x34d   : > { %v15696_v39 = vadd.f32 %v6466_v20, %v6033_v24  ;;  %v5909_v46 = vpop.f32.mrf.mxu1  ;;  %v8913_v24 = vrot.slane %v8911_v27, 1  ;;  %v8088_v40 = vsel %vm17298_vm0, %v8085_v43, %v8087_v63  ;;  %v8925_v49 = vor.u32 %v8924_v41, %v8921_v9  ;;  %vm17379_vm0 = vmmov %vm17364_vm2 }
 0x34e   : > { %v10901_v47 = vpop.f32.mrf.mxu0  ;;  %v6038_v8 = vadd.f32 %v5909_v46, %v15472_v17  ;;  %vm17367_vm5 = vcmask 64512  }
 0x34f   : > { %v15701_v2 = vadd.f32 %v10901_v47, %v6036_v35  ;;  %v10870_v26 = vpop.f32.mrf.mxu1  ;;  %11045 = vmatmul.mubr.msk.bf16.gmra.mxu1 %vm17292_vm1, %v7773_v22  ;;  %v8086_v35 = vsel %vm17359_vm15, %v8083_v53, %v8085_v43  ;;  %v8917_v15 = vor.u32 %v8916_v61, %v8913_v24  ;;  %v8937_v47 = vshrl.u32 %v11425_v13, 16  ;;  %vm17372_vm1 = vmmov %vm17368_vm6 }
 0x350   : > { %v6469_v28 = vpop.f32.mrf.mxu0  ;;  %v6043_v6 = vadd.f32 %v10870_v26, %v15484_v44  ;;  %11088 = vmatprep.mubr.msk.bf16.mxu1 %vm17358_vm12, %v8382_v32  ;;  %v8940_v26 = vshll.u32 %v11425_v13, 16  ;;  %v8090_v24 = vsel %vm17362_vm10, %v8087_v63, %v8089_v16  ;;  %v11427_v13 = vld [vmem:[%s11530_s12 + $0x30] sm:$0xff]   ;;  %vm17373_vm7 = vmmov %vm17367_vm5 }
 0x351   : > { %v15710_v17 = vadd.f32 %v6469_v28, %v6034_v19  ;;  %v5922_v60 = vpop.f32.mrf.mxu1  ;;  %v8928_v19 = vshrl.u32 %v11424_v14, 16  ;;  %v11426_v28 = vld [vmem:[%s11530_s12 + $0x28] sm:$0xff]   ;;  %v8926_v41 = vsel %vm17365_vm9, %v8917_v15, %v8925_v49  ;;  %vm17374_vm12 = vmmov %vm17367_vm5 }
 0x352   : > { %v10904_v20 = vpop.f32.mrf.mxu0  ;;  %11079 = vmatmul.mubr.msk.bf16.gmra.mxu0 %vm17360_vm14, %v8086_v35  ;;  %v6041_v27 = vadd.f32 %v5922_v60, %v15492_v38  ;;  %v8949_v16 = vshll.u32 %v11426_v28, 16  ;;  %vm17375_vm15 = vmmov %vm17372_vm1 }
 0x353   : > { %v15717_v44 = vadd.f32 %v10904_v20, %v6039_v62  ;;  %11082 = vmatprep.mubr.msk.bf16.mxu0 %vm17361_vm11, %v8088_v40  ;;  %v10871_v22 = vpop.f32.mrf.mxu1  ;;  %v8930_v14 = vrot.slane %v8928_v19, 1  ;;  %v8955_v19 = vshrl.u32 %v11427_v13, 16  ;;  %vm17377_vm14 = vmmov %vm17364_vm2 }
 0x354   : > { %v6482_v53 = vpop.f32.mrf.mxu0  ;;  %v6044_v46 = vadd.f32 %v10871_v22, %v15501_v52  ;;  %v8933_v52 = vrot.slane %v8931_v48, 2  ;;  %v8958_v48 = vshll.u32 %v11427_v13, 16  ;;  %vm17380_vm11 = vmmov %vm17372_vm1 }
 0x355   : > { %v15721_v43 = vadd.f32 %v6482_v53, %v6037_v37  ;;  %v5925_v38 = vpop.f32.mrf.mxu1  ;;  %vm17381_vm10 = vmmov %vm17367_vm5 }
 0x356   : > { %v10905_v30 = vpop.f32.mrf.mxu0  ;;  %v6042_v62 = vadd.f32 %v5925_v38, %v15505_v54  ;;  %v8939_v54 = vrot.slane %v8937_v47, 1  ;;  %v8934_v40 = vor.u32 %v8933_v52, %v8930_v14  ;;  %v17370_v52 = vld [vmem:[#allocation22_spill] sm:$0xff]  ;;  %vm17385_vm9 = vmmov %vm17379_vm0 }
 0x357   : > { %v15724_v32 = vadd.f32 %v10905_v30, %v6040_v34  ;;  %v10874_v61 = vpop.f32.mrf.mxu1  ;;  %11089 = vmatmul.mubr.msk.bf16.vlgmr.msra.gmra.mxu1 %vm17363_vm8, %v15218_v23  ;;  %v8942_v34 = vrot.slane %v8940_v26, 2  ;;  %vm17382_vm8 = vmmov %vm17367_vm5 }
 0x358   : > { %v6485_v9 = vpop.f32.mrf.mxu0  ;;  %v6047_v37 = vadd.f32 %v10874_v61, %v15517_v56  ;;  %11092 = vmatprep.mubr.msk.bf16.mxu1 %vm17364_vm2, %v15237_v29  ;;  %v8946_v29 = vshrl.u32 %v11426_v28, 16  ;;  %v8935_v38 = vsel %vm17368_vm6, %v8925_v49, %v8934_v40  ;;  %v11428_v61 = vld [vmem:[%s11530_s12 + $0x38] sm:$0xff]   ;;  %vm17383_vm2 = vmmov %vm17372_vm1 }
 0x359   : > { %v15735_v35 = vadd.f32 %v6485_v9, %v6038_v8  ;;  %v5938_v63 = vpop.f32.mrf.mxu1  ;;  %v8943_v8 = vor.u32 %v8942_v34, %v8939_v54  ;;  %v11429_v9 = vld [vmem:[%s11530_s12 + $0x40] sm:$0xff]   ;;  %vm17389_vm6 = vmmov %vm17373_vm7 }
 0x35a   : > { %v10908_v60 = vpop.f32.mrf.mxu0  ;;  %11083 = vmatmul.mubr.msk.bf16.gmra.mxu0 %vm17366_vm4, %v8090_v24  ;;  %v6045_v23 = vadd.f32 %v5938_v63, %v15527_v4  ;;  %v8948_v24 = vrot.slane %v8946_v29, 1  ;;  %v8964_v63 = vshrl.u32 %v11428_v61, 16  ;;  %v8973_v29 = vshrl.u32 %v11429_v9, 16  ;;  %vm17387_vm4 = vmmov %vm17379_vm0 }
 0x35b   : > { %v15739_v20 = vadd.f32 %v10908_v60, %v6043_v6  ;;  %11126 = vmatprep.mubr.msk.bf16.mxu0 %vm17367_vm5, %v8926_v41  ;;  %v10875_v56 = vpop.f32.mrf.mxu1  ;;  %v8944_v28 = vsel %vm17372_vm1, %v8934_v40, %v8943_v8  ;;  %v8967_v60 = vshll.u32 %v11428_v61, 16  ;;  %v17378_v61 = vld [vmem:[#allocation33_spill] sm:$0xff]  ;;  %vm17388_vm5 = vmmov %vm17372_vm1 }
 0x35c   : > { %v6498_v22 = vpop.f32.mrf.mxu0  ;;  %v6048_v15 = vadd.f32 %v10875_v56, %v15531_v57  ;;  %v8951_v57 = vrot.slane %v8949_v16, 2  ;;  %v8976_v16 = vshll.u32 %v11429_v9, 16 }
 0x35d   : > { %v15743_v53 = vadd.f32 %v6498_v22, %v6041_v27  ;;  %v5941_v47 = vpop.f32.mrf.mxu1 }
 0x35e   : > { %v10909_v4 = vpop.f32.mrf.mxu0  ;;  %v6046_v6 = vadd.f32 %v5941_v47, %v15537_v45  ;;  %v8957_v45 = vrot.slane %v8955_v19, 1  ;;  %v8952_v13 = vor.u32 %v8951_v57, %v8948_v24  ;;  %v11430_v24 = vld [vmem:[%s11530_s12 + $0x48] sm:$0xff]  }
 0x35f   : > { %v15746_v26 = vadd.f32 %v10909_v4, %v6044_v46  ;;  %v10878_v30 = vpop.f32.mrf.mxu1  ;;  %11093 = vmatmul.mubr.msk.bf16.gmra.mxu1 %vm17369_vm13, %v15272_v18  ;;  %v8960_v46 = vrot.slane %v8958_v48, 2  ;;  %vm17390_vm13 = vmmov %vm17389_vm6 }
 0x360   : > { %v6501_v14 = vpop.f32.mrf.mxu0  ;;  %v6051_v27 = vadd.f32 %v10878_v30, %v15550_v3  ;;  %11096 = vmatprep.mubr.msk.bf16.mxu1 %vm17371_vm3, %v17370_v52  ;;  %v8953_v47 = vsel %vm17375_vm15, %v8943_v8, %v8952_v13  ;;  %v8966_v30 = vrot.slane %v8964_v63, 1  ;;  %v11431_v52 = vld [vmem:[%s11530_s12 + $0x50] sm:$0xff]   ;;  %vm17391_vm3 = vmmov %vm17372_vm1 }
 0x361   : > { %v15757_v41 = vadd.f32 %v6501_v14, %v6042_v62  ;;  %v5954_v49 = vpop.f32.mrf.mxu1  ;;  %v8961_v62 = vor.u32 %v8960_v46, %v8957_v45  ;;  %vm17393_vm1 = vmmov %vm17379_vm0 }
 0x362   : > { %v10912_v54 = vpop.f32.mrf.mxu0  ;;  %11127 = vmatmul.mubr.msk.bf16.vlgmr.msra.gmra.mxu0 %vm17373_vm7, %v8935_v38  ;;  %v6049_v18 = vadd.f32 %v5954_v49, %v15555_v1  ;;  %v17376_v38 = vld [vmem:[#allocation52_spill] sm:$0xff]  ;;  %vm17395_vm7 = vmmov %vm17379_vm0 }
 0x363   : > { %v15761_v34 = vadd.f32 %v10912_v54, %v6047_v37  ;;  %11130 = vmatprep.mubr.msk.bf16.mxu0 %vm17374_vm12, %v8944_v28  ;;  %v10879_v3 = vpop.f32.mrf.mxu1  ;;  %v8962_v14 = vsel %vm17380_vm11, %v8952_v13, %v8961_v62  ;;  %v8982_v54 = vshrl.u32 %v11430_v24, 16  ;;  %vm17396_vm12 = vmmov %vm17383_vm2 }
 0x364   : > { %v6514_v56 = vpop.f32.mrf.mxu0  ;;  %v6052_v40 = vadd.f32 %v10879_v3, %v15561_v7  ;;  %v8969_v7 = vrot.slane %v8967_v60, 2  ;;  %v8985_v3 = vshll.u32 %v11430_v24, 16  ;;  %v8991_v60 = vshrl.u32 %v11431_v52, 16  ;;  %v17386_v24 = vld [vmem:[#allocation23_spill] sm:$0xff]  ;;  %vm17397_vm15 = vmmov %vm17389_vm6 }
 0x365   : > { %v15765_v22 = vadd.f32 %v6514_v56, %v6045_v23  ;;  %v5957_v19 = vpop.f32.mrf.mxu1  ;;  %v8994_v56 = vshll.u32 %v11431_v52, 16  ;;  %vm17401_vm11 = vmmov %vm17393_vm1 }
 0x366   : > { %v10913_v1 = vpop.f32.mrf.mxu0  ;;  %v6050_v37 = vadd.f32 %v5957_v19, %v15567_v10  ;;  %v8975_v10 = vrot.slane %v8973_v29, 1  ;;  %v8970_v49 = vor.u32 %v8969_v7, %v8966_v30  ;;  %v11432_v30 = vld [vmem:[%s11530_s12 + $0x58] sm:$0xff]  }
 0x367   : > { %v15768_v48 = vadd.f32 %v10913_v1, %v6048_v15  ;;  %v10882_v4 = vpop.f32.mrf.mxu1  ;;  %11097 = vmatmul.mubr.msk.bf16.gmra.mxu1 %vm17377_vm14, %v17376_v38  ;;  %v8978_v15 = vrot.slane %v8976_v16, 2  ;;  %v8984_v38 = vrot.slane %v8982_v54, 1  ;;  %vm17398_vm14 = vmmov %vm17389_vm6 }
 0x368   : > { %v6517_v57 = vpop.f32.mrf.mxu0  ;;  %v6055_v23 = vadd.f32 %v10882_v4, %v15576_v55  ;;  %11100 = vmatprep.mubr.msk.bf16.mxu1 %vm17379_vm0, %v17378_v61  ;;  %v8971_v1 = vsel %vm17383_vm2, %v8961_v62, %v8970_v49  ;;  %v17384_v4 = vld [vmem:[#allocation29_spill] sm:$0xff]  ;;  %vm17399_vm0 = vmmov %vm17383_vm2 }
 0x369   : > { %v15779_v28 = vadd.f32 %v6517_v57, %v6046_v6  ;;  %v5970_v8 = vpop.f32.mrf.mxu1  ;;  %v8979_v6 = vor.u32 %v8978_v15, %v8975_v10  ;;  %v11433_v61 = vld [vmem:[%s11530_s12 + $0x60] sm:$0xff]   ;;  %vm17406_vm2 = vmmov %vm17389_vm6 }
 0x36a   : > { %v10916_v45 = vpop.f32.mrf.mxu0  ;;  %11131 = vmatmul.mubr.msk.bf16.gmra.mxu0 %vm17381_vm10, %v8953_v47  ;;  %v6053_v46 = vadd.f32 %v5970_v8, %v15581_v12  ;;  %vm17404_vm10 = vmmov %vm17393_vm1 }
 0x36b   : > { %v15783_v9 = vadd.f32 %v10916_v45, %v6051_v27  ;;  %11134 = vmatprep.mubr.msk.bf16.mxu0 %vm17382_vm8, %v8962_v14  ;;  %v10883_v55 = vpop.f32.mrf.mxu1  ;;  %v8980_v57 = vsel %vm17388_vm5, %v8970_v49, %v8979_v6  ;;  %v9000_v45 = vshrl.u32 %v11432_v30, 16  ;;  %vm17405_vm8 = vmmov %vm17399_vm0 }
 0x36c   : > { %v6530_v13 = vpop.f32.mrf.mxu0  ;;  %v6056_v63 = vadd.f32 %v10883_v55, %v15587_v50  ;;  %v8987_v50 = vrot.slane %v8985_v3, 2  ;;  %v9003_v55 = vshll.u32 %v11432_v30, 16  ;;  %v9009_v3 = vshrl.u32 %v11433_v61, 16  ;;  %v17394_v30 = vld [vmem:[#allocation35_spill] sm:$0xff]  ;;  %vm17411_vm5 = vmmov %vm17393_vm1 }
 0x36d   : > { %v15787_v29 = vadd.f32 %v6530_v13, %v6049_v18  ;;  %v5973_v16 = vpop.f32.mrf.mxu1  ;;  %v9012_v13 = vshll.u32 %v11433_v61, 16 }
 0x36e   : > { %v10917_v12 = vpop.f32.mrf.mxu0  ;;  %v6054_v27 = vadd.f32 %v5973_v16, %v15593_v36  ;;  %v8993_v36 = vrot.slane %v8991_v60, 1  ;;  %v8988_v8 = vor.u32 %v8987_v50, %v8984_v38  ;;  %v11434_v16 = vld [vmem:[%s11530_s12 + $0x68] sm:$0xff]   ;;  %v9005_v38 = vrot.slane %v9003_v55, 2 }
 0x36f   : > { %v15790_v19 = vadd.f32 %v10917_v12, %v6052_v40  ;;  %v10886_v47 = vpop.f32.mrf.mxu1  ;;  %11101 = vmatmul.mubr.msk.bf16.gmra.mxu1 %vm17385_vm9, %v17384_v4  ;;  %v8996_v40 = vrot.slane %v8994_v56, 2  ;;  %v17392_v4 = vld [vmem:[#allocation57_spill] sm:$0xff]  ;;  %v9018_v61 = vshrl.u32 %v11434_v16, 16  ;;  %vm17408_vm9 = vmmov %vm17406_vm2 }
 0x370   : > { %v6533_v7 = vpop.f32.mrf.mxu0  ;;  %v6059_v18 = vadd.f32 %v10886_v47, %v15602_v42  ;;  %11104 = vmatprep.mubr.msk.bf16.mxu1 %vm17387_vm4, %v17386_v24  ;;  %v9014_v24 = vrot.slane %v9012_v13, 2  ;;  %vm17409_vm4 = vmmov %vm17399_vm0 }
 0x371   : > { %v15801_v14 = vadd.f32 %v6533_v7, %v6050_v37  ;;  %v5986_v62 = vpop.f32.mrf.mxu1  ;;  %v8997_v37 = vor.u32 %v8996_v40, %v8993_v36 }
 0x372   : > { %v10920_v10 = vpop.f32.mrf.mxu0  ;;  %11135 = vmatmul.mubr.msk.bf16.gmra.mxu0 %vm17389_vm6, %v8971_v1  ;;  %v6057_v15 = vadd.f32 %v5986_v62, %v15607_v21  ;;  %v8989_v1 = vsel %vm17391_vm3, %v8979_v6, %v8988_v8  ;;  %v9021_v62 = vshll.u32 %v11434_v16, 16  ;;  %v11436_v16 = vld [vmem:[%s11530_s12 + $0x78] sm:$0xff]   ;;  %vm17413_vm6 = vmmov %vm17393_vm1 }
 0x373   : > { %v15805_v52 = vadd.f32 %v10920_v10, %v6055_v23  ;;  %11138 = vmatprep.mubr.msk.bf16.mxu0 %vm17390_vm13, %v8980_v57  ;;  %v10887_v42 = vpop.f32.mrf.mxu1  ;;  %v8998_v7 = vsel %vm17396_vm12, %v8988_v8, %v8997_v37  ;;  %vm17414_vm13 = vmmov %vm17399_vm0 }
 0x374   : > { %v6546_v49 = vpop.f32.mrf.mxu0  ;;  %v6060_v54 = vadd.f32 %v10887_v42, %v15613_v31  ;;  %v9002_v31 = vrot.slane %v9000_v45, 1  ;;  %vm17415_vm3 = vmmov %vm17406_vm2 }
 0x375   : > { %v15809_v60 = vadd.f32 %v6546_v49, %v6053_v46  ;;  %v5989_v56 = vpop.f32.mrf.mxu1  ;;  %vm17419_vm12 = vmmov %vm17411_vm5 }
 0x376   : > { %v10921_v21 = vpop.f32.mrf.mxu0  ;;  %v6058_v23 = vadd.f32 %v5989_v56, %v15619_v5  ;;  %v9011_v5 = vrot.slane %v9009_v3, 1  ;;  %v9006_v42 = vor.u32 %v9005_v38, %v9002_v31  ;;  %v17400_v31 = vld [vmem:[#allocation31_spill] sm:$0xff] }
 0x377   : > { %v15813_v12 = vadd.f32 %v10921_v21, %v6056_v63  ;;  %v10890_v47 = vpop.f32.mrf.mxu1  ;;  %11105 = vmatmul.mubr.msk.bf16.gmra.mxu1 %vm17393_vm1, %v17392_v4  ;;  %v11435_v63 = vld [vmem:[%s11530_s12 + $0x70] sm:$0xff]   ;;  %v9020_v21 = vrot.slane %v9018_v61, 1  ;;  %v9036_v61 = vshrl.u32 %v11436_v16, 16  ;;  %vm17416_vm1 = vmmov %vm17406_vm2 }
 0x378   : > { %v6549_v50 = vpop.f32.mrf.mxu0  ;;  %v6063_v46 = vadd.f32 %v10890_v47, %v15628_v33  ;;  %11108 = vmatprep.mubr.msk.bf16.mxu1 %vm17395_vm7, %v17394_v30  ;;  %v9015_v45 = vor.u32 %v9014_v24, %v9011_v5  ;;  %v9027_v55 = vshrl.u32 %v11435_v63, 16  ;;  %v9030_v49 = vshll.u32 %v11435_v63, 16  ;;  %v17403_v30 = vld [vmem:[#allocation26_spill] sm:$0xff]  ;;  %vm17417_vm7 = vmmov %vm17399_vm0 }
 0x379   : > { %v15823_v57 = vadd.f32 %v6549_v50, %v6054_v27  ;;  %v6002_v6 = vpop.f32.mrf.mxu1  ;;  %v9007_v47 = vsel %vm17399_vm0, %v8997_v37, %v9006_v42  ;;  %v17402_v50 = vld [vmem:[#allocation36_spill] sm:$0xff]  ;;  %v17407_v37 = vld [vmem:[#allocation46_spill] sm:$0xff] }
 0x37a   : > { %v10924_v36 = vpop.f32.mrf.mxu0  ;;  %11139 = vmatmul.mubr.msk.bf16.gmra.mxu0 %vm17397_vm15, %v8989_v1  ;;  %v6061_v40 = vadd.f32 %v6002_v6, %v15633_v51  ;;  %v9032_v5 = vrot.slane %v9030_v49, 2  ;;  %v11439_v49 = vld [vmem:[#allocation2 + $0xa4] ss:$0 sps:$4 sm:$0x33]   ;;  %vm17420_vm15 = vmmov %vm17399_vm0 }
 0x37b   : > { %v15827_v33 = vadd.f32 %v10924_v36, %v6059_v18  ;;  %11142 = vmatprep.mubr.msk.bf16.mxu0 %vm17398_vm14, %v8998_v7  ;;  %v10891_v10 = vpop.f32.mrf.mxu1  ;;  %v9023_v18 = vrot.slane %v9021_v62, 2  ;;  %v9029_v7 = vrot.slane %v9027_v55, 1  ;;  %v9039_v62 = vshll.u32 %v11436_v16, 16  ;;  %vm17422_vm14 = vmmov %vm17411_vm5 }
 0x37c   : > { %v6562_v8 = vpop.f32.mrf.mxu0  ;;  %v6064_v27 = vadd.f32 %v10891_v10, %v15639_v59  ;;  %v11437_v59 = vld [vmem:[%s11530_s12 + $0x80] sm:$0xff]   ;;  %vm17423_vm0 = vmmov %vm17416_vm1 }
 0x37d   : > { %v15831_v3 = vadd.f32 %v6562_v8, %v6057_v15  ;;  %v6005_v13 = vpop.f32.mrf.mxu1  ;;  %v9024_v36 = vor.u32 %v9023_v18, %v9020_v21  ;;  %v9048_v55 = vshll.u32 %v11437_v59, 16  ;;  %v9038_v18 = vrot.slane %v9036_v61, 1 }
 0x37e   : > { %v10925_v51 = vpop.f32.mrf.mxu0  ;;  %v6062_v56 = vadd.f32 %v6005_v13, %v15650_v11  ;;  %v9016_v11 = vsel %vm17405_vm8, %v9006_v42, %v9015_v45  ;;  %v9045_v42 = vshrl.u32 %v11437_v59, 16  ;;  %v9041_v16 = vrot.slane %v9039_v62, 2  ;;  %vm17427_vm8 = vmmov %vm17409_vm4 }
 0x37f   : > { %v15835_v1 = vadd.f32 %v10925_v51, %v6060_v54  ;;  %v10894_v4 = vpop.f32.mrf.mxu1  ;;  %11109 = vmatmul.mubr.msk.bf16.gmra.mxu1 %vm17401_vm11, %v17400_v31  ;;  %v9033_v51 = vor.u32 %v9032_v5, %v9029_v7  ;;  %v9025_v21 = vsel %vm17409_vm4, %v9015_v45, %v9024_v36  ;;  %v8451_v45 = vshll.u32 %v11439_v49, 16  ;;  %vm17424_vm11 = vmmov %vm17423_vm0 }
 0x380   : > { %v6565_v38 = vpop.f32.mrf.mxu0  ;;  %v6067_v15 = vadd.f32 %v10894_v4, %v17402_v50  ;;  %11112 = vmatprep.mubr.msk.bf16.mxu1 %vm17404_vm10, %v17403_v30  ;;  %v17410_v30 = vld [vmem:[#allocation37_spill] sm:$0xff]  ;;  %vm17426_vm10 = vmmov %vm17409_vm4 }
 0x381   : > { %v15845_v24 = vadd.f32 %v6565_v38, %v6058_v23  ;;  %v6018_v54 = vpop.f32.mrf.mxu1  ;;  %v11438_v38 = vld [vmem:[%s11530_s12 + $0x88] sm:$0xff]  }
 0x382   : > { %v10928_v63 = vpop.f32.mrf.mxu0  ;;  %11143 = vmatmul.mubr.msk.bf16.gmra.mxu0 %vm17406_vm2, %v9007_v47  ;;  %v6065_v6 = vadd.f32 %v6018_v54, %v17407_v37  ;;  %v17412_v54 = vld [vmem:[#allocation34_spill] sm:$0xff]  ;;  %vm17428_vm2 = vmmov %vm17411_vm5 }
 0x383   : > { %v15849_v10 = vadd.f32 %v10928_v63, %v6063_v46  ;;  %11146 = vmatprep.mubr.msk.bf16.mxu0 %vm17408_vm9, %v9016_v11  ;;  %v10895_v8 = vpop.f32.mrf.mxu1  ;;  %v9050_v11 = vrot.slane %v9048_v55, 2  ;;  %v11440_v63 = vld [vmem:[%s11530_s12 + $0x90] sm:$0xff]   ;;  %vm17429_vm9 = vmmov %vm17409_vm4 }
 0x384   : > { %v6578_v23 = vpop.f32.mrf.mxu0  ;;  %v6068_v13 = vadd.f32 %v10895_v8, %v15674_v58  ;;  %v9047_v58 = vrot.slane %v9045_v42, 1  ;;  %v9042_v8 = vor.u32 %v9041_v16, %v9038_v18  ;;  %v9054_v42 = vshrl.u32 %v11438_v38, 16  ;;  %vm17430_vm4 = vmmov %vm17423_vm0 }
 0x385   : > { %v15853_v4 = vadd.f32 %v6578_v23, %v6061_v40  ;;  %v6021_v47 = vpop.f32.mrf.mxu1  ;;  %v8448_v40 = vshrl.u32 %v11439_v49, 16 }
 0x386   : > { %v10929_v31 = vpop.f32.mrf.mxu0  ;;  %v6066_v46 = vadd.f32 %v6021_v47, %v15685_v0  ;;  %v9034_v0 = vsel %vm17414_vm13, %v9024_v36, %v9033_v51  ;;  %v9051_v23 = vor.u32 %v9050_v11, %v9047_v58  ;;  %v9057_v47 = vshll.u32 %v11438_v38, 16  ;;  %v17418_v38 = vld [vmem:[#allocation27_spill] sm:$0xff]  ;;  %vm17433_vm13 = vmmov %vm17423_vm0 }
 0x387   : > { %v15858_v50 = vadd.f32 %v10929_v31, %v6064_v27  ;;  %v10938_v59 = vpop.f32.mrf.mxu1  ;;  %11113 = vmatmul.mubr.msk.bf16.gmra.mxu1 %vm17411_vm5, %v17410_v30  ;;  %v8450_v36 = vrot.slane %v8448_v40, 1  ;;  %v8453_v31 = vrot.slane %v8451_v45, 2  ;;  %v9066_v30 = vshll.u32 %v11440_v63, 16  ;;  %v17421_v45 = vld [vmem:[#allocation40_spill] sm:$0xff]  ;;  %vm17431_vm5 = vmmov %vm17423_vm0 }
 0x388   : > { %v6581_v7 = vpop.f32.mrf.mxu0  ;;  %v6905_v5 = vadd.f32 %v10938_v59, %v15691_v25  ;;  %11116 = vmatprep.mubr.msk.bf16.mxu1 %vm17413_vm6, %v17412_v54  ;;  %v9063_v59 = vshrl.u32 %v11440_v63, 16  ;;  %v9052_v11 = vsel %vm17420_vm15, %v9042_v8, %v9051_v23  ;;  %v9059_v40 = vrot.slane %v9057_v47, 2  ;;  %v11441_v54 = vld [vmem:[%s11530_s12 + $0x98] ss:$0 sps:$4 sm:$0x33]   ;;  %vm17432_vm6 = vmmov %vm17417_vm7 }
 0x389   : > { %v15867_v37 = vadd.f32 %v6581_v7, %v6062_v56  ;;  %v6760_v27 = vpop.f32.mrf.mxu1  ;;  %v9072_v47 = vshrl.u32 %v11441_v54, 16 }
 0x38a   : > { %v10932_v61 = vpop.f32.mrf.mxu0  ;;  %11147 = vmatmul.mubr.msk.bf16.gmra.mxu0 %vm17415_vm3, %v9025_v21  ;;  %v6903_v62 = vadd.f32 %v6760_v27, %v15696_v39  ;;  %v9065_v63 = vrot.slane %v9063_v59, 1  ;;  %vm17434_vm3 = vmmov %vm17428_vm2 }
 0x38b   : > { %v15871_v55 = vadd.f32 %v10932_v61, %v6067_v15  ;;  %11150 = vmatprep.mubr.msk.bf16.mxu0 %vm17416_vm1, %v9034_v0  ;;  %v10939_v25 = vpop.f32.mrf.mxu1  ;;  %v9043_v15 = vsel %vm17417_vm7, %v9033_v51, %v9042_v8  ;;  %v8454_v51 = vor.u32 %v8453_v31, %v8450_v36  ;;  %v17425_v31 = vld [vmem:[#allocation44_spill] sm:$0xff]  ;;  %vm17435_vm1 = vmmov %vm17428_vm2 }
 0x38c   : > { %v6594_v49 = vpop.f32.mrf.mxu0  ;;  %v6906_v56 = vadd.f32 %v10939_v25, %v15701_v2  ;;  %v9056_v2 = vrot.slane %v9054_v42, 1  ;;  %vm17436_vm7 = vmmov %vm17435_vm1 }
 0x38d   : > { %v15875_v21 = vadd.f32 %v6594_v49, %v6065_v6  ;;  %v6763_v39 = vpop.f32.mrf.mxu1  ;;  %v9075_v49 = vshll.u32 %v11441_v54, 16  ;;  %vm17438_vm15 = vmmov %vm17435_vm1 }
 0x38e   : > { %v10933_v18 = vpop.f32.mrf.mxu0  ;;  %v6904_v16 = vadd.f32 %v6763_v39, %v15710_v17  ;;  %v9068_v17 = vrot.slane %v9066_v30, 2 }
 0x38f   : > { %v15879_v7 = vadd.f32 %v10933_v18, %v6068_v13  ;;  %v10942_v58 = vpop.f32.mrf.mxu1  ;;  %11117 = vmatmul.mubr.msk.bf16.gmra.mxu1 %vm17419_vm12, %v17418_v38  ;;  %vm17437_vm12 = vmmov %vm17435_vm1 }
 0x390   : > { %v6597_v0 = vpop.f32.mrf.mxu0  ;;  %v6909_v6 = vadd.f32 %v10942_v58, %v15717_v44  ;;  %11120 = vmatprep.mubr.msk.bf16.mxu1 %vm17422_vm14, %v17421_v45  ;;  %v9060_v44 = vor.u32 %v9059_v40, %v9056_v2  ;;  %v9069_v59 = vor.u32 %v9068_v17, %v9065_v63  ;;  %v9077_v2 = vrot.slane %v9075_v49, 2  ;;  %vm17439_vm14 = vmmov %vm17435_vm1 }
 0x391   : > { %v15888_v13 = vadd.f32 %v6597_v0, %v6066_v46  ;;  %v6776_v27 = vpop.f32.mrf.mxu1  ;;  %v8455_v46 = vsel %vm17426_vm10, %v17425_v31, %v8454_v51 }
 0x392   : > { %v10976_v61 = vpop.f32.mrf.mxu0  ;;  %11151 = vmatmul.mubr.msk.bf16.gmra.mxu0 %vm17423_vm0, %v9043_v15  ;;  %v6907_v8 = vadd.f32 %v6776_v27, %v15721_v43  ;;  %v9061_v58 = vsel %vm17427_vm8, %v9051_v23, %v9060_v44  ;;  %v9070_v54 = vsel %vm17429_vm9, %v9060_v44, %v9069_v59  ;;  %vm17440_vm0 = vmmov %vm17435_vm1 }
 0x393   : > { %v15892_v42 = vadd.f32 %v10976_v61, %v6905_v5  ;;  %11154 = vmatprep.mubr.msk.bf16.mxu0 %vm17424_vm11, %v9052_v11  ;;  %v10943_v25 = vpop.f32.mrf.mxu1  ;;  %v9074_v11 = vrot.slane %v9072_v47, 1  ;;  %vm17441_vm11 = vmmov %vm17440_vm0 }
 0x394   : > { %v7314_v39 = vpop.f32.mrf.mxu0  ;;  %v6910_v36 = vadd.f32 %v10943_v25, %v15724_v32  ;;  %vm17442_vm10 = vmmov %vm17440_vm0 }
 0x395   : > { %v15898_v30 = vadd.f32 %v7314_v39, %v6903_v62  ;;  %v6779_v18 = vpop.f32.mrf.mxu1  ;;  %v9078_v51 = vor.u32 %v9077_v2, %v9074_v11  ;;  %vm17443_vm8 = vmmov %vm17440_vm0 }
 0x396   : > { %v10977_v15 = vpop.f32.mrf.mxu0  ;;  %v6908_v43 = vadd.f32 %v6779_v18, %v15735_v35  ;;  %vm17445_vm9 = vmmov %vm17440_vm0 }
 0x397   : > { %v15901_v5 = vadd.f32 %v10977_v15, %v6906_v56  ;;  %v10946_v38 = vpop.f32.mrf.mxu1  ;;  %11121 = vmatmul.mubr.msk.bf16.gmra.mxu1 %vm17428_vm2, %v8455_v46  ;;  %v9079_v44 = vsel %vm17432_vm6, %v9069_v59, %v9078_v51  ;;  %vm17444_vm2 = vmmov %vm17440_vm0 }
 0x398   : > { %v7317_v32 = vpop.f32.mrf.mxu0  ;;  %v6913_v40 = vadd.f32 %v10946_v38, %v15739_v20  ;;  %vm17448_vm6 = vmmov %vm17440_vm0 }
 0x399   : > { %v15907_v62 = vadd.f32 %v7317_v32, %v6904_v16  ;;  %v6792_v0 = vpop.f32.mrf.mxu1 }
 0x39a   : > { %v10980_v45 = vpop.f32.mrf.mxu0  ;;  %11155 = vmatmul.mubr.msk.bf16.gmra.mxu0 %vm17430_vm4, %v9061_v58  ;;  %v6911_v35 = vadd.f32 %v6792_v0, %v15743_v53  ;;  %vm17446_vm4 = vmmov %vm17440_vm0 }
 0x39b   : > { %v15911_v56 = vadd.f32 %v10980_v45, %v6909_v6  ;;  %11158 = vmatprep.mubr.msk.bf16.mxu0 %vm17431_vm5, %v9070_v54  ;;  %v10947_v23 = vpop.f32.mrf.mxu1  ;;  %vm17447_vm5 = vmmov %vm17440_vm0 }
 0x39c   : > { %v7330_v63 = vpop.f32.mrf.mxu0  ;;  %v6914_v17 = vadd.f32 %v10947_v23, %v15746_v26 }
 0x39d   : > { %v15915_v20 = vadd.f32 %v7330_v63, %v6907_v8  ;;  %v6795_v27 = vpop.f32.mrf.mxu1 }
 0x39e   : > { %v10981_v16 = vpop.f32.mrf.mxu0  ;;  %v6912_v61 = vadd.f32 %v6795_v27, %v15757_v41 }
 0x39f   : > { %v15918_v25 = vadd.f32 %v10981_v16, %v6910_v36  ;;  %v10950_v53 = vpop.f32.mrf.mxu1 }
 0x3a0   : > { %v7333_v6 = vpop.f32.mrf.mxu0  ;;  %v6917_v47 = vadd.f32 %v10950_v53, %v15761_v34 }
 0x3a1   : > { %v15922_v49 = vadd.f32 %v7333_v6, %v6908_v43  ;;  %v6808_v39 = vpop.f32.mrf.mxu1 }
 0x3a2   : > { %v10984_v31 = vpop.f32.mrf.mxu0  ;;  %11159 = vmatmul.mubr.msk.bf16.gmra.mxu0 %vm17433_vm13, %v9079_v44  ;;  %v6915_v26 = vadd.f32 %v6808_v39, %v15765_v22  ;;  %vm17449_vm13 = vmmov %vm17440_vm0 }
 0x3a3   : > { %v15926_v8 = vadd.f32 %v10984_v31, %v6913_v40  ;;  %v10951_v46 = vpop.f32.mrf.mxu1 }
 0x3a4   : > { %v7346_v41 = vpop.f32.mrf.mxu0  ;;  %v6918_v36 = vadd.f32 %v10951_v46, %v15768_v48 }
 0x3a5   : > { %v15929_v18 = vadd.f32 %v7346_v41, %v6911_v35  ;;  %v6811_v59 = vpop.f32.mrf.mxu1 }
 0x3a6   : > { %v10985_v15 = vpop.f32.mrf.mxu0  ;;  %v6916_v34 = vadd.f32 %v6811_v59, %v15779_v28 }
 0x3a7   : > { %v15932_v43 = vadd.f32 %v10985_v15, %v6914_v17  ;;  %v10954_v58 = vpop.f32.mrf.mxu1 }
 0x3a8   : > { %v7349_v38 = vpop.f32.mrf.mxu0  ;;  %v6921_v11 = vadd.f32 %v10954_v58, %v15783_v9 }
 0x3a9   : > { %v15935_v2 = vadd.f32 %v7349_v38, %v6912_v61  ;;  %v6824_v22 = vpop.f32.mrf.mxu1 }
 0x3aa   : > { %v10988_v32 = vpop.f32.mrf.mxu0  ;;  %v6919_v40 = vadd.f32 %v6824_v22, %v15787_v29 }
 0x3ab   : > { %v15938_v54 = vadd.f32 %v10988_v32, %v6917_v47  ;;  %v10955_v48 = vpop.f32.mrf.mxu1 }
 0x3ac   : > { %v7362_v0 = vpop.f32.mrf.mxu0  ;;  %v6922_v45 = vadd.f32 %v10955_v48, %v15790_v19 }
 0x3ad   : > { %v15941_v35 = vadd.f32 %v7362_v0, %v6915_v26  ;;  %v6827_v28 = vpop.f32.mrf.mxu1 }
 0x3ae   : > { %v10989_v23 = vpop.f32.mrf.mxu0  ;;  %v6920_v51 = vadd.f32 %v6827_v28, %v15801_v14 }
 0x3af   : > { %v15944_v63 = vadd.f32 %v10989_v23, %v6918_v36  ;;  %v10958_v9 = vpop.f32.mrf.mxu1 }
 0x3b0   : > { %v7365_v17 = vpop.f32.mrf.mxu0  ;;  %v6925_v27 = vadd.f32 %v10958_v9, %v15805_v52 }
 0x3b1   : > { %v15947_v16 = vadd.f32 %v7365_v17, %v6916_v34  ;;  %v6840_v29 = vpop.f32.mrf.mxu1 }
 0x3b2   : > { %v10992_v61 = vpop.f32.mrf.mxu0  ;;  %v6923_v44 = vadd.f32 %v6840_v29, %v15809_v60 }
 0x3b3   : > { %v15950_v53 = vadd.f32 %v10992_v61, %v6921_v11  ;;  %v10959_v19 = vpop.f32.mrf.mxu1 }
 0x3b4   : > { %v7378_v6 = vpop.f32.mrf.mxu0  ;;  %v6926_v47 = vadd.f32 %v10959_v19, %v15813_v12 }
 0x3b5   : > { %v15953_v39 = vadd.f32 %v7378_v6, %v6919_v40  ;;  %v6843_v14 = vpop.f32.mrf.mxu1 }
 0x3b6   : > { %v10993_v31 = vpop.f32.mrf.mxu0  ;;  %v6924_v26 = vadd.f32 %v6843_v14, %v15823_v57 }
 0x3b7   : > { %v15956_v46 = vadd.f32 %v10993_v31, %v6922_v45  ;;  %v10962_v52 = vpop.f32.mrf.mxu1 }
 0x3b8   : > { %v7381_v41 = vpop.f32.mrf.mxu0  ;;  %v6929_v36 = vadd.f32 %v10962_v52, %v15827_v33 }
 0x3b9   : > { %v15959_v59 = vadd.f32 %v7381_v41, %v6920_v51  ;;  %v6856_v60 = vpop.f32.mrf.mxu1 }
 0x3ba   : > { %v10996_v15 = vpop.f32.mrf.mxu0  ;;  %v6927_v34 = vadd.f32 %v6856_v60, %v15831_v3 }
 0x3bb   : > { %v15962_v58 = vadd.f32 %v10996_v15, %v6925_v27  ;;  %v10963_v12 = vpop.f32.mrf.mxu1 }
 0x3bc   : > { %v7394_v38 = vpop.f32.mrf.mxu0  ;;  %v6930_v11 = vadd.f32 %v10963_v12, %v15835_v1 }
 0x3bd   : > { %v15965_v22 = vadd.f32 %v7394_v38, %v6923_v44  ;;  %v6859_v57 = vpop.f32.mrf.mxu1 }
 0x3be   : > { %v10997_v32 = vpop.f32.mrf.mxu0  ;;  %v6928_v40 = vadd.f32 %v6859_v57, %v15845_v24 }
 0x3bf   : > { %v15968_v48 = vadd.f32 %v10997_v32, %v6926_v47  ;;  %v10966_v33 = vpop.f32.mrf.mxu1 }
 0x3c0   : > { %v7397_v0 = vpop.f32.mrf.mxu0  ;;  %v6933_v45 = vadd.f32 %v10966_v33, %v15849_v10 }
 0x3c1   : > { %v15971_v28 = vadd.f32 %v7397_v0, %v6924_v26  ;;  %v6872_v3 = vpop.f32.mrf.mxu1 }
 0x3c2   : > { %v11000_v23 = vpop.f32.mrf.mxu0  ;;  %v6931_v51 = vadd.f32 %v6872_v3, %v15853_v4 }
 0x3c3   : > { %v15974_v9 = vadd.f32 %v11000_v23, %v6929_v36  ;;  %v10967_v1 = vpop.f32.mrf.mxu1 }
 0x3c4   : > { %v7410_v17 = vpop.f32.mrf.mxu0  ;;  %v6934_v27 = vadd.f32 %v10967_v1, %v15858_v50 }
 0x3c5   : > { %v15977_v29 = vadd.f32 %v7410_v17, %v6927_v34  ;;  %v6875_v24 = vpop.f32.mrf.mxu1 }
 0x3c6   : > { %v11001_v61 = vpop.f32.mrf.mxu0  ;;  %v6932_v44 = vadd.f32 %v6875_v24, %v15867_v37 }
 0x3c7   : > { %v15980_v19 = vadd.f32 %v11001_v61, %v6930_v11  ;;  %v10970_v10 = vpop.f32.mrf.mxu1 }
 0x3c8   : > { %v7413_v6 = vpop.f32.mrf.mxu0  ;;  %v6937_v47 = vadd.f32 %v10970_v10, %v15871_v55 }
 0x3c9   : > { %v15983_v14 = vadd.f32 %v7413_v6, %v6928_v40  ;;  %v6888_v4 = vpop.f32.mrf.mxu1 }
 0x3ca   : > { %v11004_v31 = vpop.f32.mrf.mxu0  ;;  %v6935_v26 = vadd.f32 %v6888_v4, %v15875_v21 }
 0x3cb   : > { %v15986_v52 = vadd.f32 %v11004_v31, %v6933_v45  ;;  %v10971_v50 = vpop.f32.mrf.mxu1 }
 0x3cc   : > { %v7426_v41 = vpop.f32.mrf.mxu0  ;;  %v6938_v36 = vadd.f32 %v10971_v50, %v15879_v7 }
 0x3cd   : > { %v15989_v60 = vadd.f32 %v7426_v41, %v6931_v51  ;;  %v6891_v37 = vpop.f32.mrf.mxu1 }
 0x3ce   : > { %v11005_v15 = vpop.f32.mrf.mxu0  ;;  %v6936_v34 = vadd.f32 %v6891_v37, %v15888_v13 }
 0x3cf   : > { %v15992_v12 = vadd.f32 %v11005_v15, %v6934_v27  ;;  %v11014_v55 = vpop.f32.mrf.mxu1 }
 0x3d0   : > { %v7429_v38 = vpop.f32.mrf.mxu0  ;;  %v8013_v11 = vadd.f32 %v11014_v55, %v15892_v42 }
 0x3d1   : > { %v15995_v57 = vadd.f32 %v7429_v38, %v6932_v44  ;;  %v7868_v21 = vpop.f32.mrf.mxu1 }
 0x3d2   : > { %v11008_v32 = vpop.f32.mrf.mxu0  ;;  %v8011_v40 = vadd.f32 %v7868_v21, %v15898_v30 }
 0x3d3   : > { %v15998_v33 = vadd.f32 %v11008_v32, %v6937_v47  ;;  %v11015_v7 = vpop.f32.mrf.mxu1 }
 0x3d4   : > { %v7442_v0 = vpop.f32.mrf.mxu0  ;;  %v8014_v45 = vadd.f32 %v11015_v7, %v15901_v5 }
 0x3d5   : > { %v16001_v3 = vadd.f32 %v7442_v0, %v6935_v26  ;;  %v7871_v13 = vpop.f32.mrf.mxu1 }
 0x3d6   : > { %v11009_v23 = vpop.f32.mrf.mxu0  ;;  %v8012_v51 = vadd.f32 %v7871_v13, %v15907_v62 }
 0x3d7   : > { %v16004_v1 = vadd.f32 %v11009_v23, %v6938_v36  ;;  %v11018_v42 = vpop.f32.mrf.mxu1 }
 0x3d8   : > { %v7445_v17 = vpop.f32.mrf.mxu0  ;;  %v8017_v27 = vadd.f32 %v11018_v42, %v15911_v56 }
 0x3d9   : > { %v16007_v24 = vadd.f32 %v7445_v17, %v6936_v34  ;;  %v7884_v30 = vpop.f32.mrf.mxu1 }
 0x3da   : > { %v11052_v61 = vpop.f32.mrf.mxu0  ;;  %v8015_v44 = vadd.f32 %v7884_v30, %v15915_v20 }
 0x3db   : > { %v16010_v10 = vadd.f32 %v11052_v61, %v8013_v11  ;;  %v11019_v5 = vpop.f32.mrf.mxu1 }
 0x3dc   : > { %v8185_v6 = vpop.f32.mrf.mxu0  ;;  %v8018_v47 = vadd.f32 %v11019_v5, %v15918_v25 }
 0x3dd   : > { %v16013_v4 = vadd.f32 %v8185_v6, %v8011_v40  ;;  %v7887_v62 = vpop.f32.mrf.mxu1 }
 0x3de   : > { %v11053_v31 = vpop.f32.mrf.mxu0  ;;  %v8016_v26 = vadd.f32 %v7887_v62, %v15922_v49 }
 0x3df   : > { %v16016_v50 = vadd.f32 %v11053_v31, %v8014_v45  ;;  %v11022_v56 = vpop.f32.mrf.mxu1 }
 0x3e0   : > { %v8188_v41 = vpop.f32.mrf.mxu0  ;;  %v8021_v36 = vadd.f32 %v11022_v56, %v15926_v8 }
 0x3e1   : > { %v16019_v37 = vadd.f32 %v8188_v41, %v8012_v51  ;;  %v7900_v20 = vpop.f32.mrf.mxu1 }
 0x3e2   : > { %v11056_v15 = vpop.f32.mrf.mxu0  ;;  %v8019_v34 = vadd.f32 %v7900_v20, %v15929_v18 }
 0x3e3   : > { %v16022_v55 = vadd.f32 %v11056_v15, %v8017_v27  ;;  %v11023_v25 = vpop.f32.mrf.mxu1 }
 0x3e4   : > { %v8201_v38 = vpop.f32.mrf.mxu0  ;;  %v8022_v11 = vadd.f32 %v11023_v25, %v15932_v43 }
 0x3e5   : > { %v16025_v21 = vadd.f32 %v8201_v38, %v8015_v44  ;;  %v7903_v49 = vpop.f32.mrf.mxu1 }
 0x3e6   : > { %v11057_v32 = vpop.f32.mrf.mxu0  ;;  %v8020_v40 = vadd.f32 %v7903_v49, %v15935_v2 }
 0x3e7   : > { %v16028_v7 = vadd.f32 %v11057_v32, %v8018_v47  ;;  %v11026_v8 = vpop.f32.mrf.mxu1 }
 0x3e8   : > { %v8204_v0 = vpop.f32.mrf.mxu0  ;;  %v8025_v45 = vadd.f32 %v11026_v8, %v15938_v54 }
 0x3e9   : > { %v16031_v13 = vadd.f32 %v8204_v0, %v8016_v26  ;;  %v7916_v18 = vpop.f32.mrf.mxu1 }
 0x3ea   : > { %v11060_v23 = vpop.f32.mrf.mxu0  ;;  %v8023_v51 = vadd.f32 %v7916_v18, %v15941_v35 }
 0x3eb   : > { %v16034_v42 = vadd.f32 %v11060_v23, %v8021_v36  ;;  %v11027_v43 = vpop.f32.mrf.mxu1 }
 0x3ec   : > { %v8217_v17 = vpop.f32.mrf.mxu0  ;;  %v8026_v27 = vadd.f32 %v11027_v43, %v15944_v63 }
 0x3ed   : > { %v16037_v30 = vadd.f32 %v8217_v17, %v8019_v34  ;;  %v7919_v2 = vpop.f32.mrf.mxu1 }
 0x3ee   : > { %v11061_v61 = vpop.f32.mrf.mxu0  ;;  %v8024_v44 = vadd.f32 %v7919_v2, %v15947_v16 }
 0x3ef   : > { %v16040_v5 = vadd.f32 %v11061_v61, %v8022_v11  ;;  %v11030_v54 = vpop.f32.mrf.mxu1 }
 0x3f0   : > { %v8220_v6 = vpop.f32.mrf.mxu0  ;;  %v8029_v47 = vadd.f32 %v11030_v54, %v15950_v53 }
 0x3f1   : > { %v16043_v62 = vadd.f32 %v8220_v6, %v8020_v40  ;;  %v7932_v35 = vpop.f32.mrf.mxu1 }
 0x3f2   : > { %v11064_v31 = vpop.f32.mrf.mxu0  ;;  %v8027_v26 = vadd.f32 %v7932_v35, %v15953_v39 }
 0x3f3   : > { %v16046_v56 = vadd.f32 %v11064_v31, %v8025_v45  ;;  %v11031_v63 = vpop.f32.mrf.mxu1 }
 0x3f4   : > { %v8233_v41 = vpop.f32.mrf.mxu0  ;;  %v8030_v36 = vadd.f32 %v11031_v63, %v15956_v46 }
 0x3f5   : > { %v16049_v20 = vadd.f32 %v8233_v41, %v8023_v51  ;;  %v7935_v16 = vpop.f32.mrf.mxu1 }
 0x3f6   : > { %v11065_v15 = vpop.f32.mrf.mxu0  ;;  %v8028_v34 = vadd.f32 %v7935_v16, %v15959_v59 }
 0x3f7   : > { %v16052_v25 = vadd.f32 %v11065_v15, %v8026_v27  ;;  %v11034_v53 = vpop.f32.mrf.mxu1 }
 0x3f8   : > { %v8236_v38 = vpop.f32.mrf.mxu0  ;;  %v8033_v11 = vadd.f32 %v11034_v53, %v15962_v58 }
 0x3f9   : > { %v16055_v49 = vadd.f32 %v8236_v38, %v8024_v44  ;;  %v7948_v39 = vpop.f32.mrf.mxu1 }
 0x3fa   : > { %v11068_v32 = vpop.f32.mrf.mxu0  ;;  %v8031_v40 = vadd.f32 %v7948_v39, %v15965_v22 }
 0x3fb   : > { %v16058_v8 = vadd.f32 %v11068_v32, %v8029_v47  ;;  %v11035_v46 = vpop.f32.mrf.mxu1 }
 0x3fc   : > { %v8249_v0 = vpop.f32.mrf.mxu0  ;;  %v8034_v45 = vadd.f32 %v11035_v46, %v15968_v48 }
 0x3fd   : > { %v16061_v18 = vadd.f32 %v8249_v0, %v8027_v26  ;;  %v7951_v59 = vpop.f32.mrf.mxu1 }
 0x3fe   : > { %v11069_v23 = vpop.f32.mrf.mxu0  ;;  %v8032_v51 = vadd.f32 %v7951_v59, %v15971_v28 }
 0x3ff   : > { %v16064_v43 = vadd.f32 %v11069_v23, %v8030_v36  ;;  %v11038_v58 = vpop.f32.mrf.mxu1 }
 0x400   : > { %v8252_v17 = vpop.f32.mrf.mxu0  ;;  %v8037_v27 = vadd.f32 %v11038_v58, %v15974_v9 }
 0x401   : > { %v16067_v2 = vadd.f32 %v8252_v17, %v8028_v34  ;;  %v7964_v22 = vpop.f32.mrf.mxu1 }
 0x402   : > { %v11072_v61 = vpop.f32.mrf.mxu0  ;;  %v8035_v44 = vadd.f32 %v7964_v22, %v15977_v29 }
 0x403   : > { %v16070_v54 = vadd.f32 %v11072_v61, %v8033_v11  ;;  %v11039_v48 = vpop.f32.mrf.mxu1 }
 0x404   : > { %v8265_v6 = vpop.f32.mrf.mxu0  ;;  %v8038_v47 = vadd.f32 %v11039_v48, %v15980_v19 }
 0x405   : > { %v16073_v35 = vadd.f32 %v8265_v6, %v8031_v40  ;;  %v7967_v28 = vpop.f32.mrf.mxu1 }
 0x406   : > { %v11073_v31 = vpop.f32.mrf.mxu0  ;;  %v8036_v26 = vadd.f32 %v7967_v28, %v15983_v14 }
 0x407   : > { %v16076_v63 = vadd.f32 %v11073_v31, %v8034_v45  ;;  %v11042_v9 = vpop.f32.mrf.mxu1 }
 0x408   : > { %v8268_v41 = vpop.f32.mrf.mxu0  ;;  %v8041_v36 = vadd.f32 %v11042_v9, %v15986_v52 }
 0x409   : > { %v16079_v16 = vadd.f32 %v8268_v41, %v8032_v51  ;;  %v7980_v29 = vpop.f32.mrf.mxu1 }
 0x40a   : > { %v11076_v15 = vpop.f32.mrf.mxu0  ;;  %v8039_v34 = vadd.f32 %v7980_v29, %v15989_v60 }
 0x40b   : > { %v16082_v53 = vadd.f32 %v11076_v15, %v8037_v27  ;;  %v11043_v19 = vpop.f32.mrf.mxu1 }
 0x40c   : > { %v8281_v38 = vpop.f32.mrf.mxu0  ;;  %v8042_v11 = vadd.f32 %v11043_v19, %v15992_v12 }
 0x40d   : > { %v16085_v39 = vadd.f32 %v8281_v38, %v8035_v44  ;;  %v7983_v14 = vpop.f32.mrf.mxu1  ;;  %v16120_v38 = vld [vmem:[%s16317_s6] ss:$0 sm:$0xff] }
 0x40e   : > { %v11077_v32 = vpop.f32.mrf.mxu0  ;;  %v8040_v40 = vadd.f32 %v7983_v14, %v15995_v57 }
 0x40f   : > { %v16088_v46 = vadd.f32 %v11077_v32, %v8038_v47  ;;  %v11046_v52 = vpop.f32.mrf.mxu1 }
 0x410   : > { %v8284_v0 = vpop.f32.mrf.mxu0  ;;  %v8045_v45 = vadd.f32 %v11046_v52, %v15998_v33 }
 0x411   : > { %v16091_v59 = vadd.f32 %v8284_v0, %v8036_v26  ;;  %v7996_v60 = vpop.f32.mrf.mxu1 }
 0x412   : > { %v11080_v23 = vpop.f32.mrf.mxu0  ;;  %v8043_v51 = vadd.f32 %v7996_v60, %v16001_v3 }
 0x413   : > { %v16094_v58 = vadd.f32 %v11080_v23, %v8041_v36  ;;  %v11047_v12 = vpop.f32.mrf.mxu1 }
 0x414   : > { %v8297_v17 = vpop.f32.mrf.mxu0  ;;  %v8046_v27 = vadd.f32 %v11047_v12, %v16004_v1 }
 0x415   : > { %v16097_v22 = vadd.f32 %v8297_v17, %v8039_v34  ;;  %v7999_v57 = vpop.f32.mrf.mxu1  ;;  %v16114_v34 = vld [vmem:[%s16315_s4] ss:$0 sm:$0xff] }
 0x416   : > { %v11081_v61 = vpop.f32.mrf.mxu0  ;;  %v8044_v44 = vadd.f32 %v7999_v57, %v16007_v24 }
 0x417   : > { %v16100_v48 = vadd.f32 %v11081_v61, %v8042_v11  ;;  %v11090_v33 = vpop.f32.mrf.mxu1 }
 0x418   : > { %v8300_v6 = vpop.f32.mrf.mxu0  ;;  %v8695_v24 = vadd.f32 %v11090_v33, %v16010_v10 }
 0x419   : > { %v16102_v47 = vadd.f32 %v8300_v6, %v8040_v40  ;;  %v8550_v3 = vpop.f32.mrf.mxu1 }
 0x41a   : > { %v11084_v28 = vpop.f32.mrf.mxu0  ;;  %v8693_v14 = vadd.f32 %v8550_v3, %v16013_v4  ;;  %v8738_v10 = vadd.f32 %v16114_v34, %v8695_v24 }
 0x41b   : > { %v16104_v31 = vadd.f32 %v11084_v28, %v8045_v45  ;;  %v11091_v26 = vpop.f32.mrf.mxu1 }
 0x41c   : > { %v8313_v9 = vpop.f32.mrf.mxu0  ;;  %v8696_v52 = vadd.f32 %v11091_v26, %v16016_v50  ;;  %v8736_v23 = vadd.f32 %v16114_v34, %v8693_v14 }
 0x41d   : > { %v16106_v1 = vadd.f32 %v8313_v9, %v8043_v51  ;;  %v8553_v41 = vpop.f32.mrf.mxu1 }
 0x41e   : > { %v11085_v36 = vpop.f32.mrf.mxu0  ;;  %v8694_v51 = vadd.f32 %v8553_v41, %v16019_v37 }
 0x41f   : > { %v16108_v29 = vadd.f32 %v11085_v36, %v8046_v27  ;;  %v11094_v15 = vpop.f32.mrf.mxu1  ;;  %v8739_v27 = vadd.f32 %v16114_v34, %v8696_v52 }
 0x420   : > { %v8316_v19 = vpop.f32.mrf.mxu0  ;;  %v8699_v61 = vadd.f32 %v11094_v15, %v16022_v55  ;;  %v8737_v3 = vadd.f32 %v16114_v34, %v8694_v51 }
 0x421   : > { %v16122_v11 = vadd.f32 %v8316_v19, %v8044_v44  ;;  %v8566_v32 = vpop.f32.mrf.mxu1 }
 0x422   : > { %v11128_v40 = vpop.f32.mrf.mxu0  ;;  %v8697_v28 = vadd.f32 %v8566_v32, %v16025_v21  ;;  %v8742_v36 = vadd.f32 %v16114_v34, %v8699_v61 }
 0x423   : > { %v9180_v0 = vadd.f32 %v11128_v40, %v16120_v38  ;;  %v11095_v45 = vpop.f32.mrf.mxu1 }
 0x424   : > { %v9171_v60 = vpop.f32.mrf.mxu0  ;;  %v8700_v24 = vadd.f32 %v11095_v45, %v16028_v7  ;;  %v8740_v40 = vadd.f32 %v16114_v34, %v8697_v28 }
 0x425   : > { %v9316_v4 = vadd.f32 %v9180_v0, %v8738_v10  ;;  %v9172_v12 = vadd.f32 %v16120_v38, %v9171_v60  ;;  %v8569_v17 = vpop.f32.mrf.mxu1 }
 0x426   : > { %v11129_v50 = vpop.f32.mrf.mxu0  ;;  %v8698_v32 = vadd.f32 %v8569_v17, %v16031_v13  ;;  %v8743_v60 = vadd.f32 %v16114_v34, %v8700_v24 }
 0x427   : > { %9352 = vst.msk [vmem:[%s16131_s22 + $0x10] sm:$0xff] %vm17434_vm3, %v9316_v4  ;;  %v9314_v57 = vadd.f32 %v9172_v12, %v8736_v23  ;;  %v9183_v44 = vadd.f32 %v11129_v50, %v16120_v38  ;;  %v11098_v33 = vpop.f32.mrf.mxu1  ;;  %vm17450_vm3 = vmmov %vm17440_vm0 }
 0x428   : > { %v9174_v6 = vpop.f32.mrf.mxu0  ;;  %v8703_v45 = vadd.f32 %v11098_v33, %v16034_v42  ;;  %v8741_v12 = vadd.f32 %v16114_v34, %v8698_v32 }
 0x429   : > { %9350 = vst.msk [vmem:[%s16131_s22] sm:$0xff] %vm17435_vm1, %v9314_v57  ;;  %v9317_v37 = vadd.f32 %v9183_v44, %v8739_v27  ;;  %v9175_v26 = vadd.f32 %v16120_v38, %v9174_v6  ;;  %v8582_v9 = vpop.f32.mrf.mxu1  ;;  %vm17451_vm1 = vmmov %vm17440_vm0 }
 0x42a   : > { %v11132_v41 = vpop.f32.mrf.mxu0  ;;  %v8701_v17 = vadd.f32 %v8582_v9, %v16037_v30  ;;  %v8746_v61 = vadd.f32 %v16114_v34, %v8703_v45 }
 0x42b   : > { %9353 = vst.msk [vmem:[%s16131_s22 + $0x18] sm:$0xff] %vm17436_vm7, %v9317_v37  ;;  %v9315_v55 = vadd.f32 %v9175_v26, %v8737_v3  ;;  %v9196_v15 = vadd.f32 %v11132_v41, %v16120_v38  ;;  %v11099_v19 = vpop.f32.mrf.mxu1  ;;  %vm17452_vm7 = vmmov %vm17440_vm0 }
 0x42c   : > { %v9187_v14 = vpop.f32.mrf.mxu0  ;;  %v8704_v44 = vadd.f32 %v11099_v19, %v16040_v5  ;;  %v8744_v37 = vadd.f32 %v16114_v34, %v8701_v17 }
 0x42d   : > { %9351 = vst.msk [vmem:[%s16131_s22 + $0x8] sm:$0xff] %vm17437_vm12, %v9315_v55  ;;  %v9320_v21 = vadd.f32 %v9196_v15, %v8742_v36  ;;  %v9188_v10 = vadd.f32 %v16120_v38, %v9187_v14  ;;  %v8585_v52 = vpop.f32.mrf.mxu1  ;;  %vm17453_vm12 = vmmov %vm17440_vm0 }
 0x42e   : > { %v11133_v0 = vpop.f32.mrf.mxu0  ;;  %v8702_v28 = vadd.f32 %v8585_v52, %v16043_v62  ;;  %v8747_v36 = vadd.f32 %v16114_v34, %v8704_v44 }
 0x42f   : > { %9356 = vst.msk [vmem:[%s16131_s22 + $0x30] sm:$0xff] %vm17438_vm15, %v9320_v21  ;;  %v9318_v7 = vadd.f32 %v9188_v10, %v8740_v40  ;;  %v9199_v23 = vadd.f32 %v11133_v0, %v16120_v38  ;;  %v11102_v4 = vpop.f32.mrf.mxu1  ;;  %vm17454_vm15 = vmmov %vm17440_vm0 }
 0x430   : > { %v9190_v51 = vpop.f32.mrf.mxu0  ;;  %v8707_v55 = vadd.f32 %v11102_v4, %v16046_v56  ;;  %v8745_v14 = vadd.f32 %v16114_v34, %v8702_v28 }
 0x431   : > { %9354 = vst.msk [vmem:[%s16131_s22 + $0x20] sm:$0xff] %vm17439_vm14, %v9318_v7  ;;  %v9321_v13 = vadd.f32 %v9199_v23, %v8743_v60  ;;  %v9191_v50 = vadd.f32 %v16120_v38, %v9190_v51  ;;  %v8598_v27 = vpop.f32.mrf.mxu1  ;;  %vm17455_vm14 = vmmov %vm17440_vm0 }
 0x432   : > { %v11136_v57 = vpop.f32.mrf.mxu0  ;;  %v8705_v40 = vadd.f32 %v8598_v27, %v16049_v20  ;;  %v8750_v52 = vadd.f32 %v16114_v34, %v8707_v55 }
 0x433   : > { %9357 = vst.msk [vmem:[%s16131_s22 + $0x38] sm:$0xff] %vm17440_vm0, %v9321_v13  ;;  %v9319_v42 = vadd.f32 %v9191_v50, %v8741_v12  ;;  %v9212_v33 = vadd.f32 %v11136_v57, %v16120_v38  ;;  %v11103_v6 = vpop.f32.mrf.mxu1 }
 0x434   : > { %v9203_v3 = vpop.f32.mrf.mxu0  ;;  %v8708_v0 = vadd.f32 %v11103_v6, %v16052_v25  ;;  %v8748_v23 = vadd.f32 %v16114_v34, %v8705_v40 }
 0x435   : > { %9355 = vst.msk [vmem:[%s16131_s22 + $0x28] sm:$0xff] %vm17441_vm11, %v9319_v42  ;;  %v9324_v30 = vadd.f32 %v9212_v33, %v8746_v61  ;;  %v9204_v26 = vadd.f32 %v16120_v38, %v9203_v3  ;;  %v8601_v9 = vpop.f32.mrf.mxu1  ;;  %vm17456_vm11 = vmmov %vm17440_vm0 }
 0x436   : > { %v11137_v41 = vpop.f32.mrf.mxu0  ;;  %v8706_v4 = vadd.f32 %v8601_v9, %v16055_v49  ;;  %v8751_v17 = vadd.f32 %v16114_v34, %v8708_v0 }
 0x437   : > { %9360 = vst.msk [vmem:[%s16131_s22 + $0x50] sm:$0xff] %vm17442_vm10, %v9324_v30  ;;  %v9322_v5 = vadd.f32 %v9204_v26, %v8744_v37  ;;  %v9215_v24 = vadd.f32 %v11137_v41, %v16120_v38  ;;  %v11106_v15 = vpop.f32.mrf.mxu1  ;;  %vm17457_vm10 = vmmov %vm17440_vm0 }
 0x438   : > { %v9206_v19 = vpop.f32.mrf.mxu0  ;;  %v8711_v50 = vadd.f32 %v11106_v15, %v16058_v8  ;;  %v8749_v42 = vadd.f32 %v16114_v34, %v8706_v4 }
 0x439   : > { %9358 = vst.msk [vmem:[%s16131_s22 + $0x40] sm:$0xff] %vm17443_vm8, %v9322_v5  ;;  %v9325_v62 = vadd.f32 %v9215_v24, %v8747_v36  ;;  %v9207_v21 = vadd.f32 %v16120_v38, %v9206_v19  ;;  %v8614_v32 = vpop.f32.mrf.mxu1  ;;  %vm17458_vm8 = vmmov %vm17440_vm0 }
 0x43a   : > { %v11140_v10 = vpop.f32.mrf.mxu0  ;;  %v8709_v44 = vadd.f32 %v8614_v32, %v16061_v18  ;;  %v8754_v37 = vadd.f32 %v16114_v34, %v8711_v50 }
 0x43b   : > { %9361 = vst.msk [vmem:[%s16131_s22 + $0x58] sm:$0xff] %vm17444_vm2, %v9325_v62  ;;  %v9323_v56 = vadd.f32 %v9207_v21, %v8745_v14  ;;  %v9228_v60 = vadd.f32 %v11140_v10, %v16120_v38  ;;  %v11107_v7 = vpop.f32.mrf.mxu1  ;;  %vm17459_vm2 = vmmov %vm17440_vm0 }
 0x43c   : > { %v9219_v45 = vpop.f32.mrf.mxu0  ;;  %v8712_v30 = vadd.f32 %v11107_v7, %v16064_v43  ;;  %v8752_v41 = vadd.f32 %v16114_v34, %v8709_v44 }
 0x43d   : > { %9359 = vst.msk [vmem:[%s16131_s22 + $0x48] sm:$0xff] %vm17445_vm9, %v9323_v56  ;;  %v9328_v20 = vadd.f32 %v9228_v60, %v8750_v52  ;;  %v9220_v51 = vadd.f32 %v16120_v38, %v9219_v45  ;;  %v8617_v12 = vpop.f32.mrf.mxu1  ;;  %vm17460_vm9 = vmmov %vm17440_vm0 }
 0x43e   : > { %v11141_v13 = vpop.f32.mrf.mxu0  ;;  %v8710_v36 = vadd.f32 %v8617_v12, %v16067_v2  ;;  %v8755_v15 = vadd.f32 %v16114_v34, %v8712_v30 }
 0x43f   : > { %9364 = vst.msk [vmem:[%s16131_s22 + $0x70] sm:$0xff] %vm17446_vm4, %v9328_v20  ;;  %v9326_v25 = vadd.f32 %v9220_v51, %v8748_v23  ;;  %v9231_v27 = vadd.f32 %v11141_v13, %v16120_v38  ;;  %v11110_v57 = vpop.f32.mrf.mxu1  ;;  %vm17461_vm4 = vmmov %vm17440_vm0 }
 0x440   : > { %v9222_v61 = vpop.f32.mrf.mxu0  ;;  %v8715_v19 = vadd.f32 %v11110_v57, %v16070_v54  ;;  %v8753_v21 = vadd.f32 %v16114_v34, %v8710_v36 }
 0x441   : > { %9362 = vst.msk [vmem:[%s16131_s22 + $0x60] sm:$0xff] %vm17447_vm5, %v9326_v25  ;;  %v9329_v49 = vadd.f32 %v9231_v27, %v8751_v17  ;;  %v9223_v33 = vadd.f32 %v16120_v38, %v9222_v61  ;;  %v8630_v6 = vpop.f32.mrf.mxu1  ;;  %vm17462_vm5 = vmmov %vm17440_vm0 }
 0x442   : > { %v11144_v3 = vpop.f32.mrf.mxu0  ;;  %v8713_v32 = vadd.f32 %v8630_v6, %v16073_v35  ;;  %v8758_v0 = vadd.f32 %v16114_v34, %v8715_v19 }
 0x443   : > { %9365 = vst.msk [vmem:[%s16131_s22 + $0x78] sm:$0xff] %vm17448_vm6, %v9329_v49  ;;  %v9327_v8 = vadd.f32 %v9223_v33, %v8749_v42  ;;  %v9244_v28 = vadd.f32 %v11144_v3, %v16120_v38  ;;  %v11111_v26 = vpop.f32.mrf.mxu1  ;;  %vm17463_vm6 = vmmov %vm17440_vm0 }
 0x444   : > { %v9235_v9 = vpop.f32.mrf.mxu0  ;;  %v8716_v60 = vadd.f32 %v11111_v26, %v16076_v63  ;;  %v8756_v20 = vadd.f32 %v16114_v34, %v8713_v32 }
 0x445   : > { %9363 = vst.msk [vmem:[%s16131_s22 + $0x68] sm:$0xff] %vm17449_vm13, %v9327_v8  ;;  %v9332_v18 = vadd.f32 %v9244_v28, %v8754_v37  ;;  %v9236_v5 = vadd.f32 %v16120_v38, %v9235_v9  ;;  %v8633_v55 = vpop.f32.mrf.mxu1  ;;  %vm17464_vm13 = vmmov %vm17440_vm0 }
 0x446   : > { %v11145_v24 = vpop.f32.mrf.mxu0  ;;  %v8714_v4 = vadd.f32 %v8633_v55, %v16079_v16  ;;  %v8759_v17 = vadd.f32 %v16114_v34, %v8716_v60 }
 0x447   : > { %9368 = vst.msk [vmem:[%s16131_s22 + $0x90] sm:$0xff] %vm17450_vm3, %v9332_v18  ;;  %v9330_v43 = vadd.f32 %v9236_v5, %v8752_v41  ;;  %v9247_v14 = vadd.f32 %v11145_v24, %v16120_v38  ;;  %v11114_v62 = vpop.f32.mrf.mxu1  ;;  %vm17465_vm3 = vmmov %vm17440_vm0 }
 0x448   : > { %v9238_v40 = vpop.f32.mrf.mxu0  ;;  %v8719_v25 = vadd.f32 %v11114_v62, %v16082_v53  ;;  %v8757_v61 = vadd.f32 %v16114_v34, %v8714_v4 }
 0x449   : > { %9366 = vst.msk [vmem:[%s16131_s22 + $0x80] sm:$0xff] %vm17451_vm1, %v9330_v43  ;;  %v9333_v2 = vadd.f32 %v9247_v14, %v8755_v15  ;;  %v9239_v10 = vadd.f32 %v16120_v38, %v9238_v40  ;;  %v8646_v52 = vpop.f32.mrf.mxu1  ;;  %vm17466_vm1 = vmmov %vm17440_vm0 }
 0x44a   : > { %v11148_v56 = vpop.f32.mrf.mxu0  ;;  %v8717_v42 = vadd.f32 %v8646_v52, %v16085_v39  ;;  %v8762_v6 = vadd.f32 %v16114_v34, %v8719_v25 }
 0x44b   : > { %9369 = vst.msk [vmem:[%s16131_s22 + $0x98] sm:$0xff] %vm17452_vm7, %v9333_v2  ;;  %v9331_v54 = vadd.f32 %v9239_v10, %v8753_v21  ;;  %v9260_v7 = vadd.f32 %v11148_v56, %v16120_v38  ;;  %v11115_v45 = vpop.f32.mrf.mxu1  ;;  %vm17467_vm7 = vmmov %vm17440_vm0 }
 0x44c   : > { %v9251_v23 = vpop.f32.mrf.mxu0  ;;  %v8720_v3 = vadd.f32 %v11115_v45, %v16088_v46  ;;  %v8760_v28 = vadd.f32 %v16114_v34, %v8717_v42 }
 0x44d   : > { %9367 = vst.msk [vmem:[%s16131_s22 + $0x88] sm:$0xff] %vm17453_vm12, %v9331_v54  ;;  %v9336_v35 = vadd.f32 %v9260_v7, %v8758_v0  ;;  %v9252_v51 = vadd.f32 %v16120_v38, %v9251_v23  ;;  %v8649_v12 = vpop.f32.mrf.mxu1  ;;  %vm17468_vm12 = vmmov %vm17440_vm0 }
 0x44e   : > { %v11149_v13 = vpop.f32.mrf.mxu0  ;;  %v8718_v26 = vadd.f32 %v8649_v12, %v16091_v59  ;;  %v8763_v36 = vadd.f32 %v16114_v34, %v8720_v3 }
 0x44f   : > { %9372 = vst.msk [vmem:[%s16131_s22 + $0xb0] sm:$0xff] %vm17454_vm15, %v9336_v35  ;;  %v9334_v63 = vadd.f32 %v9252_v51, %v8756_v20  ;;  %v9263_v50 = vadd.f32 %v11149_v13, %v16120_v38  ;;  %v11118_v27 = vpop.f32.mrf.mxu1 }
 0x450   : > { %v9254_v57 = vpop.f32.mrf.mxu0  ;;  %v8723_v5 = vadd.f32 %v11118_v27, %v16094_v58  ;;  %v8761_v43 = vadd.f32 %v16114_v34, %v8718_v26 }
 0x451   : > { %9370 = vst.msk [vmem:[%s16131_s22 + $0xa0] sm:$0xff] %vm17455_vm14, %v9334_v63  ;;  %v9337_v16 = vadd.f32 %v9263_v50, %v8759_v17  ;;  %v9255_v49 = vadd.f32 %v16120_v38, %v9254_v57  ;;  %v8662_v44 = vpop.f32.mrf.mxu1 }
 0x452   : > { %v11152_v33 = vpop.f32.mrf.mxu0  ;;  %v8721_v19 = vadd.f32 %v8662_v44, %v16097_v22  ;;  %v8766_v21 = vadd.f32 %v16114_v34, %v8723_v5 }
 0x453   : > { %9373 = vst.msk [vmem:[%s16131_s22 + $0xb8] sm:$0xff] %vm17440_vm0, %v9337_v16  ;;  %v9335_v53 = vadd.f32 %v9255_v49, %v8757_v61  ;;  %v9276_v37 = vadd.f32 %v11152_v33, %v16120_v38  ;;  %v11119_v8 = vpop.f32.mrf.mxu1 }
 0x454   : > { %v9267_v30 = vpop.f32.mrf.mxu0  ;;  %v8724_v2 = vadd.f32 %v11119_v8, %v16100_v48  ;;  %v8764_v52 = vadd.f32 %v16114_v34, %v8721_v19 }
 0x455   : > { %9371 = vst.msk [vmem:[%s16131_s22 + $0xa8] sm:$0xff] %vm17456_vm11, %v9335_v53  ;;  %v9340_v39 = vadd.f32 %v9276_v37, %v8762_v6  ;;  %v9268_v9 = vadd.f32 %v16120_v38, %v9267_v30  ;;  %v8665_v41 = vpop.f32.mrf.mxu1 }
 0x456   : > { %v11153_v18 = vpop.f32.mrf.mxu0  ;;  %v8722_v56 = vadd.f32 %v8665_v41, %v16102_v47  ;;  %v8767_v7 = vadd.f32 %v16114_v34, %v8724_v2 }
 0x457   : > { %9376 = vst.msk [vmem:[%s16131_s22 + $0xd0] sm:$0xff] %vm17457_vm10, %v9340_v39  ;;  %v9338_v46 = vadd.f32 %v9268_v9, %v8760_v28  ;;  %v9279_v55 = vadd.f32 %v11153_v18, %v16120_v38  ;;  %v11122_v24 = vpop.f32.mrf.mxu1 }
 0x458   : > { %v9270_v15 = vpop.f32.mrf.mxu0  ;;  %v8727_v45 = vadd.f32 %v11122_v24, %v16104_v31  ;;  %v8765_v35 = vadd.f32 %v16114_v34, %v8722_v56 }
 0x459   : > { %9374 = vst.msk [vmem:[%s16131_s22 + $0xc0] sm:$0xff] %vm17458_vm8, %v9338_v46  ;;  %v9341_v59 = vadd.f32 %v9279_v55, %v8763_v36  ;;  %v9271_v14 = vadd.f32 %v16120_v38, %v9270_v15  ;;  %v8678_v40 = vpop.f32.mrf.mxu1 }
 0x45a   : > { %v11156_v62 = vpop.f32.mrf.mxu0  ;;  %v8725_v4 = vadd.f32 %v8678_v40, %v16106_v1  ;;  %v8770_v17 = vadd.f32 %v16114_v34, %v8727_v45 }
 0x45b   : > { %9377 = vst.msk [vmem:[%s16131_s22 + $0xd8] sm:$0xff] %vm17459_vm2, %v9341_v59  ;;  %v9339_v58 = vadd.f32 %v9271_v14, %v8761_v43  ;;  %v9292_v32 = vadd.f32 %v11156_v62, %v16120_v38  ;;  %v11123_v60 = vpop.f32.mrf.mxu1 }
 0x45c   : > { %v9283_v10 = vpop.f32.mrf.mxu0  ;;  %v8728_v63 = vadd.f32 %v11123_v60, %v16108_v29  ;;  %v8768_v27 = vadd.f32 %v16114_v34, %v8725_v4 }
 0x45d   : > { %9375 = vst.msk [vmem:[%s16131_s22 + $0xc8] sm:$0xff] %vm17460_vm9, %v9339_v58  ;;  %v9344_v22 = vadd.f32 %v9292_v32, %v8766_v21  ;;  %v9284_v0 = vadd.f32 %v16120_v38, %v9283_v10  ;;  %v8681_v13 = vpop.f32.mrf.mxu1 }
 0x45e   : > { %v11157_v54 = vpop.f32.mrf.mxu0  ;;  %v8726_v57 = vadd.f32 %v8681_v13, %v16122_v11  ;;  %v8771_v42 = vadd.f32 %v16114_v34, %v8728_v63 }
 0x45f   : > { %9380 = vst.msk [vmem:[%s16131_s22 + $0xf0] sm:$0xff] %vm17461_vm4, %v9344_v22  ;;  %v9342_v48 = vadd.f32 %v9284_v0, %v8764_v52  ;;  %v9295_v23 = vadd.f32 %v11157_v54, %v16120_v38 }
 0x460   : > { %v9286_v20 = vpop.f32.mrf.mxu0  ;;  %v8769_v33 = vadd.f32 %v16114_v34, %v8726_v57 }
 0x461   : > { %9378 = vst.msk [vmem:[%s16131_s22 + $0xe0] sm:$0xff] %vm17462_vm5, %v9342_v48  ;;  %v9345_v47 = vadd.f32 %v9295_v23, %v8767_v7  ;;  %v9287_v51 = vadd.f32 %v16120_v38, %v9286_v20 }
 0x462   : > { %v11160_v12 = vpop.f32.mrf.mxu0 }
 0x463   : > { %9381 = vst.msk [vmem:[%s16131_s22 + $0xf8] sm:$0xff] %vm17463_vm6, %v9345_v47  ;;  %v9343_v31 = vadd.f32 %v9287_v51, %v8765_v35  ;;  %v9308_v25 = vadd.f32 %v11160_v12, %v16120_v38 }
 0x464   : > { %v9299_v50 = vpop.f32.mrf.mxu0 }
 0x465   : > { %9379 = vst.msk [vmem:[%s16131_s22 + $0xe8] sm:$0xff] %vm17464_vm13, %v9343_v31  ;;  %v9348_v1 = vadd.f32 %v9308_v25, %v8770_v17  ;;  %v9300_v61 = vadd.f32 %v16120_v38, %v9299_v50 }
 0x466   : > { %v11161_v16 = vpop.f32.mrf.mxu0 }
 0x467   : > { %9384 = vst.msk [vmem:[%s16131_s22 + $0x110] sm:$0xff] %vm17465_vm3, %v9348_v1  ;;  %v9346_v29 = vadd.f32 %v9300_v61, %v8768_v27  ;;  %v9311_v49 = vadd.f32 %v11161_v16, %v16120_v38 }
 0x468   : > { %v9302_v44 = vpop.f32.mrf.mxu0 }
 0x469   : > { %9382 = vst.msk [vmem:[%s16131_s22 + $0x100] sm:$0xff] %vm17466_vm1, %v9346_v29  ;;  %v9349_v6 = vadd.f32 %v9311_v49, %v8771_v42  ;;  %v9303_v53 = vadd.f32 %v16120_v38, %v9302_v44 }
 0x46b   : > { %9385 = vst.msk [vmem:[%s16131_s22 + $0x118] sm:$0xff] %vm17467_vm7, %v9349_v6  ;;  %v9347_v11 = vadd.f32 %v9303_v53, %v8769_v33 }
 0x46d   : > { %9383 = vst.msk [vmem:[%s16131_s22 + $0x108] sm:$0xff] %vm17468_vm12, %v9347_v11 }
 0x46e PF: > { %s17_s24 = sadd.s32 1, %s11453_s24  }
 0x46f   : > { %p14_p4 = scmp.ge.s32.totalorder %s17_s24, 4  }
 0x471   :  { %16 = sbr.rel (!%p14_p4) target bundleno = 1 (0x1), region = 94 }

</bundles_post_ra>
